<compile_context>
chip_gen: v7x
topology: tpu7x:2x2x1
jax: 0.10.0
libtpu: 0.0.40
codegen_flags: <defaults>
</compile_context>

<pallas_src>
import jax
import jax.numpy as jnp
from jax.experimental import pallas as pl
from jax.experimental.pallas import tpu as pltpu


Z_DIM = 1024

# Layer topology (in_features, out_features), in call order.
def _layer_dims(meta_dim):
    return [
        (meta_dim, 256),   # l0
        (256, 256),        # rb1a
        (256, 256),        # rb1b
        (256, 512),        # l1
        (512, 512),        # rb2a
        (512, 512),        # rb2b
        (512, 1024),       # l2
        (1024, 1024),      # rb3a
        (1024, 1024),      # rb3b
    ]

_OUT_DIMS = (256, 256, 256, 512, 512, 512, 1024, 1024, 1024)
_BIAS_OFFS = tuple(int(sum(_OUT_DIMS[:i])) for i in range(len(_OUT_DIMS)))
_BIAS_TOTAL = int(sum(_OUT_DIMS))   # 5376 = 42 * 128 (lane-dense, 128-aligned offsets)


def _round_up(x, m):
    return ((x + m - 1) // m) * m


# ----------------------------------------------------------------------------
# Fused Pallas kernel: the whole Meta_Embadding MLP in one body.
# ----------------------------------------------------------------------------
def _meta_embedding_kernel(x_ref, bias_ref, *refs):
    """refs = (w0, ..., w8, o_ref).

    w_i is bf16 (in, out) and VMEM-resident; bias_ref is f32 (1, 5376).
    """
    o_ref = refs[-1]
    w = refs[:-1]

    def dense(x, idx, pre_relu=False):
        # x: f32 activations; bf16 only at the MXU inputs, f32 accumulation.
        if pre_relu:
            x = jnp.maximum(x, 0.0)
        off = _BIAS_OFFS[idx]
        b = bias_ref[:, off:off + _OUT_DIMS[idx]]            # static, 128-aligned
        y = jnp.dot(x.astype(jnp.bfloat16), w[idx][...],
                    preferred_element_type=jnp.float32)
        return y + b

    h = dense(x_ref[...].astype(jnp.float32), 0)                 # Linear(meta,256)
    h = h + dense(dense(h, 1, pre_relu=True), 2, pre_relu=True)  # ResBlock(256)
    h = dense(h, 3)                                              # Linear(256,512)
    h = h + dense(dense(h, 4, pre_relu=True), 5, pre_relu=True)  # ResBlock(512)
    h = dense(h, 6)                                              # Linear(512,1024)
    z = h + dense(dense(h, 7, pre_relu=True), 8, pre_relu=True)  # ResBlock(1024)
    o_ref[...] = z.astype(o_ref.dtype)


def meta_embedding_forward(params, meta_v, *, block_b=256):
    """Pallas forward:  z = Meta_Embadding(meta_v),  z: (B, 1024).

    block_b: batch rows per grid step.  256 saturates the 2x256 bf16 MXU on
    v6e/v7x; use 128 on v5e (4x128 MXU).
    """
    weights, bias_packed = params
    B, meta_dim = meta_v.shape

    # Batch tiling: sublane-aligned tile, grid over batch tiles.
    tb = min(block_b, _round_up(B, 8))
    bp = _round_up(B, tb)
    x = meta_v if bp == B else jnp.pad(meta_v, ((0, bp - B), (0, 0)))
    grid = (bp // tb,)

    in_specs = [
        pl.BlockSpec((tb, meta_dim), lambda i: (i, 0)),        # activations: tiled
        pl.BlockSpec((1, _BIAS_TOTAL), lambda i: (0, 0)),      # packed biases
    ]
    flops = 0
    bytes_accessed = x.size * 4 + bp * Z_DIM * 4 + _BIAS_TOTAL * 4
    for wt in weights:
        in_f, out_f = wt.shape
        # Constant index_map -> each weight block is DMA'd once and stays
        # VMEM-resident across all batch tiles (no re-fetch per tile).
        in_specs.append(pl.BlockSpec((in_f, out_f), lambda i: (0, 0)))
        flops += 2 * bp * in_f * out_f
        bytes_accessed += in_f * out_f * 2                     # bf16 weights

    out = pl.pallas_call(
        _meta_embedding_kernel,
        out_shape=jax.ShapeDtypeStruct((bp, Z_DIM), jnp.float32),
        grid=grid,
        in_specs=in_specs,
        out_specs=pl.BlockSpec((tb, Z_DIM), lambda i: (i, 0)),
        compiler_params=pltpu.CompilerParams(
            dimension_semantics=("parallel",),
            # bf16 weights (~6.8 MiB, ~13.6 MiB double-buffered) + activation
            # tiles fit easily; safe on v7x's 64 MiB-per-TC VMEM.
            vmem_limit_bytes=32 * 1024 * 1024),
        cost_estimate=pl.CostEstimate(
            flops=flops, transcendentals=0, bytes_accessed=bytes_accessed),
    )(x, bias_packed, *weights)
    return out[:B] if bp != B else out


# ----------------------------------------------------------------------------
# Parameter construction (mirrors the PyTorch init scheme, deterministic).
# Weights are stored PRE-TRANSPOSED as (in, out) in bf16; biases are packed
# into one f32 (1, 5376) array.
# ----------------------------------------------------------------------------
def init_params(key, meta_dim):
    dims = _layer_dims(meta_dim)
    keys = jax.random.split(key, 2 * len(dims))
    weights, biases = [], []
    for li, (in_f, out_f) in enumerate(dims):
        # Meta_Embadding.init_layers: weight ~ U(-1/sqrt(2*fan_in), +...)
        wb = 1.0 / jnp.sqrt(2.0 * in_f)
        # bias keeps PyTorch's default nn.Linear init: U(-1/sqrt(fan_in), +...)
        bb = 1.0 / jnp.sqrt(1.0 * in_f)
        w = jax.random.uniform(keys[2 * li], (out_f, in_f), jnp.float32, -wb, wb)
        b = jax.random.uniform(keys[2 * li + 1], (out_f,), jnp.float32, -bb, bb)
        weights.append(jnp.transpose(w).astype(jnp.bfloat16))
        biases.append(b)
    bias_packed = jnp.concatenate(biases).reshape(1, _BIAS_TOTAL)
    return tuple(weights), bias_packed


# ----------------------------------------------------------------------------
# Pure-JAX reference (for validation).  Uses the same bf16 weights upcast to
# f32, so the only numeric difference vs the kernel is the bf16 activation
# cast at the dot inputs and MXU accumulation order.
# ----------------------------------------------------------------------------
def reference_forward(params, meta_v):
    weights, bias_packed = params

    def lin(x, idx, relu_in=False):
        if relu_in:
            x = jnp.maximum(x, 0.0)
        w = weights[idx].astype(jnp.float32)
        off = _BIAS_OFFS[idx]
        b = bias_packed[:, off:off + _OUT_DIMS[idx]]
        return x @ w + b

    h = lin(meta_v, 0)
    h = h + lin(lin(h, 1, relu_in=True), 2, relu_in=True)
    h = lin(h, 3)
    h = h + lin(lin(h, 4, relu_in=True), 5, relu_in=True)
    h = lin(h, 6)
    z = h + lin(lin(h, 7, relu_in=True), 8, relu_in=True)
    return z.reshape(-1, Z_DIM)


# ----------------------------------------------------------------------------
if __name__ == "__main__":
    B = 2
    META_DIM = 8          # z_dim is architecturally fixed to 1024 by the MLP

    key = jax.random.PRNGKey(0)
    k_par, k_meta = jax.random.split(key)

    params = init_params(k_par, META_DIM)
    meta_v = jax.random.normal(k_meta, (B, META_DIM), jnp.float32)

    out = jax.block_until_ready(meta_embedding_forward(params, meta_v))
    ref = jax.block_until_ready(reference_forward(params, meta_v))

    assert out.shape == (B, Z_DIM), out.shape
    # bf16 activation casts at the dot inputs -> loosened tolerance vs f32 ref.
    err = float(jnp.max(jnp.abs(out - ref)))
    assert jnp.allclose(out, ref, atol=3e-2, rtol=3e-2), err
    print("KERNEL_OK")
</pallas_src>

<mosaic_0001>
module attributes {stable_mosaic.version = 11 : i64} {
  func.func @_meta_embedding_kernel(%arg0: i32, %arg1: memref<8x8xf32, #tpu.memory_space<vmem>>, %arg2: memref<1x5376xf32, #tpu.memory_space<vmem>>, %arg3: memref<8x256xbf16, #tpu.memory_space<vmem>>, %arg4: memref<256x256xbf16, #tpu.memory_space<vmem>>, %arg5: memref<256x256xbf16, #tpu.memory_space<vmem>>, %arg6: memref<256x512xbf16, #tpu.memory_space<vmem>>, %arg7: memref<512x512xbf16, #tpu.memory_space<vmem>>, %arg8: memref<512x512xbf16, #tpu.memory_space<vmem>>, %arg9: memref<512x1024xbf16, #tpu.memory_space<vmem>>, %arg10: memref<1024x1024xbf16, #tpu.memory_space<vmem>>, %arg11: memref<1024x1024xbf16, #tpu.memory_space<vmem>>, %arg12: memref<8x1024xf32, #tpu.memory_space<vmem>>) attributes {dimension_semantics = [#tpu.dimension_semantics<parallel>], iteration_bounds = array<i64: 1>, scalar_prefetch = 0 : i64, scratch_operands = 0 : i64, tpu.core_type = #tpu.core_type<tc>, window_params = [{transform_indices = @transform_0, window_bounds = array<i64: 8, 8>}, {pipeline_mode = #tpu.pipeline_mode<synchronous>, transform_indices = @transform_1, window_bounds = array<i64: 1, 5376>}, {pipeline_mode = #tpu.pipeline_mode<synchronous>, transform_indices = @transform_2, window_bounds = array<i64: 8, 256>}, {pipeline_mode = #tpu.pipeline_mode<synchronous>, transform_indices = @transform_3, window_bounds = array<i64: 256, 256>}, {pipeline_mode = #tpu.pipeline_mode<synchronous>, transform_indices = @transform_4, window_bounds = array<i64: 256, 256>}, {pipeline_mode = #tpu.pipeline_mode<synchronous>, transform_indices = @transform_5, window_bounds = array<i64: 256, 512>}, {pipeline_mode = #tpu.pipeline_mode<synchronous>, transform_indices = @transform_6, window_bounds = array<i64: 512, 512>}, {pipeline_mode = #tpu.pipeline_mode<synchronous>, transform_indices = @transform_7, window_bounds = array<i64: 512, 512>}, {pipeline_mode = #tpu.pipeline_mode<synchronous>, transform_indices = @transform_8, window_bounds = array<i64: 512, 1024>}, {pipeline_mode = #tpu.pipeline_mode<synchronous>, transform_indices = @transform_9, window_bounds = array<i64: 1024, 1024>}, {pipeline_mode = #tpu.pipeline_mode<synchronous>, transform_indices = @transform_10, window_bounds = array<i64: 1024, 1024>}, {transform_indices = @transform_11, window_bounds = array<i64: 8, 1024>}]} {
    %c0 = arith.constant 0 : index
    %c0_0 = arith.constant 0 : index
    %0 = vector.load %arg1[%c0, %c0_0] : memref<8x8xf32, #tpu.memory_space<vmem>>, vector<8x8xf32>
    %c0_1 = arith.constant 0 : index
    %c0_2 = arith.constant 0 : index
    %1 = vector.load %arg2[%c0_1, %c0_2] : memref<1x5376xf32, #tpu.memory_space<vmem>>, vector<1x256xf32>
    %2 = arith.truncf %0 : vector<8x8xf32> to vector<8x8xbf16>
    %c0_3 = arith.constant 0 : index
    %c0_4 = arith.constant 0 : index
    %3 = vector.load %arg3[%c0_3, %c0_4] : memref<8x256xbf16, #tpu.memory_space<vmem>>, vector<8x256xbf16>
    %cst = arith.constant dense<0.000000e+00> : vector<8x256xf32>
    %4 = tpu.matmul %2, %3, %cst {dimension_numbers = #tpu.dot_dimension_numbers<[1], [0], [0], [1], [0, 0, 1, 1], [], []>} : vector<8x8xbf16>, vector<8x256xbf16>, vector<8x256xf32> -> vector<8x256xf32>
    %5 = vector.broadcast %1 : vector<1x256xf32> to vector<8x256xf32>
    %6 = arith.addf %4, %5 : vector<8x256xf32>
    %cst_5 = arith.constant 0.000000e+00 : f32
    %7 = vector.broadcast %cst_5 : f32 to vector<8x256xf32>
    %8 = arith.maximumf %6, %7 : vector<8x256xf32>
    %c0_6 = arith.constant 0 : index
    %c256 = arith.constant 256 : index
    %9 = vector.load %arg2[%c0_6, %c256] : memref<1x5376xf32, #tpu.memory_space<vmem>>, vector<1x256xf32>
    %10 = arith.truncf %8 : vector<8x256xf32> to vector<8x256xbf16>
    %c0_7 = arith.constant 0 : index
    %c0_8 = arith.constant 0 : index
    %11 = vector.load %arg4[%c0_7, %c0_8] : memref<256x256xbf16, #tpu.memory_space<vmem>>, vector<256x256xbf16>
    %cst_9 = arith.constant dense<0.000000e+00> : vector<8x256xf32>
    %12 = tpu.matmul %10, %11, %cst_9 {dimension_numbers = #tpu.dot_dimension_numbers<[1], [0], [0], [1], [0, 0, 1, 1], [], []>} : vector<8x256xbf16>, vector<256x256xbf16>, vector<8x256xf32> -> vector<8x256xf32>
    %13 = vector.broadcast %9 : vector<1x256xf32> to vector<8x256xf32>
    %14 = arith.addf %12, %13 : vector<8x256xf32>
    %cst_10 = arith.constant 0.000000e+00 : f32
    %15 = vector.broadcast %cst_10 : f32 to vector<8x256xf32>
    %16 = arith.maximumf %14, %15 : vector<8x256xf32>
    %c0_11 = arith.constant 0 : index
    %c512 = arith.constant 512 : index
    %17 = vector.load %arg2[%c0_11, %c512] : memref<1x5376xf32, #tpu.memory_space<vmem>>, vector<1x256xf32>
    %18 = arith.truncf %16 : vector<8x256xf32> to vector<8x256xbf16>
    %c0_12 = arith.constant 0 : index
    %c0_13 = arith.constant 0 : index
    %19 = vector.load %arg5[%c0_12, %c0_13] : memref<256x256xbf16, #tpu.memory_space<vmem>>, vector<256x256xbf16>
    %cst_14 = arith.constant dense<0.000000e+00> : vector<8x256xf32>
    %20 = tpu.matmul %18, %19, %cst_14 {dimension_numbers = #tpu.dot_dimension_numbers<[1], [0], [0], [1], [0, 0, 1, 1], [], []>} : vector<8x256xbf16>, vector<256x256xbf16>, vector<8x256xf32> -> vector<8x256xf32>
    %21 = vector.broadcast %17 : vector<1x256xf32> to vector<8x256xf32>
    %22 = arith.addf %20, %21 : vector<8x256xf32>
    %23 = arith.addf %6, %22 : vector<8x256xf32>
    %c0_15 = arith.constant 0 : index
    %c768 = arith.constant 768 : index
    %24 = vector.load %arg2[%c0_15, %c768] : memref<1x5376xf32, #tpu.memory_space<vmem>>, vector<1x512xf32>
    %25 = arith.truncf %23 : vector<8x256xf32> to vector<8x256xbf16>
    %c0_16 = arith.constant 0 : index
    %c0_17 = arith.constant 0 : index
    %26 = vector.load %arg6[%c0_16, %c0_17] : memref<256x512xbf16, #tpu.memory_space<vmem>>, vector<256x512xbf16>
    %cst_18 = arith.constant dense<0.000000e+00> : vector<8x512xf32>
    %27 = tpu.matmul %25, %26, %cst_18 {dimension_numbers = #tpu.dot_dimension_numbers<[1], [0], [0], [1], [0, 0, 1, 1], [], []>} : vector<8x256xbf16>, vector<256x512xbf16>, vector<8x512xf32> -> vector<8x512xf32>
    %28 = vector.broadcast %24 : vector<1x512xf32> to vector<8x512xf32>
    %29 = arith.addf %27, %28 : vector<8x512xf32>
    %cst_19 = arith.constant 0.000000e+00 : f32
    %30 = vector.broadcast %cst_19 : f32 to vector<8x512xf32>
    %31 = arith.maximumf %29, %30 : vector<8x512xf32>
    %c0_20 = arith.constant 0 : index
    %c1280 = arith.constant 1280 : index
    %32 = vector.load %arg2[%c0_20, %c1280] : memref<1x5376xf32, #tpu.memory_space<vmem>>, vector<1x512xf32>
    %33 = arith.truncf %31 : vector<8x512xf32> to vector<8x512xbf16>
    %c0_21 = arith.constant 0 : index
    %c0_22 = arith.constant 0 : index
    %34 = vector.load %arg7[%c0_21, %c0_22] : memref<512x512xbf16, #tpu.memory_space<vmem>>, vector<512x512xbf16>
    %cst_23 = arith.constant dense<0.000000e+00> : vector<8x512xf32>
    %35 = tpu.matmul %33, %34, %cst_23 {dimension_numbers = #tpu.dot_dimension_numbers<[1], [0], [0], [1], [0, 0, 1, 1], [], []>} : vector<8x512xbf16>, vector<512x512xbf16>, vector<8x512xf32> -> vector<8x512xf32>
    %36 = vector.broadcast %32 : vector<1x512xf32> to vector<8x512xf32>
    %37 = arith.addf %35, %36 : vector<8x512xf32>
    %cst_24 = arith.constant 0.000000e+00 : f32
    %38 = vector.broadcast %cst_24 : f32 to vector<8x512xf32>
    %39 = arith.maximumf %37, %38 : vector<8x512xf32>
    %c0_25 = arith.constant 0 : index
    %c1792 = arith.constant 1792 : index
    %40 = vector.load %arg2[%c0_25, %c1792] : memref<1x5376xf32, #tpu.memory_space<vmem>>, vector<1x512xf32>
    %41 = arith.truncf %39 : vector<8x512xf32> to vector<8x512xbf16>
    %c0_26 = arith.constant 0 : index
    %c0_27 = arith.constant 0 : index
    %42 = vector.load %arg8[%c0_26, %c0_27] : memref<512x512xbf16, #tpu.memory_space<vmem>>, vector<512x512xbf16>
    %cst_28 = arith.constant dense<0.000000e+00> : vector<8x512xf32>
    %43 = tpu.matmul %41, %42, %cst_28 {dimension_numbers = #tpu.dot_dimension_numbers<[1], [0], [0], [1], [0, 0, 1, 1], [], []>} : vector<8x512xbf16>, vector<512x512xbf16>, vector<8x512xf32> -> vector<8x512xf32>
    %44 = vector.broadcast %40 : vector<1x512xf32> to vector<8x512xf32>
    %45 = arith.addf %43, %44 : vector<8x512xf32>
    %46 = arith.addf %29, %45 : vector<8x512xf32>
    %c0_29 = arith.constant 0 : index
    %c2304 = arith.constant 2304 : index
    %47 = vector.load %arg2[%c0_29, %c2304] : memref<1x5376xf32, #tpu.memory_space<vmem>>, vector<1x1024xf32>
    %48 = arith.truncf %46 : vector<8x512xf32> to vector<8x512xbf16>
    %c0_30 = arith.constant 0 : index
    %c0_31 = arith.constant 0 : index
    %49 = vector.load %arg9[%c0_30, %c0_31] : memref<512x1024xbf16, #tpu.memory_space<vmem>>, vector<512x1024xbf16>
    %cst_32 = arith.constant dense<0.000000e+00> : vector<8x1024xf32>
    %50 = tpu.matmul %48, %49, %cst_32 {dimension_numbers = #tpu.dot_dimension_numbers<[1], [0], [0], [1], [0, 0, 1, 1], [], []>} : vector<8x512xbf16>, vector<512x1024xbf16>, vector<8x1024xf32> -> vector<8x1024xf32>
    %51 = vector.broadcast %47 : vector<1x1024xf32> to vector<8x1024xf32>
    %52 = arith.addf %50, %51 : vector<8x1024xf32>
    %cst_33 = arith.constant 0.000000e+00 : f32
    %53 = vector.broadcast %cst_33 : f32 to vector<8x1024xf32>
    %54 = arith.maximumf %52, %53 : vector<8x1024xf32>
    %c0_34 = arith.constant 0 : index
    %c3328 = arith.constant 3328 : index
    %55 = vector.load %arg2[%c0_34, %c3328] : memref<1x5376xf32, #tpu.memory_space<vmem>>, vector<1x1024xf32>
    %56 = arith.truncf %54 : vector<8x1024xf32> to vector<8x1024xbf16>
    %c0_35 = arith.constant 0 : index
    %c0_36 = arith.constant 0 : index
    %57 = vector.load %arg10[%c0_35, %c0_36] : memref<1024x1024xbf16, #tpu.memory_space<vmem>>, vector<1024x1024xbf16>
    %cst_37 = arith.constant dense<0.000000e+00> : vector<8x1024xf32>
    %58 = tpu.matmul %56, %57, %cst_37 {dimension_numbers = #tpu.dot_dimension_numbers<[1], [0], [0], [1], [0, 0, 1, 1], [], []>} : vector<8x1024xbf16>, vector<1024x1024xbf16>, vector<8x1024xf32> -> vector<8x1024xf32>
    %59 = vector.broadcast %55 : vector<1x1024xf32> to vector<8x1024xf32>
    %60 = arith.addf %58, %59 : vector<8x1024xf32>
    %cst_38 = arith.constant 0.000000e+00 : f32
    %61 = vector.broadcast %cst_38 : f32 to vector<8x1024xf32>
    %62 = arith.maximumf %60, %61 : vector<8x1024xf32>
    %c0_39 = arith.constant 0 : index
    %c4352 = arith.constant 4352 : index
    %63 = vector.load %arg2[%c0_39, %c4352] : memref<1x5376xf32, #tpu.memory_space<vmem>>, vector<1x1024xf32>
    %64 = arith.truncf %62 : vector<8x1024xf32> to vector<8x1024xbf16>
    %c0_40 = arith.constant 0 : index
    %c0_41 = arith.constant 0 : index
    %65 = vector.load %arg11[%c0_40, %c0_41] : memref<1024x1024xbf16, #tpu.memory_space<vmem>>, vector<1024x1024xbf16>
    %cst_42 = arith.constant dense<0.000000e+00> : vector<8x1024xf32>
    %66 = tpu.matmul %64, %65, %cst_42 {dimension_numbers = #tpu.dot_dimension_numbers<[1], [0], [0], [1], [0, 0, 1, 1], [], []>} : vector<8x1024xbf16>, vector<1024x1024xbf16>, vector<8x1024xf32> -> vector<8x1024xf32>
    %67 = vector.broadcast %63 : vector<1x1024xf32> to vector<8x1024xf32>
    %68 = arith.addf %66, %67 : vector<8x1024xf32>
    %69 = arith.addf %52, %68 : vector<8x1024xf32>
    %c0_43 = arith.constant 0 : index
    %c0_44 = arith.constant 0 : index
    %70 = vector.load %arg12[%c0_43, %c0_44] : memref<8x1024xf32, #tpu.memory_space<vmem>>, vector<8x1024xf32>
    tpu.vector_store %arg12[%c0_43, %c0_44], %69 {strides = array<i32>} : memref<8x1024xf32, #tpu.memory_space<vmem>>, vector<8x1024xf32>,
    return
  }
  func.func @transform_0(%arg0: i32) -> (i32, i32) {
    %c0_i32 = arith.constant 0 : i32
    %c0_i32_0 = arith.constant 0 : i32
    return %arg0, %c0_i32 : i32, i32
  }
  func.func @transform_1(%arg0: i32) -> (i32, i32) {
    %c0_i32 = arith.constant 0 : i32
    %c0_i32_0 = arith.constant 0 : i32
    %c0_i32_1 = arith.constant 0 : i32
    return %c0_i32, %c0_i32_0 : i32, i32
  }
  func.func @transform_2(%arg0: i32) -> (i32, i32) {
    %c0_i32 = arith.constant 0 : i32
    %c0_i32_0 = arith.constant 0 : i32
    %c0_i32_1 = arith.constant 0 : i32
    return %c0_i32, %c0_i32_0 : i32, i32
  }
  func.func @transform_3(%arg0: i32) -> (i32, i32) {
    %c0_i32 = arith.constant 0 : i32
    %c0_i32_0 = arith.constant 0 : i32
    %c0_i32_1 = arith.constant 0 : i32
    return %c0_i32, %c0_i32_0 : i32, i32
  }
  func.func @transform_4(%arg0: i32) -> (i32, i32) {
    %c0_i32 = arith.constant 0 : i32
    %c0_i32_0 = arith.constant 0 : i32
    %c0_i32_1 = arith.constant 0 : i32
    return %c0_i32, %c0_i32_0 : i32, i32
  }
  func.func @transform_5(%arg0: i32) -> (i32, i32) {
    %c0_i32 = arith.constant 0 : i32
    %c0_i32_0 = arith.constant 0 : i32
    %c0_i32_1 = arith.constant 0 : i32
    return %c0_i32, %c0_i32_0 : i32, i32
  }
  func.func @transform_6(%arg0: i32) -> (i32, i32) {
    %c0_i32 = arith.constant 0 : i32
    %c0_i32_0 = arith.constant 0 : i32
    %c0_i32_1 = arith.constant 0 : i32
    return %c0_i32, %c0_i32_0 : i32, i32
  }
  func.func @transform_7(%arg0: i32) -> (i32, i32) {
    %c0_i32 = arith.constant 0 : i32
    %c0_i32_0 = arith.constant 0 : i32
    %c0_i32_1 = arith.constant 0 : i32
    return %c0_i32, %c0_i32_0 : i32, i32
  }
  func.func @transform_8(%arg0: i32) -> (i32, i32) {
    %c0_i32 = arith.constant 0 : i32
    %c0_i32_0 = arith.constant 0 : i32
    %c0_i32_1 = arith.constant 0 : i32
    return %c0_i32, %c0_i32_0 : i32, i32
  }
  func.func @transform_9(%arg0: i32) -> (i32, i32) {
    %c0_i32 = arith.constant 0 : i32
    %c0_i32_0 = arith.constant 0 : i32
    %c0_i32_1 = arith.constant 0 : i32
    return %c0_i32, %c0_i32_0 : i32, i32
  }
  func.func @transform_10(%arg0: i32) -> (i32, i32) {
    %c0_i32 = arith.constant 0 : i32
    %c0_i32_0 = arith.constant 0 : i32
    %c0_i32_1 = arith.constant 0 : i32
    return %c0_i32, %c0_i32_0 : i32, i32
  }
  func.func @transform_11(%arg0: i32) -> (i32, i32) {
    %c0_i32 = arith.constant 0 : i32
    %c0_i32_0 = arith.constant 0 : i32
    return %arg0, %c0_i32 : i32, i32
  }
}

</mosaic_0001>

<bundles_post_ra>
// kernel: tpu_custom_call.1
= control target key start
LH: loop header
LB: loop body
LE: loop exit
PB: predicated region body
PF: predicated region fallthrough
CT: control target
= control target key end

     0   :  { %16 = vsyncpa [#allocation3], 0  ;;  %s15964_s0 = inlined_call_operand.hbm [shape: f32[8,8], index: 0, kind: input, shape index: {}]   ;;  %s15965_s1 = inlined_call_operand.hbm [shape: f32[1,5376], index: 1, kind: input, shape index: {}]   ;;  %s15966_s2 = inlined_call_operand.hbm [shape: bf16[8,256], index: 2, kind: input, shape index: {}]   ;;  %s15967_s3 = inlined_call_operand.hbm [shape: bf16[256,256], index: 3, kind: input, shape index: {}]   ;;  %s15968_s4 = inlined_call_operand.hbm [shape: bf16[256,256], index: 4, kind: input, shape index: {}]   ;;  %s15969_s5 = inlined_call_operand.hbm [shape: bf16[256,512], index: 5, kind: input, shape index: {}]   ;;  %s15970_s6 = inlined_call_operand.hbm [shape: bf16[512,512], index: 6, kind: input, shape index: {}]   ;;  %s15971_s7 = inlined_call_operand.hbm [shape: bf16[512,512], index: 7, kind: input, shape index: {}]   ;;  %s15972_s8 = inlined_call_operand.hbm [shape: bf16[512,1024], index: 8, kind: input, shape index: {}]   ;;  %s15973_s9 = inlined_call_operand.hbm [shape: bf16[1024,1024], index: 9, kind: input, shape index: {}]   ;;  %s15974_s10 = inlined_call_operand.hbm [shape: bf16[1024,1024], index: 10, kind: input, shape index: {}]   ;;  %s15975_s11 = inlined_call_operand.hbm [shape: f32[8,1024], index: 11, kind: output, shape index: {}]  }
   0x1   :  { %17 = vsyncpa [#allocation6], 0 }
   0x2   :  { %18 = vsyncpa [#allocation9], 0 }
   0x3   :  { %19 = vsyncpa [#allocation12], 0 }
   0x4   :  { %20 = vsyncpa [#allocation15], 0 }
   0x5   :  { %21 = vsyncpa [#allocation18], 0 }
   0x6   :  { %22 = vsyncpa [#allocation4], 0  ;;  %s15328_s17 = smov [#allocation5]   ;;  %s15329_s19 = smov [#allocation8]  }
   0x7   :  { %s39_s18 = sshll.u32 %s15328_s17, 4  ;;  %s58_s20 = sshll.u32 %s15329_s19, 4  ;;  %s40_s18 = int_to_ptr.vmem [resolvable:$true] %s39_s18  ;;  %s15407_s20 = int_to_ptr.vmem [resolvable:$true] %s58_s20 }
   0x8   :  { %s15050_s23 = scalar_lea.hbm %s15965_s1, 672 }
   0x9   :  { %p15051_p0 = scmp.ne.s32.totalorder %s15965_s1, %s15050_s23  ;;  %p15054_p1 = scmp.lt.u32.totalorder %s15050_s23, %s15965_s1 }
   0xb   :  { %p15056_p2 = pnand %p15054_p1, %p15051_p0 }
   0xd   :  { %15059 = shalt.err (!%p15056_p2)
}
   0xe   :  { %s15060_s28 = scalar_lea.vmem %s40_s18, 672  ;;  %p15065_p4 = scmp.lt.s32.totalorder %s40_s18, %s40_s18 }
   0xf   :  { %p15061_p3 = scmp.ne.s32.totalorder %s40_s18, %s15060_s28  ;;  %p15066_p5 = scmp.lt.s32.totalorder %s15060_s28, %s15060_s28 }
  0x11   :  { %p15067_p6 = por %p15066_p5, %p15065_p4 }
  0x13   :  { %p15068_p7 = pnand %p15067_p6, %p15061_p3 }
  0x15   :  { %15071 = shalt.err (!%p15068_p7)
}
  0x16   :  { %42 = dma.hbm_to_vmem [thread:$0]  %s15965_s1, 672, %s40_s18, [#allocation6]  }
  0x17   :  { %s15072_s14 = scalar_lea.hbm %s15967_s3, 4096 }
  0x18   :  { %p15073_p8 = scmp.ne.s32.totalorder %s15967_s3, %s15072_s14  ;;  %p15076_p9 = scmp.lt.u32.totalorder %s15072_s14, %s15967_s3 }
  0x1a   :  { %p15078_p10 = pnand %p15076_p9, %p15073_p8 }
  0x1c   :  { %15081 = shalt.err (!%p15078_p10)
}
  0x1d   :  { %s15082_s21 = scalar_lea.vmem %s15407_s20, 4096  ;;  %p15087_p12 = scmp.lt.s32.totalorder %s15407_s20, %s15407_s20 }
  0x1e   :  { %p15083_p11 = scmp.ne.s32.totalorder %s15407_s20, %s15082_s21  ;;  %p15088_p13 = scmp.lt.s32.totalorder %s15082_s21, %s15082_s21 }
  0x20   :  { %p15089_p0 = por %p15088_p13, %p15087_p12 }
  0x22   :  { %p15090_p1 = pnand %p15089_p0, %p15083_p11 }
  0x24   :  { %15093 = shalt.err (!%p15090_p1)
}
  0x25   :  { %s15330_s1 = smov 128   ;;  %s15331_s18 = smov 8  }
  0x26   :  { %64 = dma.hbm_to_vmem [thread:$0]  %s15967_s3, 4096, %s15407_s20, [#allocation9], %s15330_s1, %s15330_s1, %s15331_s18  }
  0x27   :  { %s15332_s24 = smov [#allocation11]   ;;  %s15094_s28 = scalar_lea.hbm %s15969_s5, 8192 }
  0x28   :  { %s82_s25 = sshll.u32 %s15332_s24, 4  ;;  %p15095_p2 = scmp.ne.s32.totalorder %s15969_s5, %s15094_s28  ;;  %s83_s25 = int_to_ptr.vmem [resolvable:$true] %s82_s25 }
  0x29   :  { %p15098_p3 = scmp.lt.u32.totalorder %s15094_s28, %s15969_s5 }
  0x2b   :  { %p15100_p4 = pnand %p15098_p3, %p15095_p2 }
  0x2d   :  { %15103 = shalt.err (!%p15100_p4)
}
  0x2e   :  { %s15104_s14 = scalar_lea.vmem %s83_s25, 8192  ;;  %p15109_p6 = scmp.lt.s32.totalorder %s83_s25, %s83_s25 }
  0x2f   :  { %p15105_p5 = scmp.ne.s32.totalorder %s83_s25, %s15104_s14  ;;  %p15110_p7 = scmp.lt.s32.totalorder %s15104_s14, %s15104_s14 }
  0x31   :  { %p15111_p8 = por %p15110_p7, %p15109_p6 }
  0x33   :  { %p15112_p9 = pnand %p15111_p8, %p15105_p5 }
  0x35   :  { %15115 = shalt.err (!%p15112_p9)
}
  0x36   :  { %s15333_s3 = smov 256   ;;  %s15334_s20 = smov 16  }
  0x37   :  { %88 = dma.hbm_to_vmem [thread:$0]  %s15969_s5, 8192, %s83_s25, [#allocation12], %s15333_s3, %s15333_s3, %s15334_s20  }
  0x38   :  { %s15335_s17 = smov [#allocation14]   ;;  %s15116_s23 = scalar_lea.hbm %s15971_s7, 16384 }
  0x39   :  { %s106_s19 = sshll.u32 %s15335_s17, 4  ;;  %p15117_p10 = scmp.ne.s32.totalorder %s15971_s7, %s15116_s23  ;;  %s107_s19 = int_to_ptr.vmem [resolvable:$true] %s106_s19 }
  0x3a   :  { %p15120_p11 = scmp.lt.u32.totalorder %s15116_s23, %s15971_s7 }
  0x3c   :  { %p15122_p12 = pnand %p15120_p11, %p15117_p10 }
  0x3e   :  { %15125 = shalt.err (!%p15122_p12)
}
  0x3f   :  { %s15126_s29 = scalar_lea.vmem %s107_s19, 16384  ;;  %p15131_p0 = scmp.lt.s32.totalorder %s107_s19, %s107_s19 }
  0x40   :  { %p15127_p13 = scmp.ne.s32.totalorder %s107_s19, %s15126_s29  ;;  %p15132_p1 = scmp.lt.s32.totalorder %s15126_s29, %s15126_s29 }
  0x42   :  { %p15133_p2 = por %p15132_p1, %p15131_p0 }
  0x44   :  { %p15134_p3 = pnand %p15133_p2, %p15127_p13 }
  0x46   :  { %15137 = shalt.err (!%p15134_p3)
}
  0x47   :  { %112 = dma.hbm_to_vmem [thread:$0]  %s15971_s7, 16384, %s107_s19, [#allocation15], %s15333_s3, %s15333_s3, %s15334_s20  }
  0x48   :  { %s15336_s30 = smov [#allocation17]   ;;  %s15337_s13 = smov [#allocation2]  }
  0x49   :  { %s130_s12 = sshll.u32 %s15336_s30, 4  ;;  %s29_s14 = sshll.u32 %s15337_s13, 4  ;;  %s131_s12 = int_to_ptr.vmem [resolvable:$true] %s130_s12  ;;  %s30_s14 = int_to_ptr.vmem [resolvable:$true] %s29_s14 }
  0x4a   :  { %s15138_s17 = scalar_lea.hbm %s15973_s9, 65536 }
  0x4b   :  { %p15139_p4 = scmp.ne.s32.totalorder %s15973_s9, %s15138_s17  ;;  %p15142_p5 = scmp.lt.u32.totalorder %s15138_s17, %s15973_s9 }
  0x4d   :  { %p15144_p6 = pnand %p15142_p5, %p15139_p4 }
  0x4f   :  { %15147 = shalt.err (!%p15144_p6)
}
  0x50   :  { %s15148_s7 = scalar_lea.vmem %s131_s12, 65536  ;;  %p15153_p8 = scmp.lt.s32.totalorder %s131_s12, %s131_s12 }
  0x51   :  { %p15149_p7 = scmp.ne.s32.totalorder %s131_s12, %s15148_s7  ;;  %p15154_p9 = scmp.lt.s32.totalorder %s15148_s7, %s15148_s7 }
  0x53   :  { %p15155_p10 = por %p15154_p9, %p15153_p8 }
  0x55   :  { %p15156_p11 = pnand %p15155_p10, %p15149_p7 }
  0x57   :  { %15159 = shalt.err (!%p15156_p11)
}
  0x58   :  { %s15338_s19 = smov 512   ;;  %s15339_s26 = smov 32  }
  0x59   :  { %136 = dma.hbm_to_vmem [thread:$0]  %s15973_s9, 65536, %s131_s12, [#allocation18], %s15338_s19, %s15338_s19, %s15339_s26  }
  0x5a   :  { %s15160_s25 = scalar_lea.hbm %s15964_s0, 128 }
  0x5b   :  { %p15161_p12 = scmp.ne.s32.totalorder %s15964_s0, %s15160_s25  ;;  %p15164_p13 = scmp.lt.u32.totalorder %s15160_s25, %s15964_s0 }
  0x5d   :  { %p15166_p0 = pnand %p15164_p13, %p15161_p12 }
  0x5f   :  { %15169 = shalt.err (!%p15166_p0)
}
  0x60   :  { %s15170_s17 = scalar_lea.vmem %s30_s14, 128  ;;  %p15175_p2 = scmp.lt.s32.totalorder %s30_s14, %s30_s14 }
  0x61   :  { %p15171_p1 = scmp.ne.s32.totalorder %s30_s14, %s15170_s17  ;;  %p15176_p3 = scmp.lt.s32.totalorder %s15170_s17, %s15170_s17 }
  0x63   :  { %p15177_p4 = por %p15176_p3, %p15175_p2 }
  0x65   :  { %p15178_p5 = pnand %p15177_p4, %p15171_p1 }
  0x67   :  { %15181 = shalt.err (!%p15178_p5)
}
  0x68   :  { %32 = dma.hbm_to_vmem [thread:$0]  %s15964_s0, 128, %s30_s14, [#allocation3]  }
  0x69   :  { %s15340_s21 = smov [#allocation7]   ;;  %s15341_s23 = smov [#allocation10]  }
  0x6a   :  { %s49_s22 = sshll.u32 %s15340_s21, 4  ;;  %s70_s24 = sshll.u32 %s15341_s23, 4  ;;  %s50_s22 = int_to_ptr.vmem [resolvable:$true] %s49_s22  ;;  %s15498_s24 = int_to_ptr.vmem [resolvable:$true] %s70_s24 }
  0x6b   :  { %s15182_s28 = scalar_lea.hbm %s15966_s2, 128 }
  0x6c   :  { %p15183_p6 = scmp.ne.s32.totalorder %s15966_s2, %s15182_s28  ;;  %p15186_p7 = scmp.lt.u32.totalorder %s15182_s28, %s15966_s2 }
  0x6e   :  { %p15188_p8 = pnand %p15186_p7, %p15183_p6 }
  0x70   :  { %15191 = shalt.err (!%p15188_p8)
}
  0x71   :  { %s15192_s0 = scalar_lea.vmem %s50_s22, 128  ;;  %p15197_p10 = scmp.lt.s32.totalorder %s50_s22, %s50_s22 }
  0x72   :  { %p15193_p9 = scmp.ne.s32.totalorder %s50_s22, %s15192_s0  ;;  %p15198_p11 = scmp.lt.s32.totalorder %s15192_s0, %s15192_s0 }
  0x74   :  { %p15199_p12 = por %p15198_p11, %p15197_p10 }
  0x76   :  { %p15200_p13 = pnand %p15199_p12, %p15193_p9 }
  0x78   :  { %15203 = shalt.err (!%p15200_p13)
}
  0x79   :  { %52 = dma.hbm_to_vmem [thread:$0]  %s15966_s2, 128, %s50_s22, [#allocation6]  }
  0x7a   :  { %s15204_s17 = scalar_lea.hbm %s15968_s4, 4096 }
  0x7b   :  { %p15205_p0 = scmp.ne.s32.totalorder %s15968_s4, %s15204_s17  ;;  %p15208_p1 = scmp.lt.u32.totalorder %s15204_s17, %s15968_s4 }
  0x7d   :  { %p15210_p2 = pnand %p15208_p1, %p15205_p0 }
  0x7f   :  { %15213 = shalt.err (!%p15210_p2)
}
  0x80   :  { %s15214_s7 = scalar_lea.vmem %s15498_s24, 4096  ;;  %p15219_p4 = scmp.lt.s32.totalorder %s15498_s24, %s15498_s24 }
  0x81   :  { %p15215_p3 = scmp.ne.s32.totalorder %s15498_s24, %s15214_s7  ;;  %p15220_p5 = scmp.lt.s32.totalorder %s15214_s7, %s15214_s7 }
  0x83   :  { %p15221_p6 = por %p15220_p5, %p15219_p4 }
  0x85   :  { %p15222_p7 = pnand %p15221_p6, %p15215_p3 }
  0x87   :  { %15225 = shalt.err (!%p15222_p7)
}
  0x88   :  { %76 = dma.hbm_to_vmem [thread:$0]  %s15968_s4, 4096, %s15498_s24, [#allocation9], %s15330_s1, %s15330_s1, %s15331_s18  }
  0x89   :  { %s15342_s27 = smov [#allocation13]   ;;  %s15343_s29 = smov [#allocation16]  }
  0x8a   :  { %s94_s28 = sshll.u32 %s15342_s27, 4  ;;  %s118_s5 = sshll.u32 %s15343_s29, 4  ;;  %s95_s28 = int_to_ptr.vmem [resolvable:$true] %s94_s28  ;;  %s15532_s5 = int_to_ptr.vmem [resolvable:$true] %s118_s5 }
  0x8b   :  { %s15226_s0 = scalar_lea.hbm %s15970_s6, 16384 }
  0x8c   :  { %p15227_p8 = scmp.ne.s32.totalorder %s15970_s6, %s15226_s0  ;;  %p15230_p9 = scmp.lt.u32.totalorder %s15226_s0, %s15970_s6 }
  0x8e   :  { %p15232_p10 = pnand %p15230_p9, %p15227_p8 }
  0x90   :  { %15235 = shalt.err (!%p15232_p10)
}
  0x91   :  { %s15236_s4 = scalar_lea.vmem %s95_s28, 16384  ;;  %p15241_p12 = scmp.lt.s32.totalorder %s95_s28, %s95_s28 }
  0x92   :  { %p15237_p11 = scmp.ne.s32.totalorder %s95_s28, %s15236_s4  ;;  %p15242_p13 = scmp.lt.s32.totalorder %s15236_s4, %s15236_s4 }
  0x94   :  { %p15243_p0 = por %p15242_p13, %p15241_p12 }
  0x96   :  { %p15244_p1 = pnand %p15243_p0, %p15237_p11 }
  0x98   :  { %15247 = shalt.err (!%p15244_p1)
}
  0x99   :  { %100 = dma.hbm_to_vmem [thread:$0]  %s15970_s6, 16384, %s95_s28, [#allocation12], %s15333_s3, %s15333_s3, %s15334_s20  }
  0x9a   :  { %s15248_s9 = scalar_lea.hbm %s15972_s8, 32768 }
  0x9b   :  { %p15249_p2 = scmp.ne.s32.totalorder %s15972_s8, %s15248_s9  ;;  %p15252_p3 = scmp.lt.u32.totalorder %s15248_s9, %s15972_s8 }
  0x9d   :  { %p15254_p4 = pnand %p15252_p3, %p15249_p2 }
  0x9f   :  { %15257 = shalt.err (!%p15254_p4)
}
  0xa0   :  { %s15258_s2 = scalar_lea.vmem %s15532_s5, 32768  ;;  %p15263_p6 = scmp.lt.s32.totalorder %s15532_s5, %s15532_s5 }
  0xa1   :  { %p15259_p5 = scmp.ne.s32.totalorder %s15532_s5, %s15258_s2  ;;  %p15264_p7 = scmp.lt.s32.totalorder %s15258_s2, %s15258_s2 }
  0xa3   :  { %p15265_p8 = por %p15264_p7, %p15263_p6 }
  0xa5   :  { %p15266_p9 = pnand %p15265_p8, %p15259_p5 }
  0xa7   :  { %15269 = shalt.err (!%p15266_p9)
}
  0xa8   :  { %124 = dma.hbm_to_vmem [thread:$0]  %s15972_s8, 32768, %s15532_s5, [#allocation15], %s15338_s19, %s15338_s19, %s15339_s26  }
  0xa9   :  { %s15344_s20 = smov [#allocation19]   ;;  %s15270_s29 = scalar_lea.hbm %s15974_s10, 65536 }
  0xaa   :  { %s142_s22 = sshll.u32 %s15344_s20, 4  ;;  %p15271_p10 = scmp.ne.s32.totalorder %s15974_s10, %s15270_s29  ;;  %s143_s22 = int_to_ptr.vmem [resolvable:$true] %s142_s22 }
  0xab   :  { %p15274_p11 = scmp.lt.u32.totalorder %s15270_s29, %s15974_s10 }
  0xad   :  { %p15276_p12 = pnand %p15274_p11, %p15271_p10 }
  0xaf   :  { %15279 = shalt.err (!%p15276_p12)
}
  0xb0   :  { %s15280_s13 = scalar_lea.vmem %s143_s22, 65536  ;;  %p15285_p0 = scmp.lt.s32.totalorder %s143_s22, %s143_s22 }
  0xb1   :  { %p15281_p13 = scmp.ne.s32.totalorder %s143_s22, %s15280_s13  ;;  %p15286_p1 = scmp.lt.s32.totalorder %s15280_s13, %s15280_s13 }
  0xb3   :  { %p15287_p2 = por %p15286_p1, %p15285_p0 }
  0xb5   :  { %p15288_p3 = pnand %p15287_p2, %p15281_p13 }
  0xb7   :  { %15291 = shalt.err (!%p15288_p3)
}
  0xb8   :  { %148 = dma.hbm_to_vmem [thread:$0]  %s15974_s10, 65536, %s143_s22, [#allocation18], %s15338_s19, %s15338_s19, %s15339_s26  }
  0xb9   :  { %15314 = dma.done.wait [#allocation3], 128  }
  0xba   :  { %15315 = vsyncadd [#allocation3], 4294967168 }
  0xbb   :  { %15316 = dma.done.wait [#allocation6], 800  }
  0xbc   :  { %15317 = vsyncadd [#allocation6], 4294966496 }
  0xbd   :  { %15318 = dma.done.wait [#allocation9], 8192  }
  0xbe   :  { %15319 = vsyncadd [#allocation9], 4294959104 }
  0xbf   :  { %15320 = dma.done.wait [#allocation12], 24576  }
  0xc0   :  { %15321 = vsyncadd [#allocation12], 4294942720 }
  0xc1   :  { %15322 = dma.done.wait [#allocation15], 49152  }
  0xc2   :  { %15323 = vsyncadd [#allocation15], 4294918144 }
  0xc3   :  { %15324 = dma.done.wait [#allocation18], 131072  }
  0xc4   :  { %15325 = vsyncadd [#allocation18], 4294836224  ;;  %v15345_v0 = vmov 0   ;;  %v186_v1 = vld [vmem:[#allocation7] sm:$0xff]  ;;  %vm207_vm0 = vcmask 1043456   ;;  %v183_v2 = vld [vmem:[#allocation2] sm:$0xff] }
  0xc5   :  { %246 = vmatprep.mubr.bf16.mxu0 %v15345_v0  ;;  %v12692_v3 = vcombine.high %v186_v1, %v186_v1  ;;  %v12691_v4 = vcombine.low %v186_v1, %v186_v1  ;;  %v14472_v5 = vld [vmem:[#allocation8 + $0x4] ss:$8 sps:$4 sm:$0xff]   ;;  %v14474_v6 = vld [vmem:[#allocation8] ss:$8 sps:$4 sm:$0xff]   ;;  %v14475_v7 = vld [vmem:[#allocation8 + $0x14] ss:$8 sps:$4 sm:$0xff]   ;;  %v185_v9 = vpack.c.bf16 %v183_v2, %v183_v2 }
  0xc6   :  { %463 = vmatprep.subr.bf16.mxu1 %v14472_v5  ;;  %vm203_vm1 = vcmask 64512   ;;  %v14477_v10 = vld [vmem:[#allocation8 + $0x10] ss:$8 sps:$4 sm:$0xff]   ;;  %v14478_v11 = vld [vmem:[#allocation8 + $0x24] ss:$8 sps:$4 sm:$0xff]   ;;  %s15346_s10 = smov [#allocation20]  }
  0xc7   :  { %12693 = vmatprep.subr.msk.bf16.mxu0 %vm207_vm0, %v12692_v3  ;;  %v209_v8 = vsel %vm207_vm0, %v12691_v4, 0  ;;  %464 = vmatpush1.bf16.msra.mxu1 %v14474_v6  ;;  %v14480_v12 = vld [vmem:[#allocation8 + $0x20] ss:$8 sps:$4 sm:$0xff]   ;;  %v14481_v13 = vld [vmem:[#allocation8 + $0x34] ss:$8 sps:$4 sm:$0xff]   ;;  %v188_v3 = vlaneseq  ;;  %s12677_s19 = sshll.u32 %s15346_s10, 4  ;;  %s12678_s19 = int_to_ptr.vmem [resolvable:$true] %s12677_s19 }
  0xc8   :  { %215 = vmatpush1.bf16.msra.mxu0 %v209_v8  ;;  %465 = vmatprep.subr.bf16.mxu1 %v14475_v7  ;;  %v14483_v14 = vld [vmem:[#allocation8 + $0x30] ss:$8 sps:$4 sm:$0xff]   ;;  %v14484_v15 = vld [vmem:[#allocation8 + $0x44] ss:$8 sps:$4 sm:$0xff]   ;;  %v14486_v16 = vld [vmem:[#allocation8 + $0x40] ss:$8 sps:$4 sm:$0xff]   ;;  %p15297_p5 = scmp.lt.s32.totalorder %s12678_s19, %s12678_s19 }
  0xc9   :  { %v14487_v17 = vld [vmem:[#allocation8 + $0x54] ss:$8 sps:$4 sm:$0xff]   ;;  %v14489_v18 = vld [vmem:[#allocation8 + $0x50] ss:$8 sps:$4 sm:$0xff]   ;;  %v14490_v19 = vld [vmem:[#allocation8 + $0x64] ss:$8 sps:$4 sm:$0xff]  }
  0xca   :  { %v14492_v20 = vld [vmem:[#allocation8 + $0x60] ss:$8 sps:$4 sm:$0xff]   ;;  %v14493_v21 = vld [vmem:[#allocation8 + $0x74] ss:$8 sps:$4 sm:$0xff]   ;;  %v14495_v22 = vld [vmem:[#allocation8 + $0x70] ss:$8 sps:$4 sm:$0xff]  }
  0xcb   :  { %12694 = vmatmul.mubr.msk.bf16.vlgmr.msra.gmra.mrb[0].mxu0 %vm203_vm1, %v185_v9  ;;  %466 = vmatpush1.bf16.msra.mxu1 %v14477_v10  ;;  %v14496_v23 = vld [vmem:[#allocation8 + $0x84] ss:$8 sps:$4 sm:$0xff]   ;;  %v14498_v24 = vld [vmem:[#allocation8 + $0x80] ss:$8 sps:$4 sm:$0xff]   ;;  %v14499_v25 = vld [vmem:[#allocation8 + $0x94] ss:$8 sps:$4 sm:$0xff]  }
  0xcc   :  { %467 = vmatprep.subr.bf16.mxu1 %v14478_v11  ;;  %v14501_v26 = vld [vmem:[#allocation8 + $0x90] ss:$8 sps:$4 sm:$0xff]   ;;  %v14502_v27 = vld [vmem:[#allocation8 + $0xa4] ss:$8 sps:$4 sm:$0xff]   ;;  %v14504_v28 = vld [vmem:[#allocation8 + $0xa0] ss:$8 sps:$4 sm:$0xff]  }
  0xcd   :  { %v14505_v29 = vld [vmem:[#allocation8 + $0xb4] ss:$8 sps:$4 sm:$0xff]   ;;  %v14507_v30 = vld [vmem:[#allocation8 + $0xb0] ss:$8 sps:$4 sm:$0xff]   ;;  %v14508_v31 = vld [vmem:[#allocation8 + $0xc4] ss:$8 sps:$4 sm:$0xff]  }
  0xce   :  { %v14510_v32 = vld [vmem:[#allocation8 + $0xc0] ss:$8 sps:$4 sm:$0xff]   ;;  %v14511_v33 = vld [vmem:[#allocation8 + $0xd4] ss:$8 sps:$4 sm:$0xff]   ;;  %v14513_v34 = vld [vmem:[#allocation8 + $0xd0] ss:$8 sps:$4 sm:$0xff]  }
  0xcf   :  { %468 = vmatpush1.bf16.msra.mxu1 %v14480_v12  ;;  %v14514_v35 = vld [vmem:[#allocation8 + $0xe4] ss:$8 sps:$4 sm:$0xff]   ;;  %v14516_v36 = vld [vmem:[#allocation8 + $0xe0] ss:$8 sps:$4 sm:$0xff]   ;;  %v14517_v37 = vld [vmem:[#allocation8 + $0xf4] ss:$8 sps:$4 sm:$0xff]  }
  0xd0   :  { %469 = vmatprep.subr.bf16.mxu1 %v14481_v13  ;;  %v14519_v38 = vld [vmem:[#allocation8 + $0xf0] ss:$8 sps:$4 sm:$0xff]   ;;  %v14520_v39 = vld [vmem:[#allocation10] ss:$8 sps:$4 sm:$0xff]   ;;  %v14522_v40 = vld [vmem:[#allocation10 + $0x4] ss:$8 sps:$4 sm:$0xff]  }
  0xd1   :  { %v14525_v41 = vld [vmem:[#allocation10 + $0x14] ss:$8 sps:$4 sm:$0xff]   ;;  %712 = vmatprep.subr.bf16.mxu0 %v14522_v40  ;;  %v14523_v42 = vld [vmem:[#allocation10 + $0x10] ss:$8 sps:$4 sm:$0xff]   ;;  %v14528_v43 = vld [vmem:[#allocation10 + $0x24] ss:$8 sps:$4 sm:$0xff]  }
  0xd2   :  { %713 = vmatpush1.bf16.msra.mxu0 %v14520_v39  ;;  %v14526_v44 = vld [vmem:[#allocation10 + $0x20] ss:$8 sps:$4 sm:$0xff]   ;;  %v14531_v45 = vld [vmem:[#allocation10 + $0x34] ss:$8 sps:$4 sm:$0xff]   ;;  %v14529_v46 = vld [vmem:[#allocation10 + $0x30] ss:$8 sps:$4 sm:$0xff]  }
  0xd3   :  { %470 = vmatpush1.bf16.msra.mxu1 %v14483_v14  ;;  %714 = vmatprep.subr.bf16.mxu0 %v14525_v41  ;;  %v14534_v47 = vld [vmem:[#allocation10 + $0x44] ss:$8 sps:$4 sm:$0xff]   ;;  %v14532_v48 = vld [vmem:[#allocation10 + $0x40] ss:$8 sps:$4 sm:$0xff]   ;;  %v14537_v49 = vld [vmem:[#allocation10 + $0x54] ss:$8 sps:$4 sm:$0xff]  }
  0xd4   :  { %471 = vmatprep.subr.bf16.mxu1 %v14484_v15  ;;  %v14535_v50 = vld [vmem:[#allocation10 + $0x50] ss:$8 sps:$4 sm:$0xff]   ;;  %v14540_v51 = vld [vmem:[#allocation10 + $0x64] ss:$8 sps:$4 sm:$0xff]   ;;  %v14538_v52 = vld [vmem:[#allocation10 + $0x60] ss:$8 sps:$4 sm:$0xff]  }
  0xd5   :  { %v14543_v53 = vld [vmem:[#allocation10 + $0x74] ss:$8 sps:$4 sm:$0xff]   ;;  %v14541_v54 = vld [vmem:[#allocation10 + $0x70] ss:$8 sps:$4 sm:$0xff]   ;;  %v14546_v55 = vld [vmem:[#allocation10 + $0x84] ss:$8 sps:$4 sm:$0xff]  }
  0xd6   :  { %715 = vmatpush1.bf16.msra.mxu0 %v14523_v42  ;;  %v14544_v56 = vld [vmem:[#allocation10 + $0x80] ss:$8 sps:$4 sm:$0xff]   ;;  %v14549_v57 = vld [vmem:[#allocation10 + $0x94] ss:$8 sps:$4 sm:$0xff]   ;;  %v14547_v58 = vld [vmem:[#allocation10 + $0x90] ss:$8 sps:$4 sm:$0xff]  }
  0xd7   :  { %472 = vmatpush1.bf16.msra.mxu1 %v14486_v16  ;;  %716 = vmatprep.subr.bf16.mxu0 %v14528_v43  ;;  %v14552_v59 = vld [vmem:[#allocation10 + $0xa4] ss:$8 sps:$4 sm:$0xff]   ;;  %v14550_v60 = vld [vmem:[#allocation10 + $0xa0] ss:$8 sps:$4 sm:$0xff]   ;;  %v14555_v61 = vld [vmem:[#allocation10 + $0xb4] ss:$8 sps:$4 sm:$0xff]  }
  0xd8   :  { %473 = vmatprep.subr.bf16.mxu1 %v14487_v17  ;;  %v14553_v62 = vld [vmem:[#allocation10 + $0xb0] ss:$8 sps:$4 sm:$0xff]   ;;  %v14558_v63 = vld [vmem:[#allocation10 + $0xc4] ss:$8 sps:$4 sm:$0xff]   ;;  %v14556_v0 = vld [vmem:[#allocation10 + $0xc0] ss:$8 sps:$4 sm:$0xff]  }
  0xd9   :  { %v14561_v1 = vld [vmem:[#allocation10 + $0xd4] ss:$8 sps:$4 sm:$0xff]   ;;  %v14559_v2 = vld [vmem:[#allocation10 + $0xd0] ss:$8 sps:$4 sm:$0xff]   ;;  %v15584_v4 = vshrl.u32 %v188_v3, 7  ;;  %s15292_s26 = scalar_lea.vmem %s12678_s19, 1024 }
  0xda   :  { %717 = vmatpush1.bf16.msra.mxu0 %v14526_v44  ;;  %v184_v6 = vld [vmem:[#allocation5] sm:$0x3]  ;;  %v14612_v39 = vld [vmem:[#allocation11 + $0xe4] ss:$16 sps:$4 sm:$0xff]   ;;  %v14610_v40 = vld [vmem:[#allocation11 + $0xe0] ss:$16 sps:$4 sm:$0xff]   ;;  %p15293_p4 = scmp.ne.s32.totalorder %s12678_s19, %s15292_s26  ;;  %p15298_p6 = scmp.lt.s32.totalorder %s15292_s26, %s15292_s26 }
  0xdb   :  { %474 = vmatpush1.bf16.msra.mxu1 %v14489_v18  ;;  %718 = vmatprep.subr.bf16.mxu0 %v14531_v45  ;;  %v15587_v5 = vsub.s32 0, %v15584_v4  ;;  %v15590_v7 = vsub.s32 1, %v15584_v4  ;;  %v14618_v41 = vld [vmem:[#allocation11 + $0x104] ss:$16 sps:$4 sm:$0xff]   ;;  %v14616_v42 = vld [vmem:[#allocation11 + $0x100] ss:$16 sps:$4 sm:$0xff]  }
  0xdc   :  { %475 = vmatprep.subr.bf16.mxu1 %v14490_v19  ;;  %v14624_v43 = vld [vmem:[#allocation11 + $0x124] ss:$16 sps:$4 sm:$0xff]   ;;  %v14622_v44 = vld [vmem:[#allocation11 + $0x120] ss:$16 sps:$4 sm:$0xff]   ;;  %v14579_v3 = vld [vmem:[#allocation11 + $0x2c] ss:$16 sps:$4 sm:$0xff]   ;;  %p15299_p7 = por %p15298_p6, %p15297_p5 }
  0xdd   :  { %v191_v8 = vrot.slane %v184_v6, %v15587_v5  ;;  %v195_v9 = vrot.slane %v184_v6, %v15590_v7  ;;  %v14630_v45 = vld [vmem:[#allocation11 + $0x144] ss:$16 sps:$4 sm:$0xff]   ;;  %v14577_v6 = vld [vmem:[#allocation11 + $0x28] ss:$16 sps:$4 sm:$0xff]  }
  0xde   :  { %719 = vmatpush1.bf16.msra.mxu0 %v14529_v46  ;;  %v14628_v46 = vld [vmem:[#allocation11 + $0x140] ss:$16 sps:$4 sm:$0xff]   ;;  %p15300_p8 = pnand %p15299_p7, %p15293_p4 }
  0xdf   :  { %476 = vmatpush1.bf16.msra.mxu1 %v14492_v20  ;;  %720 = vmatprep.subr.bf16.mxu0 %v14534_v47  ;;  %v14564_v20 = vld [vmem:[#allocation10 + $0xe4] ss:$8 sps:$4 sm:$0xff]  }
  0xe0   :  { %477 = vmatprep.subr.bf16.mxu1 %v14493_v21  ;;  %v14562_v21 = vld [vmem:[#allocation10 + $0xe0] ss:$8 sps:$4 sm:$0xff]   ;;  %v14636_v47 = vld [vmem:[#allocation11 + $0x164] ss:$16 sps:$4 sm:$0xff]  }
  0xe2   :  { %721 = vmatpush1.bf16.msra.mxu0 %v14532_v48  ;;  %v14634_v48 = vld [vmem:[#allocation11 + $0x160] ss:$16 sps:$4 sm:$0xff]  }
  0xe3   :  { %478 = vmatpush1.bf16.msra.mxu1 %v14495_v22  ;;  %722 = vmatprep.subr.bf16.mxu0 %v14537_v49  ;;  %v14567_v22 = vld [vmem:[#allocation10 + $0xf4] ss:$8 sps:$4 sm:$0xff]  }
  0xe4   :  { %479 = vmatprep.subr.bf16.mxu1 %v14496_v23  ;;  %v14565_v23 = vld [vmem:[#allocation10 + $0xf0] ss:$8 sps:$4 sm:$0xff]   ;;  %v14642_v49 = vld [vmem:[#allocation11 + $0x184] ss:$16 sps:$4 sm:$0xff]  }
  0xe6   :  { %723 = vmatpush1.bf16.msra.mxu0 %v14535_v50  ;;  %v14640_v50 = vld [vmem:[#allocation11 + $0x180] ss:$16 sps:$4 sm:$0xff]  }
  0xe7   :  { %480 = vmatpush1.bf16.msra.mxu1 %v14498_v24  ;;  %724 = vmatprep.subr.bf16.mxu0 %v14540_v51  ;;  %v14568_v24 = vld [vmem:[#allocation11] ss:$16 sps:$4 sm:$0xff]   ;;  %v14648_v51 = vld [vmem:[#allocation11 + $0x1a4] ss:$16 sps:$4 sm:$0xff]  }
  0xe8   :  { %481 = vmatprep.subr.bf16.mxu1 %v14499_v25  ;;  %v14570_v25 = vld [vmem:[#allocation11 + $0x4] ss:$16 sps:$4 sm:$0xff]  }
  0xea   :  { %725 = vmatpush1.bf16.msra.mxu0 %v14538_v52  ;;  %v14646_v52 = vld [vmem:[#allocation11 + $0x1a0] ss:$16 sps:$4 sm:$0xff]  }
  0xeb   :  { %482 = vmatpush1.bf16.msra.mxu1 %v14501_v26  ;;  %726 = vmatprep.subr.bf16.mxu0 %v14543_v53  ;;  %v14573_v26 = vld [vmem:[#allocation11 + $0xc] ss:$16 sps:$4 sm:$0xff]   ;;  %v257_v53 = vld [vmem:[#allocation5 + $0x2] sm:$0x3] }
  0xec   :  { %483 = vmatprep.subr.bf16.mxu1 %v14502_v27  ;;  %v14576_v27 = vld [vmem:[#allocation11 + $0x24] ss:$16 sps:$4 sm:$0xff]  }
  0xee   :  { %727 = vmatpush1.bf16.msra.mxu0 %v14541_v54  ;;  %v296_v54 = vrot.slane %v257_v53, %v15587_v5 }
  0xef   :  { %484 = vmatpush1.bf16.msra.mxu1 %v14504_v28  ;;  %728 = vmatprep.subr.bf16.mxu0 %v14546_v55  ;;  %v14574_v28 = vld [vmem:[#allocation11 + $0x20] ss:$16 sps:$4 sm:$0xff]   ;;  %v300_v55 = vrot.slane %v257_v53, %v15590_v7 }
  0xf0   :  { %485 = vmatprep.subr.bf16.mxu1 %v14505_v29  ;;  %v14582_v29 = vld [vmem:[#allocation11 + $0x44] ss:$16 sps:$4 sm:$0xff]  }
  0xf2   :  { %729 = vmatpush1.bf16.msra.mxu0 %v14544_v56 }
  0xf3   :  { %486 = vmatpush1.bf16.msra.mxu1 %v14507_v30  ;;  %730 = vmatprep.subr.bf16.mxu0 %v14549_v57  ;;  %v14580_v30 = vld [vmem:[#allocation11 + $0x40] ss:$16 sps:$4 sm:$0xff]  }
  0xf4   :  { %487 = vmatprep.subr.bf16.mxu1 %v14508_v31  ;;  %v14588_v31 = vld [vmem:[#allocation11 + $0x64] ss:$16 sps:$4 sm:$0xff]  }
  0xf6   :  { %731 = vmatpush1.bf16.msra.mxu0 %v14547_v58 }
  0xf7   :  { %488 = vmatpush1.bf16.msra.mxu1 %v14510_v32  ;;  %732 = vmatprep.subr.bf16.mxu0 %v14552_v59  ;;  %v14586_v32 = vld [vmem:[#allocation11 + $0x60] ss:$16 sps:$4 sm:$0xff]  }
  0xf8   :  { %489 = vmatprep.subr.bf16.mxu1 %v14511_v33  ;;  %v14594_v33 = vld [vmem:[#allocation11 + $0x84] ss:$16 sps:$4 sm:$0xff]  }
  0xfa   :  { %733 = vmatpush1.bf16.msra.mxu0 %v14550_v60 }
  0xfb   :  { %490 = vmatpush1.bf16.msra.mxu1 %v14513_v34  ;;  %734 = vmatprep.subr.bf16.mxu0 %v14555_v61  ;;  %v14592_v34 = vld [vmem:[#allocation11 + $0x80] ss:$16 sps:$4 sm:$0xff]  }
  0xfc   :  { %491 = vmatprep.subr.bf16.mxu1 %v14514_v35  ;;  %v14600_v35 = vld [vmem:[#allocation11 + $0xa4] ss:$16 sps:$4 sm:$0xff]  }
  0xfe   :  { %735 = vmatpush1.bf16.msra.mxu0 %v14553_v62 }
  0xff   :  { %492 = vmatpush1.bf16.msra.mxu1 %v14516_v36  ;;  %736 = vmatprep.subr.bf16.mxu0 %v14558_v63  ;;  %v14598_v36 = vld [vmem:[#allocation11 + $0xa0] ss:$16 sps:$4 sm:$0xff]  }
 0x100   :  { %493 = vmatprep.subr.bf16.mxu1 %v14517_v37  ;;  %v14606_v37 = vld [vmem:[#allocation11 + $0xc4] ss:$16 sps:$4 sm:$0xff]  }
 0x102   :  { %737 = vmatpush1.bf16.msra.mxu0 %v14556_v0 }
 0x103   :  { %494 = vmatpush1.bf16.msra.mxu1 %v14519_v38  ;;  %738 = vmatprep.subr.bf16.mxu0 %v14561_v1  ;;  %v14604_v38 = vld [vmem:[#allocation11 + $0xc0] ss:$16 sps:$4 sm:$0xff]   ;;  %v14571_v1 = vld [vmem:[#allocation11 + $0x8] ss:$16 sps:$4 sm:$0xff]  }
 0x104   :  { %1163 = vmatprep.subr.bf16.mxu1 %v14570_v25  ;;  %v14625_v25 = vld [vmem:[#allocation11 + $0x128] ss:$16 sps:$4 sm:$0xff]  }
 0x106   :  { %739 = vmatpush1.bf16.msra.mxu0 %v14559_v2 }
 0x107   :  { %740 = vmatprep.subr.bf16.mxu0 %v14564_v20  ;;  %v14615_v20 = vld [vmem:[#allocation11 + $0xec] ss:$16 sps:$4 sm:$0xff]  }
 0x10a   :  { %741 = vmatpush1.bf16.msra.mxu0 %v14562_v21  ;;  %v14613_v21 = vld [vmem:[#allocation11 + $0xe8] ss:$16 sps:$4 sm:$0xff]  }
 0x10b   :  { %742 = vmatprep.subr.bf16.mxu0 %v14567_v22  ;;  %v14621_v22 = vld [vmem:[#allocation11 + $0x10c] ss:$16 sps:$4 sm:$0xff]  }
 0x10e   :  { %743 = vmatpush1.bf16.msra.mxu0 %v14565_v23  ;;  %v14619_v23 = vld [vmem:[#allocation11 + $0x108] ss:$16 sps:$4 sm:$0xff]  }
 0x10f   :  { %1204 = vmatprep.subr.bf16.mxu0 %v14573_v26  ;;  %v14633_v26 = vld [vmem:[#allocation11 + $0x14c] ss:$16 sps:$4 sm:$0xff]  }
 0x19e   :  { %v248_v10 = vpop.f32.mrb[0].mxu0 }
 0x19f   :  { %v15594_v11 = vadd.f32 %v248_v10, %v191_v8  ;;  %v250_v12 = vpop.f32.mrb[1].mxu0  ;;  %v14585_v8 = vld [vmem:[#allocation11 + $0x4c] ss:$16 sps:$4 sm:$0xff]  }
 0x1a0   :  { %v15596_v13 = vadd.f32 %v250_v12, %v195_v9  ;;  %v252_v14 = vpop.f32.mrb[2].mxu0  ;;  %v14583_v9 = vld [vmem:[#allocation11 + $0x48] ss:$16 sps:$4 sm:$0xff]   ;;  %v14591_v10 = vld [vmem:[#allocation11 + $0x6c] ss:$16 sps:$4 sm:$0xff]  }
 0x1a1   :  { %v255_v15 = vmax.f32 %v15594_v11, 0.0  ;;  %v253_v16 = vpop.f32.mrb[3].mxu0  ;;  %v14589_v12 = vld [vmem:[#allocation11 + $0x68] ss:$16 sps:$4 sm:$0xff]   ;;  %v14597_v14 = vld [vmem:[#allocation11 + $0x8c] ss:$16 sps:$4 sm:$0xff]  }
 0x1a2   :  { %v256_v17 = vmax.f32 %v15596_v13, 0.0  ;;  %v14603_v16 = vld [vmem:[#allocation11 + $0xac] ss:$16 sps:$4 sm:$0xff]  }
 0x1a3   :  { %v258_v19 = vpack.c.bf16 %v255_v15, %v255_v15  ;;  %v14595_v15 = vld [vmem:[#allocation11 + $0x88] ss:$16 sps:$4 sm:$0xff]  }
 0x1a4   :  { %v259_v18 = vpack.c.bf16 %v256_v17, %v256_v17  ;;  %v14601_v17 = vld [vmem:[#allocation11 + $0xa8] ss:$16 sps:$4 sm:$0xff]  }
 0x1a6   :  { %495 = vmatprep.mubr.bf16.mxu1 %v259_v18  ;;  %v14609_v18 = vld [vmem:[#allocation11 + $0xcc] ss:$16 sps:$4 sm:$0xff]  }
 0x1a7   :  { %496 = vmatmul.mubr.bf16.vlgmr.msra.gmra.mrb[0].mxu1 %v258_v19  ;;  %v14607_v19 = vld [vmem:[#allocation11 + $0xc8] ss:$16 sps:$4 sm:$0xff]  }
 0x1a8   :  { %1164 = vmatpush1.bf16.msra.mxu1 %v14568_v24  ;;  %v14627_v24 = vld [vmem:[#allocation11 + $0x12c] ss:$16 sps:$4 sm:$0xff]  }
 0x1a9   :  { %1165 = vmatprep.subr.bf16.mxu1 %v14576_v27  ;;  %v14631_v27 = vld [vmem:[#allocation11 + $0x148] ss:$16 sps:$4 sm:$0xff]  }
 0x1ac   :  { %1166 = vmatpush1.bf16.msra.mxu1 %v14574_v28  ;;  %v14639_v28 = vld [vmem:[#allocation11 + $0x16c] ss:$16 sps:$4 sm:$0xff]  }
 0x1ad   :  { %1167 = vmatprep.subr.bf16.mxu1 %v14582_v29  ;;  %v14637_v29 = vld [vmem:[#allocation11 + $0x168] ss:$16 sps:$4 sm:$0xff]  }
 0x1b0   :  { %1168 = vmatpush1.bf16.msra.mxu1 %v14580_v30  ;;  %v14645_v30 = vld [vmem:[#allocation11 + $0x18c] ss:$16 sps:$4 sm:$0xff]  }
 0x1b1   :  { %1169 = vmatprep.subr.bf16.mxu1 %v14588_v31  ;;  %v14643_v31 = vld [vmem:[#allocation11 + $0x188] ss:$16 sps:$4 sm:$0xff]  }
 0x1b4   :  { %1170 = vmatpush1.bf16.msra.mxu1 %v14586_v32  ;;  %v14651_v32 = vld [vmem:[#allocation11 + $0x1ac] ss:$16 sps:$4 sm:$0xff]  }
 0x1b5   :  { %1171 = vmatprep.subr.bf16.mxu1 %v14594_v33  ;;  %v14649_v33 = vld [vmem:[#allocation11 + $0x1a8] ss:$16 sps:$4 sm:$0xff]  }
 0x1b8   :  { %1172 = vmatpush1.bf16.msra.mxu1 %v14592_v34  ;;  %v14654_v34 = vld [vmem:[#allocation11 + $0x1c4] ss:$16 sps:$4 sm:$0xff]  }
 0x1b9   :  { %1173 = vmatprep.subr.bf16.mxu1 %v14600_v35  ;;  %v14657_v35 = vld [vmem:[#allocation11 + $0x1cc] ss:$16 sps:$4 sm:$0xff]  }
 0x1bc   :  { %1174 = vmatpush1.bf16.msra.mxu1 %v14598_v36  ;;  %v14652_v36 = vld [vmem:[#allocation11 + $0x1c0] ss:$16 sps:$4 sm:$0xff]  }
 0x1bd   :  { %1175 = vmatprep.subr.bf16.mxu1 %v14606_v37  ;;  %v14655_v37 = vld [vmem:[#allocation11 + $0x1c8] ss:$16 sps:$4 sm:$0xff]  }
 0x1c0   :  { %1176 = vmatpush1.bf16.msra.mxu1 %v14604_v38  ;;  %v14660_v38 = vld [vmem:[#allocation11 + $0x1e4] ss:$16 sps:$4 sm:$0xff]  }
 0x1c1   :  { %1177 = vmatprep.subr.bf16.mxu1 %v14612_v39  ;;  %v14663_v39 = vld [vmem:[#allocation11 + $0x1ec] ss:$16 sps:$4 sm:$0xff]  }
 0x1c4   :  { %1178 = vmatpush1.bf16.msra.mxu1 %v14610_v40  ;;  %v14658_v40 = vld [vmem:[#allocation11 + $0x1e0] ss:$16 sps:$4 sm:$0xff]  }
 0x1c5   :  { %1179 = vmatprep.subr.bf16.mxu1 %v14618_v41  ;;  %v14661_v41 = vld [vmem:[#allocation11 + $0x1e8] ss:$16 sps:$4 sm:$0xff]  }
 0x1c8   :  { %1180 = vmatpush1.bf16.msra.mxu1 %v14616_v42  ;;  %v14666_v42 = vld [vmem:[#allocation13 + $0x4] ss:$16 sps:$4 sm:$0xff]  }
 0x1c9   :  { %1181 = vmatprep.subr.bf16.mxu1 %v14624_v43  ;;  %v14669_v43 = vld [vmem:[#allocation13 + $0xc] ss:$16 sps:$4 sm:$0xff]  }
 0x1cc   :  { %1182 = vmatpush1.bf16.msra.mxu1 %v14622_v44  ;;  %v506_v44 = vld [vmem:[#allocation5 + $0x4] sm:$0x3] }
 0x1cd   :  { %1183 = vmatprep.subr.bf16.mxu1 %v14630_v45  ;;  %v545_v45 = vrot.slane %v506_v44, %v15587_v5 }
 0x1d0   :  { %1184 = vmatpush1.bf16.msra.mxu1 %v14628_v46  ;;  %v549_v46 = vrot.slane %v506_v44, %v15590_v7  ;;  %v14736_v44 = vld [vmem:[#allocation13 + $0x180] ss:$16 sps:$4 sm:$0xff]  }
 0x1d1   :  { %1185 = vmatprep.subr.bf16.mxu1 %v14636_v47 }
 0x1d4   :  { %1186 = vmatpush1.bf16.msra.mxu1 %v14634_v48 }
 0x1d5   :  { %1187 = vmatprep.subr.bf16.mxu1 %v14642_v49 }
 0x1d8   :  { %1188 = vmatpush1.bf16.msra.mxu1 %v14640_v50 }
 0x1d9   :  { %1189 = vmatprep.subr.bf16.mxu1 %v14648_v51 }
 0x1dc   :  { %1190 = vmatpush1.bf16.msra.mxu1 %v14646_v52 }
 0x1dd   :  { %1191 = vmatprep.subr.bf16.mxu1 %v14654_v34  ;;  %v14726_v34 = vld [vmem:[#allocation13 + $0x144] ss:$16 sps:$4 sm:$0xff]  }
 0x1e0   :  { %1192 = vmatpush1.bf16.msra.mxu1 %v14652_v36  ;;  %v14724_v36 = vld [vmem:[#allocation13 + $0x140] ss:$16 sps:$4 sm:$0xff]  }
 0x1e1   :  { %1193 = vmatprep.subr.bf16.mxu1 %v14660_v38  ;;  %v14732_v38 = vld [vmem:[#allocation13 + $0x164] ss:$16 sps:$4 sm:$0xff]  }
 0x1e4   :  { %1194 = vmatpush1.bf16.msra.mxu1 %v14658_v40  ;;  %v14730_v40 = vld [vmem:[#allocation13 + $0x160] ss:$16 sps:$4 sm:$0xff]  }
 0x1e5   :  { %2043 = vmatprep.subr.bf16.mxu1 %v14666_v42  ;;  %v14738_v42 = vld [vmem:[#allocation13 + $0x184] ss:$16 sps:$4 sm:$0xff]  }
 0x27a   :  { %v497_v56 = vpop.f32.mrb[0].mxu1 }
 0x27b   :  { %v498_v57 = vadd.f32 %v497_v56, %v296_v54  ;;  %v499_v58 = vpop.f32.mrb[1].mxu1  ;;  %v14664_v56 = vld [vmem:[#allocation13] ss:$16 sps:$4 sm:$0xff]  }
 0x27c   :  { %v500_v59 = vadd.f32 %v499_v58, %v300_v55  ;;  %v501_v60 = vpop.f32.mrb[2].mxu1 }
 0x27d   :  { %v504_v61 = vmax.f32 %v498_v57, 0.0  ;;  %v502_v62 = vpop.f32.mrb[3].mxu1  ;;  %v14667_v57 = vld [vmem:[#allocation13 + $0x8] ss:$16 sps:$4 sm:$0xff]   ;;  %v14675_v60 = vld [vmem:[#allocation13 + $0x2c] ss:$16 sps:$4 sm:$0xff]  }
 0x27e   :  { %v505_v63 = vmax.f32 %v500_v59, 0.0  ;;  %v14672_v59 = vld [vmem:[#allocation13 + $0x24] ss:$16 sps:$4 sm:$0xff]   ;;  %v14673_v62 = vld [vmem:[#allocation13 + $0x28] ss:$16 sps:$4 sm:$0xff]  }
 0x27f   :  { %v507_v2 = vpack.c.bf16 %v504_v61, %v504_v61  ;;  %v14670_v61 = vld [vmem:[#allocation13 + $0x20] ss:$16 sps:$4 sm:$0xff]  }
 0x280   :  { %v508_v0 = vpack.c.bf16 %v505_v63, %v505_v63  ;;  %v14681_v63 = vld [vmem:[#allocation13 + $0x4c] ss:$16 sps:$4 sm:$0xff]  }
 0x282   :  { %744 = vmatprep.mubr.bf16.mxu0 %v508_v0  ;;  %v14679_v0 = vld [vmem:[#allocation13 + $0x48] ss:$16 sps:$4 sm:$0xff]  }
 0x283   :  { %745 = vmatmul.mubr.bf16.vlgmr.msra.gmra.mrb[4].mxu0 %v507_v2  ;;  %v14687_v2 = vld [vmem:[#allocation13 + $0x6c] ss:$16 sps:$4 sm:$0xff]  }
 0x284   :  { %1205 = vmatpush1.bf16.msra.mxu0 %v14571_v1  ;;  %v14684_v1 = vld [vmem:[#allocation13 + $0x64] ss:$16 sps:$4 sm:$0xff]  }
 0x285   :  { %1206 = vmatprep.subr.bf16.mxu0 %v14579_v3  ;;  %v14682_v3 = vld [vmem:[#allocation13 + $0x60] ss:$16 sps:$4 sm:$0xff]  }
 0x288   :  { %1207 = vmatpush1.bf16.msra.mxu0 %v14577_v6  ;;  %v14685_v6 = vld [vmem:[#allocation13 + $0x68] ss:$16 sps:$4 sm:$0xff]  }
 0x289   :  { %1208 = vmatprep.subr.bf16.mxu0 %v14585_v8  ;;  %v14690_v8 = vld [vmem:[#allocation13 + $0x84] ss:$16 sps:$4 sm:$0xff]  }
 0x28c   :  { %1209 = vmatpush1.bf16.msra.mxu0 %v14583_v9  ;;  %v14693_v9 = vld [vmem:[#allocation13 + $0x8c] ss:$16 sps:$4 sm:$0xff]  }
 0x28d   :  { %1210 = vmatprep.subr.bf16.mxu0 %v14591_v10  ;;  %v14688_v10 = vld [vmem:[#allocation13 + $0x80] ss:$16 sps:$4 sm:$0xff]  }
 0x290   :  { %1211 = vmatpush1.bf16.msra.mxu0 %v14589_v12  ;;  %v14691_v12 = vld [vmem:[#allocation13 + $0x88] ss:$16 sps:$4 sm:$0xff]  }
 0x291   :  { %1212 = vmatprep.subr.bf16.mxu0 %v14597_v14  ;;  %v14696_v14 = vld [vmem:[#allocation13 + $0xa4] ss:$16 sps:$4 sm:$0xff]  }
 0x294   :  { %1213 = vmatpush1.bf16.msra.mxu0 %v14595_v15  ;;  %v14699_v15 = vld [vmem:[#allocation13 + $0xac] ss:$16 sps:$4 sm:$0xff]  }
 0x295   :  { %1214 = vmatprep.subr.bf16.mxu0 %v14603_v16  ;;  %v14694_v16 = vld [vmem:[#allocation13 + $0xa0] ss:$16 sps:$4 sm:$0xff]  }
 0x298   :  { %1215 = vmatpush1.bf16.msra.mxu0 %v14601_v17  ;;  %v14697_v17 = vld [vmem:[#allocation13 + $0xa8] ss:$16 sps:$4 sm:$0xff]  }
 0x299   :  { %1216 = vmatprep.subr.bf16.mxu0 %v14609_v18  ;;  %v14702_v18 = vld [vmem:[#allocation13 + $0xc4] ss:$16 sps:$4 sm:$0xff]  }
 0x29c   :  { %1217 = vmatpush1.bf16.msra.mxu0 %v14607_v19  ;;  %v14705_v19 = vld [vmem:[#allocation13 + $0xcc] ss:$16 sps:$4 sm:$0xff]  }
 0x29d   :  { %1218 = vmatprep.subr.bf16.mxu0 %v14615_v20  ;;  %v14700_v20 = vld [vmem:[#allocation13 + $0xc0] ss:$16 sps:$4 sm:$0xff]  }
 0x2a0   :  { %1219 = vmatpush1.bf16.msra.mxu0 %v14613_v21  ;;  %v14703_v21 = vld [vmem:[#allocation13 + $0xc8] ss:$16 sps:$4 sm:$0xff]  }
 0x2a1   :  { %1220 = vmatprep.subr.bf16.mxu0 %v14621_v22  ;;  %v14708_v22 = vld [vmem:[#allocation13 + $0xe4] ss:$16 sps:$4 sm:$0xff]  }
 0x2a4   :  { %1221 = vmatpush1.bf16.msra.mxu0 %v14619_v23  ;;  %v14711_v23 = vld [vmem:[#allocation13 + $0xec] ss:$16 sps:$4 sm:$0xff]  }
 0x2a5   :  { %1222 = vmatprep.subr.bf16.mxu0 %v14627_v24  ;;  %v14706_v24 = vld [vmem:[#allocation13 + $0xe0] ss:$16 sps:$4 sm:$0xff]  }
 0x2a8   :  { %1223 = vmatpush1.bf16.msra.mxu0 %v14625_v25  ;;  %v14709_v25 = vld [vmem:[#allocation13 + $0xe8] ss:$16 sps:$4 sm:$0xff]  }
 0x2a9   :  { %1224 = vmatprep.subr.bf16.mxu0 %v14633_v26  ;;  %v14714_v26 = vld [vmem:[#allocation13 + $0x104] ss:$16 sps:$4 sm:$0xff]  }
 0x2ac   :  { %1225 = vmatpush1.bf16.msra.mxu0 %v14631_v27  ;;  %v14717_v27 = vld [vmem:[#allocation13 + $0x10c] ss:$16 sps:$4 sm:$0xff]  }
 0x2ad   :  { %1226 = vmatprep.subr.bf16.mxu0 %v14639_v28  ;;  %v14712_v28 = vld [vmem:[#allocation13 + $0x100] ss:$16 sps:$4 sm:$0xff]  }
 0x2b0   :  { %1227 = vmatpush1.bf16.msra.mxu0 %v14637_v29  ;;  %v14715_v29 = vld [vmem:[#allocation13 + $0x108] ss:$16 sps:$4 sm:$0xff]  }
 0x2b1   :  { %1228 = vmatprep.subr.bf16.mxu0 %v14645_v30  ;;  %v14720_v30 = vld [vmem:[#allocation13 + $0x124] ss:$16 sps:$4 sm:$0xff]  }
 0x2b4   :  { %1229 = vmatpush1.bf16.msra.mxu0 %v14643_v31  ;;  %v14723_v31 = vld [vmem:[#allocation13 + $0x12c] ss:$16 sps:$4 sm:$0xff]  }
 0x2b5   :  { %1230 = vmatprep.subr.bf16.mxu0 %v14651_v32  ;;  %v14718_v32 = vld [vmem:[#allocation13 + $0x120] ss:$16 sps:$4 sm:$0xff]  }
 0x2b8   :  { %1231 = vmatpush1.bf16.msra.mxu0 %v14649_v33  ;;  %v14721_v33 = vld [vmem:[#allocation13 + $0x128] ss:$16 sps:$4 sm:$0xff]  }
 0x2b9   :  { %1232 = vmatprep.subr.bf16.mxu0 %v14657_v35  ;;  %v14729_v35 = vld [vmem:[#allocation13 + $0x14c] ss:$16 sps:$4 sm:$0xff]  }
 0x2bc   :  { %1233 = vmatpush1.bf16.msra.mxu0 %v14655_v37  ;;  %v14727_v37 = vld [vmem:[#allocation13 + $0x148] ss:$16 sps:$4 sm:$0xff]  }
 0x2bd   :  { %1234 = vmatprep.subr.bf16.mxu0 %v14663_v39  ;;  %v14735_v39 = vld [vmem:[#allocation13 + $0x16c] ss:$16 sps:$4 sm:$0xff]  }
 0x2c0   :  { %1235 = vmatpush1.bf16.msra.mxu0 %v14661_v41  ;;  %v14733_v41 = vld [vmem:[#allocation13 + $0x168] ss:$16 sps:$4 sm:$0xff]  }
 0x2c1   :  { %2125 = vmatprep.subr.bf16.mxu0 %v14669_v43  ;;  %v14741_v43 = vld [vmem:[#allocation13 + $0x18c] ss:$16 sps:$4 sm:$0xff]  }
 0x356   :  { %v746_v47 = vpop.f32.mrb[4].mxu0 }
 0x357   :  { %v747_v48 = vadd.f32 %v746_v47, %v545_v45  ;;  %v748_v49 = vpop.f32.mrb[5].mxu0  ;;  %v14739_v45 = vld [vmem:[#allocation13 + $0x188] ss:$16 sps:$4 sm:$0xff]   ;;  %v14747_v47 = vld [vmem:[#allocation13 + $0x1ac] ss:$16 sps:$4 sm:$0xff]  }
 0x358   :  { %v749_v50 = vadd.f32 %v748_v49, %v549_v46  ;;  %v750_v51 = vpop.f32.mrb[6].mxu0  ;;  %v14744_v46 = vld [vmem:[#allocation13 + $0x1a4] ss:$16 sps:$4 sm:$0xff]   ;;  %v14745_v49 = vld [vmem:[#allocation13 + $0x1a8] ss:$16 sps:$4 sm:$0xff]  }
 0x359   :  { %v753_v52 = vadd.f32 %v747_v48, %v15594_v11  ;;  %v751_v53 = vpop.f32.mrb[7].mxu0  ;;  %v14678_v11 = vld [vmem:[#allocation13 + $0x44] ss:$16 sps:$4 sm:$0xff]   ;;  %v14742_v48 = vld [vmem:[#allocation13 + $0x1a0] ss:$16 sps:$4 sm:$0xff]  }
 0x35a   :  { %v754_v54 = vadd.f32 %v749_v50, %v15596_v13  ;;  %v14676_v13 = vld [vmem:[#allocation13 + $0x40] ss:$16 sps:$4 sm:$0xff]   ;;  %v14750_v50 = vld [vmem:[#allocation13 + $0x1c4] ss:$16 sps:$4 sm:$0xff]   ;;  %v14753_v51 = vld [vmem:[#allocation13 + $0x1cc] ss:$16 sps:$4 sm:$0xff]  }
 0x35b   :  { %v756_v58 = vpack.c.bf16 %v753_v52, %v753_v52  ;;  %v14748_v52 = vld [vmem:[#allocation13 + $0x1c0] ss:$16 sps:$4 sm:$0xff]   ;;  %v14751_v53 = vld [vmem:[#allocation13 + $0x1c8] ss:$16 sps:$4 sm:$0xff]  }
 0x35c   :  { %v757_v55 = vpack.c.bf16 %v754_v54, %v754_v54  ;;  %v14756_v54 = vld [vmem:[#allocation13 + $0x1e4] ss:$16 sps:$4 sm:$0xff]  }
 0x35e   :  { %1195 = vmatprep.mubr.bf16.mxu1 %v757_v55  ;;  %1236 = vmatprep.mubr.bf16.mxu0 %v757_v55  ;;  %v14759_v55 = vld [vmem:[#allocation13 + $0x1ec] ss:$16 sps:$4 sm:$0xff]  }
 0x35f   :  { %1196 = vmatmul.mubr.bf16.vlgmr.msra.gmra.mrb[4].mxu1 %v756_v58  ;;  %1237 = vmatmul.mubr.bf16.vlgmr.msra.gmra.mrb[8].mxu0 %v756_v58  ;;  %v14762_v58 = vld [vmem:[#allocation13 + $0x204] ss:$16 sps:$4 sm:$0xff]  }
 0x360   :  { %2044 = vmatpush1.bf16.msra.mxu1 %v14664_v56  ;;  %2126 = vmatpush1.bf16.msra.mxu0 %v14667_v57  ;;  %v14754_v56 = vld [vmem:[#allocation13 + $0x1e0] ss:$16 sps:$4 sm:$0xff]   ;;  %v14757_v57 = vld [vmem:[#allocation13 + $0x1e8] ss:$16 sps:$4 sm:$0xff]  }
 0x361   :  { %2045 = vmatprep.subr.bf16.mxu1 %v14672_v59  ;;  %2127 = vmatprep.subr.bf16.mxu0 %v14675_v60  ;;  %v14765_v59 = vld [vmem:[#allocation13 + $0x20c] ss:$16 sps:$4 sm:$0xff]   ;;  %v15606_v60 = vld [vmem:[#allocation5 + $0x6] sm:$0xf] }
 0x364   :  { %2046 = vmatpush1.bf16.msra.mxu1 %v14670_v61  ;;  %2128 = vmatpush1.bf16.msra.mxu0 %v14673_v62  ;;  %v15609_v61 = vsub.s32 3, %v15584_v4  ;;  %v826_v62 = vrot.slane %v15606_v60, %v15587_v5 }
 0x365   :  { %2047 = vmatprep.subr.bf16.mxu1 %v14678_v11  ;;  %2129 = vmatprep.subr.bf16.mxu0 %v14681_v63  ;;  %v830_v11 = vrot.slane %v15606_v60, %v15590_v7 }
 0x366   :  { %v838_v63 = vrot.slane %v15606_v60, %v15609_v61 }
 0x368   :  { %2048 = vmatpush1.bf16.msra.mxu1 %v14676_v13  ;;  %2130 = vmatpush1.bf16.msra.mxu0 %v14679_v0 }
 0x369   :  { %2049 = vmatprep.subr.bf16.mxu1 %v14684_v1  ;;  %2131 = vmatprep.subr.bf16.mxu0 %v14687_v2 }
 0x36c   :  { %2050 = vmatpush1.bf16.msra.mxu1 %v14682_v3  ;;  %2132 = vmatpush1.bf16.msra.mxu0 %v14685_v6 }
 0x36d   :  { %2051 = vmatprep.subr.bf16.mxu1 %v14690_v8  ;;  %2133 = vmatprep.subr.bf16.mxu0 %v14693_v9 }
 0x370   :  { %2052 = vmatpush1.bf16.msra.mxu1 %v14688_v10  ;;  %2134 = vmatpush1.bf16.msra.mxu0 %v14691_v12 }
 0x371   :  { %2053 = vmatprep.subr.bf16.mxu1 %v14696_v14  ;;  %2135 = vmatprep.subr.bf16.mxu0 %v14699_v15 }
 0x374   :  { %2054 = vmatpush1.bf16.msra.mxu1 %v14694_v16  ;;  %2136 = vmatpush1.bf16.msra.mxu0 %v14697_v17 }
 0x375   :  { %2055 = vmatprep.subr.bf16.mxu1 %v14702_v18  ;;  %2137 = vmatprep.subr.bf16.mxu0 %v14705_v19  ;;  %v14760_v19 = vld [vmem:[#allocation13 + $0x200] ss:$16 sps:$4 sm:$0xff]  }
 0x378   :  { %2056 = vmatpush1.bf16.msra.mxu1 %v14700_v20  ;;  %2138 = vmatpush1.bf16.msra.mxu0 %v14703_v21  ;;  %v14763_v20 = vld [vmem:[#allocation13 + $0x208] ss:$16 sps:$4 sm:$0xff]  }
 0x379   :  { %2057 = vmatprep.subr.bf16.mxu1 %v14708_v22  ;;  %2139 = vmatprep.subr.bf16.mxu0 %v14711_v23  ;;  %v14768_v22 = vld [vmem:[#allocation13 + $0x224] ss:$16 sps:$4 sm:$0xff]   ;;  %v14771_v23 = vld [vmem:[#allocation13 + $0x22c] ss:$16 sps:$4 sm:$0xff]  }
 0x37c   :  { %2058 = vmatpush1.bf16.msra.mxu1 %v14706_v24  ;;  %2140 = vmatpush1.bf16.msra.mxu0 %v14709_v25  ;;  %v14766_v25 = vld [vmem:[#allocation13 + $0x220] ss:$16 sps:$4 sm:$0xff]  }
 0x37d   :  { %2059 = vmatprep.subr.bf16.mxu1 %v14714_v26  ;;  %2141 = vmatprep.subr.bf16.mxu0 %v14717_v27  ;;  %v14769_v26 = vld [vmem:[#allocation13 + $0x228] ss:$16 sps:$4 sm:$0xff]   ;;  %v14774_v27 = vld [vmem:[#allocation13 + $0x244] ss:$16 sps:$4 sm:$0xff]  }
 0x380   :  { %2060 = vmatpush1.bf16.msra.mxu1 %v14712_v28  ;;  %2142 = vmatpush1.bf16.msra.mxu0 %v14715_v29  ;;  %v14777_v28 = vld [vmem:[#allocation13 + $0x24c] ss:$16 sps:$4 sm:$0xff]   ;;  %v14772_v29 = vld [vmem:[#allocation13 + $0x240] ss:$16 sps:$4 sm:$0xff]  }
 0x381   :  { %2061 = vmatprep.subr.bf16.mxu1 %v14720_v30  ;;  %2143 = vmatprep.subr.bf16.mxu0 %v14723_v31  ;;  %v14775_v30 = vld [vmem:[#allocation13 + $0x248] ss:$16 sps:$4 sm:$0xff]   ;;  %v14780_v31 = vld [vmem:[#allocation13 + $0x264] ss:$16 sps:$4 sm:$0xff]  }
 0x384   :  { %2062 = vmatpush1.bf16.msra.mxu1 %v14718_v32  ;;  %2144 = vmatpush1.bf16.msra.mxu0 %v14721_v33  ;;  %v14783_v32 = vld [vmem:[#allocation13 + $0x26c] ss:$16 sps:$4 sm:$0xff]   ;;  %v14778_v33 = vld [vmem:[#allocation13 + $0x260] ss:$16 sps:$4 sm:$0xff]  }
 0x385   :  { %2063 = vmatprep.subr.bf16.mxu1 %v14726_v34  ;;  %2145 = vmatprep.subr.bf16.mxu0 %v14729_v35  ;;  %v14781_v34 = vld [vmem:[#allocation13 + $0x268] ss:$16 sps:$4 sm:$0xff]   ;;  %v14786_v35 = vld [vmem:[#allocation13 + $0x284] ss:$16 sps:$4 sm:$0xff]  }
 0x388   :  { %2064 = vmatpush1.bf16.msra.mxu1 %v14724_v36  ;;  %2146 = vmatpush1.bf16.msra.mxu0 %v14727_v37  ;;  %v14789_v36 = vld [vmem:[#allocation13 + $0x28c] ss:$16 sps:$4 sm:$0xff]   ;;  %v14784_v37 = vld [vmem:[#allocation13 + $0x280] ss:$16 sps:$4 sm:$0xff]  }
 0x389   :  { %2065 = vmatprep.subr.bf16.mxu1 %v14732_v38  ;;  %2147 = vmatprep.subr.bf16.mxu0 %v14735_v39  ;;  %v14787_v38 = vld [vmem:[#allocation13 + $0x288] ss:$16 sps:$4 sm:$0xff]   ;;  %v14792_v39 = vld [vmem:[#allocation13 + $0x2a4] ss:$16 sps:$4 sm:$0xff]  }
 0x38c   :  { %2066 = vmatpush1.bf16.msra.mxu1 %v14730_v40  ;;  %2148 = vmatpush1.bf16.msra.mxu0 %v14733_v41  ;;  %v14795_v40 = vld [vmem:[#allocation13 + $0x2ac] ss:$16 sps:$4 sm:$0xff]   ;;  %v14790_v41 = vld [vmem:[#allocation13 + $0x2a0] ss:$16 sps:$4 sm:$0xff]  }
 0x38d   :  { %2067 = vmatprep.subr.bf16.mxu1 %v14738_v42  ;;  %2149 = vmatprep.subr.bf16.mxu0 %v14741_v43  ;;  %v14793_v42 = vld [vmem:[#allocation13 + $0x2a8] ss:$16 sps:$4 sm:$0xff]   ;;  %v14798_v43 = vld [vmem:[#allocation13 + $0x2c4] ss:$16 sps:$4 sm:$0xff]  }
 0x390   :  { %2068 = vmatpush1.bf16.msra.mxu1 %v14736_v44  ;;  %2150 = vmatpush1.bf16.msra.mxu0 %v14739_v45  ;;  %v14801_v44 = vld [vmem:[#allocation13 + $0x2cc] ss:$16 sps:$4 sm:$0xff]   ;;  %v14796_v45 = vld [vmem:[#allocation13 + $0x2c0] ss:$16 sps:$4 sm:$0xff]  }
 0x391   :  { %2069 = vmatprep.subr.bf16.mxu1 %v14744_v46  ;;  %2151 = vmatprep.subr.bf16.mxu0 %v14747_v47  ;;  %v14799_v46 = vld [vmem:[#allocation13 + $0x2c8] ss:$16 sps:$4 sm:$0xff]   ;;  %v14804_v47 = vld [vmem:[#allocation13 + $0x2e4] ss:$16 sps:$4 sm:$0xff]  }
 0x394   :  { %2070 = vmatpush1.bf16.msra.mxu1 %v14742_v48  ;;  %2152 = vmatpush1.bf16.msra.mxu0 %v14745_v49  ;;  %v14807_v48 = vld [vmem:[#allocation13 + $0x2ec] ss:$16 sps:$4 sm:$0xff]   ;;  %v14802_v49 = vld [vmem:[#allocation13 + $0x2e0] ss:$16 sps:$4 sm:$0xff]  }
 0x395   :  { %2071 = vmatprep.subr.bf16.mxu1 %v14750_v50  ;;  %2153 = vmatprep.subr.bf16.mxu0 %v14753_v51  ;;  %v14805_v50 = vld [vmem:[#allocation13 + $0x2e8] ss:$16 sps:$4 sm:$0xff]   ;;  %v14810_v51 = vld [vmem:[#allocation13 + $0x304] ss:$16 sps:$4 sm:$0xff]  }
 0x398   :  { %2072 = vmatpush1.bf16.msra.mxu1 %v14748_v52  ;;  %2154 = vmatpush1.bf16.msra.mxu0 %v14751_v53  ;;  %v14813_v52 = vld [vmem:[#allocation13 + $0x30c] ss:$16 sps:$4 sm:$0xff]   ;;  %v14808_v53 = vld [vmem:[#allocation13 + $0x300] ss:$16 sps:$4 sm:$0xff]  }
 0x399   :  { %2073 = vmatprep.subr.bf16.mxu1 %v14756_v54  ;;  %2155 = vmatprep.subr.bf16.mxu0 %v14759_v55  ;;  %v14811_v54 = vld [vmem:[#allocation13 + $0x308] ss:$16 sps:$4 sm:$0xff]   ;;  %v14816_v55 = vld [vmem:[#allocation13 + $0x324] ss:$16 sps:$4 sm:$0xff]  }
 0x39c   :  { %2074 = vmatpush1.bf16.msra.mxu1 %v14754_v56  ;;  %2156 = vmatpush1.bf16.msra.mxu0 %v14757_v57  ;;  %v14819_v56 = vld [vmem:[#allocation13 + $0x32c] ss:$16 sps:$4 sm:$0xff]   ;;  %v14814_v57 = vld [vmem:[#allocation13 + $0x320] ss:$16 sps:$4 sm:$0xff]  }
 0x39d   :  { %2084 = vmatprep.subr.bf16.mxu1 %v14762_v58  ;;  %2166 = vmatprep.subr.bf16.mxu0 %v14765_v59  ;;  %v14817_v58 = vld [vmem:[#allocation13 + $0x328] ss:$16 sps:$4 sm:$0xff]   ;;  %v14822_v59 = vld [vmem:[#allocation13 + $0x344] ss:$16 sps:$4 sm:$0xff]  }
 0x432   :  { %v1197_v13 = vpop.f32.mrb[4].mxu1  ;;  %v15617_v0 = vpop.f32.mrb[8].mxu0 }
 0x433   :  { %v15619_v1 = vadd.f32 %v1197_v13, %v826_v62  ;;  %v1199_v2 = vpop.f32.mrb[5].mxu1  ;;  %v1240_v3 = vpop.f32.mrb[9].mxu0  ;;  %v14825_v62 = vld [vmem:[#allocation13 + $0x34c] ss:$16 sps:$4 sm:$0xff]   ;;  %v14828_v13 = vld [vmem:[#allocation13 + $0x364] ss:$16 sps:$4 sm:$0xff]  }
 0x434   :  { %v15621_v6 = vadd.f32 %v1199_v2, %v830_v11  ;;  %v15623_v8 = vadd.f32 %v1240_v3, %v838_v63  ;;  %v1201_v9 = vpop.f32.mrb[6].mxu1  ;;  %v1242_v10 = vpop.f32.mrb[10].mxu0  ;;  %v14820_v11 = vld [vmem:[#allocation13 + $0x340] ss:$16 sps:$4 sm:$0xff]   ;;  %v14823_v63 = vld [vmem:[#allocation13 + $0x348] ss:$16 sps:$4 sm:$0xff]  }
 0x435   :  { %v1245_v12 = vmax.f32 %v15619_v1, 0.0  ;;  %v1202_v14 = vpop.f32.mrb[7].mxu1  ;;  %v1243_v15 = vpop.f32.mrb[11].mxu0  ;;  %v14831_v2 = vld [vmem:[#allocation13 + $0x36c] ss:$16 sps:$4 sm:$0xff]  }
 0x436   :  { %v1246_v16 = vmax.f32 %v15621_v6, 0.0  ;;  %v1248_v17 = vmax.f32 %v15623_v8, 0.0  ;;  %v14826_v3 = vld [vmem:[#allocation13 + $0x360] ss:$16 sps:$4 sm:$0xff]   ;;  %v14829_v9 = vld [vmem:[#allocation13 + $0x368] ss:$16 sps:$4 sm:$0xff]  }
 0x437   :  { %v1250_v21 = vpack.c.bf16 %v1245_v12, %v1245_v12  ;;  %v14834_v10 = vld [vmem:[#allocation13 + $0x384] ss:$16 sps:$4 sm:$0xff]   ;;  %v14837_v12 = vld [vmem:[#allocation13 + $0x38c] ss:$16 sps:$4 sm:$0xff]   ;;  %v14832_v14 = vld [vmem:[#allocation13 + $0x380] ss:$16 sps:$4 sm:$0xff]  }
 0x438   :  { %v1251_v18 = vpack.c.bf16 %v1246_v16, %v1246_v16  ;;  %v1253_v24 = vpack.c.bf16 %v1248_v17, %v1248_v17  ;;  %v14835_v15 = vld [vmem:[#allocation13 + $0x388] ss:$16 sps:$4 sm:$0xff]   ;;  %v15629_v16 = vsub.s32 2, %v15584_v4  ;;  %v14840_v17 = vld [vmem:[#allocation13 + $0x3a4] ss:$16 sps:$4 sm:$0xff]  }
 0x43a   :  { %2075 = vmatprep.mubr.bf16.mxu1 %v1251_v18  ;;  %2157 = vmatprep.mubr.bf16.mxu0 %v1251_v18  ;;  %v14843_v18 = vld [vmem:[#allocation13 + $0x3ac] ss:$16 sps:$4 sm:$0xff]  }
 0x43b   :  { %2076 = vmatmul.mubr.bf16.vlgmr.msra.gmra.mrb[8].mxu1 %v1250_v21  ;;  %2158 = vmatmul.mubr.bf16.vlgmr.msra.gmra.mrb[12].mxu0 %v1250_v21  ;;  %v834_v21 = vrot.slane %v15606_v60, %v15629_v16 }
 0x43c   :  { %2085 = vmatpush1.bf16.msra.mxu1 %v14760_v19  ;;  %2167 = vmatpush1.bf16.msra.mxu0 %v14763_v20  ;;  %v14838_v19 = vld [vmem:[#allocation13 + $0x3a0] ss:$16 sps:$4 sm:$0xff]   ;;  %v14841_v20 = vld [vmem:[#allocation13 + $0x3a8] ss:$16 sps:$4 sm:$0xff]  }
 0x43d   :  { %2116 = vmatprep.mubr.bf16.mxu1 %v1253_v24  ;;  %2198 = vmatprep.mubr.bf16.mxu0 %v1253_v24  ;;  %v14844_v24 = vld [vmem:[#allocation13 + $0x3c0] ss:$16 sps:$4 sm:$0xff]  }
 0x43e   :  { %2086 = vmatprep.subr.bf16.mxu1 %v14768_v22  ;;  %2168 = vmatprep.subr.bf16.mxu0 %v14771_v23  ;;  %v14846_v22 = vld [vmem:[#allocation13 + $0x3c4] ss:$16 sps:$4 sm:$0xff]   ;;  %v14849_v23 = vld [vmem:[#allocation13 + $0x3cc] ss:$16 sps:$4 sm:$0xff]  }
 0x440   :  { %2087 = vmatpush1.bf16.msra.mxu1 %v14766_v25  ;;  %2169 = vmatpush1.bf16.msra.mxu0 %v14769_v26  ;;  %v14847_v25 = vld [vmem:[#allocation13 + $0x3c8] ss:$16 sps:$4 sm:$0xff]   ;;  %v15634_v26 = vadd.f32 %v15617_v0, %v834_v21  ;;  %v14924_v21 = vld [vmem:[#allocation14 + $0x164] ss:$16 sps:$4 sm:$0xff]  }
 0x441   :  { %2088 = vmatprep.subr.bf16.mxu1 %v14774_v27  ;;  %2170 = vmatprep.subr.bf16.mxu0 %v14777_v28  ;;  %v14852_v27 = vld [vmem:[#allocation13 + $0x3e4] ss:$16 sps:$4 sm:$0xff]   ;;  %v14855_v28 = vld [vmem:[#allocation13 + $0x3ec] ss:$16 sps:$4 sm:$0xff]  }
 0x442   :  { %v1247_v60 = vmax.f32 %v15634_v26, 0.0 }
 0x444   :  { %2089 = vmatpush1.bf16.msra.mxu1 %v14772_v29  ;;  %2171 = vmatpush1.bf16.msra.mxu0 %v14775_v30  ;;  %v14850_v29 = vld [vmem:[#allocation13 + $0x3e0] ss:$16 sps:$4 sm:$0xff]   ;;  %v14853_v30 = vld [vmem:[#allocation13 + $0x3e8] ss:$16 sps:$4 sm:$0xff]   ;;  %v1252_v0 = vpack.c.bf16 %v1247_v60, %v1247_v60  ;;  %v14939_v60 = vld [vmem:[#allocation14 + $0x3a4] ss:$16 sps:$4 sm:$0xff]  }
 0x445   :  { %2090 = vmatprep.subr.bf16.mxu1 %v14780_v31  ;;  %2172 = vmatprep.subr.bf16.mxu0 %v14783_v32  ;;  %v14858_v31 = vld [vmem:[#allocation14 + $0x4] ss:$16 sps:$4 sm:$0xff]  }
 0x446   :  { %v14861_v32 = vld [vmem:[#allocation14 + $0x204] ss:$16 sps:$4 sm:$0xff]  }
 0x448   :  { %2091 = vmatpush1.bf16.msra.mxu1 %v14778_v33  ;;  %2173 = vmatpush1.bf16.msra.mxu0 %v14781_v34  ;;  %v14856_v33 = vld [vmem:[#allocation14] ss:$16 sps:$4 sm:$0xff]  }
 0x449   :  { %2092 = vmatprep.subr.bf16.mxu1 %v14786_v35  ;;  %2174 = vmatprep.subr.bf16.mxu0 %v14789_v36  ;;  %v14859_v34 = vld [vmem:[#allocation14 + $0x200] ss:$16 sps:$4 sm:$0xff]   ;;  %v14864_v35 = vld [vmem:[#allocation14 + $0x24] ss:$16 sps:$4 sm:$0xff]  }
 0x44a   :  { %v14867_v36 = vld [vmem:[#allocation14 + $0x224] ss:$16 sps:$4 sm:$0xff]  }
 0x44c   :  { %2093 = vmatpush1.bf16.msra.mxu1 %v14784_v37  ;;  %2175 = vmatpush1.bf16.msra.mxu0 %v14787_v38  ;;  %v14862_v37 = vld [vmem:[#allocation14 + $0x20] ss:$16 sps:$4 sm:$0xff]  }
 0x44d   :  { %2094 = vmatprep.subr.bf16.mxu1 %v14792_v39  ;;  %2176 = vmatprep.subr.bf16.mxu0 %v14795_v40  ;;  %v14865_v38 = vld [vmem:[#allocation14 + $0x220] ss:$16 sps:$4 sm:$0xff]   ;;  %v14870_v39 = vld [vmem:[#allocation14 + $0x44] ss:$16 sps:$4 sm:$0xff]  }
 0x44e   :  { %v14873_v40 = vld [vmem:[#allocation14 + $0x244] ss:$16 sps:$4 sm:$0xff]  }
 0x450   :  { %2095 = vmatpush1.bf16.msra.mxu1 %v14790_v41  ;;  %2177 = vmatpush1.bf16.msra.mxu0 %v14793_v42  ;;  %v14868_v41 = vld [vmem:[#allocation14 + $0x40] ss:$16 sps:$4 sm:$0xff]  }
 0x451   :  { %2096 = vmatprep.subr.bf16.mxu1 %v14798_v43  ;;  %2178 = vmatprep.subr.bf16.mxu0 %v14801_v44  ;;  %v14871_v42 = vld [vmem:[#allocation14 + $0x240] ss:$16 sps:$4 sm:$0xff]   ;;  %v14876_v43 = vld [vmem:[#allocation14 + $0x64] ss:$16 sps:$4 sm:$0xff]  }
 0x452   :  { %v14879_v44 = vld [vmem:[#allocation14 + $0x264] ss:$16 sps:$4 sm:$0xff]  }
 0x454   :  { %2097 = vmatpush1.bf16.msra.mxu1 %v14796_v45  ;;  %2179 = vmatpush1.bf16.msra.mxu0 %v14799_v46  ;;  %v14874_v45 = vld [vmem:[#allocation14 + $0x60] ss:$16 sps:$4 sm:$0xff]  }
 0x455   :  { %2098 = vmatprep.subr.bf16.mxu1 %v14804_v47  ;;  %2180 = vmatprep.subr.bf16.mxu0 %v14807_v48  ;;  %v14877_v46 = vld [vmem:[#allocation14 + $0x260] ss:$16 sps:$4 sm:$0xff]   ;;  %v14882_v47 = vld [vmem:[#allocation14 + $0x84] ss:$16 sps:$4 sm:$0xff]  }
 0x456   :  { %v14885_v48 = vld [vmem:[#allocation14 + $0x284] ss:$16 sps:$4 sm:$0xff]  }
 0x458   :  { %2099 = vmatpush1.bf16.msra.mxu1 %v14802_v49  ;;  %2181 = vmatpush1.bf16.msra.mxu0 %v14805_v50  ;;  %v14880_v49 = vld [vmem:[#allocation14 + $0x80] ss:$16 sps:$4 sm:$0xff]  }
 0x459   :  { %2100 = vmatprep.subr.bf16.mxu1 %v14810_v51  ;;  %2182 = vmatprep.subr.bf16.mxu0 %v14813_v52  ;;  %v14883_v50 = vld [vmem:[#allocation14 + $0x280] ss:$16 sps:$4 sm:$0xff]   ;;  %v14888_v51 = vld [vmem:[#allocation14 + $0xa4] ss:$16 sps:$4 sm:$0xff]  }
 0x45a   :  { %v14891_v52 = vld [vmem:[#allocation14 + $0x2a4] ss:$16 sps:$4 sm:$0xff]  }
 0x45c   :  { %2101 = vmatpush1.bf16.msra.mxu1 %v14808_v53  ;;  %2183 = vmatpush1.bf16.msra.mxu0 %v14811_v54  ;;  %v14886_v53 = vld [vmem:[#allocation14 + $0xa0] ss:$16 sps:$4 sm:$0xff]  }
 0x45d   :  { %2102 = vmatprep.subr.bf16.mxu1 %v14816_v55  ;;  %2184 = vmatprep.subr.bf16.mxu0 %v14819_v56  ;;  %v14889_v54 = vld [vmem:[#allocation14 + $0x2a0] ss:$16 sps:$4 sm:$0xff]   ;;  %v14894_v55 = vld [vmem:[#allocation14 + $0xc4] ss:$16 sps:$4 sm:$0xff]  }
 0x45e   :  { %v14897_v56 = vld [vmem:[#allocation14 + $0x2c4] ss:$16 sps:$4 sm:$0xff]  }
 0x460   :  { %2103 = vmatpush1.bf16.msra.mxu1 %v14814_v57  ;;  %2185 = vmatpush1.bf16.msra.mxu0 %v14817_v58  ;;  %v14892_v57 = vld [vmem:[#allocation14 + $0xc0] ss:$16 sps:$4 sm:$0xff]  }
 0x461   :  { %2104 = vmatprep.subr.bf16.mxu1 %v14822_v59  ;;  %2186 = vmatprep.subr.bf16.mxu0 %v14825_v62  ;;  %v14895_v58 = vld [vmem:[#allocation14 + $0x2c0] ss:$16 sps:$4 sm:$0xff]   ;;  %v14900_v59 = vld [vmem:[#allocation14 + $0xe4] ss:$16 sps:$4 sm:$0xff]  }
 0x462   :  { %v14903_v62 = vld [vmem:[#allocation14 + $0x2e4] ss:$16 sps:$4 sm:$0xff]  }
 0x464   :  { %2105 = vmatpush1.bf16.msra.mxu1 %v14820_v11  ;;  %2187 = vmatpush1.bf16.msra.mxu0 %v14823_v63  ;;  %v14898_v11 = vld [vmem:[#allocation14 + $0xe0] ss:$16 sps:$4 sm:$0xff]  }
 0x465   :  { %2106 = vmatprep.subr.bf16.mxu1 %v14828_v13  ;;  %2188 = vmatprep.subr.bf16.mxu0 %v14831_v2  ;;  %v14901_v63 = vld [vmem:[#allocation14 + $0x2e0] ss:$16 sps:$4 sm:$0xff]   ;;  %v14906_v13 = vld [vmem:[#allocation14 + $0x104] ss:$16 sps:$4 sm:$0xff]  }
 0x466   :  { %v14909_v2 = vld [vmem:[#allocation14 + $0x304] ss:$16 sps:$4 sm:$0xff]  }
 0x468   :  { %2107 = vmatpush1.bf16.msra.mxu1 %v14826_v3  ;;  %2189 = vmatpush1.bf16.msra.mxu0 %v14829_v9  ;;  %v14904_v3 = vld [vmem:[#allocation14 + $0x100] ss:$16 sps:$4 sm:$0xff]  }
 0x469   :  { %2108 = vmatprep.subr.bf16.mxu1 %v14834_v10  ;;  %2190 = vmatprep.subr.bf16.mxu0 %v14837_v12  ;;  %v14907_v9 = vld [vmem:[#allocation14 + $0x300] ss:$16 sps:$4 sm:$0xff]   ;;  %v14912_v10 = vld [vmem:[#allocation14 + $0x124] ss:$16 sps:$4 sm:$0xff]  }
 0x46a   :  { %v14915_v12 = vld [vmem:[#allocation14 + $0x324] ss:$16 sps:$4 sm:$0xff]  }
 0x46c   :  { %2109 = vmatpush1.bf16.msra.mxu1 %v14832_v14  ;;  %2191 = vmatpush1.bf16.msra.mxu0 %v14835_v15  ;;  %v14910_v14 = vld [vmem:[#allocation14 + $0x120] ss:$16 sps:$4 sm:$0xff]  }
 0x46d   :  { %2110 = vmatprep.subr.bf16.mxu1 %v14840_v17  ;;  %2192 = vmatprep.subr.bf16.mxu0 %v14843_v18  ;;  %v14913_v15 = vld [vmem:[#allocation14 + $0x320] ss:$16 sps:$4 sm:$0xff]   ;;  %v14918_v17 = vld [vmem:[#allocation14 + $0x144] ss:$16 sps:$4 sm:$0xff]  }
 0x46e   :  { %v14921_v18 = vld [vmem:[#allocation14 + $0x344] ss:$16 sps:$4 sm:$0xff]  }
 0x470   :  { %2111 = vmatpush1.bf16.msra.mxu1 %v14838_v19  ;;  %2193 = vmatpush1.bf16.msra.mxu0 %v14841_v20  ;;  %v14916_v19 = vld [vmem:[#allocation14 + $0x140] ss:$16 sps:$4 sm:$0xff]  }
 0x471   :  { %2112 = vmatprep.subr.bf16.mxu1 %v14846_v22  ;;  %2194 = vmatprep.subr.bf16.mxu0 %v14849_v23  ;;  %v14919_v20 = vld [vmem:[#allocation14 + $0x340] ss:$16 sps:$4 sm:$0xff]   ;;  %v14927_v22 = vld [vmem:[#allocation14 + $0x364] ss:$16 sps:$4 sm:$0xff]  }
 0x472   :  { %v14922_v23 = vld [vmem:[#allocation14 + $0x160] ss:$16 sps:$4 sm:$0xff]  }
 0x474   :  { %2113 = vmatpush1.bf16.msra.mxu1 %v14844_v24  ;;  %2195 = vmatpush1.bf16.msra.mxu0 %v14847_v25  ;;  %v14925_v24 = vld [vmem:[#allocation14 + $0x360] ss:$16 sps:$4 sm:$0xff]   ;;  %v14930_v25 = vld [vmem:[#allocation14 + $0x184] ss:$16 sps:$4 sm:$0xff]  }
 0x475   :  { %2114 = vmatprep.subr.bf16.mxu1 %v14852_v27  ;;  %2196 = vmatprep.subr.bf16.mxu0 %v14855_v28  ;;  %v14933_v27 = vld [vmem:[#allocation14 + $0x384] ss:$16 sps:$4 sm:$0xff]   ;;  %v14928_v28 = vld [vmem:[#allocation14 + $0x180] ss:$16 sps:$4 sm:$0xff]  }
 0x478   :  { %2115 = vmatpush1.bf16.msra.mxu1 %v14850_v29  ;;  %2197 = vmatpush1.bf16.msra.mxu0 %v14853_v30  ;;  %v14931_v29 = vld [vmem:[#allocation14 + $0x380] ss:$16 sps:$4 sm:$0xff]   ;;  %v14936_v30 = vld [vmem:[#allocation14 + $0x1a4] ss:$16 sps:$4 sm:$0xff]  }
 0x479   :  { %3005 = vmatprep.subr.bf16.mxu1 %v14858_v31  ;;  %3046 = vmatprep.subr.bf16.mxu0 %v14861_v32  ;;  %v14934_v31 = vld [vmem:[#allocation14 + $0x1a0] ss:$16 sps:$4 sm:$0xff]  }
 0x47a   :  { %v14937_v32 = vld [vmem:[#allocation14 + $0x3a0] ss:$16 sps:$4 sm:$0xff]  }
 0x47b   :  { %2117 = vmatmul.mubr.bf16.vlgmr.msra.gmra.mrb[8].mxu1 %v1252_v0  ;;  %2199 = vmatmul.mubr.bf16.vlgmr.msra.gmra.mrb[12].mxu0 %v1252_v0  ;;  %v14940_v0 = vld [vmem:[#allocation14 + $0x1c0] ss:$16 sps:$4 sm:$0xff]  }
 0x47c   :  { %3006 = vmatpush1.bf16.msra.mxu1 %v14856_v33  ;;  %3047 = vmatpush1.bf16.msra.mxu0 %v14859_v34  ;;  %v14942_v33 = vld [vmem:[#allocation14 + $0x1c4] ss:$16 sps:$4 sm:$0xff]  }
 0x47d   :  { %3007 = vmatprep.subr.bf16.mxu1 %v14864_v35  ;;  %3048 = vmatprep.subr.bf16.mxu0 %v14867_v36  ;;  %v14945_v34 = vld [vmem:[#allocation14 + $0x3c4] ss:$16 sps:$4 sm:$0xff]   ;;  %v14943_v35 = vld [vmem:[#allocation14 + $0x3c0] ss:$16 sps:$4 sm:$0xff]  }
 0x47e   :  { %v14948_v36 = vld [vmem:[#allocation14 + $0x1e4] ss:$16 sps:$4 sm:$0xff]  }
 0x480   :  { %3008 = vmatpush1.bf16.msra.mxu1 %v14862_v37  ;;  %3049 = vmatpush1.bf16.msra.mxu0 %v14865_v38  ;;  %v14951_v37 = vld [vmem:[#allocation14 + $0x3e4] ss:$16 sps:$4 sm:$0xff]   ;;  %v14946_v38 = vld [vmem:[#allocation14 + $0x1e0] ss:$16 sps:$4 sm:$0xff]  }
 0x481   :  { %3009 = vmatprep.subr.bf16.mxu1 %v14870_v39  ;;  %3050 = vmatprep.subr.bf16.mxu0 %v14873_v40  ;;  %v14949_v39 = vld [vmem:[#allocation14 + $0x3e0] ss:$16 sps:$4 sm:$0xff]   ;;  %v14954_v40 = vld [vmem:[#allocation14 + $0xc] ss:$16 sps:$4 sm:$0xff]  }
 0x484   :  { %3010 = vmatpush1.bf16.msra.mxu1 %v14868_v41  ;;  %3051 = vmatpush1.bf16.msra.mxu0 %v14871_v42  ;;  %v14957_v41 = vld [vmem:[#allocation14 + $0x20c] ss:$16 sps:$4 sm:$0xff]   ;;  %v1249_v42 = vld [vmem:[#allocation5 + $0xa] sm:$0xf] }
 0x485   :  { %3011 = vmatprep.subr.bf16.mxu1 %v14876_v43  ;;  %3052 = vmatprep.subr.bf16.mxu0 %v14879_v44  ;;  %v1386_v43 = vrot.slane %v1249_v42, %v15587_v5  ;;  %v1394_v44 = vrot.slane %v1249_v42, %v15629_v16 }
 0x488   :  { %3012 = vmatpush1.bf16.msra.mxu1 %v14874_v45  ;;  %3053 = vmatpush1.bf16.msra.mxu0 %v14877_v46  ;;  %v1390_v45 = vrot.slane %v1249_v42, %v15590_v7  ;;  %v1398_v46 = vrot.slane %v1249_v42, %v15609_v61  ;;  %v15002_v42 = vld [vmem:[#allocation14 + $0x10c] ss:$16 sps:$4 sm:$0xff]  }
 0x489   :  { %3013 = vmatprep.subr.bf16.mxu1 %v14882_v47  ;;  %3054 = vmatprep.subr.bf16.mxu0 %v14885_v48 }
 0x48c   :  { %3014 = vmatpush1.bf16.msra.mxu1 %v14880_v49  ;;  %3055 = vmatpush1.bf16.msra.mxu0 %v14883_v50 }
 0x48d   :  { %3015 = vmatprep.subr.bf16.mxu1 %v14888_v51  ;;  %3056 = vmatprep.subr.bf16.mxu0 %v14891_v52 }
 0x490   :  { %3016 = vmatpush1.bf16.msra.mxu1 %v14886_v53  ;;  %3057 = vmatpush1.bf16.msra.mxu0 %v14889_v54 }
 0x491   :  { %3017 = vmatprep.subr.bf16.mxu1 %v14894_v55  ;;  %3058 = vmatprep.subr.bf16.mxu0 %v14897_v56 }
 0x494   :  { %3018 = vmatpush1.bf16.msra.mxu1 %v14892_v57  ;;  %3059 = vmatpush1.bf16.msra.mxu0 %v14895_v58 }
 0x495   :  { %3019 = vmatprep.subr.bf16.mxu1 %v14900_v59  ;;  %3060 = vmatprep.subr.bf16.mxu0 %v14903_v62 }
 0x498   :  { %3020 = vmatpush1.bf16.msra.mxu1 %v14898_v11  ;;  %3061 = vmatpush1.bf16.msra.mxu0 %v14901_v63 }
 0x499   :  { %3021 = vmatprep.subr.bf16.mxu1 %v14906_v13  ;;  %3062 = vmatprep.subr.bf16.mxu0 %v14909_v2 }
 0x49c   :  { %3022 = vmatpush1.bf16.msra.mxu1 %v14904_v3  ;;  %3063 = vmatpush1.bf16.msra.mxu0 %v14907_v9  ;;  %v14952_v3 = vld [vmem:[#allocation14 + $0x8] ss:$16 sps:$4 sm:$0xff]  }
 0x49d   :  { %3023 = vmatprep.subr.bf16.mxu1 %v14912_v10  ;;  %3064 = vmatprep.subr.bf16.mxu0 %v14915_v12  ;;  %v14955_v9 = vld [vmem:[#allocation14 + $0x208] ss:$16 sps:$4 sm:$0xff]  }
 0x4a0   :  { %3024 = vmatpush1.bf16.msra.mxu1 %v14910_v14  ;;  %3065 = vmatpush1.bf16.msra.mxu0 %v14913_v15  ;;  %v14960_v14 = vld [vmem:[#allocation14 + $0x2c] ss:$16 sps:$4 sm:$0xff]  }
 0x4a1   :  { %3025 = vmatprep.subr.bf16.mxu1 %v14918_v17  ;;  %3066 = vmatprep.subr.bf16.mxu0 %v14921_v18  ;;  %v14963_v15 = vld [vmem:[#allocation14 + $0x22c] ss:$16 sps:$4 sm:$0xff]   ;;  %v14958_v17 = vld [vmem:[#allocation14 + $0x28] ss:$16 sps:$4 sm:$0xff]  }
 0x4a2   :  { %v14961_v18 = vld [vmem:[#allocation14 + $0x228] ss:$16 sps:$4 sm:$0xff]  }
 0x4a4   :  { %3026 = vmatpush1.bf16.msra.mxu1 %v14916_v19  ;;  %3067 = vmatpush1.bf16.msra.mxu0 %v14919_v20  ;;  %v14966_v19 = vld [vmem:[#allocation14 + $0x4c] ss:$16 sps:$4 sm:$0xff]  }
 0x4a5   :  { %3027 = vmatprep.subr.bf16.mxu1 %v14924_v21  ;;  %3068 = vmatprep.subr.bf16.mxu0 %v14927_v22  ;;  %v14969_v20 = vld [vmem:[#allocation14 + $0x24c] ss:$16 sps:$4 sm:$0xff]   ;;  %v14964_v21 = vld [vmem:[#allocation14 + $0x48] ss:$16 sps:$4 sm:$0xff]  }
 0x4a6   :  { %v14967_v22 = vld [vmem:[#allocation14 + $0x248] ss:$16 sps:$4 sm:$0xff]  }
 0x4a8   :  { %3028 = vmatpush1.bf16.msra.mxu1 %v14922_v23  ;;  %3069 = vmatpush1.bf16.msra.mxu0 %v14925_v24  ;;  %v14972_v23 = vld [vmem:[#allocation14 + $0x6c] ss:$16 sps:$4 sm:$0xff]  }
 0x4a9   :  { %3029 = vmatprep.subr.bf16.mxu1 %v14930_v25  ;;  %3070 = vmatprep.subr.bf16.mxu0 %v14933_v27  ;;  %v14975_v24 = vld [vmem:[#allocation14 + $0x26c] ss:$16 sps:$4 sm:$0xff]   ;;  %v14970_v25 = vld [vmem:[#allocation14 + $0x68] ss:$16 sps:$4 sm:$0xff]  }
 0x4aa   :  { %v14973_v27 = vld [vmem:[#allocation14 + $0x268] ss:$16 sps:$4 sm:$0xff]  }
 0x4ac   :  { %3030 = vmatpush1.bf16.msra.mxu1 %v14928_v28  ;;  %3071 = vmatpush1.bf16.msra.mxu0 %v14931_v29  ;;  %v14978_v28 = vld [vmem:[#allocation14 + $0x8c] ss:$16 sps:$4 sm:$0xff]  }
 0x4ad   :  { %3031 = vmatprep.subr.bf16.mxu1 %v14936_v30  ;;  %3072 = vmatprep.subr.bf16.mxu0 %v14939_v60  ;;  %v14981_v29 = vld [vmem:[#allocation14 + $0x28c] ss:$16 sps:$4 sm:$0xff]   ;;  %v14976_v30 = vld [vmem:[#allocation14 + $0x88] ss:$16 sps:$4 sm:$0xff]  }
 0x4ae   :  { %v14979_v60 = vld [vmem:[#allocation14 + $0x288] ss:$16 sps:$4 sm:$0xff]  }
 0x4b0   :  { %3032 = vmatpush1.bf16.msra.mxu1 %v14934_v31  ;;  %3073 = vmatpush1.bf16.msra.mxu0 %v14937_v32  ;;  %v14984_v31 = vld [vmem:[#allocation14 + $0xac] ss:$16 sps:$4 sm:$0xff]  }
 0x4b1   :  { %3033 = vmatprep.subr.bf16.mxu1 %v14942_v33  ;;  %3074 = vmatprep.subr.bf16.mxu0 %v14945_v34  ;;  %v14987_v32 = vld [vmem:[#allocation14 + $0x2ac] ss:$16 sps:$4 sm:$0xff]   ;;  %v14982_v33 = vld [vmem:[#allocation14 + $0xa8] ss:$16 sps:$4 sm:$0xff]  }
 0x4b2   :  { %v14985_v34 = vld [vmem:[#allocation14 + $0x2a8] ss:$16 sps:$4 sm:$0xff]  }
 0x4b4   :  { %3034 = vmatpush1.bf16.msra.mxu1 %v14940_v0  ;;  %3075 = vmatpush1.bf16.msra.mxu0 %v14943_v35  ;;  %v14990_v0 = vld [vmem:[#allocation14 + $0xcc] ss:$16 sps:$4 sm:$0xff]  }
 0x4b5   :  { %3035 = vmatprep.subr.bf16.mxu1 %v14948_v36  ;;  %3076 = vmatprep.subr.bf16.mxu0 %v14951_v37  ;;  %v14993_v35 = vld [vmem:[#allocation14 + $0x2cc] ss:$16 sps:$4 sm:$0xff]   ;;  %v14988_v36 = vld [vmem:[#allocation14 + $0xc8] ss:$16 sps:$4 sm:$0xff]  }
 0x4b6   :  { %v14991_v37 = vld [vmem:[#allocation14 + $0x2c8] ss:$16 sps:$4 sm:$0xff]  }
 0x4b8   :  { %3036 = vmatpush1.bf16.msra.mxu1 %v14946_v38  ;;  %3077 = vmatpush1.bf16.msra.mxu0 %v14949_v39  ;;  %v14996_v38 = vld [vmem:[#allocation14 + $0xec] ss:$16 sps:$4 sm:$0xff]  }
 0x4b9   :  { %3087 = vmatprep.subr.bf16.mxu1 %v14954_v40  ;;  %3128 = vmatprep.subr.bf16.mxu0 %v14957_v41  ;;  %v14999_v39 = vld [vmem:[#allocation14 + $0x2ec] ss:$16 sps:$4 sm:$0xff]   ;;  %v14994_v40 = vld [vmem:[#allocation14 + $0xe8] ss:$16 sps:$4 sm:$0xff]  }
 0x4ba   :  { %v14997_v41 = vld [vmem:[#allocation14 + $0x2e8] ss:$16 sps:$4 sm:$0xff]  }
 0x54e   :  { %v2118_v47 = vpop.f32.mrb[8].mxu1  ;;  %v2200_v48 = vpop.f32.mrb[12].mxu0 }
 0x54f   :  { %v14359_v49 = vadd.f32 %v2118_v47, %v1386_v43  ;;  %v14361_v50 = vadd.f32 %v2200_v48, %v1394_v44  ;;  %v2120_v51 = vpop.f32.mrb[9].mxu1  ;;  %v2202_v52 = vpop.f32.mrb[13].mxu0  ;;  %v15005_v43 = vld [vmem:[#allocation14 + $0x30c] ss:$16 sps:$4 sm:$0xff]   ;;  %v15000_v44 = vld [vmem:[#allocation14 + $0x108] ss:$16 sps:$4 sm:$0xff]  }
 0x550   :  { %v14360_v53 = vadd.f32 %v2120_v51, %v1390_v45  ;;  %v14362_v54 = vadd.f32 %v2202_v52, %v1398_v46  ;;  %v2122_v55 = vpop.f32.mrb[10].mxu1  ;;  %v2204_v56 = vpop.f32.mrb[14].mxu0  ;;  %v15003_v45 = vld [vmem:[#allocation14 + $0x308] ss:$16 sps:$4 sm:$0xff]   ;;  %v15008_v46 = vld [vmem:[#allocation14 + $0x12c] ss:$16 sps:$4 sm:$0xff]  }
 0x551   :  { %v2207_v57 = vmax.f32 %v14359_v49, 0.0  ;;  %v2209_v58 = vmax.f32 %v14361_v50, 0.0  ;;  %v2123_v59 = vpop.f32.mrb[11].mxu1  ;;  %v2205_v62 = vpop.f32.mrb[15].mxu0  ;;  %v15011_v47 = vld [vmem:[#allocation14 + $0x32c] ss:$16 sps:$4 sm:$0xff]  }
 0x552   :  { %v2208_v11 = vmax.f32 %v14360_v53, 0.0  ;;  %v2210_v63 = vmax.f32 %v14362_v54, 0.0  ;;  %v15006_v48 = vld [vmem:[#allocation14 + $0x128] ss:$16 sps:$4 sm:$0xff]   ;;  %v15014_v50 = vld [vmem:[#allocation14 + $0x14c] ss:$16 sps:$4 sm:$0xff]  }
 0x553   :  { %v15641_v10 = vpack.c.bf16 %v2207_v57, %v2207_v57  ;;  %v15643_v12 = vpack.c.bf16 %v2209_v58, %v2209_v58  ;;  %v15009_v49 = vld [vmem:[#allocation14 + $0x328] ss:$16 sps:$4 sm:$0xff]   ;;  %v15017_v51 = vld [vmem:[#allocation14 + $0x34c] ss:$16 sps:$4 sm:$0xff]  }
 0x554   :  { %v2213_v13 = vpack.c.bf16 %v2208_v11, %v2208_v11  ;;  %v2215_v2 = vpack.c.bf16 %v2210_v63, %v2210_v63  ;;  %v15012_v52 = vld [vmem:[#allocation14 + $0x148] ss:$16 sps:$4 sm:$0xff]   ;;  %v15020_v54 = vld [vmem:[#allocation14 + $0x16c] ss:$16 sps:$4 sm:$0xff]  }
 0x555   :  { %v15015_v53 = vld [vmem:[#allocation14 + $0x348] ss:$16 sps:$4 sm:$0xff]   ;;  %v15023_v55 = vld [vmem:[#allocation14 + $0x36c] ss:$16 sps:$4 sm:$0xff]  }
 0x556   :  { %3037 = vmatprep.mubr.bf16.mxu1 %v2213_v13  ;;  %3078 = vmatprep.mubr.bf16.mxu0 %v2215_v2  ;;  %v15018_v56 = vld [vmem:[#allocation14 + $0x168] ss:$16 sps:$4 sm:$0xff]   ;;  %v15026_v58 = vld [vmem:[#allocation14 + $0x18c] ss:$16 sps:$4 sm:$0xff]  }
 0x557   :  { %3038 = vmatmul.mubr.bf16.vlgmr.msra.gmra.mrb[12].mxu1 %v15641_v10  ;;  %3079 = vmatmul.mubr.bf16.vlgmr.msra.gmra.mrb[16].mxu0 %v15643_v12  ;;  %v15021_v57 = vld [vmem:[#allocation14 + $0x368] ss:$16 sps:$4 sm:$0xff]   ;;  %v15029_v59 = vld [vmem:[#allocation14 + $0x38c] ss:$16 sps:$4 sm:$0xff]  }
 0x558   :  { %3088 = vmatpush1.bf16.msra.mxu1 %v14952_v3  ;;  %3129 = vmatpush1.bf16.msra.mxu0 %v14955_v9  ;;  %v15024_v62 = vld [vmem:[#allocation14 + $0x188] ss:$16 sps:$4 sm:$0xff]   ;;  %v15032_v63 = vld [vmem:[#allocation14 + $0x1ac] ss:$16 sps:$4 sm:$0xff]  }
 0x559   :  { %3119 = vmatprep.mubr.bf16.mxu1 %v2213_v13  ;;  %3160 = vmatprep.mubr.bf16.mxu0 %v2215_v2  ;;  %v15027_v11 = vld [vmem:[#allocation14 + $0x388] ss:$16 sps:$4 sm:$0xff]   ;;  %v15035_v13 = vld [vmem:[#allocation14 + $0x3ac] ss:$16 sps:$4 sm:$0xff]  }
 0x55a   :  { %3089 = vmatprep.subr.bf16.mxu1 %v14960_v14  ;;  %3130 = vmatprep.subr.bf16.mxu0 %v14963_v15  ;;  %v15030_v2 = vld [vmem:[#allocation14 + $0x1a8] ss:$16 sps:$4 sm:$0xff]   ;;  %v15038_v9 = vld [vmem:[#allocation14 + $0x1cc] ss:$16 sps:$4 sm:$0xff]  }
 0x55b   :  { %v15033_v3 = vld [vmem:[#allocation14 + $0x3a8] ss:$16 sps:$4 sm:$0xff]   ;;  %v15041_v14 = vld [vmem:[#allocation14 + $0x3cc] ss:$16 sps:$4 sm:$0xff]  }
 0x55c   :  { %3090 = vmatpush1.bf16.msra.mxu1 %v14958_v17  ;;  %3131 = vmatpush1.bf16.msra.mxu0 %v14961_v18  ;;  %v15036_v15 = vld [vmem:[#allocation14 + $0x1c8] ss:$16 sps:$4 sm:$0xff]   ;;  %v15044_v18 = vld [vmem:[#allocation14 + $0x1ec] ss:$16 sps:$4 sm:$0xff]  }
 0x55d   :  { %3091 = vmatprep.subr.bf16.mxu1 %v14966_v19  ;;  %3132 = vmatprep.subr.bf16.mxu0 %v14969_v20  ;;  %v15039_v17 = vld [vmem:[#allocation14 + $0x3c8] ss:$16 sps:$4 sm:$0xff]   ;;  %v15047_v19 = vld [vmem:[#allocation14 + $0x3ec] ss:$16 sps:$4 sm:$0xff]   ;;  %v3178_v20 = vld [vmem:[#allocation16] sm:$0xff] }
 0x560   :  { %3092 = vmatpush1.bf16.msra.mxu1 %v14964_v21  ;;  %3133 = vmatpush1.bf16.msra.mxu0 %v14967_v22  ;;  %v3182_v21 = vld [vmem:[#allocation16 + $0x20] sm:$0xff]  ;;  %v3179_v22 = vld [vmem:[#allocation16 + $0x8] sm:$0xff] }
 0x561   :  { %3093 = vmatprep.subr.bf16.mxu1 %v14972_v23  ;;  %3134 = vmatprep.subr.bf16.mxu0 %v14975_v24  ;;  %v3183_v23 = vld [vmem:[#allocation16 + $0x28] sm:$0xff] }
 0x562   :  { %v15042_v24 = vld [vmem:[#allocation14 + $0x1e8] ss:$16 sps:$4 sm:$0xff]  }
 0x564   :  { %3094 = vmatpush1.bf16.msra.mxu1 %v14970_v25  ;;  %3135 = vmatpush1.bf16.msra.mxu0 %v14973_v27  ;;  %v15045_v25 = vld [vmem:[#allocation14 + $0x3e8] ss:$16 sps:$4 sm:$0xff]   ;;  %v13080_v27 = vcombine.high %v3178_v20, %v3182_v21 }
 0x565   :  { %3095 = vmatprep.subr.bf16.mxu1 %v14978_v28  ;;  %3136 = vmatprep.subr.bf16.mxu0 %v14981_v29  ;;  %v13082_v28 = vcombine.high %v3179_v22, %v3183_v23  ;;  %v3186_v29 = vld [vmem:[#allocation16 + $0x40] sm:$0xff] }
 0x568   :  { %3096 = vmatpush1.bf16.msra.mxu1 %v14976_v30  ;;  %3137 = vmatpush1.bf16.msra.mxu0 %v14979_v60  ;;  %v3190_v30 = vld [vmem:[#allocation16 + $0x60] sm:$0xff]  ;;  %v3187_v60 = vld [vmem:[#allocation16 + $0x48] sm:$0xff] }
 0x569   :  { %3097 = vmatprep.subr.bf16.mxu1 %v14984_v31  ;;  %3138 = vmatprep.subr.bf16.mxu0 %v14987_v32  ;;  %v3191_v31 = vld [vmem:[#allocation16 + $0x68] sm:$0xff]  ;;  %v13079_v32 = vcombine.low %v3178_v20, %v3182_v21  ;;  %v3234_v21 = vld [vmem:[#allocation16 + $0x1c0] sm:$0xff] }
 0x56c   :  { %3098 = vmatpush1.bf16.msra.mxu1 %v14982_v33  ;;  %3139 = vmatpush1.bf16.msra.mxu0 %v14985_v34  ;;  %v13081_v33 = vcombine.low %v3179_v22, %v3183_v23  ;;  %v13088_v34 = vcombine.high %v3186_v29, %v3190_v30  ;;  %v3238_v22 = vld [vmem:[#allocation16 + $0x1e0] sm:$0xff]  ;;  %v3235_v23 = vld [vmem:[#allocation16 + $0x1c8] sm:$0xff] }
 0x56d   :  { %3099 = vmatprep.subr.bf16.mxu1 %v14990_v0  ;;  %3140 = vmatprep.subr.bf16.mxu0 %v14993_v35  ;;  %v13090_v0 = vcombine.high %v3187_v60, %v3191_v31  ;;  %v3194_v35 = vld [vmem:[#allocation16 + $0x80] sm:$0xff] }
 0x570   :  { %3100 = vmatpush1.bf16.msra.mxu1 %v14988_v36  ;;  %3141 = vmatpush1.bf16.msra.mxu0 %v14991_v37  ;;  %v3198_v36 = vld [vmem:[#allocation16 + $0xa0] sm:$0xff]  ;;  %v3195_v37 = vld [vmem:[#allocation16 + $0x88] sm:$0xff] }
 0x571   :  { %3101 = vmatprep.subr.bf16.mxu1 %v14996_v38  ;;  %3142 = vmatprep.subr.bf16.mxu0 %v14999_v39  ;;  %v3199_v38 = vld [vmem:[#allocation16 + $0xa8] sm:$0xff]  ;;  %v13087_v39 = vcombine.low %v3186_v29, %v3190_v30  ;;  %v3242_v30 = vld [vmem:[#allocation16 + $0x200] sm:$0xff] }
 0x574   :  { %3102 = vmatpush1.bf16.msra.mxu1 %v14994_v40  ;;  %3143 = vmatpush1.bf16.msra.mxu0 %v14997_v41  ;;  %v13089_v40 = vcombine.low %v3187_v60, %v3191_v31  ;;  %v13096_v41 = vcombine.high %v3194_v35, %v3198_v36  ;;  %v3246_v60 = vld [vmem:[#allocation16 + $0x220] sm:$0xff]  ;;  %v3243_v31 = vld [vmem:[#allocation16 + $0x208] sm:$0xff] }
 0x575   :  { %3103 = vmatprep.subr.bf16.mxu1 %v15002_v42  ;;  %3144 = vmatprep.subr.bf16.mxu0 %v15005_v43  ;;  %v13098_v42 = vcombine.high %v3195_v37, %v3199_v38  ;;  %v3202_v43 = vld [vmem:[#allocation16 + $0xc0] sm:$0xff] }
 0x578   :  { %3104 = vmatpush1.bf16.msra.mxu1 %v15000_v44  ;;  %3145 = vmatpush1.bf16.msra.mxu0 %v15003_v45  ;;  %v3206_v44 = vld [vmem:[#allocation16 + $0xe0] sm:$0xff]  ;;  %v3203_v45 = vld [vmem:[#allocation16 + $0xc8] sm:$0xff] }
 0x579   :  { %3105 = vmatprep.subr.bf16.mxu1 %v15008_v46  ;;  %3146 = vmatprep.subr.bf16.mxu0 %v15011_v47  ;;  %v3207_v46 = vld [vmem:[#allocation16 + $0xe8] sm:$0xff]  ;;  %v13095_v47 = vcombine.low %v3194_v35, %v3198_v36  ;;  %v13144_v35 = vcombine.high %v3242_v30, %v3246_v60 }
 0x57c   :  { %3106 = vmatpush1.bf16.msra.mxu1 %v15006_v48  ;;  %3147 = vmatpush1.bf16.msra.mxu0 %v15009_v49  ;;  %v13097_v48 = vcombine.low %v3195_v37, %v3199_v38  ;;  %v3210_v49 = vld [vmem:[#allocation16 + $0x100] sm:$0xff]  ;;  %v3251_v38 = vld [vmem:[#allocation16 + $0x248] sm:$0xff] }
 0x57d   :  { %3107 = vmatprep.subr.bf16.mxu1 %v15014_v50  ;;  %3148 = vmatprep.subr.bf16.mxu0 %v15017_v51  ;;  %v3214_v50 = vld [vmem:[#allocation16 + $0x120] sm:$0xff]  ;;  %v3211_v51 = vld [vmem:[#allocation16 + $0x108] sm:$0xff] }
 0x57e   :  { %v3254_v37 = vld [vmem:[#allocation16 + $0x260] sm:$0xff] }
 0x580   :  { %3108 = vmatpush1.bf16.msra.mxu1 %v15012_v52  ;;  %3149 = vmatpush1.bf16.msra.mxu0 %v15015_v53  ;;  %v3215_v52 = vld [vmem:[#allocation16 + $0x128] sm:$0xff]  ;;  %v13103_v53 = vcombine.low %v3202_v43, %v3206_v44 }
 0x581   :  { %3109 = vmatprep.subr.bf16.mxu1 %v15020_v54  ;;  %3150 = vmatprep.subr.bf16.mxu0 %v15023_v55  ;;  %v13105_v54 = vcombine.low %v3203_v45, %v3207_v46  ;;  %v13112_v55 = vcombine.high %v3210_v49, %v3214_v50 }
 0x584   :  { %3110 = vmatpush1.bf16.msra.mxu1 %v15018_v56  ;;  %3151 = vmatpush1.bf16.msra.mxu0 %v15021_v57  ;;  %v13114_v56 = vcombine.high %v3211_v51, %v3215_v52  ;;  %v3218_v57 = vld [vmem:[#allocation16 + $0x140] sm:$0xff] }
 0x585   :  { %3111 = vmatprep.subr.bf16.mxu1 %v15026_v58  ;;  %3152 = vmatprep.subr.bf16.mxu0 %v15029_v59  ;;  %v3222_v58 = vld [vmem:[#allocation16 + $0x160] sm:$0xff]  ;;  %v3219_v59 = vld [vmem:[#allocation16 + $0x148] sm:$0xff] }
 0x588   :  { %3112 = vmatpush1.bf16.msra.mxu1 %v15024_v62  ;;  %3153 = vmatpush1.bf16.msra.mxu0 %v15027_v11  ;;  %v3223_v62 = vld [vmem:[#allocation16 + $0x168] sm:$0xff]  ;;  %v13111_v11 = vcombine.low %v3210_v49, %v3214_v50  ;;  %v3262_v49 = vld [vmem:[#allocation16 + $0x2a0] sm:$0xff] }
 0x589   :  { %3113 = vmatprep.subr.bf16.mxu1 %v15032_v63  ;;  %3154 = vmatprep.subr.bf16.mxu0 %v15035_v13  ;;  %v13113_v63 = vcombine.low %v3211_v51, %v3215_v52  ;;  %v13120_v13 = vcombine.high %v3218_v57, %v3222_v58  ;;  %v3259_v50 = vld [vmem:[#allocation16 + $0x288] sm:$0xff] }
 0x58a   :  { %v3263_v51 = vld [vmem:[#allocation16 + $0x2a8] sm:$0xff] }
 0x58c   :  { %3114 = vmatpush1.bf16.msra.mxu1 %v15030_v2  ;;  %3155 = vmatpush1.bf16.msra.mxu0 %v15033_v3  ;;  %v13122_v2 = vcombine.high %v3219_v59, %v3223_v62  ;;  %v3226_v3 = vld [vmem:[#allocation16 + $0x180] sm:$0xff] }
 0x58d   :  { %3115 = vmatprep.subr.bf16.mxu1 %v15038_v9  ;;  %3156 = vmatprep.subr.bf16.mxu0 %v15041_v14  ;;  %v3230_v9 = vld [vmem:[#allocation16 + $0x1a0] sm:$0xff]  ;;  %v3227_v14 = vld [vmem:[#allocation16 + $0x188] sm:$0xff] }
 0x590   :  { %3116 = vmatpush1.bf16.msra.mxu1 %v15036_v15  ;;  %3157 = vmatpush1.bf16.msra.mxu0 %v15039_v17  ;;  %v3231_v15 = vld [vmem:[#allocation16 + $0x1a8] sm:$0xff]  ;;  %v13119_v17 = vcombine.low %v3218_v57, %v3222_v58  ;;  %v3270_v57 = vld [vmem:[#allocation16 + $0x2e0] sm:$0xff] }
 0x591   :  { %3117 = vmatprep.subr.bf16.mxu1 %v15044_v18  ;;  %3158 = vmatprep.subr.bf16.mxu0 %v15047_v19  ;;  %v13121_v18 = vcombine.low %v3219_v59, %v3223_v62  ;;  %v13128_v19 = vcombine.high %v3226_v3, %v3230_v9  ;;  %v13130_v20 = vcombine.high %v3227_v14, %v3231_v15  ;;  %v3267_v58 = vld [vmem:[#allocation16 + $0x2c8] sm:$0xff] }
 0x592   :  { %v3271_v59 = vld [vmem:[#allocation16 + $0x2e8] sm:$0xff] }
 0x594   :  { %3118 = vmatpush1.bf16.msra.mxu1 %v15042_v24  ;;  %3159 = vmatpush1.bf16.msra.mxu0 %v15045_v25  ;;  %v3239_v24 = vld [vmem:[#allocation16 + $0x1e8] sm:$0xff]  ;;  %v13127_v25 = vcombine.low %v3226_v3, %v3230_v9  ;;  %v3278_v3 = vld [vmem:[#allocation16 + $0x320] sm:$0xff] }
 0x595   :  { %4755 = vmatprep.subr.bf16.mxu1 %v13080_v27  ;;  %4837 = vmatprep.subr.bf16.mxu0 %v13082_v28  ;;  %v13129_v27 = vcombine.low %v3227_v14, %v3231_v15  ;;  %v13136_v28 = vcombine.high %v3234_v21, %v3238_v22  ;;  %v13138_v29 = vcombine.high %v3235_v23, %v3239_v24  ;;  %v3275_v9 = vld [vmem:[#allocation16 + $0x308] sm:$0xff] }
 0x596   :  { %v3279_v14 = vld [vmem:[#allocation16 + $0x328] sm:$0xff] }
 0x597   :  { %3120 = vmatmul.mubr.bf16.vlgmr.msra.gmra.mrb[16].mxu1 %v15641_v10  ;;  %3161 = vmatmul.mubr.bf16.vlgmr.msra.gmra.mrb[20].mxu0 %v15643_v12  ;;  %v13104_v10 = vcombine.high %v3202_v43, %v3206_v44  ;;  %v13106_v12 = vcombine.high %v3203_v45, %v3207_v46  ;;  %v13143_v43 = vcombine.low %v3242_v30, %v3246_v60  ;;  %v15655_v44 = vld [vmem:[#allocation16 + $0x428] sm:$0xff]  ;;  %v3294_v30 = vld [vmem:[#allocation16 + $0x3a0] sm:$0xff] }
 0x598   :  { %4756 = vmatpush1.bf16.msra.mxu1 %v13079_v32  ;;  %4838 = vmatpush1.bf16.msra.mxu0 %v13081_v33  ;;  %v3247_v32 = vld [vmem:[#allocation16 + $0x228] sm:$0xff]  ;;  %v13135_v33 = vcombine.low %v3234_v21, %v3238_v22  ;;  %v3286_v21 = vld [vmem:[#allocation16 + $0x360] sm:$0xff] }
 0x599   :  { %4757 = vmatprep.subr.bf16.mxu1 %v13088_v34  ;;  %4839 = vmatprep.subr.bf16.mxu0 %v13090_v0  ;;  %v13137_v34 = vcombine.low %v3235_v23, %v3239_v24  ;;  %v3250_v0 = vld [vmem:[#allocation16 + $0x240] sm:$0xff]  ;;  %v13146_v36 = vcombine.high %v3243_v31, %v3247_v32  ;;  %v13145_v45 = vcombine.low %v3243_v31, %v3247_v32  ;;  %v3283_v22 = vld [vmem:[#allocation16 + $0x348] sm:$0xff] }
 0x59a   :  { %v13151_v52 = vcombine.low %v3250_v0, %v3254_v37  ;;  %v3287_v23 = vld [vmem:[#allocation16 + $0x368] sm:$0xff] }
 0x59b   :  { %v3291_v60 = vld [vmem:[#allocation16 + $0x388] sm:$0xff] }
 0x59c   :  { %4758 = vmatpush1.bf16.msra.mxu1 %v13087_v39  ;;  %4840 = vmatpush1.bf16.msra.mxu0 %v13089_v40  ;;  %v3255_v39 = vld [vmem:[#allocation16 + $0x268] sm:$0xff]  ;;  %v15649_v40 = vld [vmem:[#allocation16 + $0x400] sm:$0xff] }
 0x59d   :  { %4759 = vmatprep.subr.bf16.mxu1 %v13096_v41  ;;  %4841 = vmatprep.subr.bf16.mxu0 %v13098_v42  ;;  %v15651_v41 = vld [vmem:[#allocation16 + $0x420] sm:$0xff]  ;;  %v15653_v42 = vld [vmem:[#allocation16 + $0x408] sm:$0xff] }
 0x59e   :  { %v13207_v46 = vcombine.low %v15649_v40, %v15651_v41  ;;  %v3295_v31 = vld [vmem:[#allocation16 + $0x3a8] sm:$0xff] }
 0x5a0   :  { %4760 = vmatpush1.bf16.msra.mxu1 %v13095_v47  ;;  %4842 = vmatpush1.bf16.msra.mxu0 %v13097_v48  ;;  %v13209_v47 = vcombine.low %v15653_v42, %v15655_v44  ;;  %v13152_v48 = vcombine.high %v3250_v0, %v3254_v37  ;;  %v13194_v0 = vcombine.high %v3291_v60, %v3295_v31  ;;  %v3299_v37 = vld [vmem:[#allocation16 + $0x3c8] sm:$0xff] }
 0x5a1   :  { %4761 = vmatprep.subr.bf16.mxu1 %v13104_v10  ;;  %4843 = vmatprep.subr.bf16.mxu0 %v13106_v12  ;;  %v13154_v10 = vcombine.high %v3251_v38, %v3255_v39  ;;  %v3258_v12 = vld [vmem:[#allocation16 + $0x280] sm:$0xff] }
 0x5a2   :  { %v13159_v62 = vcombine.low %v3258_v12, %v3262_v49 }
 0x5a4   :  { %4762 = vmatpush1.bf16.msra.mxu1 %v13103_v53  ;;  %4844 = vmatpush1.bf16.msra.mxu0 %v13105_v54  ;;  %v13153_v53 = vcombine.low %v3251_v38, %v3255_v39  ;;  %v13160_v54 = vcombine.high %v3258_v12, %v3262_v49  ;;  %v3303_v38 = vld [vmem:[#allocation16 + $0x3e8] sm:$0xff]  ;;  %v13208_v49 = vcombine.high %v15649_v40, %v15651_v41 }
 0x5a5   :  { %4763 = vmatprep.subr.bf16.mxu1 %v13112_v55  ;;  %4845 = vmatprep.subr.bf16.mxu0 %v13114_v56  ;;  %v13162_v55 = vcombine.high %v3259_v50, %v3263_v51  ;;  %v3266_v56 = vld [vmem:[#allocation16 + $0x2c0] sm:$0xff]  ;;  %v13201_v12 = vcombine.low %v3299_v37, %v3303_v38 }
 0x5a6   :  { %v13167_v15 = vcombine.low %v3266_v56, %v3270_v57 }
 0x5a8   :  { %4764 = vmatpush1.bf16.msra.mxu1 %v13111_v11  ;;  %4846 = vmatpush1.bf16.msra.mxu0 %v13113_v63  ;;  %v13161_v11 = vcombine.low %v3259_v50, %v3263_v51  ;;  %v13168_v63 = vcombine.high %v3266_v56, %v3270_v57  ;;  %v13210_v50 = vcombine.high %v15653_v42, %v15655_v44  ;;  %v15665_v51 = vld [vmem:[#allocation5 + $0xe] sm:$0xf]  ;;  %v3338_v42 = vld [vmem:[#allocation16 + $0x500] sm:$0xff] }
 0x5a9   :  { %4765 = vmatprep.subr.bf16.mxu1 %v13120_v13  ;;  %4847 = vmatprep.subr.bf16.mxu0 %v13122_v2  ;;  %v13170_v13 = vcombine.high %v3267_v58, %v3271_v59  ;;  %v3274_v2 = vld [vmem:[#allocation16 + $0x300] sm:$0xff] }
 0x5aa   :  { %v13175_v24 = vcombine.low %v3274_v2, %v3278_v3  ;;  %v3342_v44 = vld [vmem:[#allocation16 + $0x520] sm:$0xff] }
 0x5ac   :  { %4766 = vmatpush1.bf16.msra.mxu1 %v13119_v17  ;;  %4848 = vmatpush1.bf16.msra.mxu0 %v13121_v18  ;;  %v13169_v17 = vcombine.low %v3267_v58, %v3271_v59  ;;  %v13176_v18 = vcombine.high %v3274_v2, %v3278_v3 }
 0x5ad   :  { %4767 = vmatprep.subr.bf16.mxu1 %v13128_v19  ;;  %4849 = vmatprep.subr.bf16.mxu0 %v13130_v20  ;;  %v13178_v19 = vcombine.high %v3275_v9, %v3279_v14  ;;  %v3282_v20 = vld [vmem:[#allocation16 + $0x340] sm:$0xff] }
 0x5ae   :  { %v13183_v32 = vcombine.low %v3282_v20, %v3286_v21 }
 0x5b0   :  { %4768 = vmatpush1.bf16.msra.mxu1 %v13127_v25  ;;  %4850 = vmatpush1.bf16.msra.mxu0 %v13129_v27  ;;  %v13177_v25 = vcombine.low %v3275_v9, %v3279_v14  ;;  %v13184_v27 = vcombine.high %v3282_v20, %v3286_v21  ;;  %v3314_v14 = vld [vmem:[#allocation16 + $0x440] sm:$0xff] }
 0x5b1   :  { %4769 = vmatprep.subr.bf16.mxu1 %v13136_v28  ;;  %4851 = vmatprep.subr.bf16.mxu0 %v13138_v29  ;;  %v13186_v28 = vcombine.high %v3283_v22, %v3287_v23  ;;  %v3290_v29 = vld [vmem:[#allocation16 + $0x380] sm:$0xff] }
 0x5b2   :  { %v13191_v39 = vcombine.low %v3290_v29, %v3294_v30 }
 0x5b4   :  { %4770 = vmatpush1.bf16.msra.mxu1 %v13135_v33  ;;  %4852 = vmatpush1.bf16.msra.mxu0 %v13137_v34  ;;  %v13185_v33 = vcombine.low %v3283_v22, %v3287_v23  ;;  %v13192_v34 = vcombine.high %v3290_v29, %v3294_v30 }
 0x5b5   :  { %4771 = vmatprep.subr.bf16.mxu1 %v13144_v35  ;;  %4853 = vmatprep.subr.bf16.mxu0 %v13146_v36  ;;  %v3298_v35 = vld [vmem:[#allocation16 + $0x3c0] sm:$0xff] }
 0x5b6   :  { %v3302_v36 = vld [vmem:[#allocation16 + $0x3e0] sm:$0xff] }
 0x5b8   :  { %4772 = vmatpush1.bf16.msra.mxu1 %v13143_v43  ;;  %4854 = vmatpush1.bf16.msra.mxu0 %v13145_v45  ;;  %v13193_v43 = vcombine.low %v3291_v60, %v3295_v31  ;;  %v13200_v45 = vcombine.high %v3298_v35, %v3302_v36  ;;  %v3330_v60 = vld [vmem:[#allocation16 + $0x4c0] sm:$0xff] }
 0x5b9   :  { %4773 = vmatprep.subr.bf16.mxu1 %v13152_v48  ;;  %4855 = vmatprep.subr.bf16.mxu0 %v13154_v10  ;;  %v13202_v48 = vcombine.high %v3299_v37, %v3303_v38  ;;  %v13199_v10 = vcombine.low %v3298_v35, %v3302_v36  ;;  %v3334_v31 = vld [vmem:[#allocation16 + $0x4e0] sm:$0xff]  ;;  %v13240_v37 = vcombine.high %v3338_v42, %v3342_v44 }
 0x5ba   :  { %v13232_v40 = vcombine.high %v3330_v60, %v3334_v31  ;;  %v13231_v35 = vcombine.low %v3330_v60, %v3334_v31 }
 0x5bc   :  { %4774 = vmatpush1.bf16.msra.mxu1 %v13151_v52  ;;  %4856 = vmatpush1.bf16.msra.mxu0 %v13153_v53  ;;  %v2348_v52 = vrot.slane %v15665_v51, %v15587_v5  ;;  %v2352_v53 = vrot.slane %v15665_v51, %v15590_v7 }
 0x5bd   :  { %4775 = vmatprep.subr.bf16.mxu1 %v13160_v54  ;;  %4857 = vmatprep.subr.bf16.mxu0 %v13162_v55 }
 0x5c0   :  { %4776 = vmatpush1.bf16.msra.mxu1 %v13159_v62  ;;  %4858 = vmatpush1.bf16.msra.mxu0 %v13161_v11 }
 0x5c1   :  { %4777 = vmatprep.subr.bf16.mxu1 %v13168_v63  ;;  %4859 = vmatprep.subr.bf16.mxu0 %v13170_v13 }
 0x5c4   :  { %4778 = vmatpush1.bf16.msra.mxu1 %v13167_v15  ;;  %4860 = vmatpush1.bf16.msra.mxu0 %v13169_v17  ;;  %v3318_v17 = vld [vmem:[#allocation16 + $0x460] sm:$0xff] }
 0x5c5   :  { %4779 = vmatprep.subr.bf16.mxu1 %v13176_v18  ;;  %4861 = vmatprep.subr.bf16.mxu0 %v13178_v19  ;;  %v3315_v18 = vld [vmem:[#allocation16 + $0x448] sm:$0xff]  ;;  %v13216_v22 = vcombine.high %v3314_v14, %v3318_v17 }
 0x5c6   :  { %v3319_v19 = vld [vmem:[#allocation16 + $0x468] sm:$0xff] }
 0x5c7   :  { %v13218_v23 = vcombine.high %v3315_v18, %v3319_v19 }
 0x5c8   :  { %4780 = vmatpush1.bf16.msra.mxu1 %v13175_v24  ;;  %4862 = vmatpush1.bf16.msra.mxu0 %v13177_v25  ;;  %v3322_v24 = vld [vmem:[#allocation16 + $0x480] sm:$0xff] }
 0x5c9   :  { %4781 = vmatprep.subr.bf16.mxu1 %v13184_v27  ;;  %4863 = vmatprep.subr.bf16.mxu0 %v13186_v28  ;;  %v3326_v25 = vld [vmem:[#allocation16 + $0x4a0] sm:$0xff]  ;;  %v3323_v27 = vld [vmem:[#allocation16 + $0x488] sm:$0xff]  ;;  %v13217_v28 = vcombine.low %v3315_v18, %v3319_v19 }
 0x5ca   :  { %v13224_v29 = vcombine.high %v3322_v24, %v3326_v25  ;;  %v3371_v18 = vld [vmem:[#allocation16 + $0x608] sm:$0xff] }
 0x5cb   :  { %v3375_v19 = vld [vmem:[#allocation16 + $0x628] sm:$0xff] }
 0x5cc   :  { %4782 = vmatpush1.bf16.msra.mxu1 %v13183_v32  ;;  %4864 = vmatpush1.bf16.msra.mxu0 %v13185_v33  ;;  %v3331_v32 = vld [vmem:[#allocation16 + $0x4c8] sm:$0xff] }
 0x5cd   :  { %4783 = vmatprep.subr.bf16.mxu1 %v13192_v34  ;;  %4865 = vmatprep.subr.bf16.mxu0 %v13194_v0  ;;  %v3335_v33 = vld [vmem:[#allocation16 + $0x4e8] sm:$0xff]  ;;  %v13223_v34 = vcombine.low %v3322_v24, %v3326_v25  ;;  %v13274_v25 = vcombine.high %v3371_v18, %v3375_v19 }
 0x5ce   :  { %v13234_v41 = vcombine.high %v3331_v32, %v3335_v33  ;;  %v13233_v36 = vcombine.low %v3331_v32, %v3335_v33  ;;  %v3386_v32 = vld [vmem:[#allocation16 + $0x680] sm:$0xff] }
 0x5cf   :  { %v3390_v33 = vld [vmem:[#allocation16 + $0x6a0] sm:$0xff] }
 0x5d0   :  { %4784 = vmatpush1.bf16.msra.mxu1 %v13191_v39  ;;  %4866 = vmatpush1.bf16.msra.mxu0 %v13193_v43  ;;  %v3346_v39 = vld [vmem:[#allocation16 + $0x540] sm:$0xff] }
 0x5d1   :  { %4785 = vmatprep.subr.bf16.mxu1 %v13200_v45  ;;  %4867 = vmatprep.subr.bf16.mxu0 %v13202_v48  ;;  %v3350_v43 = vld [vmem:[#allocation16 + $0x560] sm:$0xff]  ;;  %v3347_v45 = vld [vmem:[#allocation16 + $0x548] sm:$0xff] }
 0x5d2   :  { %v3351_v48 = vld [vmem:[#allocation16 + $0x568] sm:$0xff] }
 0x5d4   :  { %4786 = vmatpush1.bf16.msra.mxu1 %v13199_v10  ;;  %4868 = vmatpush1.bf16.msra.mxu0 %v13201_v12  ;;  %v13239_v10 = vcombine.low %v3338_v42, %v3342_v44  ;;  %v13288_v42 = vcombine.high %v3386_v32, %v3390_v33 }
 0x5d5   :  { %4796 = vmatprep.subr.bf16.mxu1 %v13208_v49  ;;  %4878 = vmatprep.subr.bf16.mxu0 %v13210_v50  ;;  %v13248_v49 = vcombine.high %v3346_v39, %v3350_v43  ;;  %v13250_v50 = vcombine.high %v3347_v45, %v3351_v48 }
 0x62a   :  { %v3039_v54 = vpop.f32.mrb[12].mxu1  ;;  %v3080_v55 = vpop.f32.mrb[16].mxu0 }
 0x62b   :  { %v3040_v56 = vadd.f32 %v3039_v54, %v2348_v52  ;;  %v3041_v57 = vpop.f32.mrb[13].mxu1  ;;  %v3082_v58 = vpop.f32.mrb[17].mxu0  ;;  %v3354_v52 = vld [vmem:[#allocation16 + $0x580] sm:$0xff]  ;;  %v3355_v54 = vld [vmem:[#allocation16 + $0x588] sm:$0xff] }
 0x62c   :  { %v3042_v59 = vadd.f32 %v3041_v57, %v2352_v53  ;;  %v3043_v62 = vpop.f32.mrb[14].mxu1  ;;  %v3084_v11 = vpop.f32.mrb[18].mxu0  ;;  %v3358_v53 = vld [vmem:[#allocation16 + $0x5a0] sm:$0xff]  ;;  %v13249_v57 = vcombine.low %v3347_v45, %v3351_v48 }
 0x62d   :  { %v3081_v63 = vadd.f32 %v3080_v55, %v3040_v56  ;;  %v3044_v13 = vpop.f32.mrb[15].mxu1  ;;  %v3085_v2 = vpop.f32.mrb[19].mxu0  ;;  %v3359_v55 = vld [vmem:[#allocation16 + $0x5a8] sm:$0xff]  ;;  %v13247_v56 = vcombine.low %v3346_v39, %v3350_v43  ;;  %v3362_v62 = vld [vmem:[#allocation16 + $0x5c0] sm:$0xff] }
 0x62e   :  { %v3083_v3 = vadd.f32 %v3082_v58, %v3042_v59  ;;  %v13256_v58 = vcombine.high %v3354_v52, %v3358_v53  ;;  %v13258_v59 = vcombine.high %v3355_v54, %v3359_v55  ;;  %v3366_v11 = vld [vmem:[#allocation16 + $0x5e0] sm:$0xff]  ;;  %v3367_v13 = vld [vmem:[#allocation16 + $0x5e8] sm:$0xff]  ;;  %v13255_v2 = vcombine.low %v3354_v52, %v3358_v53 }
 0x62f   :  { %v3169_v9 = vadd.f32 %v3081_v63, %v15619_v1  ;;  %v3327_v1 = vld [vmem:[#allocation16 + $0x4a8] sm:$0xff]  ;;  %v3402_v45 = vld [vmem:[#allocation16 + $0x700] sm:$0xff] }
 0x630   :  { %v3170_v15 = vadd.f32 %v3083_v3, %v15621_v6  ;;  %v13215_v6 = vcombine.low %v3314_v14, %v3318_v17  ;;  %v13226_v30 = vcombine.high %v3323_v27, %v3327_v1  ;;  %v13225_v0 = vcombine.low %v3323_v27, %v3327_v1  ;;  %v3363_v63 = vld [vmem:[#allocation16 + $0x5c8] sm:$0xff]  ;;  %v3374_v17 = vld [vmem:[#allocation16 + $0x620] sm:$0xff] }
 0x631   :  { %v15675_v21 = vpack.c.bf16 %v3169_v9, %v3169_v9  ;;  %v13257_v3 = vcombine.low %v3355_v54, %v3359_v55  ;;  %v13264_v9 = vcombine.high %v3362_v62, %v3366_v11  ;;  %v13266_v14 = vcombine.high %v3363_v63, %v3367_v13  ;;  %v3378_v27 = vld [vmem:[#allocation16 + $0x640] sm:$0xff] }
 0x632   :  { %v15673_v20 = vpack.c.bf16 %v3170_v15, %v3170_v15  ;;  %v3370_v15 = vld [vmem:[#allocation16 + $0x600] sm:$0xff] }
 0x633   :  { %v13272_v24 = vcombine.high %v3370_v15, %v3374_v17  ;;  %v3382_v1 = vld [vmem:[#allocation16 + $0x660] sm:$0xff] }
 0x634   :  { %4787 = vmatprep.mubr.bf16.mxu1 %v15673_v20  ;;  %4869 = vmatprep.mubr.bf16.mxu0 %v15673_v20  ;;  %v13280_v60 = vcombine.high %v3378_v27, %v3382_v1  ;;  %v3406_v48 = vld [vmem:[#allocation16 + $0x720] sm:$0xff] }
 0x635   :  { %4788 = vmatmul.mubr.bf16.vlgmr.msra.gmra.mrb[20].mxu1 %v15675_v21  ;;  %4870 = vmatmul.mubr.bf16.vlgmr.msra.gmra.mrb[24].mxu0 %v15675_v21  ;;  %v13304_v52 = vcombine.high %v3402_v45, %v3406_v48  ;;  %v3410_v54 = vld [vmem:[#allocation16 + $0x740] sm:$0xff] }
 0x636   :  { %4797 = vmatpush1.bf16.msra.mxu1 %v13207_v46  ;;  %4879 = vmatpush1.bf16.msra.mxu0 %v13209_v47  ;;  %v3339_v46 = vld [vmem:[#allocation16 + $0x508] sm:$0xff]  ;;  %v3414_v55 = vld [vmem:[#allocation16 + $0x760] sm:$0xff] }
 0x637   :  { %4798 = vmatprep.subr.bf16.mxu1 %v13216_v22  ;;  %4880 = vmatprep.subr.bf16.mxu0 %v13218_v23  ;;  %v3343_v47 = vld [vmem:[#allocation16 + $0x528] sm:$0xff]  ;;  %v13263_v22 = vcombine.low %v3362_v62, %v3366_v11  ;;  %v13265_v23 = vcombine.low %v3363_v63, %v3367_v13  ;;  %v13312_v62 = vcombine.high %v3410_v54, %v3414_v55  ;;  %v3418_v63 = vld [vmem:[#allocation16 + $0x780] sm:$0xff] }
 0x638   :  { %v13242_v38 = vcombine.high %v3339_v46, %v3343_v47  ;;  %v13241_v12 = vcombine.low %v3339_v46, %v3343_v47  ;;  %v3394_v46 = vld [vmem:[#allocation16 + $0x6c0] sm:$0xff] }
 0x639   :  { %v3398_v47 = vld [vmem:[#allocation16 + $0x6e0] sm:$0xff] }
 0x63a   :  { %4799 = vmatpush1.bf16.msra.mxu1 %v13215_v6  ;;  %4881 = vmatpush1.bf16.msra.mxu0 %v13217_v28  ;;  %v3379_v6 = vld [vmem:[#allocation16 + $0x648] sm:$0xff]  ;;  %v13296_v39 = vcombine.high %v3394_v46, %v3398_v47  ;;  %v3422_v13 = vld [vmem:[#allocation16 + $0x7a0] sm:$0xff] }
 0x63b   :  { %4800 = vmatprep.subr.bf16.mxu1 %v13224_v29  ;;  %4882 = vmatprep.subr.bf16.mxu0 %v13226_v30  ;;  %v3383_v28 = vld [vmem:[#allocation16 + $0x668] sm:$0xff]  ;;  %v13271_v29 = vcombine.low %v3370_v15, %v3374_v17  ;;  %v13273_v30 = vcombine.low %v3371_v18, %v3375_v19  ;;  %v2356_v15 = vrot.slane %v15665_v51, %v15629_v16  ;;  %v3426_v19 = vld [vmem:[#allocation16 + $0x7c0] sm:$0xff] }
 0x63c   :  { %v13282_v31 = vcombine.high %v3379_v6, %v3383_v28  ;;  %v13320_v17 = vcombine.high %v3418_v63, %v3422_v13 }
 0x63e   :  { %4801 = vmatpush1.bf16.msra.mxu1 %v13223_v34  ;;  %4883 = vmatpush1.bf16.msra.mxu0 %v13225_v0  ;;  %v3387_v34 = vld [vmem:[#allocation16 + $0x688] sm:$0xff] }
 0x63f   :  { %4802 = vmatprep.subr.bf16.mxu1 %v13232_v40  ;;  %4884 = vmatprep.subr.bf16.mxu0 %v13234_v41  ;;  %v3391_v0 = vld [vmem:[#allocation16 + $0x6a8] sm:$0xff]  ;;  %v13279_v40 = vcombine.low %v3378_v27, %v3382_v1  ;;  %v13281_v41 = vcombine.low %v3379_v6, %v3383_v28  ;;  %v13319_v6 = vcombine.low %v3418_v63, %v3422_v13  ;;  %v3204_v13 = vld [vmem:[#allocation16 + $0xd0] sm:$0xff] }
 0x640   :  { %v13290_v44 = vcombine.high %v3387_v34, %v3391_v0 }
 0x642   :  { %4803 = vmatpush1.bf16.msra.mxu1 %v13231_v35  ;;  %4885 = vmatpush1.bf16.msra.mxu0 %v13233_v36  ;;  %v3395_v35 = vld [vmem:[#allocation16 + $0x6c8] sm:$0xff] }
 0x643   :  { %4804 = vmatprep.subr.bf16.mxu1 %v13240_v37  ;;  %4886 = vmatprep.subr.bf16.mxu0 %v13242_v38  ;;  %v3399_v36 = vld [vmem:[#allocation16 + $0x6e8] sm:$0xff]  ;;  %v13287_v37 = vcombine.low %v3386_v32, %v3390_v33  ;;  %v13289_v38 = vcombine.low %v3387_v34, %v3391_v0  ;;  %v3180_v33 = vld [vmem:[#allocation16 + $0x10] sm:$0xff] }
 0x644   :  { %v13298_v43 = vcombine.high %v3395_v35, %v3399_v36 }
 0x646   :  { %4805 = vmatpush1.bf16.msra.mxu1 %v13239_v10  ;;  %4887 = vmatpush1.bf16.msra.mxu0 %v13241_v12  ;;  %v3403_v10 = vld [vmem:[#allocation16 + $0x708] sm:$0xff] }
 0x647   :  { %4806 = vmatprep.subr.bf16.mxu1 %v13248_v49  ;;  %4888 = vmatprep.subr.bf16.mxu0 %v13250_v50  ;;  %v3407_v12 = vld [vmem:[#allocation16 + $0x728] sm:$0xff]  ;;  %v13295_v49 = vcombine.low %v3394_v46, %v3398_v47  ;;  %v13297_v50 = vcombine.low %v3395_v35, %v3399_v36 }
 0x648   :  { %v13306_v53 = vcombine.high %v3403_v10, %v3407_v12 }
 0x64a   :  { %4807 = vmatpush1.bf16.msra.mxu1 %v13247_v56  ;;  %4889 = vmatpush1.bf16.msra.mxu0 %v13249_v57  ;;  %v3411_v56 = vld [vmem:[#allocation16 + $0x748] sm:$0xff] }
 0x64b   :  { %4808 = vmatprep.subr.bf16.mxu1 %v13256_v58  ;;  %4890 = vmatprep.subr.bf16.mxu0 %v13258_v59  ;;  %v3415_v57 = vld [vmem:[#allocation16 + $0x768] sm:$0xff]  ;;  %v13303_v58 = vcombine.low %v3402_v45, %v3406_v48  ;;  %v13305_v59 = vcombine.low %v3403_v10, %v3407_v12  ;;  %v3188_v48 = vld [vmem:[#allocation16 + $0x50] sm:$0xff]  ;;  %v3189_v12 = vld [vmem:[#allocation16 + $0x58] sm:$0xff] }
 0x64c   :  { %v13314_v11 = vcombine.high %v3411_v56, %v3415_v57  ;;  %v3192_v10 = vld [vmem:[#allocation16 + $0x70] sm:$0xff] }
 0x64e   :  { %4809 = vmatpush1.bf16.msra.mxu1 %v13255_v2  ;;  %4891 = vmatpush1.bf16.msra.mxu0 %v13257_v3  ;;  %v3419_v2 = vld [vmem:[#allocation16 + $0x788] sm:$0xff] }
 0x64f   :  { %4810 = vmatprep.subr.bf16.mxu1 %v13264_v9  ;;  %4892 = vmatprep.subr.bf16.mxu0 %v13266_v14  ;;  %v3423_v3 = vld [vmem:[#allocation16 + $0x7a8] sm:$0xff]  ;;  %v13311_v9 = vcombine.low %v3410_v54, %v3414_v55  ;;  %v13313_v14 = vcombine.low %v3411_v56, %v3415_v57  ;;  %v3196_v55 = vld [vmem:[#allocation16 + $0x90] sm:$0xff]  ;;  %v3197_v57 = vld [vmem:[#allocation16 + $0x98] sm:$0xff] }
 0x650   :  { %v13322_v18 = vcombine.high %v3419_v2, %v3423_v3  ;;  %v13321_v28 = vcombine.low %v3419_v2, %v3423_v3  ;;  %v3200_v56 = vld [vmem:[#allocation16 + $0xb0] sm:$0xff]  ;;  %v3205_v3 = vld [vmem:[#allocation16 + $0xd8] sm:$0xff] }
 0x651   :  { %v3208_v2 = vld [vmem:[#allocation16 + $0xf0] sm:$0xff] }
 0x652   :  { %4811 = vmatpush1.bf16.msra.mxu1 %v13263_v22  ;;  %4893 = vmatpush1.bf16.msra.mxu0 %v13265_v23  ;;  %v2360_v22 = vrot.slane %v15665_v51, %v15609_v61  ;;  %v3430_v23 = vld [vmem:[#allocation16 + $0x7e0] sm:$0xff] }
 0x653   :  { %4812 = vmatprep.subr.bf16.mxu1 %v13272_v24  ;;  %4894 = vmatprep.subr.bf16.mxu0 %v13274_v25  ;;  %v3427_v24 = vld [vmem:[#allocation16 + $0x7c8] sm:$0xff]  ;;  %v13327_v36 = vcombine.low %v3426_v19, %v3430_v23 }
 0x654   :  { %v3431_v25 = vld [vmem:[#allocation16 + $0x7e8] sm:$0xff] }
 0x655   :  { %v13330_v32 = vcombine.high %v3427_v24, %v3431_v25 }
 0x656   :  { %4813 = vmatpush1.bf16.msra.mxu1 %v13271_v29  ;;  %4895 = vmatpush1.bf16.msra.mxu0 %v13273_v30 }
 0x657   :  { %4814 = vmatprep.subr.bf16.mxu1 %v13280_v60  ;;  %4896 = vmatprep.subr.bf16.mxu0 %v13282_v31  ;;  %v13328_v31 = vcombine.high %v3426_v19, %v3430_v23  ;;  %v3212_v19 = vld [vmem:[#allocation16 + $0x110] sm:$0xff]  ;;  %v3217_v23 = vld [vmem:[#allocation16 + $0x138] sm:$0xff] }
 0x65a   :  { %4815 = vmatpush1.bf16.msra.mxu1 %v13279_v40  ;;  %4897 = vmatpush1.bf16.msra.mxu0 %v13281_v41  ;;  %v3184_v40 = vld [vmem:[#allocation16 + $0x30] sm:$0xff]  ;;  %v3181_v41 = vld [vmem:[#allocation16 + $0x18] sm:$0xff] }
 0x65b   :  { %4816 = vmatprep.subr.bf16.mxu1 %v13288_v42  ;;  %4898 = vmatprep.subr.bf16.mxu0 %v13290_v44  ;;  %v3185_v42 = vld [vmem:[#allocation16 + $0x38] sm:$0xff] }
 0x65c   :  { %v13085_v54 = vcombine.low %v3181_v41, %v3185_v42 }
 0x65e   :  { %4817 = vmatpush1.bf16.msra.mxu1 %v13287_v37  ;;  %4899 = vmatpush1.bf16.msra.mxu0 %v13289_v38  ;;  %v13329_v37 = vcombine.low %v3427_v24, %v3431_v25  ;;  %v13107_v24 = vcombine.low %v3204_v13, %v3208_v2 }
 0x65f   :  { %4818 = vmatprep.subr.bf16.mxu1 %v13296_v39  ;;  %4900 = vmatprep.subr.bf16.mxu0 %v13298_v43  ;;  %v13084_v39 = vcombine.high %v3180_v33, %v3184_v40  ;;  %v13086_v43 = vcombine.high %v3181_v41, %v3185_v42 }
 0x662   :  { %4819 = vmatpush1.bf16.msra.mxu1 %v13295_v49  ;;  %4901 = vmatpush1.bf16.msra.mxu0 %v13297_v50  ;;  %v3193_v49 = vld [vmem:[#allocation16 + $0x78] sm:$0xff] }
 0x663   :  { %4820 = vmatprep.subr.bf16.mxu1 %v13304_v52  ;;  %4902 = vmatprep.subr.bf16.mxu0 %v13306_v53  ;;  %v13083_v52 = vcombine.low %v3180_v33, %v3184_v40  ;;  %v3233_v40 = vld [vmem:[#allocation16 + $0x1b8] sm:$0xff] }
 0x666   :  { %4821 = vmatpush1.bf16.msra.mxu1 %v13303_v58  ;;  %4903 = vmatpush1.bf16.msra.mxu0 %v13305_v59  ;;  %v3201_v58 = vld [vmem:[#allocation16 + $0xb8] sm:$0xff]  ;;  %v13091_v59 = vcombine.low %v3188_v48, %v3192_v10 }
 0x667   :  { %4822 = vmatprep.subr.bf16.mxu1 %v13312_v62  ;;  %4904 = vmatprep.subr.bf16.mxu0 %v13314_v11  ;;  %v13093_v62 = vcombine.low %v3189_v12, %v3193_v49  ;;  %v13100_v11 = vcombine.high %v3196_v55, %v3200_v56  ;;  %v13102_v63 = vcombine.high %v3197_v57, %v3201_v58 }
 0x66a   :  { %v3121_v27 = vpop.f32.mrb[16].mxu1  ;;  %v3162_v1 = vpop.f32.mrb[20].mxu0  ;;  %4823 = vmatpush1.bf16.msra.mxu1 %v13311_v9  ;;  %4905 = vmatpush1.bf16.msra.mxu0 %v13313_v14  ;;  %v3209_v9 = vld [vmem:[#allocation16 + $0xf8] sm:$0xff]  ;;  %v13099_v14 = vcombine.low %v3196_v55, %v3200_v56  ;;  %v3252_v55 = vld [vmem:[#allocation16 + $0x250] sm:$0xff] }
 0x66b   :  { %v3122_v29 = vadd.f32 %v3121_v27, %v2356_v15  ;;  %v3123_v30 = vpop.f32.mrb[17].mxu1  ;;  %v3164_v60 = vpop.f32.mrb[21].mxu0  ;;  %4824 = vmatprep.subr.bf16.mxu1 %v13320_v17  ;;  %4906 = vmatprep.subr.bf16.mxu0 %v13322_v18  ;;  %v13101_v15 = vcombine.low %v3197_v57, %v3201_v58  ;;  %v13108_v17 = vcombine.high %v3204_v13, %v3208_v2  ;;  %v3256_v56 = vld [vmem:[#allocation16 + $0x270] sm:$0xff]  ;;  %v3253_v57 = vld [vmem:[#allocation16 + $0x258] sm:$0xff] }
 0x66c   :  { %v3124_v34 = vadd.f32 %v3123_v30, %v2360_v22  ;;  %v3125_v0 = vpop.f32.mrb[18].mxu1  ;;  %v3166_v51 = vpop.f32.mrb[22].mxu0  ;;  %v13110_v18 = vcombine.high %v3205_v3, %v3209_v9  ;;  %v3216_v22 = vld [vmem:[#allocation16 + $0x130] sm:$0xff]  ;;  %v13109_v25 = vcombine.low %v3205_v3, %v3209_v9  ;;  %v3225_v30 = vld [vmem:[#allocation16 + $0x178] sm:$0xff] }
 0x66d   :  { %v3163_v44 = vadd.f32 %v3162_v1, %v3122_v29  ;;  %v3126_v46 = vpop.f32.mrb[19].mxu1  ;;  %v3167_v47 = vpop.f32.mrb[23].mxu0  ;;  %v13116_v27 = vcombine.high %v3212_v19, %v3216_v22  ;;  %v3221_v29 = vld [vmem:[#allocation16 + $0x158] sm:$0xff]  ;;  %v3232_v0 = vld [vmem:[#allocation16 + $0x1b0] sm:$0xff] }
 0x66e   :  { %v3165_v35 = vadd.f32 %v3164_v60, %v3124_v34  ;;  %4825 = vmatpush1.bf16.msra.mxu1 %v13319_v6  ;;  %4907 = vmatpush1.bf16.msra.mxu0 %v13321_v28  ;;  %v3220_v6 = vld [vmem:[#allocation16 + $0x150] sm:$0xff]  ;;  %v13115_v60 = vcombine.low %v3212_v19, %v3216_v22  ;;  %v13126_v33 = vcombine.high %v3221_v29, %v3225_v30  ;;  %v3229_v51 = vld [vmem:[#allocation16 + $0x198] sm:$0xff] }
 0x66f   :  { %v3171_v38 = vadd.f32 %v3163_v44, %v15634_v26  ;;  %4826 = vmatprep.subr.bf16.mxu1 %v13328_v31  ;;  %4908 = vmatprep.subr.bf16.mxu0 %v13330_v32  ;;  %v13092_v26 = vcombine.high %v3188_v48, %v3192_v10  ;;  %v3224_v28 = vld [vmem:[#allocation16 + $0x170] sm:$0xff]  ;;  %v13125_v42 = vcombine.low %v3221_v29, %v3225_v30  ;;  %v3257_v58 = vld [vmem:[#allocation16 + $0x278] sm:$0xff] }
 0x670   :  { %v3172_v45 = vadd.f32 %v3165_v35, %v15623_v8  ;;  %v13094_v8 = vcombine.high %v3189_v12, %v3193_v49  ;;  %v13124_v32 = vcombine.high %v3220_v6, %v3224_v28  ;;  %v3228_v34 = vld [vmem:[#allocation16 + $0x190] sm:$0xff]  ;;  %v13123_v41 = vcombine.low %v3220_v6, %v3224_v28  ;;  %v3245_v12 = vld [vmem:[#allocation16 + $0x218] sm:$0xff] }
 0x671   :  { %v15695_v53 = vpack.c.bf16 %v3171_v38, %v3171_v38  ;;  %v13132_v44 = vcombine.high %v3228_v34, %v3232_v0  ;;  %v13134_v46 = vcombine.high %v3229_v51, %v3233_v40  ;;  %v3236_v47 = vld [vmem:[#allocation16 + $0x1d0] sm:$0xff]  ;;  %v13131_v38 = vcombine.low %v3228_v34, %v3232_v0  ;;  %v3249_v49 = vld [vmem:[#allocation16 + $0x238] sm:$0xff] }
 0x672   :  { %v15693_v50 = vpack.c.bf16 %v3172_v45, %v3172_v45  ;;  %4827 = vmatpush1.bf16.msra.mxu1 %v13327_v36  ;;  %4909 = vmatpush1.bf16.msra.mxu0 %v13329_v37  ;;  %v3240_v35 = vld [vmem:[#allocation16 + $0x1f0] sm:$0xff]  ;;  %v3237_v36 = vld [vmem:[#allocation16 + $0x1d8] sm:$0xff] }
 0x673   :  { %4919 = vmatprep.subr.bf16.mxu1 %v13084_v39  ;;  %5001 = vmatprep.subr.bf16.mxu0 %v13086_v43  ;;  %v3241_v37 = vld [vmem:[#allocation16 + $0x1f8] sm:$0xff]  ;;  %v13133_v39 = vcombine.low %v3229_v51, %v3233_v40  ;;  %v13140_v43 = vcombine.high %v3236_v47, %v3240_v35  ;;  %v3244_v48 = vld [vmem:[#allocation16 + $0x210] sm:$0xff] }
 0x674   :  { %4828 = vmatprep.mubr.bf16.mxu1 %v15693_v50  ;;  %4910 = vmatprep.mubr.bf16.mxu0 %v15693_v50  ;;  %v13142_v45 = vcombine.high %v3237_v36, %v3241_v37  ;;  %v3248_v10 = vld [vmem:[#allocation16 + $0x230] sm:$0xff]  ;;  %v3261_v3 = vld [vmem:[#allocation16 + $0x298] sm:$0xff] }
 0x675   :  { %4829 = vmatmul.mubr.bf16.vlgmr.msra.gmra.mrb[20].mxu1 %v15695_v53  ;;  %4911 = vmatmul.mubr.bf16.vlgmr.msra.gmra.mrb[24].mxu0 %v15695_v53  ;;  %v3260_v13 = vld [vmem:[#allocation16 + $0x290] sm:$0xff]  ;;  %v3265_v9 = vld [vmem:[#allocation16 + $0x2b8] sm:$0xff] }
 0x676   :  { %4920 = vmatpush1.bf16.msra.mxu1 %v13083_v52  ;;  %4951 = vmatprep.mubr.bf16.mxu1 %v15673_v20  ;;  %v13139_v52 = vcombine.low %v3236_v47, %v3240_v35  ;;  %v3264_v2 = vld [vmem:[#allocation16 + $0x2b0] sm:$0xff]  ;;  %v3277_v29 = vld [vmem:[#allocation16 + $0x318] sm:$0xff] }
 0x677   :  { %5002 = vmatpush1.bf16.msra.mxu0 %v13085_v54  ;;  %5033 = vmatprep.mubr.bf16.mxu0 %v15673_v20  ;;  %v3213_v20 = vld [vmem:[#allocation16 + $0x118] sm:$0xff]  ;;  %v13141_v54 = vcombine.low %v3237_v36, %v3241_v37  ;;  %v3268_v19 = vld [vmem:[#allocation16 + $0x2d0] sm:$0xff] }
 0x678   :  { %4921 = vmatprep.subr.bf16.mxu1 %v13092_v26  ;;  %5003 = vmatprep.subr.bf16.mxu0 %v13094_v8  ;;  %v13118_v1 = vcombine.high %v3213_v20, %v3217_v23  ;;  %v13117_v31 = vcombine.low %v3213_v20, %v3217_v23  ;;  %v13148_v26 = vcombine.high %v3244_v48, %v3248_v10  ;;  %v3272_v22 = vld [vmem:[#allocation16 + $0x2f0] sm:$0xff]  ;;  %v3269_v20 = vld [vmem:[#allocation16 + $0x2d8] sm:$0xff] }
 0x679   :  { %v13150_v8 = vcombine.high %v3245_v12, %v3249_v49  ;;  %v3273_v23 = vld [vmem:[#allocation16 + $0x2f8] sm:$0xff]  ;;  %v3276_v6 = vld [vmem:[#allocation16 + $0x310] sm:$0xff] }
 0x67a   :  { %4922 = vmatpush1.bf16.msra.mxu1 %v13091_v59  ;;  %v13147_v59 = vcombine.low %v3244_v48, %v3248_v10  ;;  %v3280_v28 = vld [vmem:[#allocation16 + $0x330] sm:$0xff]  ;;  %v3281_v30 = vld [vmem:[#allocation16 + $0x338] sm:$0xff] }
 0x67b   :  { %5004 = vmatpush1.bf16.msra.mxu0 %v13093_v62  ;;  %4923 = vmatprep.subr.bf16.mxu1 %v13100_v11  ;;  %v13149_v62 = vcombine.low %v3245_v12, %v3249_v49  ;;  %v13156_v11 = vcombine.high %v3252_v55, %v3256_v56  ;;  %v3284_v34 = vld [vmem:[#allocation16 + $0x350] sm:$0xff]  ;;  %v3285_v51 = vld [vmem:[#allocation16 + $0x358] sm:$0xff] }
 0x67c   :  { %5005 = vmatprep.subr.bf16.mxu0 %v13102_v63  ;;  %v13158_v63 = vcombine.high %v3253_v57, %v3257_v58  ;;  %v3288_v0 = vld [vmem:[#allocation16 + $0x370] sm:$0xff]  ;;  %v3289_v40 = vld [vmem:[#allocation16 + $0x378] sm:$0xff] }
 0x67d   :  { %v3292_v47 = vld [vmem:[#allocation16 + $0x390] sm:$0xff]  ;;  %v3293_v36 = vld [vmem:[#allocation16 + $0x398] sm:$0xff] }
 0x67e   :  { %4924 = vmatpush1.bf16.msra.mxu1 %v13099_v14  ;;  %v13155_v14 = vcombine.low %v3252_v55, %v3256_v56  ;;  %v3296_v35 = vld [vmem:[#allocation16 + $0x3b0] sm:$0xff]  ;;  %v3297_v37 = vld [vmem:[#allocation16 + $0x3b8] sm:$0xff] }
 0x67f   :  { %5006 = vmatpush1.bf16.msra.mxu0 %v13101_v15  ;;  %4925 = vmatprep.subr.bf16.mxu1 %v13108_v17  ;;  %v13157_v15 = vcombine.low %v3253_v57, %v3257_v58  ;;  %v13164_v17 = vcombine.high %v3260_v13, %v3264_v2  ;;  %v3300_v48 = vld [vmem:[#allocation16 + $0x3d0] sm:$0xff]  ;;  %v3301_v12 = vld [vmem:[#allocation16 + $0x3d8] sm:$0xff] }
 0x680   :  { %5007 = vmatprep.subr.bf16.mxu0 %v13110_v18  ;;  %v13166_v18 = vcombine.high %v3261_v3, %v3265_v9  ;;  %v3304_v10 = vld [vmem:[#allocation16 + $0x3f0] sm:$0xff]  ;;  %v3305_v49 = vld [vmem:[#allocation16 + $0x3f8] sm:$0xff] }
 0x681   :  { %v3308_v55 = vld [vmem:[#allocation16 + $0x410] sm:$0xff]  ;;  %v3309_v57 = vld [vmem:[#allocation16 + $0x418] sm:$0xff] }
 0x682   :  { %4926 = vmatpush1.bf16.msra.mxu1 %v13107_v24  ;;  %v13163_v24 = vcombine.low %v3260_v13, %v3264_v2  ;;  %v3312_v56 = vld [vmem:[#allocation16 + $0x430] sm:$0xff]  ;;  %v3313_v58 = vld [vmem:[#allocation16 + $0x438] sm:$0xff] }
 0x683   :  { %5008 = vmatpush1.bf16.msra.mxu0 %v13109_v25  ;;  %4927 = vmatprep.subr.bf16.mxu1 %v13116_v27  ;;  %v13165_v25 = vcombine.low %v3261_v3, %v3265_v9  ;;  %v13172_v27 = vcombine.high %v3268_v19, %v3272_v22  ;;  %v3316_v13 = vld [vmem:[#allocation16 + $0x450] sm:$0xff]  ;;  %v13211_v3 = vcombine.low %v3308_v55, %v3312_v56  ;;  %v3317_v9 = vld [vmem:[#allocation16 + $0x458] sm:$0xff] }
 0x684   :  { %5009 = vmatprep.subr.bf16.mxu0 %v13118_v1  ;;  %v13174_v1 = vcombine.high %v3269_v20, %v3273_v23  ;;  %v3320_v2 = vld [vmem:[#allocation16 + $0x470] sm:$0xff] }
 0x686   :  { %4928 = vmatpush1.bf16.msra.mxu1 %v13115_v60  ;;  %v13171_v60 = vcombine.low %v3268_v19, %v3272_v22  ;;  %v3328_v19 = vld [vmem:[#allocation16 + $0x4b0] sm:$0xff] }
 0x687   :  { %5010 = vmatpush1.bf16.msra.mxu0 %v13117_v31  ;;  %4929 = vmatprep.subr.bf16.mxu1 %v13124_v32  ;;  %v13173_v31 = vcombine.low %v3269_v20, %v3273_v23  ;;  %v13180_v32 = vcombine.high %v3276_v6, %v3280_v28  ;;  %v3325_v20 = vld [vmem:[#allocation16 + $0x498] sm:$0xff] }
 0x688   :  { %5011 = vmatprep.subr.bf16.mxu0 %v13126_v33  ;;  %v13182_v33 = vcombine.high %v3277_v29, %v3281_v30  ;;  %v3329_v23 = vld [vmem:[#allocation16 + $0x4b8] sm:$0xff] }
 0x68a   :  { %4930 = vmatpush1.bf16.msra.mxu1 %v13123_v41  ;;  %v13179_v41 = vcombine.low %v3276_v6, %v3280_v28  ;;  %v3332_v6 = vld [vmem:[#allocation16 + $0x4d0] sm:$0xff] }
 0x68b   :  { %5012 = vmatpush1.bf16.msra.mxu0 %v13125_v42  ;;  %4931 = vmatprep.subr.bf16.mxu1 %v13132_v44  ;;  %v13181_v42 = vcombine.low %v3277_v29, %v3281_v30  ;;  %v13188_v44 = vcombine.high %v3284_v34, %v3288_v0  ;;  %v3336_v28 = vld [vmem:[#allocation16 + $0x4f0] sm:$0xff]  ;;  %v3333_v29 = vld [vmem:[#allocation16 + $0x4d8] sm:$0xff] }
 0x68c   :  { %5013 = vmatprep.subr.bf16.mxu0 %v13134_v46  ;;  %v13190_v46 = vcombine.high %v3285_v51, %v3289_v40  ;;  %v3337_v30 = vld [vmem:[#allocation16 + $0x4f8] sm:$0xff] }
 0x68e   :  { %4932 = vmatpush1.bf16.msra.mxu1 %v13131_v38  ;;  %v13187_v38 = vcombine.low %v3284_v34, %v3288_v0  ;;  %v3344_v34 = vld [vmem:[#allocation16 + $0x530] sm:$0xff]  ;;  %v3341_v0 = vld [vmem:[#allocation16 + $0x518] sm:$0xff] }
 0x68f   :  { %5014 = vmatpush1.bf16.msra.mxu0 %v13133_v39  ;;  %4933 = vmatprep.subr.bf16.mxu1 %v13140_v43  ;;  %v13189_v39 = vcombine.low %v3285_v51, %v3289_v40  ;;  %v13196_v43 = vcombine.high %v3292_v47, %v3296_v35  ;;  %v3345_v51 = vld [vmem:[#allocation16 + $0x538] sm:$0xff]  ;;  %v13237_v40 = vcombine.low %v3333_v29, %v3337_v30 }
 0x690   :  { %5015 = vmatprep.subr.bf16.mxu0 %v13142_v45  ;;  %v13198_v45 = vcombine.high %v3293_v36, %v3297_v37 }
 0x692   :  { %4934 = vmatpush1.bf16.msra.mxu1 %v13139_v52  ;;  %v13195_v52 = vcombine.low %v3292_v47, %v3296_v35  ;;  %v3349_v47 = vld [vmem:[#allocation16 + $0x558] sm:$0xff] }
 0x693   :  { %5016 = vmatpush1.bf16.msra.mxu0 %v13141_v54  ;;  %4935 = vmatprep.subr.bf16.mxu1 %v13148_v26  ;;  %v13197_v54 = vcombine.low %v3293_v36, %v3297_v37  ;;  %v13204_v26 = vcombine.high %v3300_v48, %v3304_v10  ;;  %v3353_v35 = vld [vmem:[#allocation16 + $0x578] sm:$0xff]  ;;  %v13245_v37 = vcombine.low %v3341_v0, %v3345_v51 }
 0x694   :  { %5017 = vmatprep.subr.bf16.mxu0 %v13150_v8  ;;  %v13206_v8 = vcombine.high %v3301_v12, %v3305_v49 }
 0x696   :  { %4936 = vmatpush1.bf16.msra.mxu1 %v13147_v59  ;;  %v13203_v59 = vcombine.low %v3300_v48, %v3304_v10  ;;  %v3357_v48 = vld [vmem:[#allocation16 + $0x598] sm:$0xff] }
 0x697   :  { %5018 = vmatpush1.bf16.msra.mxu0 %v13149_v62  ;;  %4937 = vmatprep.subr.bf16.mxu1 %v13156_v11  ;;  %v13205_v62 = vcombine.low %v3301_v12, %v3305_v49  ;;  %v13212_v11 = vcombine.high %v3308_v55, %v3312_v56  ;;  %v3361_v10 = vld [vmem:[#allocation16 + $0x5b8] sm:$0xff]  ;;  %v13253_v49 = vcombine.low %v3349_v47, %v3353_v35 }
 0x698   :  { %5019 = vmatprep.subr.bf16.mxu0 %v13158_v63  ;;  %v13214_v63 = vcombine.high %v3309_v57, %v3313_v58  ;;  %v3365_v55 = vld [vmem:[#allocation16 + $0x5d8] sm:$0xff] }
 0x699   :  { %v3369_v56 = vld [vmem:[#allocation16 + $0x5f8] sm:$0xff] }
 0x69a   :  { %4938 = vmatpush1.bf16.msra.mxu1 %v13155_v14  ;;  %v3321_v14 = vld [vmem:[#allocation16 + $0x478] sm:$0xff] }
 0x69b   :  { %5020 = vmatpush1.bf16.msra.mxu0 %v13157_v15  ;;  %4939 = vmatprep.subr.bf16.mxu1 %v13164_v17  ;;  %v13213_v15 = vcombine.low %v3309_v57, %v3313_v58  ;;  %v13220_v17 = vcombine.high %v3316_v13, %v3320_v2  ;;  %v13222_v22 = vcombine.high %v3317_v9, %v3321_v14 }
 0x69c   :  { %5021 = vmatprep.subr.bf16.mxu0 %v13166_v18  ;;  %v3324_v18 = vld [vmem:[#allocation16 + $0x490] sm:$0xff]  ;;  %v13261_v58 = vcombine.low %v3357_v48, %v3361_v10 }
 0x69e   :  { %4940 = vmatpush1.bf16.msra.mxu1 %v13163_v24  ;;  %v13219_v24 = vcombine.low %v3316_v13, %v3320_v2  ;;  %v3373_v13 = vld [vmem:[#allocation16 + $0x618] sm:$0xff] }
 0x69f   :  { %5022 = vmatpush1.bf16.msra.mxu0 %v13165_v25  ;;  %4941 = vmatprep.subr.bf16.mxu1 %v13172_v27  ;;  %v13221_v25 = vcombine.low %v3317_v9, %v3321_v14  ;;  %v13228_v27 = vcombine.high %v3324_v18, %v3328_v19  ;;  %v3377_v2 = vld [vmem:[#allocation16 + $0x638] sm:$0xff]  ;;  %v13269_v9 = vcombine.low %v3365_v55, %v3369_v56 }
 0x6a0   :  { %5023 = vmatprep.subr.bf16.mxu0 %v13174_v1  ;;  %v13230_v1 = vcombine.high %v3325_v20, %v3329_v23 }
 0x6a2   :  { %4942 = vmatpush1.bf16.msra.mxu1 %v13171_v60  ;;  %v13227_v60 = vcombine.low %v3324_v18, %v3328_v19  ;;  %v3384_v18 = vld [vmem:[#allocation16 + $0x670] sm:$0xff]  ;;  %v3381_v19 = vld [vmem:[#allocation16 + $0x658] sm:$0xff] }
 0x6a3   :  { %5024 = vmatpush1.bf16.msra.mxu0 %v13173_v31  ;;  %4943 = vmatprep.subr.bf16.mxu1 %v13180_v32  ;;  %v13236_v31 = vcombine.high %v3332_v6, %v3336_v28  ;;  %v13238_v32 = vcombine.high %v3333_v29, %v3337_v30 }
 0x6a4   :  { %5025 = vmatprep.subr.bf16.mxu0 %v13182_v33  ;;  %v3340_v33 = vld [vmem:[#allocation16 + $0x510] sm:$0xff] }
 0x6a5   :  { %v13243_v36 = vcombine.low %v3340_v33, %v3344_v34 }
 0x6a6   :  { %4944 = vmatpush1.bf16.msra.mxu1 %v13179_v41  ;;  %v13244_v41 = vcombine.high %v3340_v33, %v3344_v34  ;;  %v3397_v33 = vld [vmem:[#allocation16 + $0x6d8] sm:$0xff] }
 0x6a7   :  { %5026 = vmatpush1.bf16.msra.mxu0 %v13181_v42  ;;  %4945 = vmatprep.subr.bf16.mxu1 %v13188_v44  ;;  %v13246_v42 = vcombine.high %v3341_v0, %v3345_v51  ;;  %v3348_v44 = vld [vmem:[#allocation16 + $0x550] sm:$0xff]  ;;  %v3401_v34 = vld [vmem:[#allocation16 + $0x6f8] sm:$0xff] }
 0x6a8   :  { %5027 = vmatprep.subr.bf16.mxu0 %v13190_v46  ;;  %v3352_v46 = vld [vmem:[#allocation16 + $0x570] sm:$0xff] }
 0x6a9   :  { %v13251_v12 = vcombine.low %v3348_v44, %v3352_v46 }
 0x6aa   :  { %4946 = vmatpush1.bf16.msra.mxu1 %v13187_v38  ;;  %v13252_v38 = vcombine.high %v3348_v44, %v3352_v46  ;;  %v3405_v44 = vld [vmem:[#allocation16 + $0x718] sm:$0xff] }
 0x6ab   :  { %5028 = vmatpush1.bf16.msra.mxu0 %v13189_v39  ;;  %4947 = vmatprep.subr.bf16.mxu1 %v13196_v43  ;;  %v13254_v39 = vcombine.high %v3349_v47, %v3353_v35  ;;  %v3356_v43 = vld [vmem:[#allocation16 + $0x590] sm:$0xff]  ;;  %v3409_v46 = vld [vmem:[#allocation16 + $0x738] sm:$0xff]  ;;  %v13301_v35 = vcombine.low %v3397_v33, %v3401_v34 }
 0x6ac   :  { %5029 = vmatprep.subr.bf16.mxu0 %v13198_v45  ;;  %v3360_v45 = vld [vmem:[#allocation16 + $0x5b0] sm:$0xff] }
 0x6ad   :  { %v13259_v57 = vcombine.low %v3356_v43, %v3360_v45 }
 0x6ae   :  { %4948 = vmatpush1.bf16.msra.mxu1 %v13195_v52  ;;  %v13260_v52 = vcombine.high %v3356_v43, %v3360_v45  ;;  %v3413_v43 = vld [vmem:[#allocation16 + $0x758] sm:$0xff] }
 0x6af   :  { %5030 = vmatpush1.bf16.msra.mxu0 %v13197_v54  ;;  %4949 = vmatprep.subr.bf16.mxu1 %v13204_v26  ;;  %v13262_v54 = vcombine.high %v3357_v48, %v3361_v10  ;;  %v3364_v26 = vld [vmem:[#allocation16 + $0x5d0] sm:$0xff]  ;;  %v3417_v45 = vld [vmem:[#allocation16 + $0x778] sm:$0xff]  ;;  %v13309_v10 = vcombine.low %v3405_v44, %v3409_v46 }
 0x6b0   :  { %5031 = vmatprep.subr.bf16.mxu0 %v13206_v8  ;;  %v3368_v8 = vld [vmem:[#allocation16 + $0x5f0] sm:$0xff] }
 0x6b2   :  { %4950 = vmatpush1.bf16.msra.mxu1 %v13203_v59  ;;  %v13268_v59 = vcombine.high %v3364_v26, %v3368_v8 }
 0x6b3   :  { %5032 = vmatpush1.bf16.msra.mxu0 %v13205_v62  ;;  %4960 = vmatprep.subr.bf16.mxu1 %v13212_v11  ;;  %v13270_v62 = vcombine.high %v3365_v55, %v3369_v56  ;;  %v3372_v11 = vld [vmem:[#allocation16 + $0x610] sm:$0xff]  ;;  %v13317_v56 = vcombine.low %v3413_v43, %v3417_v45 }
 0x6b4   :  { %5042 = vmatprep.subr.bf16.mxu0 %v13214_v63  ;;  %v3376_v63 = vld [vmem:[#allocation16 + $0x630] sm:$0xff] }
 0x6b5   :  { %4952 = vmatmul.mubr.bf16.vlgmr.msra.gmra.mrb[24].mxu1 %v15675_v21  ;;  %v13276_v14 = vcombine.high %v3372_v11, %v3376_v63 }
 0x6b6   :  { %5034 = vmatmul.mubr.bf16.vlgmr.msra.gmra.mrb[28].mxu0 %v15675_v21  ;;  %4961 = vmatpush1.bf16.msra.mxu1 %v13211_v3  ;;  %v13229_v21 = vcombine.low %v3325_v20, %v3329_v23  ;;  %v13267_v3 = vcombine.low %v3364_v26, %v3368_v8  ;;  %v13275_v20 = vcombine.low %v3372_v11, %v3376_v63  ;;  %v3421_v26 = vld [vmem:[#allocation16 + $0x798] sm:$0xff] }
 0x6b7   :  { %4992 = vmatprep.mubr.bf16.mxu1 %v15693_v50  ;;  %5043 = vmatpush1.bf16.msra.mxu0 %v13213_v15  ;;  %v13278_v15 = vcombine.high %v3373_v13, %v3377_v2  ;;  %v13277_v23 = vcombine.low %v3373_v13, %v3377_v2  ;;  %v3425_v8 = vld [vmem:[#allocation16 + $0x7b8] sm:$0xff] }
 0x6b8   :  { %5074 = vmatprep.mubr.bf16.mxu0 %v15693_v50  ;;  %4962 = vmatprep.subr.bf16.mxu1 %v13220_v17  ;;  %v13235_v50 = vcombine.low %v3332_v6, %v3336_v28  ;;  %v3380_v17 = vld [vmem:[#allocation16 + $0x650] sm:$0xff]  ;;  %v3389_v6 = vld [vmem:[#allocation16 + $0x698] sm:$0xff]  ;;  %v13325_v2 = vcombine.low %v3421_v26, %v3425_v8 }
 0x6b9   :  { %5044 = vmatprep.subr.bf16.mxu0 %v13222_v22  ;;  %v3385_v22 = vld [vmem:[#allocation16 + $0x678] sm:$0xff]  ;;  %v13283_v29 = vcombine.low %v3380_v17, %v3384_v18 }
 0x6ba   :  { %4963 = vmatpush1.bf16.msra.mxu1 %v13219_v24  ;;  %v13284_v24 = vcombine.high %v3380_v17, %v3384_v18  ;;  %v3393_v28 = vld [vmem:[#allocation16 + $0x6b8] sm:$0xff]  ;;  %v13285_v30 = vcombine.low %v3381_v19, %v3385_v22  ;;  %v5101_v17 = vld [vmem:[#allocation17 + $0x8] sm:$0xff] }
 0x6bb   :  { %5045 = vmatpush1.bf16.msra.mxu0 %v13221_v25  ;;  %4964 = vmatprep.subr.bf16.mxu1 %v13228_v27  ;;  %v13286_v25 = vcombine.high %v3381_v19, %v3385_v22  ;;  %v3388_v27 = vld [vmem:[#allocation16 + $0x690] sm:$0xff]  ;;  %v13293_v51 = vcombine.low %v3389_v6, %v3393_v28  ;;  %v3429_v11 = vld [vmem:[#allocation16 + $0x7d8] sm:$0xff]  ;;  %v5105_v18 = vld [vmem:[#allocation17 + $0x28] sm:$0xff] }
 0x6bc   :  { %5046 = vmatprep.subr.bf16.mxu0 %v13230_v1  ;;  %v3392_v1 = vld [vmem:[#allocation16 + $0x6b0] sm:$0xff]  ;;  %v3433_v63 = vld [vmem:[#allocation16 + $0x7f8] sm:$0xff] }
 0x6bd   :  { %v13291_v0 = vcombine.low %v3388_v27, %v3392_v1  ;;  %v13333_v22 = vcombine.low %v3429_v11, %v3433_v63 }
 0x6be   :  { %4965 = vmatpush1.bf16.msra.mxu1 %v13227_v60  ;;  %v13292_v60 = vcombine.high %v3388_v27, %v3392_v1  ;;  %v5109_v27 = vld [vmem:[#allocation17 + $0x48] sm:$0xff] }
 0x6bf   :  { %5047 = vmatpush1.bf16.msra.mxu0 %v13229_v21  ;;  %4966 = vmatprep.subr.bf16.mxu1 %v13236_v31  ;;  %v13294_v21 = vcombine.high %v3389_v6, %v3393_v28  ;;  %v3396_v31 = vld [vmem:[#allocation16 + $0x6d0] sm:$0xff]  ;;  %v5113_v1 = vld [vmem:[#allocation17 + $0x68] sm:$0xff]  ;;  %v13337_v28 = vcombine.low %v5101_v17, %v5105_v18 }
 0x6c0   :  { %5048 = vmatprep.subr.bf16.mxu0 %v13238_v32  ;;  %v3400_v32 = vld [vmem:[#allocation16 + $0x6f0] sm:$0xff] }
 0x6c1   :  { %v13299_v47 = vcombine.low %v3396_v31, %v3400_v32 }
 0x6c2   :  { %4967 = vmatpush1.bf16.msra.mxu1 %v13235_v50  ;;  %v13300_v50 = vcombine.high %v3396_v31, %v3400_v32  ;;  %v5117_v31 = vld [vmem:[#allocation17 + $0x88] sm:$0xff] }
 0x6c3   :  { %5049 = vmatpush1.bf16.msra.mxu0 %v13237_v40  ;;  %4968 = vmatprep.subr.bf16.mxu1 %v13244_v41  ;;  %v13302_v40 = vcombine.high %v3397_v33, %v3401_v34  ;;  %v3404_v41 = vld [vmem:[#allocation16 + $0x710] sm:$0xff]  ;;  %v5121_v32 = vld [vmem:[#allocation17 + $0xa8] sm:$0xff]  ;;  %v13345_v34 = vcombine.low %v5109_v27, %v5113_v1 }
 0x6c4   :  { %5050 = vmatprep.subr.bf16.mxu0 %v13246_v42  ;;  %v3408_v42 = vld [vmem:[#allocation16 + $0x730] sm:$0xff] }
 0x6c5   :  { %v13307_v48 = vcombine.low %v3404_v41, %v3408_v42 }
 0x6c6   :  { %4969 = vmatpush1.bf16.msra.mxu1 %v13243_v36  ;;  %v13308_v36 = vcombine.high %v3404_v41, %v3408_v42  ;;  %v5125_v41 = vld [vmem:[#allocation17 + $0xc8] sm:$0xff] }
 0x6c7   :  { %5051 = vmatpush1.bf16.msra.mxu0 %v13245_v37  ;;  %4970 = vmatprep.subr.bf16.mxu1 %v13252_v38  ;;  %v13310_v37 = vcombine.high %v3405_v44, %v3409_v46  ;;  %v3412_v38 = vld [vmem:[#allocation16 + $0x750] sm:$0xff]  ;;  %v5129_v42 = vld [vmem:[#allocation17 + $0xe8] sm:$0xff]  ;;  %v13353_v46 = vcombine.low %v5117_v31, %v5121_v32 }
 0x6c8   :  { %5052 = vmatprep.subr.bf16.mxu0 %v13254_v39  ;;  %v3416_v39 = vld [vmem:[#allocation16 + $0x770] sm:$0xff] }
 0x6c9   :  { %v13315_v55 = vcombine.low %v3412_v38, %v3416_v39 }
 0x6ca   :  { %4971 = vmatpush1.bf16.msra.mxu1 %v13251_v12  ;;  %v13316_v12 = vcombine.high %v3412_v38, %v3416_v39  ;;  %v5137_v38 = vld [vmem:[#allocation17 + $0x128] sm:$0xff] }
 0x6cb   :  { %5053 = vmatpush1.bf16.msra.mxu0 %v13253_v49  ;;  %4972 = vmatprep.subr.bf16.mxu1 %v13260_v52  ;;  %v13318_v49 = vcombine.high %v3413_v43, %v3417_v45  ;;  %v3420_v52 = vld [vmem:[#allocation16 + $0x790] sm:$0xff]  ;;  %v13361_v43 = vcombine.low %v5125_v41, %v5129_v42 }
 0x6cc   :  { %5054 = vmatprep.subr.bf16.mxu0 %v13262_v54  ;;  %v3424_v54 = vld [vmem:[#allocation16 + $0x7b0] sm:$0xff] }
 0x6cd   :  { %v13323_v13 = vcombine.low %v3420_v52, %v3424_v54 }
 0x6ce   :  { %4973 = vmatpush1.bf16.msra.mxu1 %v13259_v57  ;;  %v13324_v57 = vcombine.high %v3420_v52, %v3424_v54  ;;  %v5145_v52 = vld [vmem:[#allocation17 + $0x168] sm:$0xff] }
 0x6cf   :  { %5055 = vmatpush1.bf16.msra.mxu0 %v13261_v58  ;;  %4974 = vmatprep.subr.bf16.mxu1 %v13268_v59  ;;  %v13326_v58 = vcombine.high %v3421_v26, %v3425_v8  ;;  %v3428_v59 = vld [vmem:[#allocation16 + $0x7d0] sm:$0xff] }
 0x6d0   :  { %5056 = vmatprep.subr.bf16.mxu0 %v13270_v62  ;;  %v3432_v62 = vld [vmem:[#allocation16 + $0x7f0] sm:$0xff] }
 0x6d1   :  { %v13331_v19 = vcombine.low %v3428_v59, %v3432_v62 }
 0x6d2   :  { %4975 = vmatpush1.bf16.msra.mxu1 %v13267_v3  ;;  %v13332_v3 = vcombine.high %v3428_v59, %v3432_v62  ;;  %v5153_v59 = vld [vmem:[#allocation17 + $0x1a8] sm:$0xff] }
 0x6d3   :  { %5057 = vmatpush1.bf16.msra.mxu0 %v13269_v9  ;;  %4976 = vmatprep.subr.bf16.mxu1 %v13276_v14  ;;  %v13334_v9 = vcombine.high %v3429_v11, %v3433_v63  ;;  %v5100_v14 = vld [vmem:[#allocation17] sm:$0xff] }
 0x6d4   :  { %5058 = vmatprep.subr.bf16.mxu0 %v13278_v15  ;;  %v5104_v15 = vld [vmem:[#allocation17 + $0x20] sm:$0xff] }
 0x6d5   :  { %v13335_v6 = vcombine.low %v5100_v14, %v5104_v15 }
 0x6d6   :  { %4977 = vmatpush1.bf16.msra.mxu1 %v13275_v20  ;;  %v13336_v20 = vcombine.high %v5100_v14, %v5104_v15  ;;  %v5161_v14 = vld [vmem:[#allocation17 + $0x1e8] sm:$0xff] }
 0x6d7   :  { %5059 = vmatpush1.bf16.msra.mxu0 %v13277_v23  ;;  %4978 = vmatprep.subr.bf16.mxu1 %v13284_v24  ;;  %v13338_v23 = vcombine.high %v5101_v17, %v5105_v18  ;;  %v5108_v24 = vld [vmem:[#allocation17 + $0x40] sm:$0xff] }
 0x6d8   :  { %5060 = vmatprep.subr.bf16.mxu0 %v13286_v25  ;;  %v5112_v25 = vld [vmem:[#allocation17 + $0x60] sm:$0xff] }
 0x6d9   :  { %v13343_v33 = vcombine.low %v5108_v24, %v5112_v25 }
 0x6da   :  { %4979 = vmatpush1.bf16.msra.mxu1 %v13283_v29  ;;  %v13344_v29 = vcombine.high %v5108_v24, %v5112_v25  ;;  %v5169_v24 = vld [vmem:[#allocation17 + $0x228] sm:$0xff] }
 0x6db   :  { %5061 = vmatpush1.bf16.msra.mxu0 %v13285_v30  ;;  %4980 = vmatprep.subr.bf16.mxu1 %v13292_v60  ;;  %v13346_v30 = vcombine.high %v5109_v27, %v5113_v1  ;;  %v5116_v60 = vld [vmem:[#allocation17 + $0x80] sm:$0xff] }
 0x6dc   :  { %5062 = vmatprep.subr.bf16.mxu0 %v13294_v21  ;;  %v5120_v21 = vld [vmem:[#allocation17 + $0xa0] sm:$0xff] }
 0x6dd   :  { %v13351_v44 = vcombine.low %v5116_v60, %v5120_v21 }
 0x6de   :  { %4981 = vmatpush1.bf16.msra.mxu1 %v13291_v0  ;;  %v13352_v0 = vcombine.high %v5116_v60, %v5120_v21  ;;  %v5177_v60 = vld [vmem:[#allocation17 + $0x268] sm:$0xff] }
 0x6df   :  { %5063 = vmatpush1.bf16.msra.mxu0 %v13293_v51  ;;  %4982 = vmatprep.subr.bf16.mxu1 %v13300_v50  ;;  %v13354_v51 = vcombine.high %v5117_v31, %v5121_v32  ;;  %v5124_v50 = vld [vmem:[#allocation17 + $0xc0] sm:$0xff] }
 0x6e0   :  { %5064 = vmatprep.subr.bf16.mxu0 %v13302_v40  ;;  %v5128_v40 = vld [vmem:[#allocation17 + $0xe0] sm:$0xff] }
 0x6e1   :  { %v13359_v39 = vcombine.low %v5124_v50, %v5128_v40 }
 0x6e2   :  { %4983 = vmatpush1.bf16.msra.mxu1 %v13299_v47  ;;  %v13360_v47 = vcombine.high %v5124_v50, %v5128_v40  ;;  %v5185_v50 = vld [vmem:[#allocation17 + $0x2a8] sm:$0xff] }
 0x6e3   :  { %5065 = vmatpush1.bf16.msra.mxu0 %v13301_v35  ;;  %4984 = vmatprep.subr.bf16.mxu1 %v13308_v36  ;;  %v5132_v35 = vld [vmem:[#allocation17 + $0x100] sm:$0xff] }
 0x6e4   :  { %5066 = vmatprep.subr.bf16.mxu0 %v13310_v37  ;;  %v5136_v36 = vld [vmem:[#allocation17 + $0x120] sm:$0xff]  ;;  %v5133_v37 = vld [vmem:[#allocation17 + $0x108] sm:$0xff] }
 0x6e5   :  { %v13368_v45 = vcombine.high %v5132_v35, %v5136_v36  ;;  %v13367_v54 = vcombine.low %v5132_v35, %v5136_v36  ;;  %v13369_v26 = vcombine.low %v5133_v37, %v5137_v38  ;;  %v5193_v35 = vld [vmem:[#allocation17 + $0x2e8] sm:$0xff] }
 0x6e6   :  { %4985 = vmatpush1.bf16.msra.mxu1 %v13307_v48  ;;  %v13370_v48 = vcombine.high %v5133_v37, %v5137_v38 }
 0x6e7   :  { %5067 = vmatpush1.bf16.msra.mxu0 %v13309_v10  ;;  %4986 = vmatprep.subr.bf16.mxu1 %v13316_v12  ;;  %v5140_v10 = vld [vmem:[#allocation17 + $0x140] sm:$0xff] }
 0x6e8   :  { %5068 = vmatprep.subr.bf16.mxu0 %v13318_v49  ;;  %v5144_v12 = vld [vmem:[#allocation17 + $0x160] sm:$0xff]  ;;  %v5141_v49 = vld [vmem:[#allocation17 + $0x148] sm:$0xff] }
 0x6e9   :  { %v13376_v8 = vcombine.high %v5140_v10, %v5144_v12  ;;  %v13375_v62 = vcombine.low %v5140_v10, %v5144_v12  ;;  %v13377_v11 = vcombine.low %v5141_v49, %v5145_v52  ;;  %v5201_v10 = vld [vmem:[#allocation17 + $0x328] sm:$0xff] }
 0x6ea   :  { %4987 = vmatpush1.bf16.msra.mxu1 %v13315_v55  ;;  %v13378_v55 = vcombine.high %v5141_v49, %v5145_v52 }
 0x6eb   :  { %5069 = vmatpush1.bf16.msra.mxu0 %v13317_v56  ;;  %4988 = vmatprep.subr.bf16.mxu1 %v13324_v57  ;;  %v5148_v56 = vld [vmem:[#allocation17 + $0x180] sm:$0xff] }
 0x6ec   :  { %5070 = vmatprep.subr.bf16.mxu0 %v13326_v58  ;;  %v5152_v57 = vld [vmem:[#allocation17 + $0x1a0] sm:$0xff]  ;;  %v5149_v58 = vld [vmem:[#allocation17 + $0x188] sm:$0xff] }
 0x6ed   :  { %v13384_v63 = vcombine.high %v5148_v56, %v5152_v57  ;;  %v13383_v15 = vcombine.low %v5148_v56, %v5152_v57  ;;  %v13385_v17 = vcombine.low %v5149_v58, %v5153_v59  ;;  %v5209_v56 = vld [vmem:[#allocation17 + $0x368] sm:$0xff] }
 0x6ee   :  { %4989 = vmatpush1.bf16.msra.mxu1 %v13323_v13  ;;  %v13386_v13 = vcombine.high %v5149_v58, %v5153_v59 }
 0x6ef   :  { %5071 = vmatpush1.bf16.msra.mxu0 %v13325_v2  ;;  %4990 = vmatprep.subr.bf16.mxu1 %v13332_v3  ;;  %v5156_v2 = vld [vmem:[#allocation17 + $0x1c0] sm:$0xff] }
 0x6f0   :  { %5072 = vmatprep.subr.bf16.mxu0 %v13334_v9  ;;  %v5160_v3 = vld [vmem:[#allocation17 + $0x1e0] sm:$0xff]  ;;  %v5157_v9 = vld [vmem:[#allocation17 + $0x1c8] sm:$0xff] }
 0x6f1   :  { %v13392_v18 = vcombine.high %v5156_v2, %v5160_v3  ;;  %v13391_v25 = vcombine.low %v5156_v2, %v5160_v3  ;;  %v13393_v27 = vcombine.low %v5157_v9, %v5161_v14  ;;  %v5217_v2 = vld [vmem:[#allocation17 + $0x3a8] sm:$0xff] }
 0x6f2   :  { %4991 = vmatpush1.bf16.msra.mxu1 %v13331_v19  ;;  %v13394_v19 = vcombine.high %v5157_v9, %v5161_v14 }
 0x6f3   :  { %5073 = vmatpush1.bf16.msra.mxu0 %v13333_v22  ;;  %8213 = vmatprep.subr.bf16.mxu1 %v13336_v20  ;;  %v5164_v22 = vld [vmem:[#allocation17 + $0x200] sm:$0xff] }
 0x6f4   :  { %8377 = vmatprep.subr.bf16.mxu0 %v13338_v23  ;;  %v5168_v20 = vld [vmem:[#allocation17 + $0x220] sm:$0xff]  ;;  %v5165_v23 = vld [vmem:[#allocation17 + $0x208] sm:$0xff] }
 0x6f5   :  { %4993 = vmatmul.mubr.bf16.vlgmr.msra.gmra.mrb[24].mxu1 %v15695_v53  ;;  %v13400_v1 = vcombine.high %v5164_v22, %v5168_v20  ;;  %v13399_v21 = vcombine.low %v5164_v22, %v5168_v20  ;;  %v13401_v31 = vcombine.low %v5165_v23, %v5169_v24  ;;  %v5225_v22 = vld [vmem:[#allocation17 + $0x3e8] sm:$0xff] }
 0x6f6   :  { %5075 = vmatmul.mubr.bf16.vlgmr.msra.gmra.mrb[28].mxu0 %v15695_v53  ;;  %8214 = vmatpush1.bf16.msra.mxu1 %v13335_v6  ;;  %v13362_v53 = vcombine.high %v5125_v41, %v5129_v42  ;;  %v13402_v6 = vcombine.high %v5165_v23, %v5169_v24 }
 0x6f7   :  { %8378 = vmatpush1.bf16.msra.mxu0 %v13337_v28  ;;  %8215 = vmatprep.subr.bf16.mxu1 %v13344_v29  ;;  %v5172_v28 = vld [vmem:[#allocation17 + $0x240] sm:$0xff] }
 0x6f8   :  { %8379 = vmatprep.subr.bf16.mxu0 %v13346_v30  ;;  %v5176_v29 = vld [vmem:[#allocation17 + $0x260] sm:$0xff]  ;;  %v5173_v30 = vld [vmem:[#allocation17 + $0x248] sm:$0xff] }
 0x6f9   :  { %v13408_v32 = vcombine.high %v5172_v28, %v5176_v29  ;;  %v13407_v40 = vcombine.low %v5172_v28, %v5176_v29  ;;  %v13409_v41 = vcombine.low %v5173_v30, %v5177_v60  ;;  %v5233_v28 = vld [vmem:[#allocation17 + $0x428] sm:$0xff] }
 0x6fa   :  { %8216 = vmatpush1.bf16.msra.mxu1 %v13343_v33  ;;  %v13410_v33 = vcombine.high %v5173_v30, %v5177_v60 }
 0x6fb   :  { %8380 = vmatpush1.bf16.msra.mxu0 %v13345_v34  ;;  %8217 = vmatprep.subr.bf16.mxu1 %v13352_v0  ;;  %v5180_v34 = vld [vmem:[#allocation17 + $0x280] sm:$0xff] }
 0x6fc   :  { %8381 = vmatprep.subr.bf16.mxu0 %v13354_v51  ;;  %v5184_v0 = vld [vmem:[#allocation17 + $0x2a0] sm:$0xff]  ;;  %v5181_v51 = vld [vmem:[#allocation17 + $0x288] sm:$0xff] }
 0x6fd   :  { %v13416_v42 = vcombine.high %v5180_v34, %v5184_v0  ;;  %v13415_v36 = vcombine.low %v5180_v34, %v5184_v0  ;;  %v13417_v37 = vcombine.low %v5181_v51, %v5185_v50 }
 0x6fe   :  { %8218 = vmatpush1.bf16.msra.mxu1 %v13351_v44  ;;  %v13418_v44 = vcombine.high %v5181_v51, %v5185_v50 }
 0x6ff   :  { %8382 = vmatpush1.bf16.msra.mxu0 %v13353_v46  ;;  %8219 = vmatprep.subr.bf16.mxu1 %v13360_v47  ;;  %v5188_v46 = vld [vmem:[#allocation17 + $0x2c0] sm:$0xff] }
 0x700   :  { %8383 = vmatprep.subr.bf16.mxu0 %v13362_v53  ;;  %v5192_v47 = vld [vmem:[#allocation17 + $0x2e0] sm:$0xff]  ;;  %v5189_v53 = vld [vmem:[#allocation17 + $0x2c8] sm:$0xff] }
 0x701   :  { %v13424_v38 = vcombine.high %v5188_v46, %v5192_v47  ;;  %v13423_v12 = vcombine.low %v5188_v46, %v5192_v47  ;;  %v13425_v49 = vcombine.low %v5189_v53, %v5193_v35 }
 0x702   :  { %8220 = vmatpush1.bf16.msra.mxu1 %v13359_v39  ;;  %v13426_v39 = vcombine.high %v5189_v53, %v5193_v35 }
 0x703   :  { %8384 = vmatpush1.bf16.msra.mxu0 %v13361_v43  ;;  %8221 = vmatprep.subr.bf16.mxu1 %v13368_v45  ;;  %v5196_v43 = vld [vmem:[#allocation17 + $0x300] sm:$0xff] }
 0x704   :  { %8385 = vmatprep.subr.bf16.mxu0 %v13370_v48  ;;  %v5200_v45 = vld [vmem:[#allocation17 + $0x320] sm:$0xff]  ;;  %v5197_v48 = vld [vmem:[#allocation17 + $0x308] sm:$0xff] }
 0x705   :  { %v13432_v52 = vcombine.high %v5196_v43, %v5200_v45  ;;  %v13431_v57 = vcombine.low %v5196_v43, %v5200_v45  ;;  %v13433_v58 = vcombine.low %v5197_v48, %v5201_v10  ;;  %v5240_v43 = vld [vmem:[#allocation17 + $0x460] sm:$0xff]  ;;  %v5237_v45 = vld [vmem:[#allocation17 + $0x448] sm:$0xff] }
 0x706   :  { %8222 = vmatpush1.bf16.msra.mxu1 %v13367_v54  ;;  %v13434_v54 = vcombine.high %v5197_v48, %v5201_v10  ;;  %v5241_v48 = vld [vmem:[#allocation17 + $0x468] sm:$0xff] }
 0x707   :  { %8386 = vmatpush1.bf16.msra.mxu0 %v13369_v26  ;;  %8223 = vmatprep.subr.bf16.mxu1 %v13376_v8  ;;  %v5204_v26 = vld [vmem:[#allocation17 + $0x340] sm:$0xff] }
 0x708   :  { %8387 = vmatprep.subr.bf16.mxu0 %v13378_v55  ;;  %v5208_v8 = vld [vmem:[#allocation17 + $0x360] sm:$0xff]  ;;  %v5205_v55 = vld [vmem:[#allocation17 + $0x348] sm:$0xff] }
 0x709   :  { %v13440_v59 = vcombine.high %v5204_v26, %v5208_v8  ;;  %v13439_v3 = vcombine.low %v5204_v26, %v5208_v8  ;;  %v13441_v9 = vcombine.low %v5205_v55, %v5209_v56  ;;  %v13474_v8 = vcombine.high %v5237_v45, %v5241_v48 }
 0x70a   :  { %8224 = vmatpush1.bf16.msra.mxu1 %v13375_v62  ;;  %v13442_v62 = vcombine.high %v5205_v55, %v5209_v56  ;;  %v5248_v55 = vld [vmem:[#allocation17 + $0x4a0] sm:$0xff]  ;;  %v5245_v56 = vld [vmem:[#allocation17 + $0x488] sm:$0xff] }
 0x70b   :  { %8388 = vmatpush1.bf16.msra.mxu0 %v13377_v11  ;;  %8225 = vmatprep.subr.bf16.mxu1 %v13384_v63  ;;  %v5212_v11 = vld [vmem:[#allocation17 + $0x380] sm:$0xff] }
 0x70c   :  { %8389 = vmatprep.subr.bf16.mxu0 %v13386_v13  ;;  %v5216_v63 = vld [vmem:[#allocation17 + $0x3a0] sm:$0xff]  ;;  %v5213_v13 = vld [vmem:[#allocation17 + $0x388] sm:$0xff] }
 0x70d   :  { %v13448_v14 = vcombine.high %v5212_v11, %v5216_v63  ;;  %v13447_v20 = vcombine.low %v5212_v11, %v5216_v63  ;;  %v13449_v23 = vcombine.low %v5213_v13, %v5217_v2 }
 0x70e   :  { %8226 = vmatpush1.bf16.msra.mxu1 %v13383_v15  ;;  %v13450_v15 = vcombine.high %v5213_v13, %v5217_v2  ;;  %v5252_v13 = vld [vmem:[#allocation17 + $0x4c0] sm:$0xff] }
 0x70f   :  { %8390 = vmatpush1.bf16.msra.mxu0 %v13385_v17  ;;  %8227 = vmatprep.subr.bf16.mxu1 %v13392_v18  ;;  %v5220_v17 = vld [vmem:[#allocation17 + $0x3c0] sm:$0xff] }
 0x710   :  { %8391 = vmatprep.subr.bf16.mxu0 %v13394_v19  ;;  %v5224_v18 = vld [vmem:[#allocation17 + $0x3e0] sm:$0xff]  ;;  %v5221_v19 = vld [vmem:[#allocation17 + $0x3c8] sm:$0xff] }
 0x711   :  { %v13456_v24 = vcombine.high %v5220_v17, %v5224_v18  ;;  %v13455_v29 = vcombine.low %v5220_v17, %v5224_v18  ;;  %v13457_v30 = vcombine.low %v5221_v19, %v5225_v22  ;;  %v5256_v2 = vld [vmem:[#allocation17 + $0x4e0] sm:$0xff] }
 0x712   :  { %8228 = vmatpush1.bf16.msra.mxu1 %v13391_v25  ;;  %v13458_v25 = vcombine.high %v5221_v19, %v5225_v22  ;;  %v13488_v17 = vcombine.high %v5252_v13, %v5256_v2  ;;  %v5260_v19 = vld [vmem:[#allocation17 + $0x500] sm:$0xff] }
 0x713   :  { %8392 = vmatpush1.bf16.msra.mxu0 %v13393_v27  ;;  %8229 = vmatprep.subr.bf16.mxu1 %v13400_v1  ;;  %v5228_v27 = vld [vmem:[#allocation17 + $0x400] sm:$0xff] }
 0x714   :  { %8393 = vmatprep.subr.bf16.mxu0 %v13402_v6  ;;  %v5232_v1 = vld [vmem:[#allocation17 + $0x420] sm:$0xff]  ;;  %v5229_v6 = vld [vmem:[#allocation17 + $0x408] sm:$0xff] }
 0x715   :  { %v13464_v60 = vcombine.high %v5228_v27, %v5232_v1  ;;  %v5264_v22 = vld [vmem:[#allocation17 + $0x520] sm:$0xff] }
 0x716   :  { %8230 = vmatpush1.bf16.msra.mxu1 %v13399_v21  ;;  %v13466_v21 = vcombine.high %v5229_v6, %v5233_v28 }
 0x717   :  { %8394 = vmatpush1.bf16.msra.mxu0 %v13401_v31  ;;  %8231 = vmatprep.subr.bf16.mxu1 %v13408_v32  ;;  %v15709_v31 = vld [vmem:[#allocation5 + $0x12] sm:$0xff] }
 0x718   :  { %8395 = vmatprep.subr.bf16.mxu0 %v13410_v33  ;;  %v3438_v32 = vrot.slane %v15709_v31, %v15587_v5  ;;  %v3442_v33 = vrot.slane %v15709_v31, %v15590_v7  ;;  %v3450_v34 = vrot.slane %v15709_v31, %v15609_v61 }
 0x71a   :  { %8232 = vmatpush1.bf16.msra.mxu1 %v13407_v40 }
 0x71b   :  { %8396 = vmatpush1.bf16.msra.mxu0 %v13409_v41  ;;  %8233 = vmatprep.subr.bf16.mxu1 %v13416_v42 }
 0x71c   :  { %8397 = vmatprep.subr.bf16.mxu0 %v13418_v44 }
 0x71e   :  { %8234 = vmatpush1.bf16.msra.mxu1 %v13415_v36 }
 0x71f   :  { %8398 = vmatpush1.bf16.msra.mxu0 %v13417_v37  ;;  %8235 = vmatprep.subr.bf16.mxu1 %v13424_v38  ;;  %v5236_v38 = vld [vmem:[#allocation17 + $0x440] sm:$0xff] }
 0x720   :  { %8399 = vmatprep.subr.bf16.mxu0 %v13426_v39  ;;  %v13472_v26 = vcombine.high %v5236_v38, %v5240_v43 }
 0x722   :  { %8236 = vmatpush1.bf16.msra.mxu1 %v13423_v12  ;;  %v13463_v12 = vcombine.low %v5228_v27, %v5232_v1  ;;  %v13496_v27 = vcombine.high %v5260_v19, %v5264_v22 }
 0x723   :  { %8400 = vmatpush1.bf16.msra.mxu0 %v13425_v49  ;;  %8237 = vmatprep.subr.bf16.mxu1 %v13432_v52  ;;  %v13465_v49 = vcombine.low %v5229_v6, %v5233_v28  ;;  %v5268_v6 = vld [vmem:[#allocation17 + $0x540] sm:$0xff] }
 0x724   :  { %8401 = vmatprep.subr.bf16.mxu0 %v13434_v54  ;;  %v5244_v54 = vld [vmem:[#allocation17 + $0x480] sm:$0xff] }
 0x725   :  { %v13480_v11 = vcombine.high %v5244_v54, %v5248_v55  ;;  %v5272_v28 = vld [vmem:[#allocation17 + $0x560] sm:$0xff] }
 0x726   :  { %8238 = vmatpush1.bf16.msra.mxu1 %v13431_v57  ;;  %v5249_v57 = vld [vmem:[#allocation17 + $0x4a8] sm:$0xff] }
 0x727   :  { %8402 = vmatpush1.bf16.msra.mxu0 %v13433_v58  ;;  %8239 = vmatprep.subr.bf16.mxu1 %v13440_v59  ;;  %v13471_v59 = vcombine.low %v5236_v38, %v5240_v43  ;;  %v13482_v63 = vcombine.high %v5245_v56, %v5249_v57  ;;  %v5285_v38 = vld [vmem:[#allocation17 + $0x5c8] sm:$0xff] }
 0x728   :  { %8403 = vmatprep.subr.bf16.mxu0 %v13442_v62  ;;  %v13473_v62 = vcombine.low %v5237_v45, %v5241_v48 }
 0x72a   :  { %8240 = vmatpush1.bf16.msra.mxu1 %v13439_v3  ;;  %v5253_v3 = vld [vmem:[#allocation17 + $0x4c8] sm:$0xff] }
 0x72b   :  { %8404 = vmatpush1.bf16.msra.mxu0 %v13441_v9  ;;  %8241 = vmatprep.subr.bf16.mxu1 %v13448_v14  ;;  %v5257_v9 = vld [vmem:[#allocation17 + $0x4e8] sm:$0xff]  ;;  %v13479_v14 = vcombine.low %v5244_v54, %v5248_v55  ;;  %v5296_v54 = vld [vmem:[#allocation17 + $0x620] sm:$0xff] }
 0x72c   :  { %8405 = vmatprep.subr.bf16.mxu0 %v13450_v15  ;;  %v13481_v15 = vcombine.low %v5245_v56, %v5249_v57  ;;  %v13490_v18 = vcombine.high %v5253_v3, %v5257_v9 }
 0x72e   :  { %8242 = vmatpush1.bf16.msra.mxu1 %v13447_v20  ;;  %v5261_v20 = vld [vmem:[#allocation17 + $0x508] sm:$0xff] }
 0x72f   :  { %8406 = vmatpush1.bf16.msra.mxu0 %v13449_v23  ;;  %8243 = vmatprep.subr.bf16.mxu1 %v13456_v24  ;;  %v5265_v23 = vld [vmem:[#allocation17 + $0x528] sm:$0xff]  ;;  %v13487_v24 = vcombine.low %v5252_v13, %v5256_v2 }
 0x730   :  { %8407 = vmatprep.subr.bf16.mxu0 %v13458_v25  ;;  %v13489_v25 = vcombine.low %v5253_v3, %v5257_v9  ;;  %v13498_v1 = vcombine.high %v5261_v20, %v5265_v23  ;;  %v5305_v13 = vld [vmem:[#allocation17 + $0x668] sm:$0xff] }
 0x732   :  { %8244 = vmatpush1.bf16.msra.mxu1 %v13455_v29  ;;  %v5269_v29 = vld [vmem:[#allocation17 + $0x548] sm:$0xff] }
 0x733   :  { %8408 = vmatpush1.bf16.msra.mxu0 %v13457_v30  ;;  %8254 = vmatprep.subr.bf16.mxu1 %v13464_v60  ;;  %v5273_v30 = vld [vmem:[#allocation17 + $0x568] sm:$0xff]  ;;  %v13495_v60 = vcombine.low %v5260_v19, %v5264_v22 }
 0x734   :  { %8418 = vmatprep.subr.bf16.mxu0 %v13466_v21  ;;  %v13497_v21 = vcombine.low %v5261_v20, %v5265_v23  ;;  %v5313_v19 = vld [vmem:[#allocation17 + $0x6a8] sm:$0xff] }
 0x748   :  { %v4830_v0 = vpop.f32.mrb[20].mxu1  ;;  %v15717_v51 = vpop.f32.mrb[24].mxu0 }
 0x749   :  { %v15719_v50 = vadd.f32 %v4830_v0, %v3438_v32  ;;  %v4832_v40 = vpop.f32.mrb[21].mxu1  ;;  %v4914_v41 = vpop.f32.mrb[25].mxu0  ;;  %v13504_v32 = vcombine.high %v5268_v6, %v5272_v28  ;;  %v5280_v0 = vld [vmem:[#allocation17 + $0x5a0] sm:$0xff] }
 0x74a   :  { %v15721_v42 = vadd.f32 %v4832_v40, %v3442_v33  ;;  %v15723_v44 = vadd.f32 %v4914_v41, %v3450_v34  ;;  %v4834_v46 = vpop.f32.mrb[22].mxu1  ;;  %v4916_v47 = vpop.f32.mrb[26].mxu0  ;;  %v13506_v33 = vcombine.high %v5269_v29, %v5273_v30  ;;  %v5276_v34 = vld [vmem:[#allocation17 + $0x580] sm:$0xff]  ;;  %v5277_v40 = vld [vmem:[#allocation17 + $0x588] sm:$0xff] }
 0x74b   :  { %v5083_v53 = vmax.f32 %v15719_v50, 0.0  ;;  %v4835_v35 = vpop.f32.mrb[23].mxu1  ;;  %v4917_v36 = vpop.f32.mrb[27].mxu0  ;;  %v5281_v41 = vld [vmem:[#allocation17 + $0x5a8] sm:$0xff]  ;;  %v13503_v46 = vcombine.low %v5268_v6, %v5272_v28  ;;  %v13505_v47 = vcombine.low %v5269_v29, %v5273_v30  ;;  %v13511_v43 = vcombine.low %v5276_v34, %v5280_v0 }
 0x74c   :  { %v5084_v37 = vmax.f32 %v15721_v42, 0.0  ;;  %v5086_v39 = vmax.f32 %v15723_v44, 0.0  ;;  %v13514_v35 = vcombine.high %v5277_v40, %v5281_v41  ;;  %v5284_v36 = vld [vmem:[#allocation17 + $0x5c0] sm:$0xff]  ;;  %v13513_v45 = vcombine.low %v5277_v40, %v5281_v41  ;;  %v5321_v6 = vld [vmem:[#allocation17 + $0x6e8] sm:$0xff] }
 0x74d   :  { %v15730_v52 = vpack.c.bf16 %v5083_v53, %v5083_v53  ;;  %v13512_v53 = vcombine.high %v5276_v34, %v5280_v0  ;;  %v5329_v34 = vld [vmem:[#allocation17 + $0x728] sm:$0xff] }
 0x74e   :  { %v15728_v10 = vpack.c.bf16 %v5084_v37, %v5084_v37  ;;  %v15734_v58 = vpack.c.bf16 %v5086_v39, %v5086_v39  ;;  %v5288_v37 = vld [vmem:[#allocation17 + $0x5e0] sm:$0xff]  ;;  %v5289_v39 = vld [vmem:[#allocation17 + $0x5e8] sm:$0xff] }
 0x74f   :  { %v13520_v48 = vcombine.high %v5284_v36, %v5288_v37  ;;  %v13519_v55 = vcombine.low %v5284_v36, %v5288_v37  ;;  %v13521_v56 = vcombine.low %v5285_v38, %v5289_v39  ;;  %v5337_v36 = vld [vmem:[#allocation17 + $0x768] sm:$0xff] }
 0x750   :  { %8245 = vmatprep.mubr.bf16.mxu1 %v15728_v10  ;;  %8409 = vmatprep.mubr.bf16.mxu0 %v15728_v10 }
 0x751   :  { %8246 = vmatmul.mubr.bf16.vlgmr.msra.gmra.mrb[28].mxu1 %v15730_v52  ;;  %8410 = vmatmul.mubr.bf16.vlgmr.msra.gmra.mrb[32].mxu0 %v15730_v52 }
 0x752   :  { %8255 = vmatpush1.bf16.msra.mxu1 %v13463_v12  ;;  %8419 = vmatpush1.bf16.msra.mxu0 %v13465_v49  ;;  %v13522_v12 = vcombine.high %v5285_v38, %v5289_v39  ;;  %v5292_v49 = vld [vmem:[#allocation17 + $0x600] sm:$0xff] }
 0x753   :  { %8286 = vmatprep.mubr.bf16.mxu1 %v15734_v58  ;;  %8450 = vmatprep.mubr.bf16.mxu0 %v15734_v58  ;;  %v13528_v57 = vcombine.high %v5292_v49, %v5296_v54  ;;  %v13527_v2 = vcombine.low %v5292_v49, %v5296_v54  ;;  %v5345_v49 = vld [vmem:[#allocation17 + $0x7a8] sm:$0xff] }
 0x754   :  { %8256 = vmatprep.subr.bf16.mxu1 %v13472_v26  ;;  %8420 = vmatprep.subr.bf16.mxu0 %v13474_v8  ;;  %v5293_v26 = vld [vmem:[#allocation17 + $0x608] sm:$0xff] }
 0x755   :  { %v5297_v8 = vld [vmem:[#allocation17 + $0x628] sm:$0xff] }
 0x756   :  { %8257 = vmatpush1.bf16.msra.mxu1 %v13471_v59  ;;  %8421 = vmatpush1.bf16.msra.mxu0 %v13473_v62  ;;  %v13530_v59 = vcombine.high %v5293_v26, %v5297_v8  ;;  %v5300_v62 = vld [vmem:[#allocation17 + $0x640] sm:$0xff]  ;;  %v13529_v3 = vcombine.low %v5293_v26, %v5297_v8  ;;  %v3446_v8 = vrot.slane %v15709_v31, %v15629_v16 }
 0x757   :  { %8258 = vmatprep.subr.bf16.mxu1 %v13480_v11  ;;  %8422 = vmatprep.subr.bf16.mxu0 %v13482_v63  ;;  %v5304_v11 = vld [vmem:[#allocation17 + $0x660] sm:$0xff]  ;;  %v5301_v63 = vld [vmem:[#allocation17 + $0x648] sm:$0xff] }
 0x758   :  { %v13536_v9 = vcombine.high %v5300_v62, %v5304_v11  ;;  %v13535_v22 = vcombine.low %v5300_v62, %v5304_v11  ;;  %v13537_v20 = vcombine.low %v5301_v63, %v5305_v13  ;;  %v5349_v62 = vld [vmem:[#allocation17 + $0x7c8] sm:$0xff] }
 0x759   :  { %v5353_v11 = vld [vmem:[#allocation17 + $0x7e8] sm:$0xff] }
 0x75a   :  { %8259 = vmatpush1.bf16.msra.mxu1 %v13479_v14  ;;  %8423 = vmatpush1.bf16.msra.mxu0 %v13481_v15  ;;  %v13538_v14 = vcombine.high %v5301_v63, %v5305_v13  ;;  %v5308_v15 = vld [vmem:[#allocation17 + $0x680] sm:$0xff] }
 0x75b   :  { %8260 = vmatprep.subr.bf16.mxu1 %v13488_v17  ;;  %8424 = vmatprep.subr.bf16.mxu0 %v13490_v18  ;;  %v5312_v17 = vld [vmem:[#allocation17 + $0x6a0] sm:$0xff]  ;;  %v5309_v18 = vld [vmem:[#allocation17 + $0x688] sm:$0xff] }
 0x75c   :  { %v13544_v23 = vcombine.high %v5308_v15, %v5312_v17  ;;  %v13543_v28 = vcombine.low %v5308_v15, %v5312_v17  ;;  %v13545_v29 = vcombine.low %v5309_v18, %v5313_v19  ;;  %v5360_v15 = vld [vmem:[#allocation17 + $0x820] sm:$0xff]  ;;  %v5357_v17 = vld [vmem:[#allocation17 + $0x808] sm:$0xff] }
 0x75e   :  { %8261 = vmatpush1.bf16.msra.mxu1 %v13487_v24  ;;  %8425 = vmatpush1.bf16.msra.mxu0 %v13489_v25  ;;  %v13546_v24 = vcombine.high %v5309_v18, %v5313_v19  ;;  %v5316_v25 = vld [vmem:[#allocation17 + $0x6c0] sm:$0xff]  ;;  %v5361_v18 = vld [vmem:[#allocation17 + $0x828] sm:$0xff] }
 0x75f   :  { %8262 = vmatprep.subr.bf16.mxu1 %v13496_v27  ;;  %8426 = vmatprep.subr.bf16.mxu0 %v13498_v1  ;;  %v5320_v27 = vld [vmem:[#allocation17 + $0x6e0] sm:$0xff]  ;;  %v5317_v1 = vld [vmem:[#allocation17 + $0x6c8] sm:$0xff] }
 0x760   :  { %v13552_v30 = vcombine.high %v5316_v25, %v5320_v27  ;;  %v13551_v0 = vcombine.low %v5316_v25, %v5320_v27  ;;  %v13553_v40 = vcombine.low %v5317_v1, %v5321_v6  ;;  %v5368_v25 = vld [vmem:[#allocation17 + $0x860] sm:$0xff]  ;;  %v5365_v27 = vld [vmem:[#allocation17 + $0x848] sm:$0xff] }
 0x762   :  { %8263 = vmatpush1.bf16.msra.mxu1 %v13495_v60  ;;  %8427 = vmatpush1.bf16.msra.mxu0 %v13497_v21  ;;  %v13554_v60 = vcombine.high %v5317_v1, %v5321_v6  ;;  %v5324_v21 = vld [vmem:[#allocation17 + $0x700] sm:$0xff]  ;;  %v5369_v1 = vld [vmem:[#allocation17 + $0x868] sm:$0xff] }
 0x763   :  { %8264 = vmatprep.subr.bf16.mxu1 %v13504_v32  ;;  %8428 = vmatprep.subr.bf16.mxu0 %v13506_v33  ;;  %v5328_v32 = vld [vmem:[#allocation17 + $0x720] sm:$0xff]  ;;  %v5325_v33 = vld [vmem:[#allocation17 + $0x708] sm:$0xff] }
 0x764   :  { %v13560_v41 = vcombine.high %v5324_v21, %v5328_v32  ;;  %v13559_v37 = vcombine.low %v5324_v21, %v5328_v32  ;;  %v13561_v38 = vcombine.low %v5325_v33, %v5329_v34  ;;  %v5372_v21 = vld [vmem:[#allocation17 + $0x880] sm:$0xff] }
 0x765   :  { %v5376_v32 = vld [vmem:[#allocation17 + $0x8a0] sm:$0xff] }
 0x766   :  { %8265 = vmatpush1.bf16.msra.mxu1 %v13503_v46  ;;  %8429 = vmatpush1.bf16.msra.mxu0 %v13505_v47  ;;  %v13562_v46 = vcombine.high %v5325_v33, %v5329_v34  ;;  %v5332_v47 = vld [vmem:[#allocation17 + $0x740] sm:$0xff]  ;;  %v5373_v33 = vld [vmem:[#allocation17 + $0x888] sm:$0xff] }
 0x767   :  { %8266 = vmatprep.subr.bf16.mxu1 %v13512_v53  ;;  %8430 = vmatprep.subr.bf16.mxu0 %v13514_v35  ;;  %v5336_v53 = vld [vmem:[#allocation17 + $0x760] sm:$0xff]  ;;  %v5333_v35 = vld [vmem:[#allocation17 + $0x748] sm:$0xff] }
 0x768   :  { %v13568_v39 = vcombine.high %v5332_v47, %v5336_v53  ;;  %v13567_v54 = vcombine.low %v5332_v47, %v5336_v53  ;;  %v13569_v26 = vcombine.low %v5333_v35, %v5337_v36  ;;  %v5377_v34 = vld [vmem:[#allocation17 + $0x8a8] sm:$0xff]  ;;  %v5380_v47 = vld [vmem:[#allocation17 + $0x8c0] sm:$0xff] }
 0x769   :  { %v5384_v53 = vld [vmem:[#allocation17 + $0x8e0] sm:$0xff] }
 0x76a   :  { %8267 = vmatpush1.bf16.msra.mxu1 %v13511_v43  ;;  %8431 = vmatpush1.bf16.msra.mxu0 %v13513_v45  ;;  %v13570_v43 = vcombine.high %v5333_v35, %v5337_v36  ;;  %v5340_v45 = vld [vmem:[#allocation17 + $0x780] sm:$0xff]  ;;  %v5381_v35 = vld [vmem:[#allocation17 + $0x8c8] sm:$0xff] }
 0x76b   :  { %8268 = vmatprep.subr.bf16.mxu1 %v13520_v48  ;;  %8432 = vmatprep.subr.bf16.mxu0 %v13522_v12  ;;  %v5344_v48 = vld [vmem:[#allocation17 + $0x7a0] sm:$0xff]  ;;  %v5341_v12 = vld [vmem:[#allocation17 + $0x788] sm:$0xff] }
 0x76c   :  { %v13575_v63 = vcombine.low %v5340_v45, %v5344_v48  ;;  %v13577_v13 = vcombine.low %v5341_v12, %v5345_v49  ;;  %v5385_v36 = vld [vmem:[#allocation17 + $0x8e8] sm:$0xff] }
 0x76e   :  { %8269 = vmatpush1.bf16.msra.mxu1 %v13519_v55  ;;  %8433 = vmatpush1.bf16.msra.mxu0 %v13521_v56  ;;  %v13576_v55 = vcombine.high %v5340_v45, %v5344_v48  ;;  %v13578_v56 = vcombine.high %v5341_v12, %v5345_v49  ;;  %v5388_v45 = vld [vmem:[#allocation17 + $0x900] sm:$0xff]  ;;  %v5389_v12 = vld [vmem:[#allocation17 + $0x908] sm:$0xff] }
 0x76f   :  { %8270 = vmatprep.subr.bf16.mxu1 %v13528_v57  ;;  %8434 = vmatprep.subr.bf16.mxu0 %v13530_v59  ;;  %v5348_v57 = vld [vmem:[#allocation17 + $0x7c0] sm:$0xff]  ;;  %v5393_v49 = vld [vmem:[#allocation17 + $0x928] sm:$0xff] }
 0x770   :  { %v5352_v59 = vld [vmem:[#allocation17 + $0x7e0] sm:$0xff] }
 0x771   :  { %v13583_v19 = vcombine.low %v5348_v57, %v5352_v59  ;;  %v5392_v48 = vld [vmem:[#allocation17 + $0x920] sm:$0xff] }
 0x772   :  { %8271 = vmatpush1.bf16.msra.mxu1 %v13527_v2  ;;  %8435 = vmatpush1.bf16.msra.mxu0 %v13529_v3  ;;  %v15743_v2 = vadd.f32 %v15717_v51, %v3446_v8  ;;  %v13584_v3 = vcombine.high %v5348_v57, %v5352_v59  ;;  %v5364_v51 = vld [vmem:[#allocation17 + $0x840] sm:$0xff]  ;;  %v13624_v8 = vcombine.high %v5388_v45, %v5392_v48  ;;  %v5397_v59 = vld [vmem:[#allocation17 + $0x948] sm:$0xff] }
 0x773   :  { %8272 = vmatprep.subr.bf16.mxu1 %v13536_v9  ;;  %8436 = vmatprep.subr.bf16.mxu0 %v13538_v14  ;;  %v13586_v9 = vcombine.high %v5349_v62, %v5353_v11  ;;  %v5356_v14 = vld [vmem:[#allocation17 + $0x800] sm:$0xff] }
 0x774   :  { %v13591_v6 = vcombine.low %v5356_v14, %v5360_v15  ;;  %v5400_v57 = vld [vmem:[#allocation17 + $0x960] sm:$0xff] }
 0x776   :  { %8273 = vmatpush1.bf16.msra.mxu1 %v13535_v22  ;;  %8437 = vmatpush1.bf16.msra.mxu0 %v13537_v20  ;;  %v13585_v22 = vcombine.low %v5349_v62, %v5353_v11  ;;  %v5085_v20 = vmax.f32 %v15743_v2, 0.0  ;;  %v5401_v62 = vld [vmem:[#allocation17 + $0x968] sm:$0xff]  ;;  %v13623_v11 = vcombine.low %v5388_v45, %v5392_v48 }
 0x777   :  { %8274 = vmatprep.subr.bf16.mxu1 %v13544_v23  ;;  %8438 = vmatprep.subr.bf16.mxu0 %v13546_v24  ;;  %v13592_v23 = vcombine.high %v5356_v14, %v5360_v15  ;;  %v13594_v24 = vcombine.high %v5357_v17, %v5361_v18  ;;  %v5408_v14 = vld [vmem:[#allocation17 + $0x9a0] sm:$0xff]  ;;  %v5405_v15 = vld [vmem:[#allocation17 + $0x988] sm:$0xff] }
 0x778   :  { %v5437_v45 = vld [vmem:[#allocation17 + $0xa88] sm:$0xff] }
 0x779   :  { %v5441_v48 = vld [vmem:[#allocation17 + $0xaa8] sm:$0xff] }
 0x77a   :  { %8275 = vmatpush1.bf16.msra.mxu1 %v13543_v28  ;;  %8439 = vmatpush1.bf16.msra.mxu0 %v13545_v29  ;;  %v13593_v28 = vcombine.low %v5357_v17, %v5361_v18  ;;  %v15746_v29 = vpack.c.bf16 %v5085_v20, %v5085_v20  ;;  %v5409_v17 = vld [vmem:[#allocation17 + $0x9a8] sm:$0xff] }
 0x77b   :  { %8276 = vmatprep.subr.bf16.mxu1 %v13552_v30  ;;  %8440 = vmatprep.subr.bf16.mxu0 %v13554_v60  ;;  %v13600_v30 = vcombine.high %v5364_v51, %v5368_v25  ;;  %v13602_v60 = vcombine.high %v5365_v27, %v5369_v1  ;;  %v13642_v20 = vcombine.high %v5405_v15, %v5409_v17 }
 0x77e   :  { %8277 = vmatpush1.bf16.msra.mxu1 %v13551_v0  ;;  %8441 = vmatpush1.bf16.msra.mxu0 %v13553_v40  ;;  %v13599_v0 = vcombine.low %v5364_v51, %v5368_v25  ;;  %v13601_v40 = vcombine.low %v5365_v27, %v5369_v1  ;;  %v5413_v51 = vld [vmem:[#allocation17 + $0x9c8] sm:$0xff]  ;;  %v13641_v1 = vcombine.low %v5405_v15, %v5409_v17 }
 0x77f   :  { %8278 = vmatprep.subr.bf16.mxu1 %v13560_v41  ;;  %8442 = vmatprep.subr.bf16.mxu0 %v13562_v46  ;;  %v13608_v41 = vcombine.high %v5372_v21, %v5376_v32  ;;  %v13610_v46 = vcombine.high %v5373_v33, %v5377_v34  ;;  %v5417_v25 = vld [vmem:[#allocation17 + $0x9e8] sm:$0xff] }
 0x782   :  { %8279 = vmatpush1.bf16.msra.mxu1 %v13559_v37  ;;  %8443 = vmatpush1.bf16.msra.mxu0 %v13561_v38  ;;  %v13607_v37 = vcombine.low %v5372_v21, %v5376_v32  ;;  %v13609_v38 = vcombine.low %v5373_v33, %v5377_v34  ;;  %v5421_v21 = vld [vmem:[#allocation17 + $0xa08] sm:$0xff]  ;;  %v13649_v34 = vcombine.low %v5413_v51, %v5417_v25 }
 0x783   :  { %8280 = vmatprep.subr.bf16.mxu1 %v13568_v39  ;;  %8444 = vmatprep.subr.bf16.mxu0 %v13570_v43  ;;  %v13616_v39 = vcombine.high %v5380_v47, %v5384_v53  ;;  %v13618_v43 = vcombine.high %v5381_v35, %v5385_v36  ;;  %v5425_v32 = vld [vmem:[#allocation17 + $0xa28] sm:$0xff] }
 0x786   :  { %8281 = vmatpush1.bf16.msra.mxu1 %v13567_v54  ;;  %8445 = vmatpush1.bf16.msra.mxu0 %v13569_v26  ;;  %v13615_v54 = vcombine.low %v5380_v47, %v5384_v53  ;;  %v13617_v26 = vcombine.low %v5381_v35, %v5385_v36  ;;  %v5429_v47 = vld [vmem:[#allocation17 + $0xa48] sm:$0xff]  ;;  %v13657_v36 = vcombine.low %v5421_v21, %v5425_v32 }
 0x787   :  { %8282 = vmatprep.subr.bf16.mxu1 %v13576_v55  ;;  %8446 = vmatprep.subr.bf16.mxu0 %v13578_v56  ;;  %v13626_v55 = vcombine.high %v5389_v12, %v5393_v49  ;;  %v5396_v56 = vld [vmem:[#allocation17 + $0x940] sm:$0xff]  ;;  %v5433_v53 = vld [vmem:[#allocation17 + $0xa68] sm:$0xff] }
 0x788   :  { %v13631_v18 = vcombine.low %v5396_v56, %v5400_v57 }
 0x78a   :  { %8283 = vmatpush1.bf16.msra.mxu1 %v13575_v63  ;;  %8447 = vmatpush1.bf16.msra.mxu0 %v13577_v13  ;;  %v13625_v63 = vcombine.low %v5389_v12, %v5393_v49  ;;  %v13632_v13 = vcombine.high %v5396_v56, %v5400_v57  ;;  %v13665_v49 = vcombine.low %v5429_v47, %v5433_v53  ;;  %v5445_v56 = vld [vmem:[#allocation17 + $0xac8] sm:$0xff] }
 0x78b   :  { %8284 = vmatprep.subr.bf16.mxu1 %v13584_v3  ;;  %8448 = vmatprep.subr.bf16.mxu0 %v13586_v9  ;;  %v13634_v3 = vcombine.high %v5397_v59, %v5401_v62  ;;  %v5404_v9 = vld [vmem:[#allocation17 + $0x980] sm:$0xff]  ;;  %v5449_v57 = vld [vmem:[#allocation17 + $0xae8] sm:$0xff] }
 0x78c   :  { %v13639_v27 = vcombine.low %v5404_v9, %v5408_v14  ;;  %v13681_v17 = vcombine.low %v5445_v56, %v5449_v57 }
 0x78e   :  { %8285 = vmatpush1.bf16.msra.mxu1 %v13583_v19  ;;  %8449 = vmatpush1.bf16.msra.mxu0 %v13585_v22  ;;  %v13633_v19 = vcombine.low %v5397_v59, %v5401_v62  ;;  %v13640_v22 = vcombine.high %v5404_v9, %v5408_v14  ;;  %v13673_v62 = vcombine.low %v5437_v45, %v5441_v48  ;;  %v5453_v9 = vld [vmem:[#allocation17 + $0xb08] sm:$0xff] }
 0x78f   :  { %8295 = vmatprep.subr.bf16.mxu1 %v13592_v23  ;;  %8459 = vmatprep.subr.bf16.mxu0 %v13594_v24  ;;  %v5412_v23 = vld [vmem:[#allocation17 + $0x9c0] sm:$0xff]  ;;  %v5457_v14 = vld [vmem:[#allocation17 + $0xb28] sm:$0xff] }
 0x790   :  { %v5416_v24 = vld [vmem:[#allocation17 + $0x9e0] sm:$0xff] }
 0x791   :  { %8287 = vmatmul.mubr.bf16.vlgmr.msra.gmra.mrb[28].mxu1 %v15746_v29  ;;  %8451 = vmatmul.mubr.bf16.vlgmr.msra.gmra.mrb[32].mxu0 %v15746_v29  ;;  %v13647_v33 = vcombine.low %v5412_v23, %v5416_v24 }
 0x792   :  { %8296 = vmatpush1.bf16.msra.mxu1 %v13591_v6  ;;  %8460 = vmatpush1.bf16.msra.mxu0 %v13593_v28  ;;  %v13648_v6 = vcombine.high %v5412_v23, %v5416_v24  ;;  %v13650_v28 = vcombine.high %v5413_v51, %v5417_v25  ;;  %v5461_v23 = vld [vmem:[#allocation17 + $0xb48] sm:$0xff]  ;;  %v13689_v25 = vcombine.low %v5453_v9, %v5457_v14 }
 0x793   :  { %8297 = vmatprep.subr.bf16.mxu1 %v13600_v30  ;;  %8461 = vmatprep.subr.bf16.mxu0 %v13602_v60  ;;  %v5420_v30 = vld [vmem:[#allocation17 + $0xa00] sm:$0xff]  ;;  %v5465_v24 = vld [vmem:[#allocation17 + $0xb68] sm:$0xff] }
 0x794   :  { %v5424_v60 = vld [vmem:[#allocation17 + $0xa20] sm:$0xff] }
 0x795   :  { %v13655_v35 = vcombine.low %v5420_v30, %v5424_v60 }
 0x796   :  { %8298 = vmatpush1.bf16.msra.mxu1 %v13599_v0  ;;  %8462 = vmatpush1.bf16.msra.mxu0 %v13601_v40  ;;  %v13656_v0 = vcombine.high %v5420_v30, %v5424_v60  ;;  %v13658_v40 = vcombine.high %v5421_v21, %v5425_v32  ;;  %v5469_v30 = vld [vmem:[#allocation17 + $0xb88] sm:$0xff]  ;;  %v15751_v21 = vsub.s32 4, %v15584_v4 }
 0x797   :  { %8299 = vmatprep.subr.bf16.mxu1 %v13608_v41  ;;  %8463 = vmatprep.subr.bf16.mxu0 %v13610_v46  ;;  %v5428_v41 = vld [vmem:[#allocation17 + $0xa40] sm:$0xff]  ;;  %v5473_v60 = vld [vmem:[#allocation17 + $0xba8] sm:$0xff] }
 0x798   :  { %v5432_v46 = vld [vmem:[#allocation17 + $0xa60] sm:$0xff] }
 0x799   :  { %v13663_v12 = vcombine.low %v5428_v41, %v5432_v46 }
 0x79a   :  { %8300 = vmatpush1.bf16.msra.mxu1 %v13607_v37  ;;  %8464 = vmatpush1.bf16.msra.mxu0 %v13609_v38  ;;  %v13664_v37 = vcombine.high %v5428_v41, %v5432_v46  ;;  %v13666_v38 = vcombine.high %v5429_v47, %v5433_v53  ;;  %v15757_v41 = vsub.s32 7, %v15584_v4  ;;  %v5476_v46 = vld [vmem:[#allocation17 + $0xbc0] sm:$0xff]  ;;  %v5477_v53 = vld [vmem:[#allocation17 + $0xbc8] sm:$0xff] }
 0x79b   :  { %8301 = vmatprep.subr.bf16.mxu1 %v13616_v39  ;;  %8465 = vmatprep.subr.bf16.mxu0 %v13618_v43  ;;  %v5436_v39 = vld [vmem:[#allocation17 + $0xa80] sm:$0xff] }
 0x79c   :  { %v5440_v43 = vld [vmem:[#allocation17 + $0xaa0] sm:$0xff] }
 0x79d   :  { %v13671_v59 = vcombine.low %v5436_v39, %v5440_v43  ;;  %v5480_v47 = vld [vmem:[#allocation17 + $0xbe0] sm:$0xff] }
 0x79e   :  { %8302 = vmatpush1.bf16.msra.mxu1 %v13615_v54  ;;  %8466 = vmatpush1.bf16.msra.mxu0 %v13617_v26  ;;  %v13672_v54 = vcombine.high %v5436_v39, %v5440_v43  ;;  %v13674_v26 = vcombine.high %v5437_v45, %v5441_v48  ;;  %v3466_v43 = vrot.slane %v15709_v31, %v15757_v41 }
 0x79f   :  { %8303 = vmatprep.subr.bf16.mxu1 %v13624_v8  ;;  %8467 = vmatprep.subr.bf16.mxu0 %v13626_v55  ;;  %v5444_v8 = vld [vmem:[#allocation17 + $0xac0] sm:$0xff]  ;;  %v13712_v45 = vcombine.high %v5476_v46, %v5480_v47 }
 0x7a0   :  { %v5448_v55 = vld [vmem:[#allocation17 + $0xae0] sm:$0xff] }
 0x7a1   :  { %v13679_v15 = vcombine.low %v5444_v8, %v5448_v55 }
 0x7a2   :  { %8304 = vmatpush1.bf16.msra.mxu1 %v13623_v11  ;;  %8468 = vmatpush1.bf16.msra.mxu0 %v13625_v63  ;;  %v13680_v11 = vcombine.high %v5444_v8, %v5448_v55  ;;  %v13682_v63 = vcombine.high %v5445_v56, %v5449_v57  ;;  %v5489_v8 = vld [vmem:[#allocation17 + $0xc28] sm:$0xff] }
 0x7a3   :  { %8305 = vmatprep.subr.bf16.mxu1 %v13632_v13  ;;  %8469 = vmatprep.subr.bf16.mxu0 %v13634_v3  ;;  %v5452_v13 = vld [vmem:[#allocation17 + $0xb00] sm:$0xff] }
 0x7a4   :  { %v5456_v3 = vld [vmem:[#allocation17 + $0xb20] sm:$0xff] }
 0x7a5   :  { %v13687_v51 = vcombine.low %v5452_v13, %v5456_v3 }
 0x7a6   :  { %8306 = vmatpush1.bf16.msra.mxu1 %v13631_v18  ;;  %8470 = vmatpush1.bf16.msra.mxu0 %v13633_v19  ;;  %v13688_v18 = vcombine.high %v5452_v13, %v5456_v3  ;;  %v13690_v19 = vcombine.high %v5453_v9, %v5457_v14 }
 0x7a7   :  { %8307 = vmatprep.subr.bf16.mxu1 %v13640_v22  ;;  %8471 = vmatprep.subr.bf16.mxu0 %v13642_v20  ;;  %v5460_v22 = vld [vmem:[#allocation17 + $0xb40] sm:$0xff] }
 0x7a8   :  { %v5464_v20 = vld [vmem:[#allocation17 + $0xb60] sm:$0xff] }
 0x7a9   :  { %v13695_v32 = vcombine.low %v5460_v22, %v5464_v20 }
 0x7aa   :  { %8308 = vmatpush1.bf16.msra.mxu1 %v13639_v27  ;;  %8472 = vmatpush1.bf16.msra.mxu0 %v13641_v1  ;;  %v13696_v27 = vcombine.high %v5460_v22, %v5464_v20  ;;  %v13698_v1 = vcombine.high %v5461_v23, %v5465_v24  ;;  %v5492_v22 = vld [vmem:[#allocation17 + $0xc40] sm:$0xff] }
 0x7ab   :  { %8309 = vmatprep.subr.bf16.mxu1 %v13648_v6  ;;  %8473 = vmatprep.subr.bf16.mxu0 %v13650_v28  ;;  %v5468_v6 = vld [vmem:[#allocation17 + $0xb80] sm:$0xff] }
 0x7ac   :  { %v5472_v28 = vld [vmem:[#allocation17 + $0xba0] sm:$0xff] }
 0x7ae   :  { %8310 = vmatpush1.bf16.msra.mxu1 %v13647_v33  ;;  %8474 = vmatpush1.bf16.msra.mxu0 %v13649_v34  ;;  %v13697_v33 = vcombine.low %v5461_v23, %v5465_v24  ;;  %v15754_v34 = vsub.s32 5, %v15584_v4  ;;  %v5496_v23 = vld [vmem:[#allocation17 + $0xc60] sm:$0xff]  ;;  %v5493_v24 = vld [vmem:[#allocation17 + $0xc48] sm:$0xff] }
 0x7af   :  { %8311 = vmatprep.subr.bf16.mxu1 %v13656_v0  ;;  %8475 = vmatprep.subr.bf16.mxu0 %v13658_v40  ;;  %v13704_v0 = vcombine.high %v5468_v6, %v5472_v28  ;;  %v13706_v40 = vcombine.high %v5469_v30, %v5473_v60 }
 0x7b0   :  { %v3458_v39 = vrot.slane %v15709_v31, %v15754_v34 }
 0x7b2   :  { %8312 = vmatpush1.bf16.msra.mxu1 %v13655_v35  ;;  %8476 = vmatpush1.bf16.msra.mxu0 %v13657_v36  ;;  %v5481_v35 = vld [vmem:[#allocation17 + $0xbe8] sm:$0xff]  ;;  %v3454_v36 = vrot.slane %v15709_v31, %v15751_v21 }
 0x7b3   :  { %8313 = vmatprep.subr.bf16.mxu1 %v13664_v37  ;;  %8477 = vmatprep.subr.bf16.mxu0 %v13666_v38  ;;  %v13703_v37 = vcombine.low %v5468_v6, %v5472_v28  ;;  %v13705_v38 = vcombine.low %v5469_v30, %v5473_v60  ;;  %v13714_v48 = vcombine.high %v5477_v53, %v5481_v35  ;;  %v5500_v28 = vld [vmem:[#allocation17 + $0xc80] sm:$0xff] }
 0x7b4   :  { %v13713_v31 = vcombine.low %v5477_v53, %v5481_v35  ;;  %v13728_v30 = vcombine.high %v5492_v22, %v5496_v23 }
 0x7b6   :  { %8314 = vmatpush1.bf16.msra.mxu1 %v13663_v12  ;;  %8478 = vmatpush1.bf16.msra.mxu0 %v13665_v49  ;;  %v5484_v12 = vld [vmem:[#allocation17 + $0xc00] sm:$0xff] }
 0x7b7   :  { %8315 = vmatprep.subr.bf16.mxu1 %v13672_v54  ;;  %8479 = vmatprep.subr.bf16.mxu0 %v13674_v26  ;;  %v5488_v54 = vld [vmem:[#allocation17 + $0xc20] sm:$0xff]  ;;  %v5485_v26 = vld [vmem:[#allocation17 + $0xc08] sm:$0xff] }
 0x7ba   :  { %8316 = vmatpush1.bf16.msra.mxu1 %v13671_v59  ;;  %8480 = vmatpush1.bf16.msra.mxu0 %v13673_v62 }
 0x7bb   :  { %8317 = vmatprep.subr.bf16.mxu1 %v13680_v11  ;;  %8481 = vmatprep.subr.bf16.mxu0 %v13682_v63  ;;  %v13711_v63 = vcombine.low %v5476_v46, %v5480_v47  ;;  %v13727_v46 = vcombine.low %v5492_v22, %v5496_v23  ;;  %v5532_v22 = vld [vmem:[#allocation17 + $0xd80] sm:$0xff]  ;;  %v5533_v23 = vld [vmem:[#allocation17 + $0xd88] sm:$0xff] }
 0x7be   :  { %8318 = vmatpush1.bf16.msra.mxu1 %v13679_v15  ;;  %8482 = vmatpush1.bf16.msra.mxu0 %v13681_v17  ;;  %v13720_v15 = vcombine.high %v5484_v12, %v5488_v54  ;;  %v13722_v17 = vcombine.high %v5485_v26, %v5489_v8 }
 0x7bf   :  { %8319 = vmatprep.subr.bf16.mxu1 %v13688_v18  ;;  %8483 = vmatprep.subr.bf16.mxu0 %v13690_v19 }
 0x7c2   :  { %8320 = vmatpush1.bf16.msra.mxu1 %v13687_v51  ;;  %8484 = vmatpush1.bf16.msra.mxu0 %v13689_v25  ;;  %v5497_v51 = vld [vmem:[#allocation17 + $0xc68] sm:$0xff] }
 0x7c3   :  { %8321 = vmatprep.subr.bf16.mxu1 %v13696_v27  ;;  %8485 = vmatprep.subr.bf16.mxu0 %v13698_v1  ;;  %v13719_v27 = vcombine.low %v5484_v12, %v5488_v54  ;;  %v13721_v1 = vcombine.low %v5485_v26, %v5489_v8  ;;  %v13730_v60 = vcombine.high %v5493_v24, %v5497_v51  ;;  %v5520_v54 = vld [vmem:[#allocation17 + $0xd20] sm:$0xff]  ;;  %v5517_v26 = vld [vmem:[#allocation17 + $0xd08] sm:$0xff] }
 0x7c4   :  { %v13729_v47 = vcombine.low %v5493_v24, %v5497_v51  ;;  %v5521_v8 = vld [vmem:[#allocation17 + $0xd28] sm:$0xff] }
 0x7c5   :  { %v5537_v24 = vld [vmem:[#allocation17 + $0xda8] sm:$0xff] }
 0x7c6   :  { %8322 = vmatpush1.bf16.msra.mxu1 %v13695_v32  ;;  %8486 = vmatpush1.bf16.msra.mxu0 %v13697_v33  ;;  %v5504_v32 = vld [vmem:[#allocation17 + $0xca0] sm:$0xff]  ;;  %v5501_v33 = vld [vmem:[#allocation17 + $0xc88] sm:$0xff] }
 0x7c7   :  { %8323 = vmatprep.subr.bf16.mxu1 %v13704_v0  ;;  %8487 = vmatprep.subr.bf16.mxu0 %v13706_v40  ;;  %v5505_v0 = vld [vmem:[#allocation17 + $0xca8] sm:$0xff]  ;;  %v13736_v53 = vcombine.high %v5500_v28, %v5504_v32 }
 0x7c8   :  { %v4994_v49 = vpop.f32.mrb[24].mxu1  ;;  %v13738_v35 = vcombine.high %v5501_v33, %v5505_v0 }
 0x7c9   :  { %v15765_v55 = vadd.f32 %v4994_v49, %v3454_v36  ;;  %v15767_v56 = vpop.f32.mrb[28].mxu0  ;;  %v4996_v57 = vpop.f32.mrb[25].mxu1  ;;  %v5508_v36 = vld [vmem:[#allocation17 + $0xcc0] sm:$0xff] }
 0x7ca   :  { %v15769_v59 = vadd.f32 %v4996_v57, %v3458_v39  ;;  %v5078_v62 = vpop.f32.mrb[29].mxu0  ;;  %8324 = vmatpush1.bf16.msra.mxu1 %v13703_v37  ;;  %8488 = vmatpush1.bf16.msra.mxu0 %v13705_v38  ;;  %v4998_v11 = vpop.f32.mrb[26].mxu1  ;;  %v5512_v37 = vld [vmem:[#allocation17 + $0xce0] sm:$0xff]  ;;  %v5509_v38 = vld [vmem:[#allocation17 + $0xcc8] sm:$0xff] }
 0x7cb   :  { %v5087_v13 = vmax.f32 %v15765_v55, 0.0  ;;  %v15772_v3 = vadd.f32 %v5078_v62, %v3466_v43  ;;  %v5080_v9 = vpop.f32.mrb[30].mxu0  ;;  %v4999_v14 = vpop.f32.mrb[27].mxu1  ;;  %8325 = vmatprep.subr.bf16.mxu1 %v13712_v45  ;;  %8489 = vmatprep.subr.bf16.mxu0 %v13714_v48  ;;  %v5513_v39 = vld [vmem:[#allocation17 + $0xce8] sm:$0xff]  ;;  %v13735_v43 = vcombine.low %v5500_v28, %v5504_v32  ;;  %v13737_v45 = vcombine.low %v5501_v33, %v5505_v0  ;;  %v5516_v49 = vld [vmem:[#allocation17 + $0xd00] sm:$0xff] }
 0x7cc   :  { %v5088_v18 = vmax.f32 %v15769_v59, 0.0  ;;  %v5081_v19 = vpop.f32.mrb[31].mxu0  ;;  %v13744_v48 = vcombine.high %v5508_v36, %v5512_v37  ;;  %v13746_v12 = vcombine.high %v5509_v38, %v5513_v39  ;;  %v13743_v57 = vcombine.low %v5508_v36, %v5512_v37  ;;  %v5525_v9 = vld [vmem:[#allocation17 + $0xd48] sm:$0xff]  ;;  %v5552_v36 = vld [vmem:[#allocation17 + $0xe20] sm:$0xff] }
 0x7cd   :  { %v5090_v20 = vmax.f32 %v15772_v3, 0.0  ;;  %v15778_v6 = vpack.c.bf16 %v5087_v13, %v5087_v13  ;;  %v13745_v62 = vcombine.low %v5509_v38, %v5513_v39  ;;  %v13752_v11 = vcombine.high %v5516_v49, %v5520_v54  ;;  %v5528_v13 = vld [vmem:[#allocation17 + $0xd60] sm:$0xff]  ;;  %v5529_v14 = vld [vmem:[#allocation17 + $0xd68] sm:$0xff] }
 0x7ce   :  { %v15776_v25 = vpack.c.bf16 %v5088_v18, %v5088_v18  ;;  %8326 = vmatpush1.bf16.msra.mxu1 %v13711_v63  ;;  %8490 = vmatpush1.bf16.msra.mxu0 %v13713_v31  ;;  %v13754_v63 = vcombine.high %v5517_v26, %v5521_v8  ;;  %v5524_v31 = vld [vmem:[#allocation17 + $0xd40] sm:$0xff]  ;;  %v13762_v19 = vcombine.high %v5525_v9, %v5529_v14  ;;  %v5541_v32 = vld [vmem:[#allocation17 + $0xdc8] sm:$0xff] }
 0x7cf   :  { %8336 = vmatprep.subr.bf16.mxu1 %v13720_v15  ;;  %8500 = vmatprep.subr.bf16.mxu0 %v13722_v17  ;;  %v15782_v40 = vpack.c.bf16 %v5090_v20, %v5090_v20  ;;  %v13751_v15 = vcombine.low %v5516_v49, %v5520_v54  ;;  %v13753_v17 = vcombine.low %v5517_v26, %v5521_v8  ;;  %v5536_v20 = vld [vmem:[#allocation17 + $0xda0] sm:$0xff]  ;;  %v5545_v33 = vld [vmem:[#allocation17 + $0xde8] sm:$0xff] }
 0x7d0   :  { %8327 = vmatprep.mubr.bf16.mxu1 %v15776_v25  ;;  %8491 = vmatprep.mubr.bf16.mxu0 %v15776_v25  ;;  %v13760_v18 = vcombine.high %v5524_v31, %v5528_v13  ;;  %v13759_v51 = vcombine.low %v5524_v31, %v5528_v13  ;;  %v13770_v28 = vcombine.high %v5533_v23, %v5537_v24  ;;  %v5549_v37 = vld [vmem:[#allocation17 + $0xe08] sm:$0xff]  ;;  %v5560_v49 = vld [vmem:[#allocation17 + $0xe60] sm:$0xff] }
 0x7d1   :  { %8328 = vmatmul.mubr.bf16.vlgmr.msra.gmra.mrb[28].mxu1 %v15778_v6  ;;  %8492 = vmatmul.mubr.bf16.vlgmr.msra.gmra.mrb[32].mxu0 %v15778_v6  ;;  %v13767_v0 = vcombine.low %v5532_v22, %v5536_v20  ;;  %v5553_v38 = vld [vmem:[#allocation17 + $0xe28] sm:$0xff]  ;;  %v5568_v31 = vld [vmem:[#allocation17 + $0xea0] sm:$0xff] }
 0x7d2   :  { %8337 = vmatpush1.bf16.msra.mxu1 %v13719_v27  ;;  %8501 = vmatpush1.bf16.msra.mxu0 %v13721_v1  ;;  %v13761_v27 = vcombine.low %v5525_v9, %v5529_v14  ;;  %v13768_v1 = vcombine.high %v5532_v22, %v5536_v20  ;;  %v5557_v54 = vld [vmem:[#allocation17 + $0xe48] sm:$0xff]  ;;  %v5576_v22 = vld [vmem:[#allocation17 + $0xee0] sm:$0xff] }
 0x7d3   :  { %8368 = vmatprep.mubr.bf16.mxu1 %v15782_v40  ;;  %8532 = vmatprep.mubr.bf16.mxu0 %v15782_v40  ;;  %v5561_v26 = vld [vmem:[#allocation17 + $0xe68] sm:$0xff] }
 0x7d4   :  { %8338 = vmatprep.subr.bf16.mxu1 %v13728_v30  ;;  %8502 = vmatprep.subr.bf16.mxu0 %v13730_v60  ;;  %v5540_v30 = vld [vmem:[#allocation17 + $0xdc0] sm:$0xff]  ;;  %v5565_v13 = vld [vmem:[#allocation17 + $0xe88] sm:$0xff] }
 0x7d5   :  { %v5544_v60 = vld [vmem:[#allocation17 + $0xde0] sm:$0xff]  ;;  %v5569_v9 = vld [vmem:[#allocation17 + $0xea8] sm:$0xff] }
 0x7d6   :  { %8339 = vmatpush1.bf16.msra.mxu1 %v13727_v46  ;;  %8503 = vmatpush1.bf16.msra.mxu0 %v13729_v47  ;;  %v13769_v46 = vcombine.low %v5533_v23, %v5537_v24  ;;  %v13776_v47 = vcombine.high %v5540_v30, %v5544_v60  ;;  %v13775_v39 = vcombine.low %v5540_v30, %v5544_v60  ;;  %v5573_v20 = vld [vmem:[#allocation17 + $0xec8] sm:$0xff]  ;;  %v5584_v30 = vld [vmem:[#allocation17 + $0xf20] sm:$0xff] }
 0x7d7   :  { %8340 = vmatprep.subr.bf16.mxu1 %v13736_v53  ;;  %8504 = vmatprep.subr.bf16.mxu0 %v13738_v35  ;;  %v13778_v53 = vcombine.high %v5541_v32, %v5545_v33  ;;  %v5548_v35 = vld [vmem:[#allocation17 + $0xe00] sm:$0xff]  ;;  %v5577_v23 = vld [vmem:[#allocation17 + $0xee8] sm:$0xff] }
 0x7d8   :  { %v13783_v8 = vcombine.low %v5548_v35, %v5552_v36  ;;  %v5581_v60 = vld [vmem:[#allocation17 + $0xf08] sm:$0xff] }
 0x7da   :  { %8341 = vmatpush1.bf16.msra.mxu1 %v13735_v43  ;;  %8505 = vmatpush1.bf16.msra.mxu0 %v13737_v45  ;;  %v13777_v43 = vcombine.low %v5541_v32, %v5545_v33  ;;  %v13784_v45 = vcombine.high %v5548_v35, %v5552_v36  ;;  %v5585_v32 = vld [vmem:[#allocation17 + $0xf28] sm:$0xff]  ;;  %v5592_v35 = vld [vmem:[#allocation17 + $0xf60] sm:$0xff] }
 0x7db   :  { %8342 = vmatprep.subr.bf16.mxu1 %v13744_v48  ;;  %8506 = vmatprep.subr.bf16.mxu0 %v13746_v12  ;;  %v13786_v48 = vcombine.high %v5549_v37, %v5553_v38  ;;  %v5556_v12 = vld [vmem:[#allocation17 + $0xe40] sm:$0xff]  ;;  %v5589_v36 = vld [vmem:[#allocation17 + $0xf48] sm:$0xff] }
 0x7dc   :  { %v13791_v14 = vcombine.low %v5556_v12, %v5560_v49 }
 0x7de   :  { %8343 = vmatpush1.bf16.msra.mxu1 %v13743_v57  ;;  %8507 = vmatpush1.bf16.msra.mxu0 %v13745_v62  ;;  %v13785_v57 = vcombine.low %v5549_v37, %v5553_v38  ;;  %v13792_v62 = vcombine.high %v5556_v12, %v5560_v49  ;;  %v5593_v37 = vld [vmem:[#allocation17 + $0xf68] sm:$0xff]  ;;  %v5596_v12 = vld [vmem:[#allocation17 + $0xf80] sm:$0xff] }
 0x7df   :  { %8344 = vmatprep.subr.bf16.mxu1 %v13752_v11  ;;  %8508 = vmatprep.subr.bf16.mxu0 %v13754_v63  ;;  %v13794_v11 = vcombine.high %v5557_v54, %v5561_v26  ;;  %v5564_v63 = vld [vmem:[#allocation17 + $0xe80] sm:$0xff] }
 0x7e0   :  { %v13799_v24 = vcombine.low %v5564_v63, %v5568_v31  ;;  %v5600_v49 = vld [vmem:[#allocation17 + $0xfa0] sm:$0xff] }
 0x7e2   :  { %8345 = vmatpush1.bf16.msra.mxu1 %v13751_v15  ;;  %8509 = vmatpush1.bf16.msra.mxu0 %v13753_v17  ;;  %v13793_v15 = vcombine.low %v5557_v54, %v5561_v26  ;;  %v13800_v17 = vcombine.high %v5564_v63, %v5568_v31  ;;  %v5597_v54 = vld [vmem:[#allocation17 + $0xf88] sm:$0xff]  ;;  %v13832_v63 = vcombine.high %v5596_v12, %v5600_v49  ;;  %v5604_v31 = vld [vmem:[#allocation17 + $0xfc0] sm:$0xff] }
 0x7e3   :  { %8346 = vmatprep.subr.bf16.mxu1 %v13760_v18  ;;  %8510 = vmatprep.subr.bf16.mxu0 %v13762_v19  ;;  %v13802_v18 = vcombine.high %v5565_v13, %v5569_v9  ;;  %v5572_v19 = vld [vmem:[#allocation17 + $0xec0] sm:$0xff]  ;;  %v5601_v26 = vld [vmem:[#allocation17 + $0xfa8] sm:$0xff] }
 0x7e4   :  { %v13807_v33 = vcombine.low %v5572_v19, %v5576_v22 }
 0x7e6   :  { %8347 = vmatpush1.bf16.msra.mxu1 %v13759_v51  ;;  %8511 = vmatpush1.bf16.msra.mxu0 %v13761_v27  ;;  %v13801_v51 = vcombine.low %v5565_v13, %v5569_v9  ;;  %v13808_v27 = vcombine.high %v5572_v19, %v5576_v22  ;;  %v5608_v13 = vld [vmem:[#allocation17 + $0xfe0] sm:$0xff]  ;;  %v5605_v9 = vld [vmem:[#allocation17 + $0xfc8] sm:$0xff] }
 0x7e7   :  { %8348 = vmatprep.subr.bf16.mxu1 %v13768_v1  ;;  %8512 = vmatprep.subr.bf16.mxu0 %v13770_v28  ;;  %v13810_v1 = vcombine.high %v5573_v20, %v5577_v23  ;;  %v5580_v28 = vld [vmem:[#allocation17 + $0xf00] sm:$0xff]  ;;  %v13840_v19 = vcombine.high %v5604_v31, %v5608_v13 }
 0x7e8   :  { %v13815_v38 = vcombine.low %v5580_v28, %v5584_v30 }
 0x7ea   :  { %8349 = vmatpush1.bf16.msra.mxu1 %v13767_v0  ;;  %8513 = vmatpush1.bf16.msra.mxu0 %v13769_v46  ;;  %v13809_v0 = vcombine.low %v5573_v20, %v5577_v23  ;;  %v13816_v46 = vcombine.high %v5580_v28, %v5584_v30  ;;  %v5102_v20 = vld [vmem:[#allocation17 + $0x10] sm:$0xff] }
 0x7eb   :  { %8350 = vmatprep.subr.bf16.mxu1 %v13776_v47  ;;  %8514 = vmatprep.subr.bf16.mxu0 %v13778_v53  ;;  %v13818_v47 = vcombine.high %v5581_v60, %v5585_v32  ;;  %v5588_v53 = vld [vmem:[#allocation17 + $0xf40] sm:$0xff]  ;;  %v5106_v23 = vld [vmem:[#allocation17 + $0x30] sm:$0xff] }
 0x7ec   :  { %v13340_v30 = vcombine.high %v5102_v20, %v5106_v23 }
 0x7ee   :  { %8351 = vmatpush1.bf16.msra.mxu1 %v13775_v39  ;;  %8515 = vmatpush1.bf16.msra.mxu0 %v13777_v43  ;;  %v13817_v39 = vcombine.low %v5581_v60, %v5585_v32  ;;  %v15789_v43 = vsub.s32 6, %v15584_v4  ;;  %v13834_v4 = vcombine.high %v5597_v54, %v5601_v26  ;;  %v5114_v32 = vld [vmem:[#allocation17 + $0x70] sm:$0xff] }
 0x7ef   :  { %8352 = vmatprep.subr.bf16.mxu1 %v13784_v45  ;;  %8516 = vmatprep.subr.bf16.mxu0 %v13786_v48  ;;  %v13824_v45 = vcombine.high %v5588_v53, %v5592_v35  ;;  %v13826_v48 = vcombine.high %v5589_v36, %v5593_v37 }
 0x7f2   :  { %8353 = vmatpush1.bf16.msra.mxu1 %v13783_v8  ;;  %8517 = vmatpush1.bf16.msra.mxu0 %v13785_v57  ;;  %v13823_v8 = vcombine.low %v5588_v53, %v5592_v35  ;;  %v13825_v57 = vcombine.low %v5589_v36, %v5593_v37  ;;  %v5118_v37 = vld [vmem:[#allocation17 + $0x90] sm:$0xff] }
 0x7f3   :  { %8354 = vmatprep.subr.bf16.mxu1 %v13792_v62  ;;  %8518 = vmatprep.subr.bf16.mxu0 %v13794_v11  ;;  %v15048_v62 = vld [vmem:[#allocation5 + $0x12] sm:$0xff] }
 0x7f4   :  { %v3462_v11 = vrot.slane %v15048_v62, %v15789_v43  ;;  %v5131_v62 = vld [vmem:[#allocation17 + $0xf8] sm:$0xff] }
 0x7f6   :  { %8355 = vmatpush1.bf16.msra.mxu1 %v13791_v14  ;;  %8519 = vmatpush1.bf16.msra.mxu0 %v13793_v15  ;;  %v5609_v14 = vld [vmem:[#allocation17 + $0xfe8] sm:$0xff]  ;;  %v13831_v15 = vcombine.low %v5596_v12, %v5600_v49 }
 0x7f7   :  { %8356 = vmatprep.subr.bf16.mxu1 %v13800_v17  ;;  %8520 = vmatprep.subr.bf16.mxu0 %v13802_v18  ;;  %v13833_v17 = vcombine.low %v5597_v54, %v5601_v26  ;;  %v15793_v18 = vadd.f32 %v15767_v56, %v3462_v11  ;;  %v13842_v22 = vcombine.high %v5605_v9, %v5609_v14  ;;  %v5110_v56 = vld [vmem:[#allocation17 + $0x50] sm:$0xff] }
 0x7f8   :  { %v13348_v35 = vcombine.high %v5110_v56, %v5114_v32  ;;  %v5126_v26 = vld [vmem:[#allocation17 + $0xd0] sm:$0xff] }
 0x7f9   :  { %v5089_v28 = vmax.f32 %v15793_v18, 0.0 }
 0x7fa   :  { %8357 = vmatpush1.bf16.msra.mxu1 %v13799_v24  ;;  %8521 = vmatpush1.bf16.msra.mxu0 %v13801_v51  ;;  %v5103_v24 = vld [vmem:[#allocation17 + $0x18] sm:$0xff] }
 0x7fb   :  { %8358 = vmatprep.subr.bf16.mxu1 %v13808_v27  ;;  %8522 = vmatprep.subr.bf16.mxu0 %v13810_v1  ;;  %v5107_v51 = vld [vmem:[#allocation17 + $0x38] sm:$0xff]  ;;  %v13839_v27 = vcombine.low %v5604_v31, %v5608_v13  ;;  %v13841_v1 = vcombine.low %v5605_v9, %v5609_v14  ;;  %v5134_v13 = vld [vmem:[#allocation17 + $0x110] sm:$0xff] }
 0x7fc   :  { %v13342_v60 = vcombine.high %v5103_v24, %v5107_v51  ;;  %v13341_v53 = vcombine.low %v5103_v24, %v5107_v51  ;;  %v5138_v9 = vld [vmem:[#allocation17 + $0x130] sm:$0xff]  ;;  %v5139_v14 = vld [vmem:[#allocation17 + $0x138] sm:$0xff] }
 0x7fd   :  { %v5143_v24 = vld [vmem:[#allocation17 + $0x158] sm:$0xff] }
 0x7fe   :  { %8359 = vmatpush1.bf16.msra.mxu1 %v13807_v33  ;;  %8523 = vmatpush1.bf16.msra.mxu0 %v13809_v0  ;;  %v5111_v33 = vld [vmem:[#allocation17 + $0x58] sm:$0xff] }
 0x7ff   :  { %8360 = vmatprep.subr.bf16.mxu1 %v13816_v46  ;;  %8524 = vmatprep.subr.bf16.mxu0 %v13818_v47  ;;  %v5115_v0 = vld [vmem:[#allocation17 + $0x78] sm:$0xff]  ;;  %v13339_v46 = vcombine.low %v5102_v20, %v5106_v23  ;;  %v15796_v47 = vpack.c.bf16 %v5089_v28, %v5089_v28  ;;  %v5142_v20 = vld [vmem:[#allocation17 + $0x150] sm:$0xff] }
 0x800   :  { %v13350_v36 = vcombine.high %v5111_v33, %v5115_v0  ;;  %v13349_v12 = vcombine.low %v5111_v33, %v5115_v0  ;;  %v5146_v23 = vld [vmem:[#allocation17 + $0x170] sm:$0xff]  ;;  %v5147_v51 = vld [vmem:[#allocation17 + $0x178] sm:$0xff] }
 0x801   :  { %v13380_v28 = vcombine.high %v5142_v20, %v5146_v23  ;;  %v5155_v33 = vld [vmem:[#allocation17 + $0x1b8] sm:$0xff]  ;;  %v13379_v0 = vcombine.low %v5142_v20, %v5146_v23  ;;  %v5186_v20 = vld [vmem:[#allocation17 + $0x2b0] sm:$0xff] }
 0x802   :  { %8361 = vmatpush1.bf16.msra.mxu1 %v13815_v38  ;;  %8525 = vmatpush1.bf16.msra.mxu0 %v13817_v39  ;;  %v5122_v38 = vld [vmem:[#allocation17 + $0xb0] sm:$0xff]  ;;  %v5119_v39 = vld [vmem:[#allocation17 + $0x98] sm:$0xff] }
 0x803   :  { %8362 = vmatprep.subr.bf16.mxu1 %v13824_v45  ;;  %8526 = vmatprep.subr.bf16.mxu0 %v13826_v48  ;;  %v5123_v45 = vld [vmem:[#allocation17 + $0xb8] sm:$0xff]  ;;  %v13347_v48 = vcombine.low %v5110_v56, %v5114_v32  ;;  %v13356_v49 = vcombine.high %v5118_v37, %v5122_v38  ;;  %v13355_v11 = vcombine.low %v5118_v37, %v5122_v38  ;;  %v5154_v56 = vld [vmem:[#allocation17 + $0x1b0] sm:$0xff] }
 0x804   :  { %v13358_v54 = vcombine.high %v5119_v39, %v5123_v45  ;;  %v5151_v32 = vld [vmem:[#allocation17 + $0x198] sm:$0xff]  ;;  %v5162_v37 = vld [vmem:[#allocation17 + $0x1f0] sm:$0xff] }
 0x805   :  { %v5159_v38 = vld [vmem:[#allocation17 + $0x1d8] sm:$0xff] }
 0x806   :  { %8363 = vmatpush1.bf16.msra.mxu1 %v13823_v8  ;;  %8527 = vmatpush1.bf16.msra.mxu0 %v13825_v57  ;;  %v5130_v8 = vld [vmem:[#allocation17 + $0xf0] sm:$0xff]  ;;  %v5127_v57 = vld [vmem:[#allocation17 + $0xd8] sm:$0xff] }
 0x807   :  { %8364 = vmatprep.subr.bf16.mxu1 %v13832_v63  ;;  %8528 = vmatprep.subr.bf16.mxu0 %v13834_v4  ;;  %v13357_v63 = vcombine.low %v5119_v39, %v5123_v45  ;;  %v13364_v4 = vcombine.high %v5126_v26, %v5130_v8  ;;  %v13366_v31 = vcombine.high %v5127_v57, %v5131_v62  ;;  %v5163_v39 = vld [vmem:[#allocation17 + $0x1f8] sm:$0xff] }
 0x808   :  { %v5183_v23 = vld [vmem:[#allocation17 + $0x298] sm:$0xff] }
 0x80a   :  { %8365 = vmatpush1.bf16.msra.mxu1 %v13831_v15  ;;  %8529 = vmatpush1.bf16.msra.mxu0 %v13833_v17  ;;  %v13363_v15 = vcombine.low %v5126_v26, %v5130_v8  ;;  %v13365_v17 = vcombine.low %v5127_v57, %v5131_v62  ;;  %v5170_v26 = vld [vmem:[#allocation17 + $0x230] sm:$0xff]  ;;  %v5167_v8 = vld [vmem:[#allocation17 + $0x218] sm:$0xff] }
 0x80b   :  { %8366 = vmatprep.subr.bf16.mxu1 %v13840_v19  ;;  %8530 = vmatprep.subr.bf16.mxu0 %v13842_v22  ;;  %v13372_v19 = vcombine.high %v5134_v13, %v5138_v9  ;;  %v5171_v57 = vld [vmem:[#allocation17 + $0x238] sm:$0xff] }
 0x80e   :  { %8367 = vmatpush1.bf16.msra.mxu1 %v13839_v27  ;;  %8531 = vmatpush1.bf16.msra.mxu0 %v13841_v1  ;;  %v13371_v27 = vcombine.low %v5134_v13, %v5138_v9  ;;  %v5178_v13 = vld [vmem:[#allocation17 + $0x270] sm:$0xff]  ;;  %v5175_v9 = vld [vmem:[#allocation17 + $0x258] sm:$0xff] }
 0x80f   :  { %8541 = vmatprep.subr.bf16.mxu1 %v13340_v30  ;;  %8705 = vmatprep.subr.bf16.mxu0 %v13342_v60  ;;  %v13382_v30 = vcombine.high %v5143_v24, %v5147_v51  ;;  %v5150_v60 = vld [vmem:[#allocation17 + $0x190] sm:$0xff] }
 0x810   :  { %v13387_v45 = vcombine.low %v5150_v60, %v5154_v56 }
 0x811   :  { %8369 = vmatmul.mubr.bf16.vlgmr.msra.gmra.mrb[28].mxu1 %v15796_v47  ;;  %8533 = vmatmul.mubr.bf16.vlgmr.msra.gmra.mrb[32].mxu0 %v15796_v47 }
 0x812   :  { %8542 = vmatpush1.bf16.msra.mxu1 %v13339_v46  ;;  %8573 = vmatprep.mubr.bf16.mxu1 %v15728_v10  ;;  %v13381_v46 = vcombine.low %v5143_v24, %v5147_v51  ;;  %v5187_v24 = vld [vmem:[#allocation17 + $0x2b8] sm:$0xff] }
 0x813   :  { %8706 = vmatpush1.bf16.msra.mxu0 %v13341_v53  ;;  %8737 = vmatprep.mubr.bf16.mxu0 %v15728_v10  ;;  %v5135_v10 = vld [vmem:[#allocation17 + $0x118] sm:$0xff]  ;;  %v13388_v53 = vcombine.high %v5150_v60, %v5154_v56  ;;  %v5194_v60 = vld [vmem:[#allocation17 + $0x2f0] sm:$0xff] }
 0x814   :  { %8543 = vmatprep.subr.bf16.mxu1 %v13348_v35  ;;  %8707 = vmatprep.subr.bf16.mxu0 %v13350_v36  ;;  %v13374_v22 = vcombine.high %v5135_v10, %v5139_v14  ;;  %v13373_v1 = vcombine.low %v5135_v10, %v5139_v14  ;;  %v13390_v35 = vcombine.high %v5151_v32, %v5155_v33  ;;  %v5158_v36 = vld [vmem:[#allocation17 + $0x1d0] sm:$0xff]  ;;  %v5179_v10 = vld [vmem:[#allocation17 + $0x278] sm:$0xff] }
 0x815   :  { %v13395_v62 = vcombine.low %v5158_v36, %v5162_v37  ;;  %v5191_v56 = vld [vmem:[#allocation17 + $0x2d8] sm:$0xff] }
 0x816   :  { %8544 = vmatpush1.bf16.msra.mxu1 %v13347_v48  ;;  %v13389_v48 = vcombine.low %v5151_v32, %v5155_v33  ;;  %v5195_v32 = vld [vmem:[#allocation17 + $0x2f8] sm:$0xff] }
 0x817   :  { %8708 = vmatpush1.bf16.msra.mxu0 %v13349_v12  ;;  %8545 = vmatprep.subr.bf16.mxu1 %v13356_v49  ;;  %v13396_v12 = vcombine.high %v5158_v36, %v5162_v37  ;;  %v13398_v49 = vcombine.high %v5159_v38, %v5163_v39  ;;  %v5202_v36 = vld [vmem:[#allocation17 + $0x330] sm:$0xff]  ;;  %v5199_v37 = vld [vmem:[#allocation17 + $0x318] sm:$0xff] }
 0x818   :  { %8709 = vmatprep.subr.bf16.mxu0 %v13358_v54  ;;  %v5166_v54 = vld [vmem:[#allocation17 + $0x210] sm:$0xff] }
 0x819   :  { %v13403_v14 = vcombine.low %v5166_v54, %v5170_v26 }
 0x81a   :  { %8546 = vmatpush1.bf16.msra.mxu1 %v13355_v11  ;;  %v13397_v11 = vcombine.low %v5159_v38, %v5163_v39  ;;  %v5203_v38 = vld [vmem:[#allocation17 + $0x338] sm:$0xff] }
 0x81b   :  { %8710 = vmatpush1.bf16.msra.mxu0 %v13357_v63  ;;  %8547 = vmatprep.subr.bf16.mxu1 %v13364_v4  ;;  %v13404_v63 = vcombine.high %v5166_v54, %v5170_v26  ;;  %v13406_v4 = vcombine.high %v5167_v8, %v5171_v57  ;;  %v5210_v54 = vld [vmem:[#allocation17 + $0x370] sm:$0xff]  ;;  %v5207_v26 = vld [vmem:[#allocation17 + $0x358] sm:$0xff] }
 0x81c   :  { %8711 = vmatprep.subr.bf16.mxu0 %v13366_v31  ;;  %v5174_v31 = vld [vmem:[#allocation17 + $0x250] sm:$0xff] }
 0x81d   :  { %v13411_v51 = vcombine.low %v5174_v31, %v5178_v13 }
 0x81e   :  { %8548 = vmatpush1.bf16.msra.mxu1 %v13363_v15  ;;  %v13405_v15 = vcombine.low %v5167_v8, %v5171_v57  ;;  %v5211_v8 = vld [vmem:[#allocation17 + $0x378] sm:$0xff] }
 0x81f   :  { %8712 = vmatpush1.bf16.msra.mxu0 %v13365_v17  ;;  %8549 = vmatprep.subr.bf16.mxu1 %v13372_v19  ;;  %v13412_v17 = vcombine.high %v5174_v31, %v5178_v13  ;;  %v13414_v19 = vcombine.high %v5175_v9, %v5179_v10  ;;  %v5218_v31 = vld [vmem:[#allocation17 + $0x3b0] sm:$0xff]  ;;  %v5215_v13 = vld [vmem:[#allocation17 + $0x398] sm:$0xff] }
 0x820   :  { %8713 = vmatprep.subr.bf16.mxu0 %v13374_v22  ;;  %v5182_v22 = vld [vmem:[#allocation17 + $0x290] sm:$0xff] }
 0x821   :  { %v13419_v33 = vcombine.low %v5182_v22, %v5186_v20 }
 0x822   :  { %8550 = vmatpush1.bf16.msra.mxu1 %v13371_v27  ;;  %v13413_v27 = vcombine.low %v5175_v9, %v5179_v10  ;;  %v5219_v9 = vld [vmem:[#allocation17 + $0x3b8] sm:$0xff] }
 0x823   :  { %8714 = vmatpush1.bf16.msra.mxu0 %v13373_v1  ;;  %8551 = vmatprep.subr.bf16.mxu1 %v13380_v28  ;;  %v13420_v1 = vcombine.high %v5182_v22, %v5186_v20  ;;  %v13422_v28 = vcombine.high %v5183_v23, %v5187_v24  ;;  %v5226_v22 = vld [vmem:[#allocation17 + $0x3f0] sm:$0xff]  ;;  %v5223_v20 = vld [vmem:[#allocation17 + $0x3d8] sm:$0xff] }
 0x824   :  { %8715 = vmatprep.subr.bf16.mxu0 %v13382_v30  ;;  %v5190_v30 = vld [vmem:[#allocation17 + $0x2d0] sm:$0xff] }
 0x825   :  { %v13427_v39 = vcombine.low %v5190_v30, %v5194_v60 }
 0x826   :  { %8552 = vmatpush1.bf16.msra.mxu1 %v13379_v0  ;;  %v13421_v0 = vcombine.low %v5183_v23, %v5187_v24  ;;  %v5227_v23 = vld [vmem:[#allocation17 + $0x3f8] sm:$0xff] }
 0x827   :  { %8716 = vmatpush1.bf16.msra.mxu0 %v13381_v46  ;;  %8553 = vmatprep.subr.bf16.mxu1 %v13388_v53  ;;  %v13428_v46 = vcombine.high %v5190_v30, %v5194_v60  ;;  %v13430_v53 = vcombine.high %v5191_v56, %v5195_v32  ;;  %v5234_v30 = vld [vmem:[#allocation17 + $0x430] sm:$0xff]  ;;  %v5231_v60 = vld [vmem:[#allocation17 + $0x418] sm:$0xff] }
 0x828   :  { %8717 = vmatprep.subr.bf16.mxu0 %v13390_v35  ;;  %v5198_v35 = vld [vmem:[#allocation17 + $0x310] sm:$0xff] }
 0x829   :  { %v13435_v57 = vcombine.low %v5198_v35, %v5202_v36 }
 0x82a   :  { %8554 = vmatpush1.bf16.msra.mxu1 %v13387_v45  ;;  %v13429_v45 = vcombine.low %v5191_v56, %v5195_v32  ;;  %v5235_v56 = vld [vmem:[#allocation17 + $0x438] sm:$0xff] }
 0x82b   :  { %8718 = vmatpush1.bf16.msra.mxu0 %v13389_v48  ;;  %8555 = vmatprep.subr.bf16.mxu1 %v13396_v12  ;;  %v13436_v48 = vcombine.high %v5198_v35, %v5202_v36  ;;  %v13438_v12 = vcombine.high %v5199_v37, %v5203_v38  ;;  %v5242_v35 = vld [vmem:[#allocation17 + $0x470] sm:$0xff] }
 0x82c   :  { %8719 = vmatprep.subr.bf16.mxu0 %v13398_v49  ;;  %v5206_v49 = vld [vmem:[#allocation17 + $0x350] sm:$0xff] }
 0x82d   :  { %v13443_v10 = vcombine.low %v5206_v49, %v5210_v54 }
 0x82e   :  { %8556 = vmatpush1.bf16.msra.mxu1 %v13395_v62  ;;  %v13437_v62 = vcombine.low %v5199_v37, %v5203_v38  ;;  %v5239_v37 = vld [vmem:[#allocation17 + $0x458] sm:$0xff] }
 0x82f   :  { %8720 = vmatpush1.bf16.msra.mxu0 %v13397_v11  ;;  %8557 = vmatprep.subr.bf16.mxu1 %v13404_v63  ;;  %v13444_v11 = vcombine.high %v5206_v49, %v5210_v54  ;;  %v13446_v63 = vcombine.high %v5207_v26, %v5211_v8  ;;  %v5243_v38 = vld [vmem:[#allocation17 + $0x478] sm:$0xff] }
 0x830   :  { %8721 = vmatprep.subr.bf16.mxu0 %v13406_v4  ;;  %v5214_v4 = vld [vmem:[#allocation17 + $0x390] sm:$0xff]  ;;  %v13478_v49 = vcombine.high %v5239_v37, %v5243_v38  ;;  %v5247_v54 = vld [vmem:[#allocation17 + $0x498] sm:$0xff] }
 0x831   :  { %v13451_v24 = vcombine.low %v5214_v4, %v5218_v31 }
 0x832   :  { %8558 = vmatpush1.bf16.msra.mxu1 %v13403_v14  ;;  %v13445_v14 = vcombine.low %v5207_v26, %v5211_v8  ;;  %v5251_v26 = vld [vmem:[#allocation17 + $0x4b8] sm:$0xff] }
 0x833   :  { %8722 = vmatpush1.bf16.msra.mxu0 %v13405_v15  ;;  %8559 = vmatprep.subr.bf16.mxu1 %v13412_v17  ;;  %v13452_v15 = vcombine.high %v5214_v4, %v5218_v31  ;;  %v13454_v17 = vcombine.high %v5215_v13, %v5219_v9  ;;  %v5258_v4 = vld [vmem:[#allocation17 + $0x4f0] sm:$0xff]  ;;  %v5255_v31 = vld [vmem:[#allocation17 + $0x4d8] sm:$0xff] }
 0x834   :  { %8723 = vmatprep.subr.bf16.mxu0 %v13414_v19  ;;  %v5222_v19 = vld [vmem:[#allocation17 + $0x3d0] sm:$0xff] }
 0x835   :  { %v13459_v32 = vcombine.low %v5222_v19, %v5226_v22 }
 0x836   :  { %8560 = vmatpush1.bf16.msra.mxu1 %v13411_v51  ;;  %v13453_v51 = vcombine.low %v5215_v13, %v5219_v9  ;;  %v5259_v13 = vld [vmem:[#allocation17 + $0x4f8] sm:$0xff] }
 0x837   :  { %8724 = vmatpush1.bf16.msra.mxu0 %v13413_v27  ;;  %8561 = vmatprep.subr.bf16.mxu1 %v13420_v1  ;;  %v13460_v27 = vcombine.high %v5222_v19, %v5226_v22  ;;  %v13462_v1 = vcombine.high %v5223_v20, %v5227_v23  ;;  %v5263_v19 = vld [vmem:[#allocation17 + $0x518] sm:$0xff] }
 0x838   :  { %8725 = vmatprep.subr.bf16.mxu0 %v13422_v28  ;;  %v5230_v28 = vld [vmem:[#allocation17 + $0x410] sm:$0xff]  ;;  %v5267_v22 = vld [vmem:[#allocation17 + $0x538] sm:$0xff] }
 0x839   :  { %v13467_v36 = vcombine.low %v5230_v28, %v5234_v30 }
 0x83a   :  { %8562 = vmatpush1.bf16.msra.mxu1 %v13419_v33  ;;  %v13461_v33 = vcombine.low %v5223_v20, %v5227_v23  ;;  %v13493_v20 = vcombine.low %v5255_v31, %v5259_v13 }
 0x83b   :  { %8726 = vmatpush1.bf16.msra.mxu0 %v13421_v0  ;;  %8563 = vmatprep.subr.bf16.mxu1 %v13428_v46  ;;  %v13468_v0 = vcombine.high %v5230_v28, %v5234_v30  ;;  %v13470_v46 = vcombine.high %v5231_v60, %v5235_v56  ;;  %v5275_v28 = vld [vmem:[#allocation17 + $0x578] sm:$0xff] }
 0x83c   :  { %8727 = vmatprep.subr.bf16.mxu0 %v13430_v53  ;;  %v5238_v53 = vld [vmem:[#allocation17 + $0x450] sm:$0xff] }
 0x83d   :  { %v13475_v8 = vcombine.low %v5238_v53, %v5242_v35 }
 0x83e   :  { %8564 = vmatpush1.bf16.msra.mxu1 %v13427_v39  ;;  %v13469_v39 = vcombine.low %v5231_v60, %v5235_v56  ;;  %v13501_v60 = vcombine.low %v5263_v19, %v5267_v22 }
 0x83f   :  { %8728 = vmatpush1.bf16.msra.mxu0 %v13429_v45  ;;  %8565 = vmatprep.subr.bf16.mxu1 %v13436_v48  ;;  %v13476_v45 = vcombine.high %v5238_v53, %v5242_v35  ;;  %v5246_v48 = vld [vmem:[#allocation17 + $0x490] sm:$0xff]  ;;  %v5283_v53 = vld [vmem:[#allocation17 + $0x5b8] sm:$0xff] }
 0x840   :  { %8729 = vmatprep.subr.bf16.mxu0 %v13438_v12  ;;  %v5250_v12 = vld [vmem:[#allocation17 + $0x4b0] sm:$0xff] }
 0x841   :  { %v13483_v9 = vcombine.low %v5246_v48, %v5250_v12 }
 0x842   :  { %8566 = vmatpush1.bf16.msra.mxu1 %v13435_v57  ;;  %v13477_v57 = vcombine.low %v5239_v37, %v5243_v38 }
 0x843   :  { %8730 = vmatpush1.bf16.msra.mxu0 %v13437_v62  ;;  %8567 = vmatprep.subr.bf16.mxu1 %v13444_v11  ;;  %v13484_v62 = vcombine.high %v5246_v48, %v5250_v12  ;;  %v13486_v11 = vcombine.high %v5247_v54, %v5251_v26  ;;  %v5287_v48 = vld [vmem:[#allocation17 + $0x5d8] sm:$0xff] }
 0x844   :  { %8731 = vmatprep.subr.bf16.mxu0 %v13446_v63  ;;  %v5254_v63 = vld [vmem:[#allocation17 + $0x4d0] sm:$0xff]  ;;  %v5291_v12 = vld [vmem:[#allocation17 + $0x5f8] sm:$0xff] }
 0x846   :  { %8568 = vmatpush1.bf16.msra.mxu1 %v13443_v10  ;;  %v13492_v10 = vcombine.high %v5254_v63, %v5258_v4 }
 0x847   :  { %8732 = vmatpush1.bf16.msra.mxu0 %v13445_v14  ;;  %8569 = vmatprep.subr.bf16.mxu1 %v13452_v15  ;;  %v13494_v14 = vcombine.high %v5255_v31, %v5259_v13  ;;  %v5262_v15 = vld [vmem:[#allocation17 + $0x510] sm:$0xff]  ;;  %v13525_v31 = vcombine.low %v5287_v48, %v5291_v12 }
 0x848   :  { %8733 = vmatprep.subr.bf16.mxu0 %v13454_v17  ;;  %v5266_v17 = vld [vmem:[#allocation17 + $0x530] sm:$0xff] }
 0x849   :  { %v13500_v23 = vcombine.high %v5262_v15, %v5266_v17  ;;  %v13499_v30 = vcombine.low %v5262_v15, %v5266_v17  ;;  %v5307_v15 = vld [vmem:[#allocation17 + $0x678] sm:$0xff] }
 0x84a   :  { %8570 = vmatpush1.bf16.msra.mxu1 %v13451_v24  ;;  %v13502_v24 = vcombine.high %v5263_v19, %v5267_v22 }
 0x84b   :  { %8734 = vmatpush1.bf16.msra.mxu0 %v13453_v51  ;;  %8571 = vmatprep.subr.bf16.mxu1 %v13460_v27  ;;  %v5270_v51 = vld [vmem:[#allocation17 + $0x550] sm:$0xff] }
 0x84c   :  { %8735 = vmatprep.subr.bf16.mxu0 %v13462_v1  ;;  %v5274_v27 = vld [vmem:[#allocation17 + $0x570] sm:$0xff]  ;;  %v5271_v1 = vld [vmem:[#allocation17 + $0x558] sm:$0xff] }
 0x84d   :  { %v13508_v56 = vcombine.high %v5270_v51, %v5274_v27  ;;  %v13507_v35 = vcombine.low %v5270_v51, %v5274_v27  ;;  %v5315_v51 = vld [vmem:[#allocation17 + $0x6b8] sm:$0xff] }
 0x84e   :  { %8572 = vmatpush1.bf16.msra.mxu1 %v13459_v32  ;;  %v13510_v32 = vcombine.high %v5271_v1, %v5275_v28 }
 0x84f   :  { %8736 = vmatpush1.bf16.msra.mxu0 %v13461_v33  ;;  %8582 = vmatprep.subr.bf16.mxu1 %v13468_v0  ;;  %v5278_v33 = vld [vmem:[#allocation17 + $0x590] sm:$0xff] }
 0x850   :  { %8746 = vmatprep.subr.bf16.mxu0 %v13470_v46  ;;  %v5282_v0 = vld [vmem:[#allocation17 + $0x5b0] sm:$0xff]  ;;  %v5279_v46 = vld [vmem:[#allocation17 + $0x598] sm:$0xff] }
 0x851   :  { %8574 = vmatmul.mubr.bf16.vlgmr.msra.gmra.mrb[32].mxu1 %v15730_v52  ;;  %v13516_v37 = vcombine.high %v5278_v33, %v5282_v0  ;;  %v13518_v38 = vcombine.high %v5279_v46, %v5283_v53 }
 0x852   :  { %8738 = vmatmul.mubr.bf16.vlgmr.msra.gmra.mrb[36].mxu0 %v15730_v52  ;;  %8583 = vmatpush1.bf16.msra.mxu1 %v13467_v36  ;;  %v13485_v52 = vcombine.low %v5247_v54, %v5251_v26  ;;  %v13509_v36 = vcombine.low %v5271_v1, %v5275_v28  ;;  %v13517_v54 = vcombine.low %v5279_v46, %v5283_v53 }
 0x853   :  { %8614 = vmatprep.mubr.bf16.mxu1 %v15734_v58  ;;  %8747 = vmatpush1.bf16.msra.mxu0 %v13469_v39  ;;  %v5286_v39 = vld [vmem:[#allocation17 + $0x5d0] sm:$0xff] }
 0x854   :  { %8778 = vmatprep.mubr.bf16.mxu0 %v15734_v58  ;;  %8584 = vmatprep.subr.bf16.mxu1 %v13476_v45  ;;  %v13491_v58 = vcombine.low %v5254_v63, %v5258_v4  ;;  %v5290_v45 = vld [vmem:[#allocation17 + $0x5f0] sm:$0xff]  ;;  %v5299_v63 = vld [vmem:[#allocation17 + $0x638] sm:$0xff] }
 0x855   :  { %8748 = vmatprep.subr.bf16.mxu0 %v13478_v49  ;;  %v13515_v49 = vcombine.low %v5278_v33, %v5282_v0  ;;  %v13524_v26 = vcombine.high %v5286_v39, %v5290_v45  ;;  %v13523_v4 = vcombine.low %v5286_v39, %v5290_v45  ;;  %v5323_v33 = vld [vmem:[#allocation17 + $0x6f8] sm:$0xff] }
 0x856   :  { %8585 = vmatpush1.bf16.msra.mxu1 %v13475_v8  ;;  %v13526_v8 = vcombine.high %v5287_v48, %v5291_v12  ;;  %v5331_v39 = vld [vmem:[#allocation17 + $0x738] sm:$0xff] }
 0x857   :  { %8749 = vmatpush1.bf16.msra.mxu0 %v13477_v57  ;;  %8586 = vmatprep.subr.bf16.mxu1 %v13484_v62  ;;  %v5294_v57 = vld [vmem:[#allocation17 + $0x610] sm:$0xff] }
 0x858   :  { %8750 = vmatprep.subr.bf16.mxu0 %v13486_v11  ;;  %v5298_v62 = vld [vmem:[#allocation17 + $0x630] sm:$0xff]  ;;  %v5295_v11 = vld [vmem:[#allocation17 + $0x618] sm:$0xff] }
 0x859   :  { %v13532_v13 = vcombine.high %v5294_v57, %v5298_v62  ;;  %v13531_v17 = vcombine.low %v5294_v57, %v5298_v62  ;;  %v13533_v19 = vcombine.low %v5295_v11, %v5299_v63  ;;  %v5339_v57 = vld [vmem:[#allocation17 + $0x778] sm:$0xff] }
 0x85a   :  { %8587 = vmatpush1.bf16.msra.mxu1 %v13483_v9  ;;  %v13534_v9 = vcombine.high %v5295_v11, %v5299_v63 }
 0x85b   :  { %8751 = vmatpush1.bf16.msra.mxu0 %v13485_v52  ;;  %8588 = vmatprep.subr.bf16.mxu1 %v13492_v10  ;;  %v5302_v52 = vld [vmem:[#allocation17 + $0x650] sm:$0xff] }
 0x85c   :  { %8752 = vmatprep.subr.bf16.mxu0 %v13494_v14  ;;  %v5306_v10 = vld [vmem:[#allocation17 + $0x670] sm:$0xff]  ;;  %v5303_v14 = vld [vmem:[#allocation17 + $0x658] sm:$0xff] }
 0x85d   :  { %v13540_v22 = vcombine.high %v5302_v52, %v5306_v10  ;;  %v13539_v27 = vcombine.low %v5302_v52, %v5306_v10  ;;  %v13541_v1 = vcombine.low %v5303_v14, %v5307_v15  ;;  %v5347_v52 = vld [vmem:[#allocation17 + $0x7b8] sm:$0xff] }
 0x85e   :  { %8589 = vmatpush1.bf16.msra.mxu1 %v13491_v58  ;;  %v13542_v58 = vcombine.high %v5303_v14, %v5307_v15 }
 0x85f   :  { %8753 = vmatpush1.bf16.msra.mxu0 %v13493_v20  ;;  %8590 = vmatprep.subr.bf16.mxu1 %v13500_v23  ;;  %v5310_v20 = vld [vmem:[#allocation17 + $0x690] sm:$0xff] }
 0x860   :  { %8754 = vmatprep.subr.bf16.mxu0 %v13502_v24  ;;  %v5314_v23 = vld [vmem:[#allocation17 + $0x6b0] sm:$0xff]  ;;  %v5311_v24 = vld [vmem:[#allocation17 + $0x698] sm:$0xff] }
 0x861   :  { %v13548_v28 = vcombine.high %v5310_v20, %v5314_v23  ;;  %v13547_v0 = vcombine.low %v5310_v20, %v5314_v23  ;;  %v13549_v46 = vcombine.low %v5311_v24, %v5315_v51  ;;  %v5355_v20 = vld [vmem:[#allocation17 + $0x7f8] sm:$0xff] }
 0x862   :  { %8591 = vmatpush1.bf16.msra.mxu1 %v13499_v30  ;;  %v13550_v30 = vcombine.high %v5311_v24, %v5315_v51 }
 0x863   :  { %8755 = vmatpush1.bf16.msra.mxu0 %v13501_v60  ;;  %8592 = vmatprep.subr.bf16.mxu1 %v13508_v56  ;;  %v5318_v60 = vld [vmem:[#allocation17 + $0x6d0] sm:$0xff] }
 0x864   :  { %8756 = vmatprep.subr.bf16.mxu0 %v13510_v32  ;;  %v5322_v56 = vld [vmem:[#allocation17 + $0x6f0] sm:$0xff]  ;;  %v5319_v32 = vld [vmem:[#allocation17 + $0x6d8] sm:$0xff] }
 0x865   :  { %v13556_v53 = vcombine.high %v5318_v60, %v5322_v56  ;;  %v13555_v45 = vcombine.low %v5318_v60, %v5322_v56  ;;  %v13557_v48 = vcombine.low %v5319_v32, %v5323_v33  ;;  %v5363_v60 = vld [vmem:[#allocation17 + $0x838] sm:$0xff] }
 0x866   :  { %8593 = vmatpush1.bf16.msra.mxu1 %v13507_v35  ;;  %v13558_v35 = vcombine.high %v5319_v32, %v5323_v33 }
 0x867   :  { %8757 = vmatpush1.bf16.msra.mxu0 %v13509_v36  ;;  %8594 = vmatprep.subr.bf16.mxu1 %v13516_v37  ;;  %v5326_v36 = vld [vmem:[#allocation17 + $0x710] sm:$0xff] }
 0x868   :  { %8758 = vmatprep.subr.bf16.mxu0 %v13518_v38  ;;  %v5330_v37 = vld [vmem:[#allocation17 + $0x730] sm:$0xff]  ;;  %v5327_v38 = vld [vmem:[#allocation17 + $0x718] sm:$0xff] }
 0x869   :  { %v13564_v12 = vcombine.high %v5326_v36, %v5330_v37  ;;  %v13563_v62 = vcombine.low %v5326_v36, %v5330_v37  ;;  %v13565_v11 = vcombine.low %v5327_v38, %v5331_v39  ;;  %v5367_v36 = vld [vmem:[#allocation17 + $0x858] sm:$0xff] }
 0x86a   :  { %8595 = vmatpush1.bf16.msra.mxu1 %v13515_v49  ;;  %v13566_v49 = vcombine.high %v5327_v38, %v5331_v39  ;;  %v5371_v37 = vld [vmem:[#allocation17 + $0x878] sm:$0xff] }
 0x86b   :  { %8759 = vmatpush1.bf16.msra.mxu0 %v13517_v54  ;;  %8596 = vmatprep.subr.bf16.mxu1 %v13524_v26  ;;  %v5334_v54 = vld [vmem:[#allocation17 + $0x750] sm:$0xff] }
 0x86c   :  { %8760 = vmatprep.subr.bf16.mxu0 %v13526_v8  ;;  %v5338_v26 = vld [vmem:[#allocation17 + $0x770] sm:$0xff]  ;;  %v5335_v8 = vld [vmem:[#allocation17 + $0x758] sm:$0xff] }
 0x86d   :  { %v13572_v63 = vcombine.high %v5334_v54, %v5338_v26  ;;  %v13571_v10 = vcombine.low %v5334_v54, %v5338_v26  ;;  %v13573_v14 = vcombine.low %v5335_v8, %v5339_v57  ;;  %v5379_v54 = vld [vmem:[#allocation17 + $0x8b8] sm:$0xff] }
 0x86e   :  { %8597 = vmatpush1.bf16.msra.mxu1 %v13523_v4  ;;  %v13574_v4 = vcombine.high %v5335_v8, %v5339_v57  ;;  %v13605_v8 = vcombine.low %v5367_v36, %v5371_v37 }
 0x86f   :  { %8761 = vmatpush1.bf16.msra.mxu0 %v13525_v31  ;;  %8598 = vmatprep.subr.bf16.mxu1 %v13532_v13  ;;  %v5342_v31 = vld [vmem:[#allocation17 + $0x790] sm:$0xff] }
 0x870   :  { %8762 = vmatprep.subr.bf16.mxu0 %v13534_v9  ;;  %v5346_v13 = vld [vmem:[#allocation17 + $0x7b0] sm:$0xff]  ;;  %v5343_v9 = vld [vmem:[#allocation17 + $0x798] sm:$0xff] }
 0x871   :  { %v13580_v15 = vcombine.high %v5342_v31, %v5346_v13  ;;  %v13579_v23 = vcombine.low %v5342_v31, %v5346_v13  ;;  %v13581_v24 = vcombine.low %v5343_v9, %v5347_v52  ;;  %v5387_v31 = vld [vmem:[#allocation17 + $0x8f8] sm:$0xff] }
 0x872   :  { %8599 = vmatpush1.bf16.msra.mxu1 %v13531_v17  ;;  %v13582_v17 = vcombine.high %v5343_v9, %v5347_v52 }
 0x873   :  { %8763 = vmatpush1.bf16.msra.mxu0 %v13533_v19  ;;  %8600 = vmatprep.subr.bf16.mxu1 %v13540_v22  ;;  %v5350_v19 = vld [vmem:[#allocation17 + $0x7d0] sm:$0xff] }
 0x874   :  { %8764 = vmatprep.subr.bf16.mxu0 %v13542_v58  ;;  %v5354_v22 = vld [vmem:[#allocation17 + $0x7f0] sm:$0xff]  ;;  %v5351_v58 = vld [vmem:[#allocation17 + $0x7d8] sm:$0xff] }
 0x875   :  { %v13588_v51 = vcombine.high %v5350_v19, %v5354_v22  ;;  %v13587_v56 = vcombine.low %v5350_v19, %v5354_v22  ;;  %v13589_v32 = vcombine.low %v5351_v58, %v5355_v20 }
 0x876   :  { %8601 = vmatpush1.bf16.msra.mxu1 %v13539_v27  ;;  %v13590_v27 = vcombine.high %v5351_v58, %v5355_v20  ;;  %v5398_v20 = vld [vmem:[#allocation17 + $0x950] sm:$0xff] }
 0x877   :  { %8765 = vmatpush1.bf16.msra.mxu0 %v13541_v1  ;;  %8602 = vmatprep.subr.bf16.mxu1 %v13548_v28  ;;  %v5358_v1 = vld [vmem:[#allocation17 + $0x810] sm:$0xff] }
 0x878   :  { %8766 = vmatprep.subr.bf16.mxu0 %v13550_v30  ;;  %v5362_v28 = vld [vmem:[#allocation17 + $0x830] sm:$0xff]  ;;  %v5359_v30 = vld [vmem:[#allocation17 + $0x818] sm:$0xff] }
 0x879   :  { %v13596_v33 = vcombine.high %v5358_v1, %v5362_v28  ;;  %v13597_v38 = vcombine.low %v5359_v30, %v5363_v60 }
 0x87a   :  { %8603 = vmatpush1.bf16.msra.mxu1 %v13547_v0  ;;  %v13598_v0 = vcombine.high %v5359_v30, %v5363_v60  ;;  %v5406_v60 = vld [vmem:[#allocation17 + $0x990] sm:$0xff] }
 0x87b   :  { %8767 = vmatpush1.bf16.msra.mxu0 %v13549_v46  ;;  %8604 = vmatprep.subr.bf16.mxu1 %v13556_v53  ;;  %v5366_v46 = vld [vmem:[#allocation17 + $0x850] sm:$0xff] }
 0x87c   :  { %8768 = vmatprep.subr.bf16.mxu0 %v13558_v35  ;;  %v5370_v53 = vld [vmem:[#allocation17 + $0x870] sm:$0xff]  ;;  %v13595_v35 = vcombine.low %v5358_v1, %v5362_v28 }
 0x87d   :  { %v13604_v39 = vcombine.high %v5366_v46, %v5370_v53  ;;  %v13603_v26 = vcombine.low %v5366_v46, %v5370_v53 }
 0x87e   :  { %8605 = vmatpush1.bf16.msra.mxu1 %v13555_v45  ;;  %v5374_v45 = vld [vmem:[#allocation17 + $0x890] sm:$0xff] }
 0x87f   :  { %8769 = vmatpush1.bf16.msra.mxu0 %v13557_v48  ;;  %8606 = vmatprep.subr.bf16.mxu1 %v13564_v12  ;;  %v5378_v48 = vld [vmem:[#allocation17 + $0x8b0] sm:$0xff]  ;;  %v13606_v12 = vcombine.high %v5367_v36, %v5371_v37 }
 0x880   :  { %8770 = vmatprep.subr.bf16.mxu0 %v13566_v49  ;;  %v5375_v49 = vld [vmem:[#allocation17 + $0x898] sm:$0xff]  ;;  %v13612_v57 = vcombine.high %v5374_v45, %v5378_v48  ;;  %v13611_v13 = vcombine.low %v5374_v45, %v5378_v48  ;;  %v5414_v36 = vld [vmem:[#allocation17 + $0x9d0] sm:$0xff] }
 0x881   :  { %v5418_v37 = vld [vmem:[#allocation17 + $0x9f0] sm:$0xff] }
 0x882   :  { %8607 = vmatpush1.bf16.msra.mxu1 %v13563_v62  ;;  %v13614_v62 = vcombine.high %v5375_v49, %v5379_v54 }
 0x883   :  { %8771 = vmatpush1.bf16.msra.mxu0 %v13565_v11  ;;  %8608 = vmatprep.subr.bf16.mxu1 %v13572_v63  ;;  %v5382_v11 = vld [vmem:[#allocation17 + $0x8d0] sm:$0xff] }
 0x884   :  { %8772 = vmatprep.subr.bf16.mxu0 %v13574_v4  ;;  %v5386_v63 = vld [vmem:[#allocation17 + $0x8f0] sm:$0xff]  ;;  %v5383_v4 = vld [vmem:[#allocation17 + $0x8d8] sm:$0xff] }
 0x885   :  { %v13620_v9 = vcombine.high %v5382_v11, %v5386_v63  ;;  %v13622_v52 = vcombine.high %v5383_v4, %v5387_v31  ;;  %v13621_v19 = vcombine.low %v5383_v4, %v5387_v31  ;;  %v5430_v31 = vld [vmem:[#allocation17 + $0xa50] sm:$0xff] }
 0x886   :  { %8609 = vmatpush1.bf16.msra.mxu1 %v13571_v10  ;;  %v5390_v10 = vld [vmem:[#allocation17 + $0x910] sm:$0xff] }
 0x887   :  { %8773 = vmatpush1.bf16.msra.mxu0 %v13573_v14  ;;  %8610 = vmatprep.subr.bf16.mxu1 %v13580_v15  ;;  %v5394_v14 = vld [vmem:[#allocation17 + $0x930] sm:$0xff]  ;;  %v5391_v15 = vld [vmem:[#allocation17 + $0x918] sm:$0xff] }
 0x888   :  { %8774 = vmatprep.subr.bf16.mxu0 %v13582_v17  ;;  %v5395_v17 = vld [vmem:[#allocation17 + $0x938] sm:$0xff]  ;;  %v13628_v22 = vcombine.high %v5390_v10, %v5394_v14 }
 0x889   :  { %v13630_v58 = vcombine.high %v5391_v15, %v5395_v17  ;;  %v13629_v1 = vcombine.low %v5391_v15, %v5395_v17  ;;  %v5438_v17 = vld [vmem:[#allocation17 + $0xa90] sm:$0xff] }
 0x88a   :  { %8611 = vmatpush1.bf16.msra.mxu1 %v13579_v23  ;;  %v5402_v23 = vld [vmem:[#allocation17 + $0x970] sm:$0xff] }
 0x88b   :  { %8775 = vmatpush1.bf16.msra.mxu0 %v13581_v24  ;;  %8612 = vmatprep.subr.bf16.mxu1 %v13588_v51  ;;  %v5399_v24 = vld [vmem:[#allocation17 + $0x958] sm:$0xff]  ;;  %v13636_v28 = vcombine.high %v5398_v20, %v5402_v23 }
 0x88c   :  { %8776 = vmatprep.subr.bf16.mxu0 %v13590_v27  ;;  %v5403_v51 = vld [vmem:[#allocation17 + $0x978] sm:$0xff]  ;;  %v13627_v27 = vcombine.low %v5390_v10, %v5394_v14 }
 0x88d   :  { %v13638_v30 = vcombine.high %v5399_v24, %v5403_v51  ;;  %v13637_v46 = vcombine.low %v5399_v24, %v5403_v51  ;;  %v5446_v51 = vld [vmem:[#allocation17 + $0xad0] sm:$0xff] }
 0x88e   :  { %8613 = vmatpush1.bf16.msra.mxu1 %v13587_v56  ;;  %v5410_v56 = vld [vmem:[#allocation17 + $0x9b0] sm:$0xff] }
 0x88f   :  { %8777 = vmatpush1.bf16.msra.mxu0 %v13589_v32  ;;  %8623 = vmatprep.subr.bf16.mxu1 %v13596_v33  ;;  %v5407_v32 = vld [vmem:[#allocation17 + $0x998] sm:$0xff]  ;;  %v13644_v53 = vcombine.high %v5406_v60, %v5410_v56  ;;  %v13643_v45 = vcombine.low %v5406_v60, %v5410_v56 }
 0x890   :  { %8787 = vmatprep.subr.bf16.mxu0 %v13598_v0  ;;  %v5411_v33 = vld [vmem:[#allocation17 + $0x9b8] sm:$0xff]  ;;  %v13635_v0 = vcombine.low %v5398_v20, %v5402_v23 }
 0x891   :  { %8615 = vmatmul.mubr.bf16.vlgmr.msra.gmra.mrb[32].mxu1 %v15746_v29  ;;  %v13645_v48 = vcombine.low %v5407_v32, %v5411_v33 }
 0x892   :  { %8779 = vmatmul.mubr.bf16.vlgmr.msra.gmra.mrb[36].mxu0 %v15746_v29  ;;  %8624 = vmatpush1.bf16.msra.mxu1 %v13595_v35  ;;  %v13613_v29 = vcombine.low %v5375_v49, %v5379_v54  ;;  %v13646_v35 = vcombine.high %v5407_v32, %v5411_v33  ;;  %v5422_v54 = vld [vmem:[#allocation17 + $0xa10] sm:$0xff] }
 0x893   :  { %8655 = vmatprep.mubr.bf16.mxu1 %v15776_v25  ;;  %8788 = vmatpush1.bf16.msra.mxu0 %v13597_v38  ;;  %v5415_v38 = vld [vmem:[#allocation17 + $0x9d8] sm:$0xff]  ;;  %v5454_v33 = vld [vmem:[#allocation17 + $0xb10] sm:$0xff] }
 0x894   :  { %8819 = vmatprep.mubr.bf16.mxu0 %v15776_v25  ;;  %8625 = vmatprep.subr.bf16.mxu1 %v13604_v39  ;;  %v13619_v25 = vcombine.low %v5382_v11, %v5386_v63  ;;  %v5419_v39 = vld [vmem:[#allocation17 + $0x9f8] sm:$0xff] }
 0x895   :  { %8789 = vmatprep.subr.bf16.mxu0 %v13606_v12  ;;  %v13652_v12 = vcombine.high %v5414_v36, %v5418_v37  ;;  %v13654_v49 = vcombine.high %v5415_v38, %v5419_v39  ;;  %v13653_v11 = vcombine.low %v5415_v38, %v5419_v39  ;;  %v5462_v39 = vld [vmem:[#allocation17 + $0xb50] sm:$0xff] }
 0x896   :  { %8626 = vmatpush1.bf16.msra.mxu1 %v13603_v26  ;;  %v5426_v26 = vld [vmem:[#allocation17 + $0xa30] sm:$0xff] }
 0x897   :  { %8790 = vmatpush1.bf16.msra.mxu0 %v13605_v8  ;;  %8627 = vmatprep.subr.bf16.mxu1 %v13612_v57  ;;  %v5423_v8 = vld [vmem:[#allocation17 + $0xa18] sm:$0xff]  ;;  %v13660_v63 = vcombine.high %v5422_v54, %v5426_v26 }
 0x898   :  { %8791 = vmatprep.subr.bf16.mxu0 %v13614_v62  ;;  %v5427_v57 = vld [vmem:[#allocation17 + $0xa38] sm:$0xff]  ;;  %v13651_v62 = vcombine.low %v5414_v36, %v5418_v37 }
 0x899   :  { %v13662_v4 = vcombine.high %v5423_v8, %v5427_v57  ;;  %v13661_v10 = vcombine.low %v5423_v8, %v5427_v57  ;;  %v5470_v57 = vld [vmem:[#allocation17 + $0xb90] sm:$0xff] }
 0x89a   :  { %8628 = vmatpush1.bf16.msra.mxu1 %v13611_v13  ;;  %v5434_v13 = vld [vmem:[#allocation17 + $0xa70] sm:$0xff] }
 0x89b   :  { %8792 = vmatpush1.bf16.msra.mxu0 %v13613_v29  ;;  %8629 = vmatprep.subr.bf16.mxu1 %v13620_v9  ;;  %v5431_v29 = vld [vmem:[#allocation17 + $0xa58] sm:$0xff]  ;;  %v13668_v14 = vcombine.high %v5430_v31, %v5434_v13 }
 0x89c   :  { %8793 = vmatprep.subr.bf16.mxu0 %v13622_v52  ;;  %v5435_v9 = vld [vmem:[#allocation17 + $0xa78] sm:$0xff]  ;;  %v13659_v52 = vcombine.low %v5422_v54, %v5426_v26 }
 0x89d   :  { %v13670_v15 = vcombine.high %v5431_v29, %v5435_v9  ;;  %v13669_v20 = vcombine.low %v5431_v29, %v5435_v9  ;;  %v5478_v9 = vld [vmem:[#allocation17 + $0xbd0] sm:$0xff] }
 0x89e   :  { %8630 = vmatpush1.bf16.msra.mxu1 %v13619_v25  ;;  %v5442_v25 = vld [vmem:[#allocation17 + $0xab0] sm:$0xff] }
 0x89f   :  { %8794 = vmatpush1.bf16.msra.mxu0 %v13621_v19  ;;  %8631 = vmatprep.subr.bf16.mxu1 %v13628_v22  ;;  %v5439_v19 = vld [vmem:[#allocation17 + $0xa98] sm:$0xff]  ;;  %v13676_v23 = vcombine.high %v5438_v17, %v5442_v25 }
 0x8a0   :  { %8795 = vmatprep.subr.bf16.mxu0 %v13630_v58  ;;  %v5443_v22 = vld [vmem:[#allocation17 + $0xab8] sm:$0xff]  ;;  %v13667_v58 = vcombine.low %v5430_v31, %v5434_v13 }
 0x8a1   :  { %v13678_v24 = vcombine.high %v5439_v19, %v5443_v22  ;;  %v13677_v60 = vcombine.low %v5439_v19, %v5443_v22  ;;  %v5486_v22 = vld [vmem:[#allocation17 + $0xc10] sm:$0xff] }
 0x8a2   :  { %8632 = vmatpush1.bf16.msra.mxu1 %v13627_v27  ;;  %v5450_v27 = vld [vmem:[#allocation17 + $0xaf0] sm:$0xff] }
 0x8a3   :  { %8796 = vmatpush1.bf16.msra.mxu0 %v13629_v1  ;;  %8633 = vmatprep.subr.bf16.mxu1 %v13636_v28  ;;  %v5447_v1 = vld [vmem:[#allocation17 + $0xad8] sm:$0xff]  ;;  %v13684_v56 = vcombine.high %v5446_v51, %v5450_v27 }
 0x8a4   :  { %8797 = vmatprep.subr.bf16.mxu0 %v13638_v30  ;;  %v5451_v28 = vld [vmem:[#allocation17 + $0xaf8] sm:$0xff]  ;;  %v13675_v30 = vcombine.low %v5438_v17, %v5442_v25 }
 0x8a5   :  { %v13686_v32 = vcombine.high %v5447_v1, %v5451_v28  ;;  %v13685_v36 = vcombine.low %v5447_v1, %v5451_v28  ;;  %v5494_v28 = vld [vmem:[#allocation17 + $0xc50] sm:$0xff] }
 0x8a6   :  { %8634 = vmatpush1.bf16.msra.mxu1 %v13635_v0  ;;  %v5458_v0 = vld [vmem:[#allocation17 + $0xb30] sm:$0xff] }
 0x8a7   :  { %8798 = vmatpush1.bf16.msra.mxu0 %v13637_v46  ;;  %8635 = vmatprep.subr.bf16.mxu1 %v13644_v53  ;;  %v5455_v46 = vld [vmem:[#allocation17 + $0xb18] sm:$0xff]  ;;  %v13692_v37 = vcombine.high %v5454_v33, %v5458_v0 }
 0x8a8   :  { %8799 = vmatprep.subr.bf16.mxu0 %v13646_v35  ;;  %v5459_v53 = vld [vmem:[#allocation17 + $0xb38] sm:$0xff]  ;;  %v13683_v35 = vcombine.low %v5446_v51, %v5450_v27 }
 0x8a9   :  { %v13694_v38 = vcombine.high %v5455_v46, %v5459_v53  ;;  %v13693_v54 = vcombine.low %v5455_v46, %v5459_v53  ;;  %v5502_v46 = vld [vmem:[#allocation17 + $0xc90] sm:$0xff] }
 0x8aa   :  { %8636 = vmatpush1.bf16.msra.mxu1 %v13643_v45  ;;  %v5466_v45 = vld [vmem:[#allocation17 + $0xb70] sm:$0xff] }
 0x8ab   :  { %8800 = vmatpush1.bf16.msra.mxu0 %v13645_v48  ;;  %8637 = vmatprep.subr.bf16.mxu1 %v13652_v12  ;;  %v5463_v48 = vld [vmem:[#allocation17 + $0xb58] sm:$0xff]  ;;  %v13700_v26 = vcombine.high %v5462_v39, %v5466_v45  ;;  %v5506_v53 = vld [vmem:[#allocation17 + $0xcb0] sm:$0xff] }
 0x8ac   :  { %8801 = vmatprep.subr.bf16.mxu0 %v13654_v49  ;;  %v5467_v12 = vld [vmem:[#allocation17 + $0xb78] sm:$0xff]  ;;  %v13691_v49 = vcombine.low %v5454_v33, %v5458_v0 }
 0x8ad   :  { %v13702_v8 = vcombine.high %v5463_v48, %v5467_v12  ;;  %v13701_v31 = vcombine.low %v5463_v48, %v5467_v12  ;;  %v5510_v12 = vld [vmem:[#allocation17 + $0xcd0] sm:$0xff] }
 0x8ae   :  { %8638 = vmatpush1.bf16.msra.mxu1 %v13651_v62  ;;  %v5474_v62 = vld [vmem:[#allocation17 + $0xbb0] sm:$0xff] }
 0x8af   :  { %8802 = vmatpush1.bf16.msra.mxu0 %v13653_v11  ;;  %8639 = vmatprep.subr.bf16.mxu1 %v13660_v63  ;;  %v5471_v11 = vld [vmem:[#allocation17 + $0xb98] sm:$0xff]  ;;  %v13708_v13 = vcombine.high %v5470_v57, %v5474_v62 }
 0x8b0   :  { %8803 = vmatprep.subr.bf16.mxu0 %v13662_v4  ;;  %v5475_v63 = vld [vmem:[#allocation17 + $0xbb8] sm:$0xff]  ;;  %v13699_v4 = vcombine.low %v5462_v39, %v5466_v45  ;;  %v13740_v45 = vcombine.high %v5502_v46, %v5506_v53 }
 0x8b1   :  { %v13710_v29 = vcombine.high %v5471_v11, %v5475_v63  ;;  %v13709_v17 = vcombine.low %v5471_v11, %v5475_v63  ;;  %v5518_v11 = vld [vmem:[#allocation17 + $0xd10] sm:$0xff] }
 0x8b2   :  { %8640 = vmatpush1.bf16.msra.mxu1 %v13659_v52  ;;  %v5482_v52 = vld [vmem:[#allocation17 + $0xbf0] sm:$0xff] }
 0x8b3   :  { %8804 = vmatpush1.bf16.msra.mxu0 %v13661_v10  ;;  %8641 = vmatprep.subr.bf16.mxu1 %v13668_v14  ;;  %v5479_v10 = vld [vmem:[#allocation17 + $0xbd8] sm:$0xff]  ;;  %v13716_v25 = vcombine.high %v5478_v9, %v5482_v52  ;;  %v5522_v63 = vld [vmem:[#allocation17 + $0xd30] sm:$0xff] }
 0x8b4   :  { %8805 = vmatprep.subr.bf16.mxu0 %v13670_v15  ;;  %v5483_v14 = vld [vmem:[#allocation17 + $0xbf8] sm:$0xff]  ;;  %v13707_v15 = vcombine.low %v5470_v57, %v5474_v62 }
 0x8b5   :  { %v13718_v19 = vcombine.high %v5479_v10, %v5483_v14  ;;  %v13717_v51 = vcombine.low %v5479_v10, %v5483_v14  ;;  %v5530_v10 = vld [vmem:[#allocation17 + $0xd70] sm:$0xff]  ;;  %v5527_v14 = vld [vmem:[#allocation17 + $0xd58] sm:$0xff] }
 0x8b6   :  { %8642 = vmatpush1.bf16.msra.mxu1 %v13667_v58  ;;  %v5490_v58 = vld [vmem:[#allocation17 + $0xc30] sm:$0xff] }
 0x8b7   :  { %8806 = vmatpush1.bf16.msra.mxu0 %v13669_v20  ;;  %8643 = vmatprep.subr.bf16.mxu1 %v13676_v23  ;;  %v5487_v20 = vld [vmem:[#allocation17 + $0xc18] sm:$0xff]  ;;  %v13724_v27 = vcombine.high %v5486_v22, %v5490_v58 }
 0x8b8   :  { %8807 = vmatprep.subr.bf16.mxu0 %v13678_v24  ;;  %v5491_v23 = vld [vmem:[#allocation17 + $0xc38] sm:$0xff]  ;;  %v13715_v24 = vcombine.low %v5478_v9, %v5482_v52  ;;  %v5526_v52 = vld [vmem:[#allocation17 + $0xd50] sm:$0xff] }
 0x8b9   :  { %v13726_v1 = vcombine.high %v5487_v20, %v5491_v23  ;;  %v13725_v33 = vcombine.low %v5487_v20, %v5491_v23  ;;  %v5538_v20 = vld [vmem:[#allocation17 + $0xdb0] sm:$0xff]  ;;  %v5535_v23 = vld [vmem:[#allocation17 + $0xd98] sm:$0xff] }
 0x8ba   :  { %8644 = vmatpush1.bf16.msra.mxu1 %v13675_v30  ;;  %v5498_v30 = vld [vmem:[#allocation17 + $0xc70] sm:$0xff] }
 0x8bb   :  { %8808 = vmatpush1.bf16.msra.mxu0 %v13677_v60  ;;  %8645 = vmatprep.subr.bf16.mxu1 %v13684_v56  ;;  %v13723_v60 = vcombine.low %v5486_v22, %v5490_v58  ;;  %v5495_v56 = vld [vmem:[#allocation17 + $0xc58] sm:$0xff]  ;;  %v13732_v0 = vcombine.high %v5494_v28, %v5498_v30  ;;  %v5534_v58 = vld [vmem:[#allocation17 + $0xd90] sm:$0xff] }
 0x8bc   :  { %8809 = vmatprep.subr.bf16.mxu0 %v13686_v32  ;;  %v5499_v32 = vld [vmem:[#allocation17 + $0xc78] sm:$0xff] }
 0x8bd   :  { %v13733_v39 = vcombine.low %v5495_v56, %v5499_v32 }
 0x8be   :  { %8646 = vmatpush1.bf16.msra.mxu1 %v13683_v35  ;;  %v13734_v35 = vcombine.high %v5495_v56, %v5499_v32  ;;  %v5542_v56 = vld [vmem:[#allocation17 + $0xdd0] sm:$0xff] }
 0x8bf   :  { %8810 = vmatpush1.bf16.msra.mxu0 %v13685_v36  ;;  %8647 = vmatprep.subr.bf16.mxu1 %v13692_v37  ;;  %v5503_v36 = vld [vmem:[#allocation17 + $0xc98] sm:$0xff]  ;;  %v5546_v32 = vld [vmem:[#allocation17 + $0xdf0] sm:$0xff] }
 0x8c0   :  { %8811 = vmatprep.subr.bf16.mxu0 %v13694_v38  ;;  %v5507_v37 = vld [vmem:[#allocation17 + $0xcb8] sm:$0xff]  ;;  %v13731_v38 = vcombine.low %v5494_v28, %v5498_v30 }
 0x8c1   :  { %v13742_v48 = vcombine.high %v5503_v36, %v5507_v37 }
 0x8c2   :  { %8648 = vmatpush1.bf16.msra.mxu1 %v13691_v49  ;;  %v5514_v49 = vld [vmem:[#allocation17 + $0xcf0] sm:$0xff] }
 0x8c3   :  { %8812 = vmatpush1.bf16.msra.mxu0 %v13693_v54  ;;  %8649 = vmatprep.subr.bf16.mxu1 %v13700_v26  ;;  %v5511_v54 = vld [vmem:[#allocation17 + $0xcd8] sm:$0xff]  ;;  %v13748_v57 = vcombine.high %v5510_v12, %v5514_v49 }
 0x8c4   :  { %8813 = vmatprep.subr.bf16.mxu0 %v13702_v8  ;;  %v5515_v26 = vld [vmem:[#allocation17 + $0xcf8] sm:$0xff]  ;;  %v13739_v8 = vcombine.low %v5502_v46, %v5506_v53 }
 0x8c5   :  { %v13750_v62 = vcombine.high %v5511_v54, %v5515_v26  ;;  %v5543_v46 = vld [vmem:[#allocation17 + $0xdd8] sm:$0xff] }
 0x8c6   :  { %8650 = vmatpush1.bf16.msra.mxu1 %v13699_v4  ;;  %v5519_v4 = vld [vmem:[#allocation17 + $0xd18] sm:$0xff] }
 0x8c7   :  { %8814 = vmatpush1.bf16.msra.mxu0 %v13701_v31  ;;  %8651 = vmatprep.subr.bf16.mxu1 %v13708_v13  ;;  %v5523_v31 = vld [vmem:[#allocation17 + $0xd38] sm:$0xff]  ;;  %v13749_v13 = vcombine.low %v5511_v54, %v5515_v26  ;;  %v5554_v54 = vld [vmem:[#allocation17 + $0xe30] sm:$0xff] }
 0x8c8   :  { %8815 = vmatprep.subr.bf16.mxu0 %v13710_v29  ;;  %v13756_v29 = vcombine.high %v5518_v11, %v5522_v63  ;;  %v13758_v9 = vcombine.high %v5519_v4, %v5523_v31  ;;  %v5547_v53 = vld [vmem:[#allocation17 + $0xdf8] sm:$0xff] }
 0x8c9   :  { %v5551_v26 = vld [vmem:[#allocation17 + $0xe18] sm:$0xff] }
 0x8ca   :  { %8652 = vmatpush1.bf16.msra.mxu1 %v13707_v15  ;;  %v5531_v15 = vld [vmem:[#allocation17 + $0xd78] sm:$0xff] }
 0x8cb   :  { %8816 = vmatpush1.bf16.msra.mxu0 %v13709_v17  ;;  %8653 = vmatprep.subr.bf16.mxu1 %v13716_v25  ;;  %v13755_v17 = vcombine.low %v5518_v11, %v5522_v63  ;;  %v13757_v25 = vcombine.low %v5519_v4, %v5523_v31  ;;  %v13766_v22 = vcombine.high %v5527_v14, %v5531_v15  ;;  %v5558_v63 = vld [vmem:[#allocation17 + $0xe50] sm:$0xff]  ;;  %v5559_v31 = vld [vmem:[#allocation17 + $0xe58] sm:$0xff] }
 0x8cc   :  { %8817 = vmatprep.subr.bf16.mxu0 %v13718_v19  ;;  %v13764_v19 = vcombine.high %v5526_v52, %v5530_v10  ;;  %v5562_v4 = vld [vmem:[#allocation17 + $0xe70] sm:$0xff] }
 0x8ce   :  { %8654 = vmatpush1.bf16.msra.mxu1 %v13715_v24  ;;  %v5539_v24 = vld [vmem:[#allocation17 + $0xdb8] sm:$0xff] }
 0x8cf   :  { %8818 = vmatpush1.bf16.msra.mxu0 %v13717_v51  ;;  %8664 = vmatprep.subr.bf16.mxu1 %v13724_v27  ;;  %v13763_v51 = vcombine.low %v5526_v52, %v5530_v10  ;;  %v13765_v27 = vcombine.low %v5527_v14, %v5531_v15  ;;  %v5566_v10 = vld [vmem:[#allocation17 + $0xe90] sm:$0xff]  ;;  %v5567_v15 = vld [vmem:[#allocation17 + $0xe98] sm:$0xff] }
 0x8d0   :  { %8828 = vmatprep.subr.bf16.mxu0 %v13726_v1  ;;  %v13772_v1 = vcombine.high %v5534_v58, %v5538_v20  ;;  %v5570_v14 = vld [vmem:[#allocation17 + $0xeb0] sm:$0xff] }
 0x8d1   :  { %8656 = vmatmul.mubr.bf16.vlgmr.msra.gmra.mrb[32].mxu1 %v15778_v6 }
 0x8d2   :  { %8820 = vmatmul.mubr.bf16.vlgmr.msra.gmra.mrb[36].mxu0 %v15778_v6  ;;  %8665 = vmatpush1.bf16.msra.mxu1 %v13723_v60  ;;  %v13741_v6 = vcombine.low %v5503_v36, %v5507_v37  ;;  %v13774_v60 = vcombine.high %v5535_v23, %v5539_v24  ;;  %v13771_v37 = vcombine.low %v5534_v58, %v5538_v20  ;;  %v5574_v20 = vld [vmem:[#allocation17 + $0xed0] sm:$0xff] }
 0x8d3   :  { %8696 = vmatprep.mubr.bf16.mxu1 %v15782_v40  ;;  %8829 = vmatpush1.bf16.msra.mxu0 %v13725_v33 }
 0x8d4   :  { %8860 = vmatprep.mubr.bf16.mxu0 %v15782_v40  ;;  %8666 = vmatprep.subr.bf16.mxu1 %v13732_v0  ;;  %v13747_v40 = vcombine.low %v5510_v12, %v5514_v49  ;;  %v13782_v12 = vcombine.high %v5543_v46, %v5547_v53  ;;  %v5550_v49 = vld [vmem:[#allocation17 + $0xe10] sm:$0xff] }
 0x8d5   :  { %8830 = vmatprep.subr.bf16.mxu0 %v13734_v35 }
 0x8d6   :  { %8667 = vmatpush1.bf16.msra.mxu1 %v13731_v38 }
 0x8d7   :  { %8831 = vmatpush1.bf16.msra.mxu0 %v13733_v39  ;;  %8668 = vmatprep.subr.bf16.mxu1 %v13740_v45  ;;  %v13773_v45 = vcombine.low %v5535_v23, %v5539_v24  ;;  %v5578_v23 = vld [vmem:[#allocation17 + $0xef0] sm:$0xff]  ;;  %v5575_v24 = vld [vmem:[#allocation17 + $0xed8] sm:$0xff] }
 0x8d8   :  { %8832 = vmatprep.subr.bf16.mxu0 %v13742_v48  ;;  %v13780_v48 = vcombine.high %v5542_v56, %v5546_v32 }
 0x8da   :  { %8669 = vmatpush1.bf16.msra.mxu1 %v13739_v8  ;;  %v5555_v8 = vld [vmem:[#allocation17 + $0xe38] sm:$0xff] }
 0x8db   :  { %8833 = vmatpush1.bf16.msra.mxu0 %v13741_v6  ;;  %8670 = vmatprep.subr.bf16.mxu1 %v13748_v57  ;;  %v13779_v6 = vcombine.low %v5542_v56, %v5546_v32  ;;  %v13781_v57 = vcombine.low %v5543_v46, %v5547_v53  ;;  %v13790_v11 = vcombine.high %v5551_v26, %v5555_v8  ;;  %v5582_v32 = vld [vmem:[#allocation17 + $0xf10] sm:$0xff]  ;;  %v5583_v53 = vld [vmem:[#allocation17 + $0xf18] sm:$0xff] }
 0x8dc   :  { %8834 = vmatprep.subr.bf16.mxu0 %v13750_v62  ;;  %v13788_v62 = vcombine.high %v5550_v49, %v5554_v54  ;;  %v5586_v46 = vld [vmem:[#allocation17 + $0xf30] sm:$0xff] }
 0x8de   :  { %8671 = vmatpush1.bf16.msra.mxu1 %v13747_v40  ;;  %v5563_v40 = vld [vmem:[#allocation17 + $0xe78] sm:$0xff] }
 0x8df   :  { %8835 = vmatpush1.bf16.msra.mxu0 %v13749_v13  ;;  %8672 = vmatprep.subr.bf16.mxu1 %v13756_v29  ;;  %v13787_v13 = vcombine.low %v5550_v49, %v5554_v54  ;;  %v13789_v29 = vcombine.low %v5551_v26, %v5555_v8  ;;  %v13798_v52 = vcombine.high %v5559_v31, %v5563_v40  ;;  %v5595_v49 = vld [vmem:[#allocation17 + $0xf78] sm:$0xff] }
 0x8e0   :  { %8836 = vmatprep.subr.bf16.mxu0 %v13758_v9  ;;  %v13796_v9 = vcombine.high %v5558_v63, %v5562_v4  ;;  %v13819_v54 = vcombine.low %v5582_v32, %v5586_v46 }
 0x8e2   :  { %8673 = vmatpush1.bf16.msra.mxu1 %v13755_v17  ;;  %v5571_v17 = vld [vmem:[#allocation17 + $0xeb8] sm:$0xff] }
 0x8e3   :  { %8837 = vmatpush1.bf16.msra.mxu0 %v13757_v25  ;;  %8674 = vmatprep.subr.bf16.mxu1 %v13764_v19  ;;  %v13795_v25 = vcombine.low %v5558_v63, %v5562_v4  ;;  %v13797_v19 = vcombine.low %v5559_v31, %v5563_v40  ;;  %v13806_v58 = vcombine.high %v5567_v15, %v5571_v17  ;;  %v5603_v63 = vld [vmem:[#allocation17 + $0xfb8] sm:$0xff]  ;;  %v15822_v4 = vld [vmem:[#allocation5 + $0x1a] sm:$0xff] }
 0x8e4   :  { %v15814_v28 = vpop.f32.mrb[28].mxu1  ;;  %v15816_v30 = vpop.f32.mrb[32].mxu0  ;;  %8838 = vmatprep.subr.bf16.mxu0 %v13766_v22  ;;  %v13804_v22 = vcombine.high %v5566_v10, %v5570_v14 }
 0x8e5   :  { %v15818_v33 = vpop.f32.mrb[29].mxu1  ;;  %v15820_v0 = vpop.f32.mrb[33].mxu0 }
 0x8e6   :  { %v8374_v35 = vpop.f32.mrb[30].mxu1  ;;  %v8538_v36 = vpop.f32.mrb[34].mxu0  ;;  %8675 = vmatpush1.bf16.msra.mxu1 %v13763_v51  ;;  %v5579_v51 = vld [vmem:[#allocation17 + $0xef8] sm:$0xff] }
 0x8e7   :  { %8839 = vmatpush1.bf16.msra.mxu0 %v13765_v27  ;;  %v8375_v38 = vpop.f32.mrb[31].mxu1  ;;  %v8539_v39 = vpop.f32.mrb[35].mxu0  ;;  %8676 = vmatprep.subr.bf16.mxu1 %v13772_v1  ;;  %v13803_v27 = vcombine.low %v5566_v10, %v5570_v14  ;;  %v13805_v1 = vcombine.low %v5567_v15, %v5571_v17  ;;  %v13814_v56 = vcombine.high %v5575_v24, %v5579_v51  ;;  %v5587_v35 = vld [vmem:[#allocation17 + $0xf38] sm:$0xff] }
 0x8e8   :  { %8840 = vmatprep.subr.bf16.mxu0 %v13774_v60  ;;  %v13812_v60 = vcombine.high %v5574_v20, %v5578_v23  ;;  %v13811_v36 = vcombine.low %v5574_v20, %v5578_v23  ;;  %v13820_v38 = vcombine.high %v5582_v32, %v5586_v46  ;;  %v13822_v39 = vcombine.high %v5583_v53, %v5587_v35  ;;  %v5607_v14 = vld [vmem:[#allocation17 + $0xfd8] sm:$0xff]  ;;  %v8886_v20 = vld [vmem:[#allocation19] sm:$0xff] }
 0x8e9   :  { %v13821_v26 = vcombine.low %v5583_v53, %v5587_v35  ;;  %v5620_v10 = vrot.slane %v15822_v4, %v15590_v7  ;;  %v5611_v15 = vld [vmem:[#allocation17 + $0xff8] sm:$0xff]  ;;  %v5628_v17 = vrot.slane %v15822_v4, %v15609_v61  ;;  %v8890_v23 = vld [vmem:[#allocation19 + $0x20] sm:$0xff] }
 0x8ea   :  { %8677 = vmatpush1.bf16.msra.mxu1 %v13771_v37  ;;  %v13813_v37 = vcombine.low %v5575_v24, %v5579_v51  ;;  %v9014_v51 = vld [vmem:[#allocation19 + $0x400] sm:$0xff]  ;;  %v13848_v32 = vcombine.high %v8886_v20, %v8890_v23 }
 0x8eb   :  { %8841 = vmatpush1.bf16.msra.mxu0 %v13773_v45  ;;  %8678 = vmatprep.subr.bf16.mxu1 %v13780_v48  ;;  %v5590_v45 = vld [vmem:[#allocation17 + $0xf50] sm:$0xff]  ;;  %v14372_v24 = vadd.f32 %v15818_v33, %v5620_v10  ;;  %v8894_v35 = vld [vmem:[#allocation19 + $0x40] sm:$0xff] }
 0x8ec   :  { %8842 = vmatprep.subr.bf16.mxu0 %v13782_v12  ;;  %v5594_v48 = vld [vmem:[#allocation17 + $0xf70] sm:$0xff]  ;;  %v5591_v12 = vld [vmem:[#allocation17 + $0xf58] sm:$0xff]  ;;  %v9026_v33 = vld [vmem:[#allocation19 + $0x460] sm:$0xff] }
 0x8ed   :  { %v13828_v8 = vcombine.high %v5590_v45, %v5594_v48  ;;  %v13827_v31 = vcombine.low %v5590_v45, %v5594_v48  ;;  %v13829_v40 = vcombine.low %v5591_v12, %v5595_v49  ;;  %v8870_v53 = vmax.f32 %v14372_v24, 0.0  ;;  %v8902_v48 = vld [vmem:[#allocation19 + $0x80] sm:$0xff] }
 0x8ee   :  { %8679 = vmatpush1.bf16.msra.mxu1 %v13779_v6  ;;  %v13830_v6 = vcombine.high %v5591_v12, %v5595_v49  ;;  %v8906_v12 = vld [vmem:[#allocation19 + $0xa0] sm:$0xff] }
 0x8ef   :  { %8843 = vmatpush1.bf16.msra.mxu0 %v13781_v57  ;;  %8680 = vmatprep.subr.bf16.mxu1 %v13788_v62  ;;  %v5598_v57 = vld [vmem:[#allocation17 + $0xf90] sm:$0xff]  ;;  %v15830_v49 = vpack.c.bf16 %v8870_v53, %v8870_v53  ;;  %v8930_v24 = vld [vmem:[#allocation19 + $0x160] sm:$0xff] }
 0x8f0   :  { %8844 = vmatprep.subr.bf16.mxu0 %v13790_v11  ;;  %v5602_v62 = vld [vmem:[#allocation17 + $0xfb0] sm:$0xff]  ;;  %v5599_v11 = vld [vmem:[#allocation17 + $0xf98] sm:$0xff]  ;;  %v8938_v53 = vld [vmem:[#allocation19 + $0x1a0] sm:$0xff] }
 0x8f2   :  { %8681 = vmatpush1.bf16.msra.mxu1 %v13787_v13  ;;  %v13836_v13 = vcombine.high %v5598_v57, %v5602_v62 }
 0x8f3   :  { %8845 = vmatpush1.bf16.msra.mxu0 %v13789_v29  ;;  %8682 = vmatprep.subr.bf16.mxu1 %v13796_v9  ;;  %v13838_v29 = vcombine.high %v5599_v11, %v5603_v63  ;;  %v5606_v9 = vld [vmem:[#allocation17 + $0xfd0] sm:$0xff] }
 0x8f4   :  { %8846 = vmatprep.subr.bf16.mxu0 %v13798_v52  ;;  %v5610_v52 = vld [vmem:[#allocation17 + $0xff0] sm:$0xff] }
 0x8f6   :  { %8683 = vmatpush1.bf16.msra.mxu1 %v13795_v25  ;;  %v13835_v25 = vcombine.low %v5598_v57, %v5602_v62 }
 0x8f7   :  { %8847 = vmatpush1.bf16.msra.mxu0 %v13797_v19  ;;  %8684 = vmatprep.subr.bf16.mxu1 %v13804_v22  ;;  %v13837_v19 = vcombine.low %v5599_v11, %v5603_v63  ;;  %v13844_v22 = vcombine.high %v5606_v9, %v5610_v52  ;;  %v13864_v11 = vcombine.high %v8902_v48, %v8906_v12 }
 0x8f8   :  { %8848 = vmatprep.subr.bf16.mxu0 %v13806_v58  ;;  %v13846_v58 = vcombine.high %v5607_v14, %v5611_v15 }
 0x8fa   :  { %8685 = vmatpush1.bf16.msra.mxu1 %v13803_v27  ;;  %v9018_v27 = vld [vmem:[#allocation19 + $0x420] sm:$0xff] }
 0x8fb   :  { %8849 = vmatpush1.bf16.msra.mxu0 %v13805_v1  ;;  %8686 = vmatprep.subr.bf16.mxu1 %v13812_v60  ;;  %v14374_v1 = vadd.f32 %v15820_v0, %v5628_v17  ;;  %v13843_v60 = vcombine.low %v5606_v9, %v5610_v52  ;;  %v13976_v46 = vcombine.high %v9014_v51, %v9018_v27  ;;  %v9046_v17 = vld [vmem:[#allocation19 + $0x500] sm:$0xff] }
 0x8fc   :  { %8850 = vmatprep.subr.bf16.mxu0 %v13814_v56  ;;  %v13845_v56 = vcombine.low %v5607_v14, %v5611_v15  ;;  %v13975_v45 = vcombine.low %v9014_v51, %v9018_v27  ;;  %v13863_v9 = vcombine.low %v8902_v48, %v8906_v12  ;;  %v8918_v14 = vld [vmem:[#allocation19 + $0x100] sm:$0xff] }
 0x8fd   :  { %v8922_v15 = vld [vmem:[#allocation19 + $0x120] sm:$0xff] }
 0x8fe   :  { %8687 = vmatpush1.bf16.msra.mxu1 %v13811_v36  ;;  %v8898_v36 = vld [vmem:[#allocation19 + $0x60] sm:$0xff] }
 0x8ff   :  { %8851 = vmatpush1.bf16.msra.mxu0 %v13813_v37  ;;  %8688 = vmatprep.subr.bf16.mxu1 %v13820_v38  ;;  %v8872_v37 = vmax.f32 %v14374_v1, 0.0  ;;  %v13847_v38 = vcombine.low %v8886_v20, %v8890_v23  ;;  %v13856_v0 = vcombine.high %v8894_v35, %v8898_v36  ;;  %v13855_v57 = vcombine.low %v8894_v35, %v8898_v36  ;;  %v8926_v23 = vld [vmem:[#allocation19 + $0x140] sm:$0xff] }
 0x900   :  { %8852 = vmatprep.subr.bf16.mxu0 %v13822_v39  ;;  %v9022_v39 = vld [vmem:[#allocation19 + $0x440] sm:$0xff]  ;;  %v13879_v1 = vcombine.low %v8918_v14, %v8922_v15 }
 0x901   :  { %v13983_v62 = vcombine.low %v9022_v39, %v9026_v33  ;;  %v9054_v51 = vld [vmem:[#allocation19 + $0x540] sm:$0xff] }
 0x902   :  { %8689 = vmatpush1.bf16.msra.mxu1 %v13819_v54  ;;  %v13984_v54 = vcombine.high %v9022_v39, %v9026_v33  ;;  %v9058_v27 = vld [vmem:[#allocation19 + $0x560] sm:$0xff] }
 0x903   :  { %8853 = vmatpush1.bf16.msra.mxu0 %v13821_v26  ;;  %8690 = vmatprep.subr.bf16.mxu1 %v13828_v8  ;;  %v9030_v26 = vld [vmem:[#allocation19 + $0x480] sm:$0xff] }
 0x904   :  { %8854 = vmatprep.subr.bf16.mxu0 %v13830_v6  ;;  %v9034_v8 = vld [vmem:[#allocation19 + $0x4a0] sm:$0xff]  ;;  %v15833_v6 = vpack.c.bf16 %v8872_v37, %v8872_v37  ;;  %v13887_v37 = vcombine.low %v8926_v23, %v8930_v24 }
 0x905   :  { %v13992_v63 = vcombine.high %v9030_v26, %v9034_v8  ;;  %v9062_v35 = vld [vmem:[#allocation19 + $0x580] sm:$0xff] }
 0x906   :  { %8691 = vmatpush1.bf16.msra.mxu1 %v13827_v31  ;;  %v8910_v31 = vld [vmem:[#allocation19 + $0xc0] sm:$0xff] }
 0x907   :  { %8855 = vmatpush1.bf16.msra.mxu0 %v13829_v40  ;;  %8692 = vmatprep.subr.bf16.mxu1 %v13836_v13  ;;  %v8914_v40 = vld [vmem:[#allocation19 + $0xe0] sm:$0xff] }
 0x908   :  { %8856 = vmatprep.subr.bf16.mxu0 %v13838_v29  ;;  %v9038_v13 = vld [vmem:[#allocation19 + $0x4c0] sm:$0xff]  ;;  %v13872_v52 = vcombine.high %v8910_v31, %v8914_v40 }
 0x909   :  { %v9042_v29 = vld [vmem:[#allocation19 + $0x4e0] sm:$0xff] }
 0x90a   :  { %8693 = vmatpush1.bf16.msra.mxu1 %v13835_v25  ;;  %v14000_v10 = vcombine.high %v9038_v13, %v9042_v29  ;;  %v9050_v25 = vld [vmem:[#allocation19 + $0x520] sm:$0xff] }
 0x90b   :  { %8857 = vmatpush1.bf16.msra.mxu0 %v13837_v19  ;;  %8694 = vmatprep.subr.bf16.mxu1 %v13844_v22  ;;  %v13871_v19 = vcombine.low %v8910_v31, %v8914_v40  ;;  %v13999_v22 = vcombine.low %v9038_v13, %v9042_v29  ;;  %v14008_v20 = vcombine.high %v9046_v17, %v9050_v25  ;;  %v9066_v36 = vld [vmem:[#allocation19 + $0x5a0] sm:$0xff] }
 0x90c   :  { %8858 = vmatprep.subr.bf16.mxu0 %v13846_v58  ;;  %v13880_v58 = vcombine.high %v8918_v14, %v8922_v15  ;;  %v14024_v33 = vcombine.high %v9062_v35, %v9066_v36  ;;  %v9070_v48 = vld [vmem:[#allocation19 + $0x5c0] sm:$0xff] }
 0x90d   :  { %v9074_v12 = vld [vmem:[#allocation19 + $0x5e0] sm:$0xff] }
 0x90e   :  { %8695 = vmatpush1.bf16.msra.mxu1 %v13843_v60  ;;  %v14007_v60 = vcombine.low %v9046_v17, %v9050_v25  ;;  %v9082_v31 = vld [vmem:[#allocation19 + $0x620] sm:$0xff]  ;;  %v14031_v13 = vcombine.low %v9070_v48, %v9074_v12 }
 0x90f   :  { %8859 = vmatpush1.bf16.msra.mxu0 %v13845_v56  ;;  %11999 = vmatprep.subr.bf16.mxu1 %v13848_v32  ;;  %v13888_v56 = vcombine.high %v8926_v23, %v8930_v24  ;;  %v14016_v32 = vcombine.high %v9054_v51, %v9058_v27  ;;  %v9090_v14 = vld [vmem:[#allocation19 + $0x660] sm:$0xff] }
 0x910   :  { %12040 = vmatprep.subr.bf16.mxu0 %v13976_v46  ;;  %v8934_v46 = vld [vmem:[#allocation19 + $0x180] sm:$0xff] }
 0x911   :  { %8697 = vmatmul.mubr.bf16.vlgmr.msra.gmra.mrb[32].mxu1 %v15796_v47  ;;  %v13896_v39 = vcombine.high %v8934_v46, %v8938_v53  ;;  %v9098_v23 = vld [vmem:[#allocation19 + $0x6a0] sm:$0xff] }
 0x912   :  { %8861 = vmatmul.mubr.bf16.vlgmr.msra.gmra.mrb[36].mxu0 %v15796_v47  ;;  %12000 = vmatpush1.bf16.msra.mxu1 %v13847_v38  ;;  %v13991_v47 = vcombine.low %v9030_v26, %v9034_v8  ;;  %v14015_v38 = vcombine.low %v9054_v51, %v9058_v27  ;;  %v14023_v26 = vcombine.low %v9062_v35, %v9066_v36 }
 0x913   :  { %12031 = vmatprep.mubr.bf16.mxu1 %v15830_v49  ;;  %12041 = vmatpush1.bf16.msra.mxu0 %v13975_v45  ;;  %v8942_v45 = vld [vmem:[#allocation19 + $0x1c0] sm:$0xff] }
 0x914   :  { %12072 = vmatprep.mubr.bf16.mxu0 %v15833_v6  ;;  %12001 = vmatprep.subr.bf16.mxu1 %v13856_v0  ;;  %v8946_v0 = vld [vmem:[#allocation19 + $0x1e0] sm:$0xff] }
 0x915   :  { %12042 = vmatprep.subr.bf16.mxu0 %v13984_v54  ;;  %v13895_v54 = vcombine.low %v8934_v46, %v8938_v53  ;;  %v13904_v8 = vcombine.high %v8942_v45, %v8946_v0  ;;  %v13903_v40 = vcombine.low %v8942_v45, %v8946_v0  ;;  %v9106_v46 = vld [vmem:[#allocation19 + $0x6e0] sm:$0xff] }
 0x916   :  { %12002 = vmatpush1.bf16.msra.mxu1 %v13855_v57  ;;  %v14032_v57 = vcombine.high %v9070_v48, %v9074_v12  ;;  %v9114_v45 = vld [vmem:[#allocation19 + $0x720] sm:$0xff] }
 0x917   :  { %12043 = vmatpush1.bf16.msra.mxu0 %v13983_v62  ;;  %12003 = vmatprep.subr.bf16.mxu1 %v13864_v11  ;;  %v8950_v62 = vld [vmem:[#allocation19 + $0x200] sm:$0xff] }
 0x918   :  { %12044 = vmatprep.subr.bf16.mxu0 %v13992_v63  ;;  %v8954_v11 = vld [vmem:[#allocation19 + $0x220] sm:$0xff] }
 0x919   :  { %v9078_v63 = vld [vmem:[#allocation19 + $0x600] sm:$0xff]  ;;  %v13912_v29 = vcombine.high %v8950_v62, %v8954_v11  ;;  %v13911_v15 = vcombine.low %v8950_v62, %v8954_v11 }
 0x91a   :  { %12004 = vmatpush1.bf16.msra.mxu1 %v13863_v9  ;;  %v14040_v9 = vcombine.high %v9078_v63, %v9082_v31  ;;  %v14039_v17 = vcombine.low %v9078_v63, %v9082_v31  ;;  %v9122_v62 = vld [vmem:[#allocation19 + $0x760] sm:$0xff] }
 0x91b   :  { %12045 = vmatpush1.bf16.msra.mxu0 %v13991_v47  ;;  %12005 = vmatprep.subr.bf16.mxu1 %v13872_v52  ;;  %v8958_v47 = vld [vmem:[#allocation19 + $0x240] sm:$0xff] }
 0x91c   :  { %12046 = vmatprep.subr.bf16.mxu0 %v14000_v10  ;;  %v8962_v52 = vld [vmem:[#allocation19 + $0x260] sm:$0xff] }
 0x91d   :  { %v9086_v10 = vld [vmem:[#allocation19 + $0x640] sm:$0xff]  ;;  %v13920_v25 = vcombine.high %v8958_v47, %v8962_v52  ;;  %v13919_v24 = vcombine.low %v8958_v47, %v8962_v52 }
 0x91e   :  { %12006 = vmatpush1.bf16.msra.mxu1 %v13871_v19  ;;  %v14048_v19 = vcombine.high %v9086_v10, %v9090_v14  ;;  %v14047_v51 = vcombine.low %v9086_v10, %v9090_v14  ;;  %v9130_v47 = vld [vmem:[#allocation19 + $0x7a0] sm:$0xff]  ;;  %v5616_v10 = vrot.slane %v15822_v4, %v15587_v5 }
 0x91f   :  { %12047 = vmatpush1.bf16.msra.mxu0 %v13999_v22  ;;  %12007 = vmatprep.subr.bf16.mxu1 %v13880_v58  ;;  %v8966_v22 = vld [vmem:[#allocation19 + $0x280] sm:$0xff] }
 0x920   :  { %12048 = vmatprep.subr.bf16.mxu0 %v14008_v20  ;;  %v8970_v58 = vld [vmem:[#allocation19 + $0x2a0] sm:$0xff] }
 0x921   :  { %v9094_v20 = vld [vmem:[#allocation19 + $0x680] sm:$0xff]  ;;  %v13928_v27 = vcombine.high %v8966_v22, %v8970_v58  ;;  %v13927_v53 = vcombine.low %v8966_v22, %v8970_v58 }
 0x922   :  { %12008 = vmatpush1.bf16.msra.mxu1 %v13879_v1  ;;  %v14056_v1 = vcombine.high %v9094_v20, %v9098_v23  ;;  %v14055_v35 = vcombine.low %v9094_v20, %v9098_v23  ;;  %v9010_v22 = vld [vmem:[#allocation19 + $0x3e0] sm:$0xff] }
 0x923   :  { %12049 = vmatpush1.bf16.msra.mxu0 %v14007_v60  ;;  %12009 = vmatprep.subr.bf16.mxu1 %v13888_v56  ;;  %v8974_v60 = vld [vmem:[#allocation19 + $0x2c0] sm:$0xff] }
 0x924   :  { %12050 = vmatprep.subr.bf16.mxu0 %v14016_v32  ;;  %v8978_v56 = vld [vmem:[#allocation19 + $0x2e0] sm:$0xff] }
 0x925   :  { %v9102_v32 = vld [vmem:[#allocation19 + $0x6c0] sm:$0xff]  ;;  %v13936_v36 = vcombine.high %v8974_v60, %v8978_v56  ;;  %v13935_v0 = vcombine.low %v8974_v60, %v8978_v56 }
 0x926   :  { %12010 = vmatpush1.bf16.msra.mxu1 %v13887_v37  ;;  %v14064_v37 = vcombine.high %v9102_v32, %v9106_v46  ;;  %v14063_v48 = vcombine.low %v9102_v32, %v9106_v46  ;;  %v9134_v58 = vld [vmem:[#allocation19 + $0x7c0] sm:$0xff] }
 0x927   :  { %12051 = vmatpush1.bf16.msra.mxu0 %v14015_v38  ;;  %12011 = vmatprep.subr.bf16.mxu1 %v13896_v39  ;;  %v8982_v38 = vld [vmem:[#allocation19 + $0x300] sm:$0xff] }
 0x928   :  { %12052 = vmatprep.subr.bf16.mxu0 %v14024_v33  ;;  %v8986_v39 = vld [vmem:[#allocation19 + $0x320] sm:$0xff] }
 0x929   :  { %v9110_v33 = vld [vmem:[#allocation19 + $0x700] sm:$0xff]  ;;  %v13944_v12 = vcombine.high %v8982_v38, %v8986_v39  ;;  %v13943_v11 = vcombine.low %v8982_v38, %v8986_v39 }
 0x92a   :  { %12012 = vmatpush1.bf16.msra.mxu1 %v13895_v54  ;;  %v14072_v54 = vcombine.high %v9110_v33, %v9114_v45  ;;  %v14071_v63 = vcombine.low %v9110_v33, %v9114_v45  ;;  %v9138_v20 = vld [vmem:[#allocation19 + $0x7e0] sm:$0xff] }
 0x92b   :  { %12053 = vmatpush1.bf16.msra.mxu0 %v14023_v26  ;;  %12013 = vmatprep.subr.bf16.mxu1 %v13904_v8  ;;  %v8990_v26 = vld [vmem:[#allocation19 + $0x340] sm:$0xff]  ;;  %v14096_v60 = vcombine.high %v9134_v58, %v9138_v20 }
 0x92c   :  { %12054 = vmatprep.subr.bf16.mxu0 %v14032_v57  ;;  %v8994_v8 = vld [vmem:[#allocation19 + $0x360] sm:$0xff] }
 0x92d   :  { %v9118_v57 = vld [vmem:[#allocation19 + $0x740] sm:$0xff]  ;;  %v13952_v31 = vcombine.high %v8990_v26, %v8994_v8  ;;  %v13951_v52 = vcombine.low %v8990_v26, %v8994_v8 }
 0x92e   :  { %12014 = vmatpush1.bf16.msra.mxu1 %v13903_v40  ;;  %v14080_v40 = vcombine.high %v9118_v57, %v9122_v62  ;;  %v14079_v14 = vcombine.low %v9118_v57, %v9122_v62  ;;  %v9142_v56 = vld [vmem:[#allocation19 + $0x800] sm:$0xff] }
 0x92f   :  { %12055 = vmatpush1.bf16.msra.mxu0 %v14031_v13  ;;  %12015 = vmatprep.subr.bf16.mxu1 %v13912_v29  ;;  %v8998_v13 = vld [vmem:[#allocation19 + $0x380] sm:$0xff] }
 0x930   :  { %12056 = vmatprep.subr.bf16.mxu0 %v14040_v9  ;;  %v9002_v29 = vld [vmem:[#allocation19 + $0x3a0] sm:$0xff] }
 0x931   :  { %v9126_v9 = vld [vmem:[#allocation19 + $0x780] sm:$0xff]  ;;  %v13959_v23 = vcombine.low %v8998_v13, %v9002_v29 }
 0x932   :  { %12016 = vmatpush1.bf16.msra.mxu1 %v13911_v15  ;;  %v13960_v15 = vcombine.high %v8998_v13, %v9002_v29  ;;  %v9146_v32 = vld [vmem:[#allocation19 + $0x820] sm:$0xff] }
 0x933   :  { %12057 = vmatpush1.bf16.msra.mxu0 %v14039_v17  ;;  %12017 = vmatprep.subr.bf16.mxu1 %v13920_v25  ;;  %v5624_v17 = vrot.slane %v15822_v4, %v15629_v16  ;;  %v14088_v25 = vcombine.high %v9126_v9, %v9130_v47  ;;  %v9270_v46 = vld [vmem:[#allocation19 + $0xc00] sm:$0xff]  ;;  %v14104_v38 = vcombine.high %v9142_v56, %v9146_v32 }
 0x934   :  { %12058 = vmatprep.subr.bf16.mxu0 %v14048_v19  ;;  %v9006_v19 = vld [vmem:[#allocation19 + $0x3c0] sm:$0xff] }
 0x935   :  { %v9150_v33 = vld [vmem:[#allocation19 + $0x840] sm:$0xff] }
 0x936   :  { %12018 = vmatpush1.bf16.msra.mxu1 %v13919_v24  ;;  %v14371_v24 = vadd.f32 %v15814_v28, %v5616_v10  ;;  %v9154_v45 = vld [vmem:[#allocation19 + $0x860] sm:$0xff] }
 0x937   :  { %12059 = vmatpush1.bf16.msra.mxu0 %v14047_v51  ;;  %12019 = vmatprep.subr.bf16.mxu1 %v13928_v27  ;;  %v14087_v51 = vcombine.low %v9126_v9, %v9130_v47  ;;  %v13968_v27 = vcombine.high %v9006_v19, %v9010_v22  ;;  %v14112_v26 = vcombine.high %v9150_v33, %v9154_v45  ;;  %v9158_v62 = vld [vmem:[#allocation19 + $0x880] sm:$0xff] }
 0x938   :  { %12060 = vmatprep.subr.bf16.mxu0 %v14056_v1  ;;  %v14373_v1 = vadd.f32 %v15816_v30, %v5624_v17  ;;  %v9282_v30 = vld [vmem:[#allocation19 + $0xc60] sm:$0xff] }
 0x939   :  { %v9166_v47 = vld [vmem:[#allocation19 + $0x8c0] sm:$0xff] }
 0x93a   :  { %12020 = vmatpush1.bf16.msra.mxu1 %v13927_v53  ;;  %v9274_v53 = vld [vmem:[#allocation19 + $0xc20] sm:$0xff]  ;;  %v8871_v28 = vmax.f32 %v14373_v1, 0.0 }
 0x93b   :  { %12061 = vmatpush1.bf16.msra.mxu0 %v14055_v35  ;;  %12021 = vmatprep.subr.bf16.mxu1 %v13936_v36  ;;  %v13967_v35 = vcombine.low %v9006_v19, %v9010_v22  ;;  %v8869_v36 = vmax.f32 %v14371_v24, 0.0  ;;  %v14232_v39 = vcombine.high %v9270_v46, %v9274_v53  ;;  %v9294_v10 = vld [vmem:[#allocation19 + $0xcc0] sm:$0xff] }
 0x93c   :  { %12062 = vmatprep.subr.bf16.mxu0 %v14064_v37  ;;  %v14095_v37 = vcombine.low %v9134_v58, %v9138_v20  ;;  %v15846_v8 = vpack.c.bf16 %v8871_v28, %v8871_v28  ;;  %v9174_v22 = vld [vmem:[#allocation19 + $0x900] sm:$0xff] }
 0x93d   :  { %v9178_v58 = vld [vmem:[#allocation19 + $0x920] sm:$0xff] }
 0x93e   :  { %12022 = vmatpush1.bf16.msra.mxu1 %v13935_v0  ;;  %v9278_v0 = vld [vmem:[#allocation19 + $0xc40] sm:$0xff] }
 0x93f   :  { %12063 = vmatpush1.bf16.msra.mxu0 %v14063_v48  ;;  %12023 = vmatprep.subr.bf16.mxu1 %v13944_v12  ;;  %v14103_v48 = vcombine.low %v9142_v56, %v9146_v32  ;;  %v15844_v12 = vpack.c.bf16 %v8869_v36, %v8869_v36  ;;  %v14240_v57 = vcombine.high %v9278_v0, %v9282_v30  ;;  %v9302_v20 = vld [vmem:[#allocation19 + $0xd00] sm:$0xff] }
 0x940   :  { %12064 = vmatprep.subr.bf16.mxu0 %v14072_v54  ;;  %v14231_v54 = vcombine.low %v9270_v46, %v9274_v53  ;;  %v14239_v13 = vcombine.low %v9278_v0, %v9282_v30  ;;  %v9186_v56 = vld [vmem:[#allocation19 + $0x960] sm:$0xff]  ;;  %v14135_v53 = vcombine.low %v9174_v22, %v9178_v58 }
 0x941   :  { %v9310_v32 = vld [vmem:[#allocation19 + $0xd40] sm:$0xff] }
 0x942   :  { %12024 = vmatpush1.bf16.msra.mxu1 %v13943_v11  ;;  %v9162_v11 = vld [vmem:[#allocation19 + $0x8a0] sm:$0xff] }
 0x943   :  { %12065 = vmatpush1.bf16.msra.mxu0 %v14071_v63  ;;  %12025 = vmatprep.subr.bf16.mxu1 %v13952_v31  ;;  %v9286_v63 = vld [vmem:[#allocation19 + $0xc80] sm:$0xff]  ;;  %v14120_v29 = vcombine.high %v9158_v62, %v9162_v11 }
 0x944   :  { %12066 = vmatprep.subr.bf16.mxu0 %v14080_v40  ;;  %v9290_v31 = vld [vmem:[#allocation19 + $0xca0] sm:$0xff]  ;;  %v14111_v40 = vcombine.low %v9150_v33, %v9154_v45 }
 0x945   :  { %v14248_v9 = vcombine.high %v9286_v63, %v9290_v31  ;;  %v14247_v17 = vcombine.low %v9286_v63, %v9290_v31  ;;  %v9314_v46 = vld [vmem:[#allocation19 + $0xd60] sm:$0xff] }
 0x946   :  { %12026 = vmatpush1.bf16.msra.mxu1 %v13951_v52  ;;  %v9170_v52 = vld [vmem:[#allocation19 + $0x8e0] sm:$0xff]  ;;  %v14271_v0 = vcombine.low %v9310_v32, %v9314_v46 }
 0x947   :  { %12067 = vmatpush1.bf16.msra.mxu0 %v14079_v14  ;;  %12027 = vmatprep.subr.bf16.mxu1 %v13960_v15  ;;  %v9298_v14 = vld [vmem:[#allocation19 + $0xce0] sm:$0xff]  ;;  %v14119_v15 = vcombine.low %v9158_v62, %v9162_v11  ;;  %v14127_v24 = vcombine.low %v9166_v47, %v9170_v52 }
 0x948   :  { %12068 = vmatprep.subr.bf16.mxu0 %v14088_v25  ;;  %v14128_v25 = vcombine.high %v9166_v47, %v9170_v52  ;;  %v14256_v19 = vcombine.high %v9294_v10, %v9298_v14  ;;  %v9194_v28 = vld [vmem:[#allocation19 + $0x9a0] sm:$0xff] }
 0x949   :  { %v9322_v33 = vld [vmem:[#allocation19 + $0xda0] sm:$0xff] }
 0x94a   :  { %12028 = vmatpush1.bf16.msra.mxu1 %v13959_v23  ;;  %v9306_v23 = vld [vmem:[#allocation19 + $0xd20] sm:$0xff] }
 0x94b   :  { %12069 = vmatpush1.bf16.msra.mxu0 %v14087_v51  ;;  %12029 = vmatprep.subr.bf16.mxu1 %v13968_v27  ;;  %v14255_v51 = vcombine.low %v9294_v10, %v9298_v14  ;;  %v14136_v27 = vcombine.high %v9174_v22, %v9178_v58  ;;  %v14264_v1 = vcombine.high %v9302_v20, %v9306_v23  ;;  %v9330_v62 = vld [vmem:[#allocation19 + $0xde0] sm:$0xff] }
 0x94c   :  { %12070 = vmatprep.subr.bf16.mxu0 %v14096_v60  ;;  %v9182_v60 = vld [vmem:[#allocation19 + $0x940] sm:$0xff] }
 0x94d   :  { %v14144_v36 = vcombine.high %v9182_v60, %v9186_v56  ;;  %v14143_v45 = vcombine.low %v9182_v60, %v9186_v56  ;;  %v9338_v47 = vld [vmem:[#allocation19 + $0xe20] sm:$0xff] }
 0x94e   :  { %12030 = vmatpush1.bf16.msra.mxu1 %v13967_v35  ;;  %v14263_v35 = vcombine.low %v9302_v20, %v9306_v23  ;;  %v9214_v22 = vld [vmem:[#allocation19 + $0xa40] sm:$0xff]  ;;  %v15856_v20 = vld [vmem:[#allocation19 + $0x428] sm:$0xff] }
 0x94f   :  { %12071 = vmatpush1.bf16.msra.mxu0 %v14095_v37  ;;  %12081 = vmatprep.subr.bf16.mxu1 %v14104_v38  ;;  %v14272_v37 = vcombine.high %v9310_v32, %v9314_v46  ;;  %v9190_v38 = vld [vmem:[#allocation19 + $0x980] sm:$0xff] }
 0x950   :  { %12122 = vmatprep.subr.bf16.mxu0 %v14232_v39  ;;  %v9318_v39 = vld [vmem:[#allocation19 + $0xd80] sm:$0xff]  ;;  %v14152_v30 = vcombine.high %v9190_v38, %v9194_v28  ;;  %v14151_v11 = vcombine.low %v9190_v38, %v9194_v28 }
 0x951   :  { %12032 = vmatmul.mubr.bf16.vlgmr.msra.gmra.mrb[36].mxu1 %v15844_v12  ;;  %v14279_v63 = vcombine.low %v9318_v39, %v9322_v33  ;;  %v9218_v58 = vld [vmem:[#allocation19 + $0xa60] sm:$0xff] }
 0x952   :  { %12073 = vmatmul.mubr.bf16.vlgmr.msra.gmra.mrb[40].mxu0 %v15846_v8  ;;  %12082 = vmatpush1.bf16.msra.mxu1 %v14103_v48  ;;  %v14280_v48 = vcombine.high %v9318_v39, %v9322_v33  ;;  %v9342_v23 = vld [vmem:[#allocation19 + $0xe40] sm:$0xff]  ;;  %v14176_v56 = vcombine.high %v9214_v22, %v9218_v58 }
 0x953   :  { %12123 = vmatpush1.bf16.msra.mxu0 %v14231_v54  ;;  %12083 = vmatprep.subr.bf16.mxu1 %v14112_v26  ;;  %v9198_v54 = vld [vmem:[#allocation19 + $0x9c0] sm:$0xff] }
 0x954   :  { %12124 = vmatprep.subr.bf16.mxu0 %v14240_v57  ;;  %v9202_v26 = vld [vmem:[#allocation19 + $0x9e0] sm:$0xff] }
 0x955   :  { %v9326_v57 = vld [vmem:[#allocation19 + $0xdc0] sm:$0xff]  ;;  %v14160_v31 = vcombine.high %v9198_v54, %v9202_v26  ;;  %v14159_v52 = vcombine.low %v9198_v54, %v9202_v26 }
 0x956   :  { %12084 = vmatpush1.bf16.msra.mxu1 %v14111_v40  ;;  %v14288_v40 = vcombine.high %v9326_v57, %v9330_v62  ;;  %v14287_v10 = vcombine.low %v9326_v57, %v9330_v62  ;;  %v9222_v46 = vld [vmem:[#allocation19 + $0xa80] sm:$0xff] }
 0x957   :  { %12125 = vmatpush1.bf16.msra.mxu0 %v14239_v13  ;;  %12085 = vmatprep.subr.bf16.mxu1 %v14120_v29  ;;  %v9206_v13 = vld [vmem:[#allocation19 + $0xa00] sm:$0xff] }
 0x958   :  { %12126 = vmatprep.subr.bf16.mxu0 %v14248_v9  ;;  %v9210_v29 = vld [vmem:[#allocation19 + $0xa20] sm:$0xff] }
 0x959   :  { %v9334_v9 = vld [vmem:[#allocation19 + $0xe00] sm:$0xff]  ;;  %v14168_v14 = vcombine.high %v9206_v13, %v9210_v29 }
 0x95a   :  { %12086 = vmatpush1.bf16.msra.mxu1 %v14119_v15  ;;  %v15850_v15 = vld [vmem:[#allocation19 + $0x8] sm:$0xff]  ;;  %v14295_v60 = vcombine.low %v9334_v9, %v9338_v47  ;;  %v9230_v33 = vld [vmem:[#allocation19 + $0xac0] sm:$0xff] }
 0x95b   :  { %12127 = vmatpush1.bf16.msra.mxu0 %v14247_v17  ;;  %12087 = vmatprep.subr.bf16.mxu1 %v14128_v25  ;;  %v15852_v17 = vld [vmem:[#allocation19 + $0x28] sm:$0xff]  ;;  %v9238_v62 = vld [vmem:[#allocation19 + $0xb00] sm:$0xff] }
 0x95c   :  { %12128 = vmatprep.subr.bf16.mxu0 %v14256_v19  ;;  %v15854_v25 = vld [vmem:[#allocation19 + $0x408] sm:$0xff]  ;;  %v14296_v19 = vcombine.high %v9334_v9, %v9338_v47  ;;  %v9246_v47 = vld [vmem:[#allocation19 + $0xb40] sm:$0xff] }
 0x95e   :  { %12088 = vmatpush1.bf16.msra.mxu1 %v14127_v24  ;;  %v9346_v24 = vld [vmem:[#allocation19 + $0xe60] sm:$0xff] }
 0x95f   :  { %12129 = vmatpush1.bf16.msra.mxu0 %v14255_v51  ;;  %12089 = vmatprep.subr.bf16.mxu1 %v14136_v27  ;;  %v13849_v51 = vcombine.low %v15850_v15, %v15852_v17  ;;  %v13977_v27 = vcombine.low %v15854_v25, %v15856_v20  ;;  %v14304_v32 = vcombine.high %v9342_v23, %v9346_v24 }
 0x960   :  { %12130 = vmatprep.subr.bf16.mxu0 %v14264_v1  ;;  %v14167_v1 = vcombine.low %v9206_v13, %v9210_v29  ;;  %v14303_v38 = vcombine.low %v9342_v23, %v9346_v24  ;;  %v9254_v24 = vld [vmem:[#allocation19 + $0xb80] sm:$0xff] }
 0x962   :  { %12090 = vmatpush1.bf16.msra.mxu1 %v14135_v53  ;;  %v9226_v53 = vld [vmem:[#allocation19 + $0xaa0] sm:$0xff] }
 0x963   :  { %12131 = vmatpush1.bf16.msra.mxu0 %v14263_v35  ;;  %12091 = vmatprep.subr.bf16.mxu1 %v14144_v36  ;;  %v9350_v35 = vld [vmem:[#allocation19 + $0xe80] sm:$0xff]  ;;  %v14184_v28 = vcombine.high %v9222_v46, %v9226_v53 }
 0x964   :  { %12132 = vmatprep.subr.bf16.mxu0 %v14272_v37  ;;  %v9354_v36 = vld [vmem:[#allocation19 + $0xea0] sm:$0xff]  ;;  %v14175_v37 = vcombine.low %v9214_v22, %v9218_v58 }
 0x965   :  { %v14312_v39 = vcombine.high %v9350_v35, %v9354_v36  ;;  %v14311_v54 = vcombine.low %v9350_v35, %v9354_v36  ;;  %v9262_v36 = vld [vmem:[#allocation19 + $0xbc0] sm:$0xff] }
 0x966   :  { %12092 = vmatpush1.bf16.msra.mxu1 %v14143_v45  ;;  %v9234_v45 = vld [vmem:[#allocation19 + $0xae0] sm:$0xff] }
 0x967   :  { %12133 = vmatpush1.bf16.msra.mxu0 %v14271_v0  ;;  %12093 = vmatprep.subr.bf16.mxu1 %v14152_v30  ;;  %v9358_v0 = vld [vmem:[#allocation19 + $0xec0] sm:$0xff]  ;;  %v14192_v26 = vcombine.high %v9230_v33, %v9234_v45 }
 0x968   :  { %12134 = vmatprep.subr.bf16.mxu0 %v14280_v48  ;;  %v9362_v30 = vld [vmem:[#allocation19 + $0xee0] sm:$0xff]  ;;  %v14183_v48 = vcombine.low %v9222_v46, %v9226_v53 }
 0x969   :  { %v14320_v57 = vcombine.high %v9358_v0, %v9362_v30  ;;  %v14319_v13 = vcombine.low %v9358_v0, %v9362_v30 }
 0x96a   :  { %12094 = vmatpush1.bf16.msra.mxu1 %v14151_v11  ;;  %v9242_v11 = vld [vmem:[#allocation19 + $0xb20] sm:$0xff] }
 0x96b   :  { %12135 = vmatpush1.bf16.msra.mxu0 %v14279_v63  ;;  %12095 = vmatprep.subr.bf16.mxu1 %v14160_v31  ;;  %v9366_v63 = vld [vmem:[#allocation19 + $0xf00] sm:$0xff]  ;;  %v14200_v29 = vcombine.high %v9238_v62, %v9242_v11 }
 0x96c   :  { %12136 = vmatprep.subr.bf16.mxu0 %v14288_v40  ;;  %v9370_v31 = vld [vmem:[#allocation19 + $0xf20] sm:$0xff]  ;;  %v14191_v40 = vcombine.low %v9230_v33, %v9234_v45 }
 0x96d   :  { %v14328_v9 = vcombine.high %v9366_v63, %v9370_v31  ;;  %v14327_v22 = vcombine.low %v9366_v63, %v9370_v31  ;;  %v5644_v63 = vrot.slane %v15822_v4, %v15757_v41 }
 0x96e   :  { %12096 = vmatpush1.bf16.msra.mxu1 %v14159_v52  ;;  %v9250_v52 = vld [vmem:[#allocation19 + $0xb60] sm:$0xff] }
 0x96f   :  { %12137 = vmatpush1.bf16.msra.mxu0 %v14287_v10  ;;  %12097 = vmatprep.subr.bf16.mxu1 %v14168_v14  ;;  %v9374_v10 = vld [vmem:[#allocation19 + $0xf40] sm:$0xff]  ;;  %v14208_v58 = vcombine.high %v9246_v47, %v9250_v52 }
 0x970   :  { %12138 = vmatprep.subr.bf16.mxu0 %v14296_v19  ;;  %v9378_v14 = vld [vmem:[#allocation19 + $0xf60] sm:$0xff]  ;;  %v14199_v19 = vcombine.low %v9238_v62, %v9242_v11  ;;  %v5640_v62 = vrot.slane %v15822_v4, %v15789_v43  ;;  %v5636_v11 = vrot.slane %v15822_v4, %v15754_v34 }
 0x971   :  { %v14336_v23 = vcombine.high %v9374_v10, %v9378_v14  ;;  %v14335_v46 = vcombine.low %v9374_v10, %v9378_v14 }
 0x972   :  { %12098 = vmatpush1.bf16.msra.mxu1 %v14167_v1  ;;  %v9258_v1 = vld [vmem:[#allocation19 + $0xba0] sm:$0xff] }
 0x973   :  { %12139 = vmatpush1.bf16.msra.mxu0 %v14295_v60  ;;  %12099 = vmatprep.subr.bf16.mxu1 %v14176_v56  ;;  %v9382_v60 = vld [vmem:[#allocation19 + $0xf80] sm:$0xff]  ;;  %v14216_v53 = vcombine.high %v9254_v24, %v9258_v1 }
 0x974   :  { %12140 = vmatprep.subr.bf16.mxu0 %v14304_v32  ;;  %v9386_v56 = vld [vmem:[#allocation19 + $0xfa0] sm:$0xff]  ;;  %v14207_v32 = vcombine.low %v9246_v47, %v9250_v52 }
 0x975   :  { %v14344_v35 = vcombine.high %v9382_v60, %v9386_v56  ;;  %v14343_v33 = vcombine.low %v9382_v60, %v9386_v56  ;;  %v8895_v56 = vld [vmem:[#allocation19 + $0x48] sm:$0xff] }
 0x976   :  { %12100 = vmatpush1.bf16.msra.mxu1 %v14175_v37  ;;  %v9266_v37 = vld [vmem:[#allocation19 + $0xbe0] sm:$0xff] }
 0x977   :  { %12141 = vmatpush1.bf16.msra.mxu0 %v14303_v38  ;;  %12101 = vmatprep.subr.bf16.mxu1 %v14184_v28  ;;  %v9390_v38 = vld [vmem:[#allocation19 + $0xfc0] sm:$0xff]  ;;  %v14224_v45 = vcombine.high %v9262_v36, %v9266_v37  ;;  %v14223_v30 = vcombine.low %v9262_v36, %v9266_v37 }
 0x978   :  { %12142 = vmatprep.subr.bf16.mxu0 %v14312_v39  ;;  %v9394_v28 = vld [vmem:[#allocation19 + $0xfe0] sm:$0xff]  ;;  %v14215_v39 = vcombine.low %v9254_v24, %v9258_v1 }
 0x979   :  { %v14352_v0 = vcombine.high %v9390_v38, %v9394_v28 }
 0x97a   :  { %12102 = vmatpush1.bf16.msra.mxu1 %v14183_v48  ;;  %v14351_v48 = vcombine.low %v9390_v38, %v9394_v28  ;;  %v8903_v28 = vld [vmem:[#allocation19 + $0x88] sm:$0xff] }
 0x97b   :  { %12143 = vmatpush1.bf16.msra.mxu0 %v14311_v54  ;;  %12103 = vmatprep.subr.bf16.mxu1 %v14192_v26  ;;  %v13850_v54 = vcombine.high %v15850_v15, %v15852_v17  ;;  %v13978_v26 = vcombine.high %v15854_v25, %v15856_v20 }
 0x97c   :  { %12144 = vmatprep.subr.bf16.mxu0 %v14320_v57  ;;  %v5632_v57 = vrot.slane %v15822_v4, %v15751_v21  ;;  %v9023_v4 = vld [vmem:[#allocation19 + $0x448] sm:$0xff] }
 0x97e   :  { %12104 = vmatpush1.bf16.msra.mxu1 %v14191_v40 }
 0x97f   :  { %12145 = vmatpush1.bf16.msra.mxu0 %v14319_v13  ;;  %12105 = vmatprep.subr.bf16.mxu1 %v14200_v29 }
 0x980   :  { %12146 = vmatprep.subr.bf16.mxu0 %v14328_v9 }
 0x982   :  { %12106 = vmatpush1.bf16.msra.mxu1 %v14199_v19 }
 0x983   :  { %12147 = vmatpush1.bf16.msra.mxu0 %v14327_v22  ;;  %12107 = vmatprep.subr.bf16.mxu1 %v14208_v58 }
 0x984   :  { %12148 = vmatprep.subr.bf16.mxu0 %v14336_v23 }
 0x986   :  { %12108 = vmatpush1.bf16.msra.mxu1 %v14207_v32  ;;  %v8899_v32 = vld [vmem:[#allocation19 + $0x68] sm:$0xff] }
 0x987   :  { %12149 = vmatpush1.bf16.msra.mxu0 %v14335_v46  ;;  %12109 = vmatprep.subr.bf16.mxu1 %v14216_v53  ;;  %v9027_v53 = vld [vmem:[#allocation19 + $0x468] sm:$0xff]  ;;  %v13858_v38 = vcombine.high %v8895_v56, %v8899_v32 }
 0x988   :  { %12150 = vmatprep.subr.bf16.mxu0 %v14344_v35 }
 0x98a   :  { %12110 = vmatpush1.bf16.msra.mxu1 %v14215_v39  ;;  %v8907_v39 = vld [vmem:[#allocation19 + $0xa8] sm:$0xff] }
 0x98b   :  { %12151 = vmatpush1.bf16.msra.mxu0 %v14343_v33  ;;  %12111 = vmatprep.subr.bf16.mxu1 %v14224_v45  ;;  %v13986_v33 = vcombine.high %v9023_v4, %v9027_v53  ;;  %v9031_v45 = vld [vmem:[#allocation19 + $0x488] sm:$0xff]  ;;  %v13865_v15 = vcombine.low %v8903_v28, %v8907_v39 }
 0x98c   :  { %12152 = vmatprep.subr.bf16.mxu0 %v14352_v0  ;;  %v9035_v0 = vld [vmem:[#allocation19 + $0x4a8] sm:$0xff] }
 0x98d   :  { %v13993_v17 = vcombine.low %v9031_v45, %v9035_v0 }
 0x98e   :  { %12112 = vmatpush1.bf16.msra.mxu1 %v14223_v30  ;;  %v13857_v30 = vcombine.low %v8895_v56, %v8899_v32  ;;  %v9063_v56 = vld [vmem:[#allocation19 + $0x588] sm:$0xff] }
 0x98f   :  { %12153 = vmatpush1.bf16.msra.mxu0 %v14351_v48  ;;  %12163 = vmatprep.subr.bf16.mxu1 %v13850_v54  ;;  %v13985_v48 = vcombine.low %v9023_v4, %v9027_v53  ;;  %v13866_v54 = vcombine.high %v8903_v28, %v8907_v39  ;;  %v9067_v32 = vld [vmem:[#allocation19 + $0x5a8] sm:$0xff] }
 0x990   :  { %12204 = vmatprep.subr.bf16.mxu0 %v13978_v26  ;;  %v13994_v26 = vcombine.high %v9031_v45, %v9035_v0  ;;  %v14026_v28 = vcombine.high %v9063_v56, %v9067_v32  ;;  %v8943_v39 = vld [vmem:[#allocation19 + $0x1c8] sm:$0xff] }
 0x991   :  { %v9071_v45 = vld [vmem:[#allocation19 + $0x5c8] sm:$0xff] }
 0x992   :  { %v9075_v0 = vld [vmem:[#allocation19 + $0x5e8] sm:$0xff] }
 0x9e4   :  { %v8698_v31 = vpop.f32.mrb[32].mxu1 }
 0x9e5   :  { %v14375_v40 = vadd.f32 %v8698_v31, %v5632_v57  ;;  %v8862_v13 = vpop.f32.mrb[36].mxu0  ;;  %v8700_v29 = vpop.f32.mrb[33].mxu1  ;;  %v8911_v57 = vld [vmem:[#allocation19 + $0xc8] sm:$0xff] }
 0x9e6   :  { %v14377_v9 = vadd.f32 %v8862_v13, %v5640_v62  ;;  %v14376_v47 = vadd.f32 %v8700_v29, %v5636_v11  ;;  %v8864_v52 = vpop.f32.mrb[37].mxu0  ;;  %v8702_v10 = vpop.f32.mrb[34].mxu1  ;;  %v8915_v62 = vld [vmem:[#allocation19 + $0xe8] sm:$0xff] }
 0x9e7   :  { %v8873_v14 = vmax.f32 %v14375_v40, 0.0  ;;  %v14378_v19 = vadd.f32 %v8864_v52, %v5644_v63  ;;  %v8866_v22 = vpop.f32.mrb[38].mxu0  ;;  %v8703_v58 = vpop.f32.mrb[35].mxu1  ;;  %v9039_v11 = vld [vmem:[#allocation19 + $0x4c8] sm:$0xff]  ;;  %v13874_v25 = vcombine.high %v8911_v57, %v8915_v62  ;;  %v13873_v13 = vcombine.low %v8911_v57, %v8915_v62 }
 0x9e8   :  { %v8875_v23 = vmax.f32 %v14377_v9, 0.0  ;;  %v8874_v24 = vmax.f32 %v14376_v47, 0.0  ;;  %v8867_v1 = vpop.f32.mrb[39].mxu0  ;;  %v9043_v63 = vld [vmem:[#allocation19 + $0x4e8] sm:$0xff] }
 0x9e9   :  { %v8876_v60 = vmax.f32 %v14378_v19, 0.0  ;;  %v15876_v35 = vpack.c.bf16 %v8873_v14, %v8873_v14  ;;  %v14002_v20 = vcombine.high %v9039_v11, %v9043_v63  ;;  %v9047_v31 = vld [vmem:[#allocation19 + $0x508] sm:$0xff]  ;;  %v14001_v29 = vcombine.low %v9039_v11, %v9043_v63 }
 0x9ea   :  { %v15874_v46 = vpack.c.bf16 %v8874_v24, %v8874_v24  ;;  %v15880_v37 = vpack.c.bf16 %v8875_v23, %v8875_v23  ;;  %v9051_v40 = vld [vmem:[#allocation19 + $0x528] sm:$0xff] }
 0x9eb   :  { %v15878_v36 = vpack.c.bf16 %v8876_v60, %v8876_v60  ;;  %v14010_v47 = vcombine.high %v9047_v31, %v9051_v40  ;;  %v8927_v52 = vld [vmem:[#allocation19 + $0x148] sm:$0xff]  ;;  %v14009_v58 = vcombine.low %v9047_v31, %v9051_v40 }
 0x9ec   :  { %12113 = vmatprep.mubr.bf16.mxu1 %v15874_v46  ;;  %v8931_v10 = vld [vmem:[#allocation19 + $0x168] sm:$0xff] }
 0x9ed   :  { %12154 = vmatprep.mubr.bf16.mxu0 %v15878_v36  ;;  %12114 = vmatmul.mubr.bf16.vlgmr.msra.gmra.mrb[40].mxu1 %v15876_v35  ;;  %v9055_v14 = vld [vmem:[#allocation19 + $0x548] sm:$0xff]  ;;  %v13890_v23 = vcombine.high %v8927_v52, %v8931_v10  ;;  %v13889_v4 = vcombine.low %v8927_v52, %v8931_v10 }
 0x9ee   :  { %12155 = vmatmul.mubr.bf16.vlgmr.msra.gmra.mrb[44].mxu0 %v15880_v37  ;;  %12164 = vmatpush1.bf16.msra.mxu1 %v13849_v51  ;;  %v8919_v51 = vld [vmem:[#allocation19 + $0x108] sm:$0xff] }
 0x9ef   :  { %12205 = vmatpush1.bf16.msra.mxu0 %v13977_v27  ;;  %12195 = vmatprep.mubr.bf16.mxu1 %v15830_v49  ;;  %v8923_v27 = vld [vmem:[#allocation19 + $0x128] sm:$0xff] }
 0x9f0   :  { %12236 = vmatprep.mubr.bf16.mxu0 %v15833_v6  ;;  %12165 = vmatprep.subr.bf16.mxu1 %v13858_v38  ;;  %v13882_v9 = vcombine.high %v8919_v51, %v8923_v27  ;;  %v9059_v19 = vld [vmem:[#allocation19 + $0x568] sm:$0xff]  ;;  %v13881_v22 = vcombine.low %v8919_v51, %v8923_v27 }
 0x9f1   :  { %12206 = vmatprep.subr.bf16.mxu0 %v13986_v33  ;;  %v14018_v24 = vcombine.high %v9055_v14, %v9059_v19  ;;  %v8935_v1 = vld [vmem:[#allocation19 + $0x188] sm:$0xff]  ;;  %v14017_v53 = vcombine.low %v9055_v14, %v9059_v19 }
 0x9f2   :  { %12166 = vmatpush1.bf16.msra.mxu1 %v13857_v30  ;;  %v8939_v60 = vld [vmem:[#allocation19 + $0x1a8] sm:$0xff] }
 0x9f3   :  { %12207 = vmatpush1.bf16.msra.mxu0 %v13985_v48  ;;  %12167 = vmatprep.subr.bf16.mxu1 %v13866_v54  ;;  %v13898_v38 = vcombine.high %v8935_v1, %v8939_v60  ;;  %v8947_v33 = vld [vmem:[#allocation19 + $0x1e8] sm:$0xff]  ;;  %v13897_v30 = vcombine.low %v8935_v1, %v8939_v60  ;;  %v14025_v48 = vcombine.low %v9063_v56, %v9067_v32 }
 0x9f4   :  { %12208 = vmatprep.subr.bf16.mxu0 %v13994_v26  ;;  %v13906_v54 = vcombine.high %v8943_v39, %v8947_v33  ;;  %v14034_v26 = vcombine.high %v9071_v45, %v9075_v0  ;;  %v8951_v57 = vld [vmem:[#allocation19 + $0x208] sm:$0xff] }
 0x9f5   :  { %v8955_v62 = vld [vmem:[#allocation19 + $0x228] sm:$0xff] }
 0x9f6   :  { %12168 = vmatpush1.bf16.msra.mxu1 %v13865_v15  ;;  %v9079_v11 = vld [vmem:[#allocation19 + $0x608] sm:$0xff]  ;;  %v13905_v15 = vcombine.low %v8943_v39, %v8947_v33 }
 0x9f7   :  { %12209 = vmatpush1.bf16.msra.mxu0 %v13993_v17  ;;  %12169 = vmatprep.subr.bf16.mxu1 %v13874_v25  ;;  %v9083_v63 = vld [vmem:[#allocation19 + $0x628] sm:$0xff]  ;;  %v14033_v17 = vcombine.low %v9071_v45, %v9075_v0  ;;  %v13914_v25 = vcombine.high %v8951_v57, %v8955_v62 }
 0x9f8   :  { %12210 = vmatprep.subr.bf16.mxu0 %v14002_v20  ;;  %v14042_v20 = vcombine.high %v9079_v11, %v9083_v63  ;;  %v8959_v51 = vld [vmem:[#allocation19 + $0x248] sm:$0xff] }
 0x9f9   :  { %v8963_v27 = vld [vmem:[#allocation19 + $0x268] sm:$0xff] }
 0x9fa   :  { %12170 = vmatpush1.bf16.msra.mxu1 %v13873_v13  ;;  %v9087_v31 = vld [vmem:[#allocation19 + $0x648] sm:$0xff]  ;;  %v13913_v13 = vcombine.low %v8951_v57, %v8955_v62 }
 0x9fb   :  { %12211 = vmatpush1.bf16.msra.mxu0 %v14001_v29  ;;  %12171 = vmatprep.subr.bf16.mxu1 %v13882_v9  ;;  %v9091_v40 = vld [vmem:[#allocation19 + $0x668] sm:$0xff]  ;;  %v14041_v29 = vcombine.low %v9079_v11, %v9083_v63  ;;  %v13922_v9 = vcombine.high %v8959_v51, %v8963_v27 }
 0x9fc   :  { %12212 = vmatprep.subr.bf16.mxu0 %v14010_v47  ;;  %v14050_v47 = vcombine.high %v9087_v31, %v9091_v40  ;;  %v8967_v52 = vld [vmem:[#allocation19 + $0x288] sm:$0xff] }
 0x9fd   :  { %v8971_v10 = vld [vmem:[#allocation19 + $0x2a8] sm:$0xff] }
 0x9fe   :  { %12172 = vmatpush1.bf16.msra.mxu1 %v13881_v22  ;;  %v9095_v14 = vld [vmem:[#allocation19 + $0x688] sm:$0xff]  ;;  %v13921_v22 = vcombine.low %v8959_v51, %v8963_v27 }
 0x9ff   :  { %12213 = vmatpush1.bf16.msra.mxu0 %v14009_v58  ;;  %12173 = vmatprep.subr.bf16.mxu1 %v13890_v23  ;;  %v9099_v19 = vld [vmem:[#allocation19 + $0x6a8] sm:$0xff]  ;;  %v14049_v58 = vcombine.low %v9087_v31, %v9091_v40  ;;  %v13930_v23 = vcombine.high %v8967_v52, %v8971_v10 }
 0xa00   :  { %12214 = vmatprep.subr.bf16.mxu0 %v14018_v24  ;;  %v14058_v24 = vcombine.high %v9095_v14, %v9099_v19  ;;  %v8975_v1 = vld [vmem:[#allocation19 + $0x2c8] sm:$0xff] }
 0xa01   :  { %v8979_v60 = vld [vmem:[#allocation19 + $0x2e8] sm:$0xff] }
 0xa02   :  { %12174 = vmatpush1.bf16.msra.mxu1 %v13889_v4  ;;  %v9103_v56 = vld [vmem:[#allocation19 + $0x6c8] sm:$0xff]  ;;  %v13929_v4 = vcombine.low %v8967_v52, %v8971_v10 }
 0xa03   :  { %12215 = vmatpush1.bf16.msra.mxu0 %v14017_v53  ;;  %12175 = vmatprep.subr.bf16.mxu1 %v13898_v38  ;;  %v9107_v32 = vld [vmem:[#allocation19 + $0x6e8] sm:$0xff]  ;;  %v14057_v53 = vcombine.low %v9095_v14, %v9099_v19  ;;  %v13938_v38 = vcombine.high %v8975_v1, %v8979_v60 }
 0xa04   :  { %12216 = vmatprep.subr.bf16.mxu0 %v14026_v28  ;;  %v14066_v28 = vcombine.high %v9103_v56, %v9107_v32  ;;  %v8983_v39 = vld [vmem:[#allocation19 + $0x308] sm:$0xff] }
 0xa05   :  { %v8987_v33 = vld [vmem:[#allocation19 + $0x328] sm:$0xff] }
 0xa06   :  { %12176 = vmatpush1.bf16.msra.mxu1 %v13897_v30  ;;  %v9111_v45 = vld [vmem:[#allocation19 + $0x708] sm:$0xff]  ;;  %v13937_v30 = vcombine.low %v8975_v1, %v8979_v60 }
 0xa07   :  { %12217 = vmatpush1.bf16.msra.mxu0 %v14025_v48  ;;  %12177 = vmatprep.subr.bf16.mxu1 %v13906_v54  ;;  %v9115_v0 = vld [vmem:[#allocation19 + $0x728] sm:$0xff]  ;;  %v14065_v48 = vcombine.low %v9103_v56, %v9107_v32  ;;  %v13946_v54 = vcombine.high %v8983_v39, %v8987_v33 }
 0xa08   :  { %12218 = vmatprep.subr.bf16.mxu0 %v14034_v26  ;;  %v14074_v26 = vcombine.high %v9111_v45, %v9115_v0  ;;  %v8991_v57 = vld [vmem:[#allocation19 + $0x348] sm:$0xff] }
 0xa09   :  { %v8995_v62 = vld [vmem:[#allocation19 + $0x368] sm:$0xff] }
 0xa0a   :  { %12178 = vmatpush1.bf16.msra.mxu1 %v13905_v15  ;;  %v9119_v11 = vld [vmem:[#allocation19 + $0x748] sm:$0xff]  ;;  %v13945_v15 = vcombine.low %v8983_v39, %v8987_v33 }
 0xa0b   :  { %12219 = vmatpush1.bf16.msra.mxu0 %v14033_v17  ;;  %12179 = vmatprep.subr.bf16.mxu1 %v13914_v25  ;;  %v9123_v63 = vld [vmem:[#allocation19 + $0x768] sm:$0xff]  ;;  %v14073_v17 = vcombine.low %v9111_v45, %v9115_v0  ;;  %v13954_v25 = vcombine.high %v8991_v57, %v8995_v62 }
 0xa0c   :  { %12220 = vmatprep.subr.bf16.mxu0 %v14042_v20  ;;  %v14082_v20 = vcombine.high %v9119_v11, %v9123_v63  ;;  %v8999_v51 = vld [vmem:[#allocation19 + $0x388] sm:$0xff] }
 0xa0d   :  { %v9003_v27 = vld [vmem:[#allocation19 + $0x3a8] sm:$0xff] }
 0xa0e   :  { %12180 = vmatpush1.bf16.msra.mxu1 %v13913_v13  ;;  %v9127_v31 = vld [vmem:[#allocation19 + $0x788] sm:$0xff]  ;;  %v13953_v13 = vcombine.low %v8991_v57, %v8995_v62 }
 0xa0f   :  { %12221 = vmatpush1.bf16.msra.mxu0 %v14041_v29  ;;  %12181 = vmatprep.subr.bf16.mxu1 %v13922_v9  ;;  %v9131_v40 = vld [vmem:[#allocation19 + $0x7a8] sm:$0xff]  ;;  %v8877_v29 = vld [vmem:[#allocation5 + $0x22] sm:$0xff]  ;;  %v14081_v9 = vcombine.low %v9119_v11, %v9123_v63 }
 0xa10   :  { %12222 = vmatprep.subr.bf16.mxu0 %v14050_v47  ;;  %v13962_v47 = vcombine.high %v8999_v51, %v9003_v27  ;;  %v14090_v52 = vcombine.high %v9127_v31, %v9131_v40  ;;  %v9007_v10 = vld [vmem:[#allocation19 + $0x3c8] sm:$0xff]  ;;  %v9402_v19 = vrot.slane %v8877_v29, %v15587_v5  ;;  %v14089_v1 = vcombine.low %v9127_v31, %v9131_v40 }
 0xa11   :  { %v9011_v14 = vld [vmem:[#allocation19 + $0x3e8] sm:$0xff] }
 0xa12   :  { %12182 = vmatpush1.bf16.msra.mxu1 %v13921_v22  ;;  %v9135_v22 = vld [vmem:[#allocation19 + $0x7c8] sm:$0xff]  ;;  %v13970_v60 = vcombine.high %v9007_v10, %v9011_v14 }
 0xa13   :  { %12223 = vmatpush1.bf16.msra.mxu0 %v14049_v58  ;;  %12183 = vmatprep.subr.bf16.mxu1 %v13930_v23  ;;  %v9139_v58 = vld [vmem:[#allocation19 + $0x7e8] sm:$0xff]  ;;  %v13961_v23 = vcombine.low %v8999_v51, %v9003_v27 }
 0xa14   :  { %12224 = vmatprep.subr.bf16.mxu0 %v14058_v24  ;;  %v9406_v24 = vrot.slane %v8877_v29, %v15590_v7  ;;  %v14098_v32 = vcombine.high %v9135_v22, %v9139_v58  ;;  %v9271_v33 = vld [vmem:[#allocation19 + $0xc08] sm:$0xff]  ;;  %v14097_v57 = vcombine.low %v9135_v22, %v9139_v58 }
 0xa15   :  { %v9275_v5 = vld [vmem:[#allocation19 + $0xc28] sm:$0xff] }
 0xa16   :  { %12184 = vmatpush1.bf16.msra.mxu1 %v13929_v4  ;;  %v9143_v4 = vld [vmem:[#allocation19 + $0x808] sm:$0xff]  ;;  %v14233_v31 = vcombine.low %v9271_v33, %v9275_v5 }
 0xa17   :  { %12225 = vmatpush1.bf16.msra.mxu0 %v14057_v53  ;;  %12185 = vmatprep.subr.bf16.mxu1 %v13938_v38  ;;  %v9147_v53 = vld [vmem:[#allocation19 + $0x828] sm:$0xff] }
 0xa18   :  { %12226 = vmatprep.subr.bf16.mxu0 %v14066_v28  ;;  %v14106_v62 = vcombine.high %v9143_v4, %v9147_v53  ;;  %v9279_v51 = vld [vmem:[#allocation19 + $0xc48] sm:$0xff] }
 0xa19   :  { %v9283_v27 = vld [vmem:[#allocation19 + $0xc68] sm:$0xff] }
 0xa1a   :  { %12186 = vmatpush1.bf16.msra.mxu1 %v13937_v30  ;;  %v9163_v29 = vld [vmem:[#allocation19 + $0x8a8] sm:$0xff] }
 0xa1b   :  { %12227 = vmatpush1.bf16.msra.mxu0 %v14065_v48  ;;  %12187 = vmatprep.subr.bf16.mxu1 %v13946_v54  ;;  %v13969_v48 = vcombine.low %v9007_v10, %v9011_v14  ;;  %v14241_v14 = vcombine.low %v9279_v51, %v9283_v27  ;;  %v9167_v58 = vld [vmem:[#allocation19 + $0x8c8] sm:$0xff] }
 0xa1c   :  { %12228 = vmatprep.subr.bf16.mxu0 %v14074_v26 }
 0xa1e   :  { %12188 = vmatpush1.bf16.msra.mxu1 %v13945_v15  ;;  %v14234_v15 = vcombine.high %v9271_v33, %v9275_v5 }
 0xa1f   :  { %12229 = vmatpush1.bf16.msra.mxu0 %v14073_v17  ;;  %12189 = vmatprep.subr.bf16.mxu1 %v13954_v25  ;;  %v9151_v17 = vld [vmem:[#allocation19 + $0x848] sm:$0xff] }
 0xa20   :  { %12230 = vmatprep.subr.bf16.mxu0 %v14082_v20  ;;  %v9155_v25 = vld [vmem:[#allocation19 + $0x868] sm:$0xff]  ;;  %v14105_v20 = vcombine.low %v9143_v4, %v9147_v53 }
 0xa21   :  { %v14114_v40 = vcombine.high %v9151_v17, %v9155_v25  ;;  %v14113_v10 = vcombine.low %v9151_v17, %v9155_v25  ;;  %v9175_v53 = vld [vmem:[#allocation19 + $0x908] sm:$0xff] }
 0xa22   :  { %12190 = vmatpush1.bf16.msra.mxu1 %v13953_v13  ;;  %v9159_v13 = vld [vmem:[#allocation19 + $0x888] sm:$0xff] }
 0xa23   :  { %12231 = vmatpush1.bf16.msra.mxu0 %v14081_v9  ;;  %12191 = vmatprep.subr.bf16.mxu1 %v13962_v47  ;;  %v14242_v9 = vcombine.high %v9279_v51, %v9283_v27  ;;  %v9287_v47 = vld [vmem:[#allocation19 + $0xc88] sm:$0xff] }
 0xa24   :  { %v12033_v56 = vpop.f32.mrb[36].mxu1  ;;  %12232 = vmatprep.subr.bf16.mxu0 %v14090_v52  ;;  %v9291_v52 = vld [vmem:[#allocation19 + $0xca8] sm:$0xff] }
 0xa25   :  { %v12034_v38 = vadd.f32 %v12033_v56, %v9402_v19  ;;  %v12074_v28 = vpop.f32.mrb[40].mxu0  ;;  %v12035_v39 = vpop.f32.mrb[37].mxu1  ;;  %v14122_v19 = vcombine.high %v9159_v13, %v9163_v29  ;;  %v14250_v22 = vcombine.high %v9287_v47, %v9291_v52  ;;  %v14249_v56 = vcombine.low %v9287_v47, %v9291_v52  ;;  %v9191_v17 = vld [vmem:[#allocation19 + $0x988] sm:$0xff] }
 0xa26   :  { %v12036_v45 = vadd.f32 %v12035_v39, %v9406_v24  ;;  %v12076_v0 = vpop.f32.mrb[41].mxu0  ;;  %12192 = vmatpush1.bf16.msra.mxu1 %v13961_v23  ;;  %v12037_v30 = vpop.f32.mrb[38].mxu1  ;;  %v9171_v23 = vld [vmem:[#allocation19 + $0x8e8] sm:$0xff] }
 0xa27   :  { %v15896_v7 = vadd.f32 %v12074_v28, %v12034_v38  ;;  %12233 = vmatpush1.bf16.msra.mxu0 %v14089_v1  ;;  %v12078_v54 = vpop.f32.mrb[42].mxu0  ;;  %v12038_v26 = vpop.f32.mrb[39].mxu1  ;;  %12193 = vmatprep.subr.bf16.mxu1 %v13970_v60  ;;  %v9295_v24 = vld [vmem:[#allocation19 + $0xcc8] sm:$0xff]  ;;  %v14121_v60 = vcombine.low %v9159_v13, %v9163_v29  ;;  %v14129_v33 = vcombine.low %v9167_v58, %v9171_v23 }
 0xa28   :  { %v15898_v11 = vadd.f32 %v12076_v0, %v12036_v45  ;;  %v12079_v63 = vpop.f32.mrb[43].mxu0  ;;  %12234 = vmatprep.subr.bf16.mxu0 %v14098_v32  ;;  %v9299_v1 = vld [vmem:[#allocation19 + $0xce8] sm:$0xff]  ;;  %v14130_v32 = vcombine.high %v9167_v58, %v9171_v23 }
 0xa29   :  { %v14258_v4 = vcombine.high %v9295_v24, %v9299_v1  ;;  %v9179_v38 = vld [vmem:[#allocation19 + $0x928] sm:$0xff]  ;;  %v14257_v5 = vcombine.low %v9295_v24, %v9299_v1 }
 0xa2a   :  { %12194 = vmatpush1.bf16.msra.mxu1 %v13969_v48  ;;  %v9303_v28 = vld [vmem:[#allocation19 + $0xd08] sm:$0xff]  ;;  %v14138_v45 = vcombine.high %v9175_v53, %v9179_v38 }
 0xa2b   :  { %12235 = vmatpush1.bf16.msra.mxu0 %v14097_v57  ;;  %12245 = vmatprep.subr.bf16.mxu1 %v14106_v62  ;;  %v9307_v39 = vld [vmem:[#allocation19 + $0xd28] sm:$0xff]  ;;  %v14137_v57 = vcombine.low %v9175_v53, %v9179_v38 }
 0xa2c   :  { %12286 = vmatprep.subr.bf16.mxu0 %v14234_v15  ;;  %v14266_v0 = vcombine.high %v9303_v28, %v9307_v39  ;;  %v9183_v30 = vld [vmem:[#allocation19 + $0x948] sm:$0xff]  ;;  %v14265_v62 = vcombine.low %v9303_v28, %v9307_v39 }
 0xa2d   :  { %12196 = vmatmul.mubr.bf16.vlgmr.msra.gmra.mrb[44].mxu1 %v15844_v12  ;;  %v9187_v48 = vld [vmem:[#allocation19 + $0x968] sm:$0xff] }
 0xa2e   :  { %12237 = vmatmul.mubr.bf16.vlgmr.msra.gmra.mrb[48].mxu0 %v15846_v8  ;;  %12246 = vmatpush1.bf16.msra.mxu1 %v14105_v20  ;;  %v9311_v54 = vld [vmem:[#allocation19 + $0xd48] sm:$0xff]  ;;  %v14146_v63 = vcombine.high %v9183_v30, %v9187_v48  ;;  %v14145_v27 = vcombine.low %v9183_v30, %v9187_v48 }
 0xa2f   :  { %12277 = vmatprep.mubr.bf16.mxu1 %v15874_v46  ;;  %12287 = vmatpush1.bf16.msra.mxu0 %v14233_v31  ;;  %v9315_v26 = vld [vmem:[#allocation19 + $0xd68] sm:$0xff] }
 0xa30   :  { %12318 = vmatprep.mubr.bf16.mxu0 %v15878_v36  ;;  %12247 = vmatprep.subr.bf16.mxu1 %v14114_v40  ;;  %v14274_v15 = vcombine.high %v9311_v54, %v9315_v26  ;;  %v9195_v25 = vld [vmem:[#allocation19 + $0x9a8] sm:$0xff]  ;;  %v14273_v31 = vcombine.low %v9311_v54, %v9315_v26 }
 0xa31   :  { %12288 = vmatprep.subr.bf16.mxu0 %v14242_v9  ;;  %v9319_v20 = vld [vmem:[#allocation19 + $0xd88] sm:$0xff]  ;;  %v14154_v40 = vcombine.high %v9191_v17, %v9195_v25 }
 0xa32   :  { %12248 = vmatpush1.bf16.msra.mxu1 %v14113_v10  ;;  %v9323_v51 = vld [vmem:[#allocation19 + $0xda8] sm:$0xff]  ;;  %v14153_v10 = vcombine.low %v9191_v17, %v9195_v25 }
 0xa33   :  { %12289 = vmatpush1.bf16.msra.mxu0 %v14241_v14  ;;  %12249 = vmatprep.subr.bf16.mxu1 %v14122_v19  ;;  %v14282_v13 = vcombine.high %v9319_v20, %v9323_v51  ;;  %v9199_v29 = vld [vmem:[#allocation19 + $0x9c8] sm:$0xff]  ;;  %v14281_v14 = vcombine.low %v9319_v20, %v9323_v51 }
 0xa34   :  { %12290 = vmatprep.subr.bf16.mxu0 %v14250_v22  ;;  %v9203_v9 = vld [vmem:[#allocation19 + $0x9e8] sm:$0xff] }
 0xa35   :  { %v9327_v47 = vld [vmem:[#allocation19 + $0xdc8] sm:$0xff]  ;;  %v14162_v19 = vcombine.high %v9199_v29, %v9203_v9 }
 0xa36   :  { %12250 = vmatpush1.bf16.msra.mxu1 %v14121_v60  ;;  %v9331_v52 = vld [vmem:[#allocation19 + $0xde8] sm:$0xff]  ;;  %v14161_v60 = vcombine.low %v9199_v29, %v9203_v9 }
 0xa37   :  { %12291 = vmatpush1.bf16.msra.mxu0 %v14249_v56  ;;  %12251 = vmatprep.subr.bf16.mxu1 %v14130_v32  ;;  %v14290_v22 = vcombine.high %v9327_v47, %v9331_v52  ;;  %v9207_v58 = vld [vmem:[#allocation19 + $0xa08] sm:$0xff]  ;;  %v14289_v56 = vcombine.low %v9327_v47, %v9331_v52 }
 0xa38   :  { %12292 = vmatprep.subr.bf16.mxu0 %v14258_v4  ;;  %v9211_v23 = vld [vmem:[#allocation19 + $0xa28] sm:$0xff] }
 0xa39   :  { %v9335_v24 = vld [vmem:[#allocation19 + $0xe08] sm:$0xff]  ;;  %v14170_v32 = vcombine.high %v9207_v58, %v9211_v23 }
 0xa3a   :  { %12252 = vmatpush1.bf16.msra.mxu1 %v14129_v33  ;;  %v9339_v1 = vld [vmem:[#allocation19 + $0xe28] sm:$0xff]  ;;  %v14169_v33 = vcombine.low %v9207_v58, %v9211_v23 }
 0xa3b   :  { %12293 = vmatpush1.bf16.msra.mxu0 %v14257_v5  ;;  %12253 = vmatprep.subr.bf16.mxu1 %v14138_v45  ;;  %v14298_v4 = vcombine.high %v9335_v24, %v9339_v1  ;;  %v9215_v53 = vld [vmem:[#allocation19 + $0xa48] sm:$0xff]  ;;  %v14297_v5 = vcombine.low %v9335_v24, %v9339_v1 }
 0xa3c   :  { %12294 = vmatprep.subr.bf16.mxu0 %v14266_v0  ;;  %v9219_v38 = vld [vmem:[#allocation19 + $0xa68] sm:$0xff] }
 0xa3d   :  { %v9343_v28 = vld [vmem:[#allocation19 + $0xe48] sm:$0xff]  ;;  %v14178_v45 = vcombine.high %v9215_v53, %v9219_v38 }
 0xa3e   :  { %12254 = vmatpush1.bf16.msra.mxu1 %v14137_v57  ;;  %v9347_v39 = vld [vmem:[#allocation19 + $0xe68] sm:$0xff]  ;;  %v14177_v57 = vcombine.low %v9215_v53, %v9219_v38 }
 0xa3f   :  { %12295 = vmatpush1.bf16.msra.mxu0 %v14265_v62  ;;  %12255 = vmatprep.subr.bf16.mxu1 %v14146_v63  ;;  %v14306_v0 = vcombine.high %v9343_v28, %v9347_v39  ;;  %v9223_v30 = vld [vmem:[#allocation19 + $0xa88] sm:$0xff]  ;;  %v14305_v62 = vcombine.low %v9343_v28, %v9347_v39 }
 0xa40   :  { %12296 = vmatprep.subr.bf16.mxu0 %v14274_v15  ;;  %v9227_v48 = vld [vmem:[#allocation19 + $0xaa8] sm:$0xff] }
 0xa41   :  { %v9351_v54 = vld [vmem:[#allocation19 + $0xe88] sm:$0xff]  ;;  %v14186_v63 = vcombine.high %v9223_v30, %v9227_v48 }
 0xa42   :  { %12256 = vmatpush1.bf16.msra.mxu1 %v14145_v27  ;;  %v9355_v26 = vld [vmem:[#allocation19 + $0xea8] sm:$0xff]  ;;  %v14185_v27 = vcombine.low %v9223_v30, %v9227_v48 }
 0xa43   :  { %12297 = vmatpush1.bf16.msra.mxu0 %v14273_v31  ;;  %12257 = vmatprep.subr.bf16.mxu1 %v14154_v40  ;;  %v14314_v15 = vcombine.high %v9351_v54, %v9355_v26  ;;  %v9231_v17 = vld [vmem:[#allocation19 + $0xac8] sm:$0xff]  ;;  %v14313_v31 = vcombine.low %v9351_v54, %v9355_v26 }
 0xa44   :  { %12298 = vmatprep.subr.bf16.mxu0 %v14282_v13  ;;  %v9235_v25 = vld [vmem:[#allocation19 + $0xae8] sm:$0xff] }
 0xa45   :  { %v9359_v20 = vld [vmem:[#allocation19 + $0xec8] sm:$0xff]  ;;  %v14194_v40 = vcombine.high %v9231_v17, %v9235_v25 }
 0xa46   :  { %12258 = vmatpush1.bf16.msra.mxu1 %v14153_v10  ;;  %v9363_v51 = vld [vmem:[#allocation19 + $0xee8] sm:$0xff]  ;;  %v14193_v10 = vcombine.low %v9231_v17, %v9235_v25  ;;  %v8888_v17 = vld [vmem:[#allocation19 + $0x10] sm:$0xff] }
 0xa47   :  { %12299 = vmatpush1.bf16.msra.mxu0 %v14281_v14  ;;  %12259 = vmatprep.subr.bf16.mxu1 %v14162_v19  ;;  %v14322_v13 = vcombine.high %v9359_v20, %v9363_v51  ;;  %v9239_v29 = vld [vmem:[#allocation19 + $0xb08] sm:$0xff]  ;;  %v14321_v14 = vcombine.low %v9359_v20, %v9363_v51  ;;  %v8892_v25 = vld [vmem:[#allocation19 + $0x30] sm:$0xff] }
 0xa48   :  { %12300 = vmatprep.subr.bf16.mxu0 %v14290_v22  ;;  %v9243_v9 = vld [vmem:[#allocation19 + $0xb28] sm:$0xff]  ;;  %v9016_v20 = vld [vmem:[#allocation19 + $0x410] sm:$0xff] }
 0xa49   :  { %v9367_v47 = vld [vmem:[#allocation19 + $0xf08] sm:$0xff]  ;;  %v14202_v19 = vcombine.high %v9239_v29, %v9243_v9  ;;  %v9020_v51 = vld [vmem:[#allocation19 + $0x430] sm:$0xff] }
 0xa4a   :  { %12260 = vmatpush1.bf16.msra.mxu1 %v14161_v60  ;;  %v9371_v52 = vld [vmem:[#allocation19 + $0xf28] sm:$0xff]  ;;  %v14201_v60 = vcombine.low %v9239_v29, %v9243_v9  ;;  %v8896_v29 = vld [vmem:[#allocation19 + $0x50] sm:$0xff] }
 0xa4b   :  { %12301 = vmatpush1.bf16.msra.mxu0 %v14289_v56  ;;  %12261 = vmatprep.subr.bf16.mxu1 %v14170_v32  ;;  %v14330_v22 = vcombine.high %v9367_v47, %v9371_v52  ;;  %v9247_v58 = vld [vmem:[#allocation19 + $0xb48] sm:$0xff]  ;;  %v14329_v56 = vcombine.low %v9367_v47, %v9371_v52  ;;  %v8900_v9 = vld [vmem:[#allocation19 + $0x70] sm:$0xff]  ;;  %v13851_v47 = vcombine.low %v8888_v17, %v8892_v25 }
 0xa4c   :  { %12302 = vmatprep.subr.bf16.mxu0 %v14298_v4  ;;  %v9251_v23 = vld [vmem:[#allocation19 + $0xb68] sm:$0xff]  ;;  %v9024_v52 = vld [vmem:[#allocation19 + $0x450] sm:$0xff] }
 0xa4d   :  { %v9375_v24 = vld [vmem:[#allocation19 + $0xf48] sm:$0xff]  ;;  %v14210_v32 = vcombine.high %v9247_v58, %v9251_v23 }
 0xa4e   :  { %12262 = vmatpush1.bf16.msra.mxu1 %v14169_v33  ;;  %v9379_v1 = vld [vmem:[#allocation19 + $0xf68] sm:$0xff]  ;;  %v14209_v33 = vcombine.low %v9247_v58, %v9251_v23  ;;  %v8908_v58 = vld [vmem:[#allocation19 + $0xb0] sm:$0xff] }
 0xa4f   :  { %12303 = vmatpush1.bf16.msra.mxu0 %v14297_v5  ;;  %12263 = vmatprep.subr.bf16.mxu1 %v14178_v45  ;;  %v14338_v4 = vcombine.high %v9375_v24, %v9379_v1  ;;  %v9255_v53 = vld [vmem:[#allocation19 + $0xb88] sm:$0xff]  ;;  %v14337_v5 = vcombine.low %v9375_v24, %v9379_v1  ;;  %v9032_v24 = vld [vmem:[#allocation19 + $0x490] sm:$0xff] }
 0xa50   :  { %12304 = vmatprep.subr.bf16.mxu0 %v14306_v0  ;;  %v9259_v38 = vld [vmem:[#allocation19 + $0xba8] sm:$0xff]  ;;  %v9036_v1 = vld [vmem:[#allocation19 + $0x4b0] sm:$0xff] }
 0xa51   :  { %v9383_v28 = vld [vmem:[#allocation19 + $0xf88] sm:$0xff]  ;;  %v14218_v45 = vcombine.high %v9255_v53, %v9259_v38 }
 0xa52   :  { %12264 = vmatpush1.bf16.msra.mxu1 %v14177_v57  ;;  %v9387_v39 = vld [vmem:[#allocation19 + $0xfa8] sm:$0xff]  ;;  %v14217_v57 = vcombine.low %v9255_v53, %v9259_v38  ;;  %v8912_v53 = vld [vmem:[#allocation19 + $0xd0] sm:$0xff] }
 0xa53   :  { %12305 = vmatpush1.bf16.msra.mxu0 %v14305_v62  ;;  %12265 = vmatprep.subr.bf16.mxu1 %v14186_v63  ;;  %v14346_v0 = vcombine.high %v9383_v28, %v9387_v39  ;;  %v9263_v30 = vld [vmem:[#allocation19 + $0xbc8] sm:$0xff]  ;;  %v14345_v62 = vcombine.low %v9383_v28, %v9387_v39  ;;  %v8916_v38 = vld [vmem:[#allocation19 + $0xf0] sm:$0xff] }
 0xa54   :  { %12306 = vmatprep.subr.bf16.mxu0 %v14314_v15  ;;  %v9267_v48 = vld [vmem:[#allocation19 + $0xbe8] sm:$0xff]  ;;  %v9040_v28 = vld [vmem:[#allocation19 + $0x4d0] sm:$0xff] }
 0xa55   :  { %v9391_v54 = vld [vmem:[#allocation19 + $0xfc8] sm:$0xff]  ;;  %v14226_v63 = vcombine.high %v9263_v30, %v9267_v48  ;;  %v9044_v39 = vld [vmem:[#allocation19 + $0x4f0] sm:$0xff] }
 0xa56   :  { %12266 = vmatpush1.bf16.msra.mxu1 %v14185_v27  ;;  %v9395_v26 = vld [vmem:[#allocation19 + $0xfe8] sm:$0xff]  ;;  %v14225_v27 = vcombine.low %v9263_v30, %v9267_v48  ;;  %v8920_v30 = vld [vmem:[#allocation19 + $0x110] sm:$0xff] }
 0xa57   :  { %12307 = vmatpush1.bf16.msra.mxu0 %v14313_v31  ;;  %12267 = vmatprep.subr.bf16.mxu1 %v14194_v40  ;;  %v14354_v15 = vcombine.high %v9391_v54, %v9395_v26  ;;  %v14353_v31 = vcombine.low %v9391_v54, %v9395_v26  ;;  %v13852_v40 = vcombine.high %v8888_v17, %v8892_v25  ;;  %v8924_v48 = vld [vmem:[#allocation19 + $0x130] sm:$0xff] }
 0xa58   :  { %12308 = vmatprep.subr.bf16.mxu0 %v14322_v13  ;;  %v13980_v13 = vcombine.high %v9016_v20, %v9020_v51  ;;  %v9048_v54 = vld [vmem:[#allocation19 + $0x510] sm:$0xff] }
 0xa59   :  { %v9052_v26 = vld [vmem:[#allocation19 + $0x530] sm:$0xff] }
 0xa5a   :  { %12268 = vmatpush1.bf16.msra.mxu1 %v14193_v10  ;;  %v9028_v10 = vld [vmem:[#allocation19 + $0x470] sm:$0xff] }
 0xa5b   :  { %12309 = vmatpush1.bf16.msra.mxu0 %v14321_v14  ;;  %12269 = vmatprep.subr.bf16.mxu1 %v14202_v19  ;;  %v13979_v14 = vcombine.low %v9016_v20, %v9020_v51  ;;  %v13860_v19 = vcombine.high %v8896_v29, %v8900_v9  ;;  %v13988_v23 = vcombine.high %v9024_v52, %v9028_v10  ;;  %v8928_v17 = vld [vmem:[#allocation19 + $0x150] sm:$0xff] }
 0xa5c   :  { %12310 = vmatprep.subr.bf16.mxu0 %v14330_v22  ;;  %v8904_v22 = vld [vmem:[#allocation19 + $0x90] sm:$0xff] }
 0xa5d   :  { %v8932_v25 = vld [vmem:[#allocation19 + $0x170] sm:$0xff] }
 0xa5e   :  { %12270 = vmatpush1.bf16.msra.mxu1 %v14201_v60  ;;  %v13859_v60 = vcombine.low %v8896_v29, %v8900_v9  ;;  %v9056_v20 = vld [vmem:[#allocation19 + $0x550] sm:$0xff] }
 0xa5f   :  { %12311 = vmatpush1.bf16.msra.mxu0 %v14329_v56  ;;  %12271 = vmatprep.subr.bf16.mxu1 %v14210_v32  ;;  %v13987_v56 = vcombine.low %v9024_v52, %v9028_v10  ;;  %v13868_v32 = vcombine.high %v8904_v22, %v8908_v58  ;;  %v9060_v51 = vld [vmem:[#allocation19 + $0x570] sm:$0xff]  ;;  %v13891_v10 = vcombine.low %v8928_v17, %v8932_v25 }
 0xa60   :  { %12312 = vmatprep.subr.bf16.mxu0 %v14338_v4  ;;  %v13996_v4 = vcombine.high %v9032_v24, %v9036_v1  ;;  %v8936_v29 = vld [vmem:[#allocation19 + $0x190] sm:$0xff] }
 0xa61   :  { %v8940_v9 = vld [vmem:[#allocation19 + $0x1b0] sm:$0xff] }
 0xa62   :  { %12272 = vmatpush1.bf16.msra.mxu1 %v14209_v33  ;;  %v13867_v33 = vcombine.low %v8904_v22, %v8908_v58  ;;  %v9068_v52 = vld [vmem:[#allocation19 + $0x5b0] sm:$0xff] }
 0xa63   :  { %12313 = vmatpush1.bf16.msra.mxu0 %v14337_v5  ;;  %12273 = vmatprep.subr.bf16.mxu1 %v14218_v45  ;;  %v13995_v5 = vcombine.low %v9032_v24, %v9036_v1  ;;  %v13876_v45 = vcombine.high %v8912_v53, %v8916_v38  ;;  %v8944_v58 = vld [vmem:[#allocation19 + $0x1d0] sm:$0xff] }
 0xa64   :  { %12314 = vmatprep.subr.bf16.mxu0 %v14346_v0  ;;  %v14004_v0 = vcombine.high %v9040_v28, %v9044_v39  ;;  %v9072_v24 = vld [vmem:[#allocation19 + $0x5d0] sm:$0xff] }
 0xa65   :  { %v9076_v1 = vld [vmem:[#allocation19 + $0x5f0] sm:$0xff] }
 0xa66   :  { %12274 = vmatpush1.bf16.msra.mxu1 %v14217_v57  ;;  %v13875_v57 = vcombine.low %v8912_v53, %v8916_v38  ;;  %v8952_v53 = vld [vmem:[#allocation19 + $0x210] sm:$0xff] }
 0xa67   :  { %12315 = vmatpush1.bf16.msra.mxu0 %v14345_v62  ;;  %12275 = vmatprep.subr.bf16.mxu1 %v14226_v63  ;;  %v14003_v62 = vcombine.low %v9040_v28, %v9044_v39  ;;  %v13884_v63 = vcombine.high %v8920_v30, %v8924_v48  ;;  %v8956_v38 = vld [vmem:[#allocation19 + $0x230] sm:$0xff] }
 0xa68   :  { %12316 = vmatprep.subr.bf16.mxu0 %v14354_v15  ;;  %v14012_v15 = vcombine.high %v9048_v54, %v9052_v26  ;;  %v9080_v28 = vld [vmem:[#allocation19 + $0x610] sm:$0xff] }
 0xa69   :  { %v9084_v39 = vld [vmem:[#allocation19 + $0x630] sm:$0xff] }
 0xa6a   :  { %12276 = vmatpush1.bf16.msra.mxu1 %v14225_v27  ;;  %v13883_v27 = vcombine.low %v8920_v30, %v8924_v48  ;;  %v8960_v30 = vld [vmem:[#allocation19 + $0x250] sm:$0xff] }
 0xa6b   :  { %12317 = vmatpush1.bf16.msra.mxu0 %v14353_v31  ;;  %12327 = vmatprep.subr.bf16.mxu1 %v13852_v40  ;;  %v14011_v31 = vcombine.low %v9048_v54, %v9052_v26  ;;  %v13892_v40 = vcombine.high %v8928_v17, %v8932_v25  ;;  %v8964_v48 = vld [vmem:[#allocation19 + $0x270] sm:$0xff] }
 0xa6c   :  { %12368 = vmatprep.subr.bf16.mxu0 %v13980_v13  ;;  %v14020_v13 = vcombine.high %v9056_v20, %v9060_v51  ;;  %v9088_v54 = vld [vmem:[#allocation19 + $0x650] sm:$0xff] }
 0xa6d   :  { %12278 = vmatmul.mubr.bf16.vlgmr.msra.gmra.mrb[48].mxu1 %v15876_v35  ;;  %v9092_v26 = vld [vmem:[#allocation19 + $0x670] sm:$0xff] }
 0xa6e   :  { %12319 = vmatmul.mubr.bf16.vlgmr.msra.gmra.mrb[52].mxu0 %v15880_v37  ;;  %12328 = vmatpush1.bf16.msra.mxu1 %v13851_v47  ;;  %v9064_v47 = vld [vmem:[#allocation19 + $0x590] sm:$0xff] }
 0xa6f   :  { %12359 = vmatprep.mubr.bf16.mxu1 %v15830_v49  ;;  %12369 = vmatpush1.bf16.msra.mxu0 %v13979_v14  ;;  %v14019_v14 = vcombine.low %v9056_v20, %v9060_v51  ;;  %v14028_v22 = vcombine.high %v9064_v47, %v9068_v52  ;;  %v8968_v17 = vld [vmem:[#allocation19 + $0x290] sm:$0xff] }
 0xa70   :  { %12400 = vmatprep.mubr.bf16.mxu0 %v15833_v6  ;;  %12329 = vmatprep.subr.bf16.mxu1 %v13860_v19  ;;  %v13900_v19 = vcombine.high %v8936_v29, %v8940_v9  ;;  %v8972_v25 = vld [vmem:[#allocation19 + $0x2b0] sm:$0xff] }
 0xa71   :  { %12370 = vmatprep.subr.bf16.mxu0 %v13988_v23  ;;  %v8948_v23 = vld [vmem:[#allocation19 + $0x1f0] sm:$0xff] }
 0xa72   :  { %12330 = vmatpush1.bf16.msra.mxu1 %v13859_v60  ;;  %v13899_v60 = vcombine.low %v8936_v29, %v8940_v9  ;;  %v9096_v20 = vld [vmem:[#allocation19 + $0x690] sm:$0xff] }
 0xa73   :  { %12371 = vmatpush1.bf16.msra.mxu0 %v13987_v56  ;;  %12331 = vmatprep.subr.bf16.mxu1 %v13868_v32  ;;  %v14027_v56 = vcombine.low %v9064_v47, %v9068_v52  ;;  %v13908_v32 = vcombine.high %v8944_v58, %v8948_v23  ;;  %v9100_v51 = vld [vmem:[#allocation19 + $0x6b0] sm:$0xff] }
 0xa74   :  { %12372 = vmatprep.subr.bf16.mxu0 %v13996_v4  ;;  %v14036_v4 = vcombine.high %v9072_v24, %v9076_v1  ;;  %v8976_v29 = vld [vmem:[#allocation19 + $0x2d0] sm:$0xff] }
 0xa75   :  { %v8980_v9 = vld [vmem:[#allocation19 + $0x2f0] sm:$0xff] }
 0xa76   :  { %12332 = vmatpush1.bf16.msra.mxu1 %v13867_v33  ;;  %v13907_v33 = vcombine.low %v8944_v58, %v8948_v23  ;;  %v9104_v47 = vld [vmem:[#allocation19 + $0x6d0] sm:$0xff] }
 0xa77   :  { %12373 = vmatpush1.bf16.msra.mxu0 %v13995_v5  ;;  %12333 = vmatprep.subr.bf16.mxu1 %v13876_v45  ;;  %v14035_v5 = vcombine.low %v9072_v24, %v9076_v1  ;;  %v13916_v45 = vcombine.high %v8952_v53, %v8956_v38  ;;  %v9108_v52 = vld [vmem:[#allocation19 + $0x6f0] sm:$0xff] }
 0xa78   :  { %12374 = vmatprep.subr.bf16.mxu0 %v14004_v0  ;;  %v14044_v0 = vcombine.high %v9080_v28, %v9084_v39  ;;  %v8984_v58 = vld [vmem:[#allocation19 + $0x310] sm:$0xff] }
 0xa79   :  { %v8988_v23 = vld [vmem:[#allocation19 + $0x330] sm:$0xff] }
 0xa7a   :  { %12334 = vmatpush1.bf16.msra.mxu1 %v13875_v57  ;;  %v13915_v57 = vcombine.low %v8952_v53, %v8956_v38  ;;  %v9112_v24 = vld [vmem:[#allocation19 + $0x710] sm:$0xff] }
 0xa7b   :  { %12375 = vmatpush1.bf16.msra.mxu0 %v14003_v62  ;;  %12335 = vmatprep.subr.bf16.mxu1 %v13884_v63  ;;  %v14043_v62 = vcombine.low %v9080_v28, %v9084_v39  ;;  %v13924_v63 = vcombine.high %v8960_v30, %v8964_v48  ;;  %v9116_v1 = vld [vmem:[#allocation19 + $0x730] sm:$0xff] }
 0xa7c   :  { %12376 = vmatprep.subr.bf16.mxu0 %v14012_v15  ;;  %v14052_v15 = vcombine.high %v9088_v54, %v9092_v26  ;;  %v8992_v53 = vld [vmem:[#allocation19 + $0x350] sm:$0xff] }
 0xa7d   :  { %v8996_v38 = vld [vmem:[#allocation19 + $0x370] sm:$0xff] }
 0xa7e   :  { %12336 = vmatpush1.bf16.msra.mxu1 %v13883_v27  ;;  %v13923_v27 = vcombine.low %v8960_v30, %v8964_v48  ;;  %v9120_v28 = vld [vmem:[#allocation19 + $0x750] sm:$0xff] }
 0xa7f   :  { %12377 = vmatpush1.bf16.msra.mxu0 %v14011_v31  ;;  %12337 = vmatprep.subr.bf16.mxu1 %v13892_v40  ;;  %v14051_v31 = vcombine.low %v9088_v54, %v9092_v26  ;;  %v13932_v40 = vcombine.high %v8968_v17, %v8972_v25  ;;  %v9124_v39 = vld [vmem:[#allocation19 + $0x770] sm:$0xff] }
 0xa80   :  { %12378 = vmatprep.subr.bf16.mxu0 %v14020_v13  ;;  %v14060_v13 = vcombine.high %v9096_v20, %v9100_v51  ;;  %v9000_v30 = vld [vmem:[#allocation19 + $0x390] sm:$0xff] }
 0xa81   :  { %v9004_v48 = vld [vmem:[#allocation19 + $0x3b0] sm:$0xff] }
 0xa82   :  { %12338 = vmatpush1.bf16.msra.mxu1 %v13891_v10  ;;  %v13931_v10 = vcombine.low %v8968_v17, %v8972_v25  ;;  %v9128_v54 = vld [vmem:[#allocation19 + $0x790] sm:$0xff] }
 0xa83   :  { %12379 = vmatpush1.bf16.msra.mxu0 %v14019_v14  ;;  %12339 = vmatprep.subr.bf16.mxu1 %v13900_v19  ;;  %v14059_v14 = vcombine.low %v9096_v20, %v9100_v51  ;;  %v13940_v19 = vcombine.high %v8976_v29, %v8980_v9  ;;  %v9132_v26 = vld [vmem:[#allocation19 + $0x7b0] sm:$0xff] }
 0xa84   :  { %12380 = vmatprep.subr.bf16.mxu0 %v14028_v22  ;;  %v14068_v22 = vcombine.high %v9104_v47, %v9108_v52  ;;  %v9008_v17 = vld [vmem:[#allocation19 + $0x3d0] sm:$0xff] }
 0xa85   :  { %v9012_v25 = vld [vmem:[#allocation19 + $0x3f0] sm:$0xff] }
 0xa86   :  { %12340 = vmatpush1.bf16.msra.mxu1 %v13899_v60  ;;  %v13939_v60 = vcombine.low %v8976_v29, %v8980_v9  ;;  %v9136_v20 = vld [vmem:[#allocation19 + $0x7d0] sm:$0xff] }
 0xa87   :  { %12381 = vmatpush1.bf16.msra.mxu0 %v14027_v56  ;;  %12341 = vmatprep.subr.bf16.mxu1 %v13908_v32  ;;  %v14067_v56 = vcombine.low %v9104_v47, %v9108_v52  ;;  %v13948_v32 = vcombine.high %v8984_v58, %v8988_v23  ;;  %v9140_v51 = vld [vmem:[#allocation19 + $0x7f0] sm:$0xff] }
 0xa88   :  { %12382 = vmatprep.subr.bf16.mxu0 %v14036_v4  ;;  %v14076_v4 = vcombine.high %v9112_v24, %v9116_v1  ;;  %v9144_v29 = vld [vmem:[#allocation19 + $0x810] sm:$0xff] }
 0xa89   :  { %v9148_v9 = vld [vmem:[#allocation19 + $0x830] sm:$0xff] }
 0xa8a   :  { %12342 = vmatpush1.bf16.msra.mxu1 %v13907_v33  ;;  %v13947_v33 = vcombine.low %v8984_v58, %v8988_v23  ;;  %v9272_v47 = vld [vmem:[#allocation19 + $0xc10] sm:$0xff] }
 0xa8b   :  { %12383 = vmatpush1.bf16.msra.mxu0 %v14035_v5  ;;  %12343 = vmatprep.subr.bf16.mxu1 %v13916_v45  ;;  %v14075_v5 = vcombine.low %v9112_v24, %v9116_v1  ;;  %v13956_v45 = vcombine.high %v8992_v53, %v8996_v38  ;;  %v9276_v52 = vld [vmem:[#allocation19 + $0xc30] sm:$0xff]  ;;  %v14107_v24 = vcombine.low %v9144_v29, %v9148_v9 }
 0xa8c   :  { %12384 = vmatprep.subr.bf16.mxu0 %v14044_v0  ;;  %v14084_v0 = vcombine.high %v9120_v28, %v9124_v39  ;;  %v9152_v58 = vld [vmem:[#allocation19 + $0x850] sm:$0xff] }
 0xa8d   :  { %v9156_v23 = vld [vmem:[#allocation19 + $0x870] sm:$0xff] }
 0xa8e   :  { %12344 = vmatpush1.bf16.msra.mxu1 %v13915_v57  ;;  %v13955_v57 = vcombine.low %v8992_v53, %v8996_v38  ;;  %v9280_v1 = vld [vmem:[#allocation19 + $0xc50] sm:$0xff] }
 0xa8f   :  { %12385 = vmatpush1.bf16.msra.mxu0 %v14043_v62  ;;  %12345 = vmatprep.subr.bf16.mxu1 %v13924_v63  ;;  %v14083_v62 = vcombine.low %v9120_v28, %v9124_v39  ;;  %v13964_v63 = vcombine.high %v9000_v30, %v9004_v48  ;;  %v9164_v53 = vld [vmem:[#allocation19 + $0x8b0] sm:$0xff] }
 0xa90   :  { %12386 = vmatprep.subr.bf16.mxu0 %v14052_v15  ;;  %v14092_v15 = vcombine.high %v9128_v54, %v9132_v26  ;;  %v9288_v28 = vld [vmem:[#allocation19 + $0xc90] sm:$0xff] }
 0xa91   :  { %v9292_v39 = vld [vmem:[#allocation19 + $0xcb0] sm:$0xff] }
 0xa92   :  { %12346 = vmatpush1.bf16.msra.mxu1 %v13923_v27  ;;  %v13963_v27 = vcombine.low %v9000_v30, %v9004_v48  ;;  %v9168_v30 = vld [vmem:[#allocation19 + $0x8d0] sm:$0xff] }
 0xa93   :  { %12387 = vmatpush1.bf16.msra.mxu0 %v14051_v31  ;;  %12347 = vmatprep.subr.bf16.mxu1 %v13932_v40  ;;  %v14091_v31 = vcombine.low %v9128_v54, %v9132_v26  ;;  %v13972_v40 = vcombine.high %v9008_v17, %v9012_v25  ;;  %v9172_v48 = vld [vmem:[#allocation19 + $0x8f0] sm:$0xff] }
 0xa94   :  { %12388 = vmatprep.subr.bf16.mxu0 %v14060_v13  ;;  %v14100_v13 = vcombine.high %v9136_v20, %v9140_v51  ;;  %v9296_v54 = vld [vmem:[#allocation19 + $0xcd0] sm:$0xff] }
 0xa95   :  { %v9300_v26 = vld [vmem:[#allocation19 + $0xcf0] sm:$0xff] }
 0xa96   :  { %12348 = vmatpush1.bf16.msra.mxu1 %v13931_v10  ;;  %v13971_v10 = vcombine.low %v9008_v17, %v9012_v25  ;;  %v9176_v17 = vld [vmem:[#allocation19 + $0x910] sm:$0xff] }
 0xa97   :  { %12389 = vmatpush1.bf16.msra.mxu0 %v14059_v14  ;;  %12349 = vmatprep.subr.bf16.mxu1 %v13940_v19  ;;  %v14099_v14 = vcombine.low %v9136_v20, %v9140_v51  ;;  %v14108_v19 = vcombine.high %v9144_v29, %v9148_v9  ;;  %v9180_v25 = vld [vmem:[#allocation19 + $0x930] sm:$0xff] }
 0xa98   :  { %12390 = vmatprep.subr.bf16.mxu0 %v14068_v22  ;;  %v14236_v22 = vcombine.high %v9272_v47, %v9276_v52  ;;  %v9304_v20 = vld [vmem:[#allocation19 + $0xd10] sm:$0xff] }
 0xa99   :  { %v9308_v51 = vld [vmem:[#allocation19 + $0xd30] sm:$0xff] }
 0xa9a   :  { %12350 = vmatpush1.bf16.msra.mxu1 %v13939_v60  ;;  %v9284_v60 = vld [vmem:[#allocation19 + $0xc70] sm:$0xff] }
 0xa9b   :  { %12391 = vmatpush1.bf16.msra.mxu0 %v14067_v56  ;;  %12351 = vmatprep.subr.bf16.mxu1 %v13948_v32  ;;  %v14235_v56 = vcombine.low %v9272_v47, %v9276_v52  ;;  %v14116_v32 = vcombine.high %v9152_v58, %v9156_v23  ;;  %v14244_v38 = vcombine.high %v9280_v1, %v9284_v60  ;;  %v9184_v29 = vld [vmem:[#allocation19 + $0x950] sm:$0xff] }
 0xa9c   :  { %12392 = vmatprep.subr.bf16.mxu0 %v14076_v4  ;;  %v9160_v4 = vld [vmem:[#allocation19 + $0x890] sm:$0xff] }
 0xa9d   :  { %v9188_v9 = vld [vmem:[#allocation19 + $0x970] sm:$0xff] }
 0xa9e   :  { %12352 = vmatpush1.bf16.msra.mxu1 %v13947_v33  ;;  %v14115_v33 = vcombine.low %v9152_v58, %v9156_v23  ;;  %v9312_v47 = vld [vmem:[#allocation19 + $0xd50] sm:$0xff] }
 0xa9f   :  { %12393 = vmatpush1.bf16.msra.mxu0 %v14075_v5  ;;  %12353 = vmatprep.subr.bf16.mxu1 %v13956_v45  ;;  %v14243_v5 = vcombine.low %v9280_v1, %v9284_v60  ;;  %v14124_v45 = vcombine.high %v9160_v4, %v9164_v53  ;;  %v9316_v52 = vld [vmem:[#allocation19 + $0xd70] sm:$0xff]  ;;  %v14147_v60 = vcombine.low %v9184_v29, %v9188_v9 }
 0xaa0   :  { %12394 = vmatprep.subr.bf16.mxu0 %v14084_v0  ;;  %v14252_v0 = vcombine.high %v9288_v28, %v9292_v39  ;;  %v9192_v58 = vld [vmem:[#allocation19 + $0x990] sm:$0xff] }
 0xaa1   :  { %v9196_v23 = vld [vmem:[#allocation19 + $0x9b0] sm:$0xff] }
 0xaa2   :  { %12354 = vmatpush1.bf16.msra.mxu1 %v13955_v57  ;;  %v14123_v57 = vcombine.low %v9160_v4, %v9164_v53  ;;  %v9324_v1 = vld [vmem:[#allocation19 + $0xdb0] sm:$0xff] }
 0xaa3   :  { %12395 = vmatpush1.bf16.msra.mxu0 %v14083_v62  ;;  %12355 = vmatprep.subr.bf16.mxu1 %v13964_v63  ;;  %v14251_v62 = vcombine.low %v9288_v28, %v9292_v39  ;;  %v14132_v63 = vcombine.high %v9168_v30, %v9172_v48  ;;  %v9204_v28 = vld [vmem:[#allocation19 + $0x9f0] sm:$0xff] }
 0xaa4   :  { %12396 = vmatprep.subr.bf16.mxu0 %v14092_v15  ;;  %v14260_v15 = vcombine.high %v9296_v54, %v9300_v26 }
 0xaa6   :  { %12356 = vmatpush1.bf16.msra.mxu1 %v13963_v27  ;;  %v14131_v27 = vcombine.low %v9168_v30, %v9172_v48 }
 0xaa7   :  { %12397 = vmatpush1.bf16.msra.mxu0 %v14091_v31  ;;  %12357 = vmatprep.subr.bf16.mxu1 %v13972_v40  ;;  %v14259_v31 = vcombine.low %v9296_v54, %v9300_v26  ;;  %v14140_v40 = vcombine.high %v9176_v17, %v9180_v25  ;;  %v14155_v26 = vcombine.low %v9192_v58, %v9196_v23 }
 0xaa8   :  { %12398 = vmatprep.subr.bf16.mxu0 %v14100_v13  ;;  %v14268_v13 = vcombine.high %v9304_v20, %v9308_v51 }
 0xaaa   :  { %12358 = vmatpush1.bf16.msra.mxu1 %v13971_v10  ;;  %v14139_v10 = vcombine.low %v9176_v17, %v9180_v25 }
 0xaab   :  { %12399 = vmatpush1.bf16.msra.mxu0 %v14099_v14  ;;  %12409 = vmatprep.subr.bf16.mxu1 %v14108_v19  ;;  %v14267_v14 = vcombine.low %v9304_v20, %v9308_v51  ;;  %v14148_v19 = vcombine.high %v9184_v29, %v9188_v9  ;;  %v9208_v51 = vld [vmem:[#allocation19 + $0xa10] sm:$0xff] }
 0xaac   :  { %12450 = vmatprep.subr.bf16.mxu0 %v14236_v22  ;;  %v14276_v22 = vcombine.high %v9312_v47, %v9316_v52 }
 0xaad   :  { %12360 = vmatmul.mubr.bf16.vlgmr.msra.gmra.mrb[52].mxu1 %v15844_v12 }
 0xaae   :  { %12401 = vmatmul.mubr.bf16.vlgmr.msra.gmra.mrb[56].mxu0 %v15846_v8  ;;  %12410 = vmatpush1.bf16.msra.mxu1 %v14107_v24  ;;  %v9320_v24 = vld [vmem:[#allocation19 + $0xd90] sm:$0xff] }
 0xaaf   :  { %12441 = vmatprep.mubr.bf16.mxu1 %v15874_v46  ;;  %12451 = vmatpush1.bf16.msra.mxu0 %v14235_v56  ;;  %v14275_v56 = vcombine.low %v9312_v47, %v9316_v52  ;;  %v14284_v53 = vcombine.high %v9320_v24, %v9324_v1 }
 0xab0   :  { %12482 = vmatprep.mubr.bf16.mxu0 %v15878_v36  ;;  %12411 = vmatprep.subr.bf16.mxu1 %v14116_v32  ;;  %v14156_v32 = vcombine.high %v9192_v58, %v9196_v23 }
 0xab1   :  { %12452 = vmatprep.subr.bf16.mxu0 %v14244_v38  ;;  %v9200_v38 = vld [vmem:[#allocation19 + $0x9d0] sm:$0xff] }
 0xab2   :  { %12412 = vmatpush1.bf16.msra.mxu1 %v14115_v33  ;;  %v14164_v17 = vcombine.high %v9200_v38, %v9204_v28  ;;  %v14163_v29 = vcombine.low %v9200_v38, %v9204_v28  ;;  %v9232_v28 = vld [vmem:[#allocation19 + $0xad0] sm:$0xff] }
 0xab3   :  { %12453 = vmatpush1.bf16.msra.mxu0 %v14243_v5  ;;  %12413 = vmatprep.subr.bf16.mxu1 %v14124_v45  ;;  %v9328_v45 = vld [vmem:[#allocation19 + $0xdd0] sm:$0xff] }
 0xab4   :  { %12454 = vmatprep.subr.bf16.mxu0 %v14252_v0  ;;  %v9332_v0 = vld [vmem:[#allocation19 + $0xdf0] sm:$0xff] }
 0xab5   :  { %v14291_v9 = vcombine.low %v9328_v45, %v9332_v0 }
 0xab6   :  { %12414 = vmatpush1.bf16.msra.mxu1 %v14123_v57 }
 0xab7   :  { %12455 = vmatpush1.bf16.msra.mxu0 %v14251_v62  ;;  %12415 = vmatprep.subr.bf16.mxu1 %v14132_v63 }
 0xab8   :  { %12456 = vmatprep.subr.bf16.mxu0 %v14260_v15  ;;  %v14283_v15 = vcombine.low %v9320_v24, %v9324_v1  ;;  %v9224_v24 = vld [vmem:[#allocation19 + $0xa90] sm:$0xff] }
 0xab9   :  { %v9228_v1 = vld [vmem:[#allocation19 + $0xab0] sm:$0xff] }
 0xaba   :  { %12416 = vmatpush1.bf16.msra.mxu1 %v14131_v27  ;;  %v9212_v27 = vld [vmem:[#allocation19 + $0xa30] sm:$0xff] }
 0xabb   :  { %12457 = vmatpush1.bf16.msra.mxu0 %v14259_v31  ;;  %12417 = vmatprep.subr.bf16.mxu1 %v14140_v40  ;;  %v9340_v40 = vld [vmem:[#allocation19 + $0xe30] sm:$0xff]  ;;  %v14172_v47 = vcombine.high %v9208_v51, %v9212_v27 }
 0xabc   :  { %12458 = vmatprep.subr.bf16.mxu0 %v14268_v13 }
 0xabe   :  { %12418 = vmatpush1.bf16.msra.mxu1 %v14139_v10  ;;  %v9216_v10 = vld [vmem:[#allocation19 + $0xa50] sm:$0xff] }
 0xabf   :  { %12459 = vmatpush1.bf16.msra.mxu0 %v14267_v14  ;;  %12419 = vmatprep.subr.bf16.mxu1 %v14148_v19  ;;  %v9220_v14 = vld [vmem:[#allocation19 + $0xa70] sm:$0xff] }
 0xac0   :  { %v12115_v4 = vpop.f32.mrb[40].mxu1  ;;  %12460 = vmatprep.subr.bf16.mxu0 %v14276_v22  ;;  %v9344_v19 = vld [vmem:[#allocation19 + $0xe50] sm:$0xff] }
 0xac1   :  { %v12116_v39 = vadd.f32 %v12115_v4, %v15896_v7  ;;  %v12156_v33 = vpop.f32.mrb[44].mxu0  ;;  %v12117_v5 = vpop.f32.mrb[41].mxu1  ;;  %v14292_v7 = vcombine.high %v9328_v45, %v9332_v0  ;;  %v9348_v22 = vld [vmem:[#allocation19 + $0xe70] sm:$0xff]  ;;  %v14187_v45 = vcombine.low %v9224_v24, %v9228_v1 }
 0xac2   :  { %v12118_v30 = vadd.f32 %v12117_v5, %v15898_v11  ;;  %v12158_v48 = vpop.f32.mrb[45].mxu0  ;;  %12420 = vmatpush1.bf16.msra.mxu1 %v14147_v60  ;;  %v12119_v54 = vpop.f32.mrb[42].mxu1  ;;  %v9336_v11 = vld [vmem:[#allocation19 + $0xe10] sm:$0xff]  ;;  %v14308_v23 = vcombine.high %v9344_v19, %v9348_v22  ;;  %v14307_v4 = vcombine.low %v9344_v19, %v9348_v22 }
 0xac3   :  { %v12157_v57 = vadd.f32 %v12156_v33, %v12116_v39  ;;  %12461 = vmatpush1.bf16.msra.mxu0 %v14275_v56  ;;  %v12160_v62 = vpop.f32.mrb[46].mxu0  ;;  %v12120_v63 = vpop.f32.mrb[43].mxu1  ;;  %12421 = vmatprep.subr.bf16.mxu1 %v14156_v32  ;;  %v14300_v52 = vcombine.high %v9336_v11, %v9340_v40  ;;  %v14299_v58 = vcombine.low %v9336_v11, %v9340_v40  ;;  %v9352_v60 = vld [vmem:[#allocation19 + $0xe90] sm:$0xff] }
 0xac4   :  { %v12159_v25 = vadd.f32 %v12158_v48, %v12118_v30  ;;  %v12161_v20 = vpop.f32.mrb[47].mxu0  ;;  %12462 = vmatprep.subr.bf16.mxu0 %v14284_v53  ;;  %v9356_v56 = vld [vmem:[#allocation19 + $0xeb0] sm:$0xff]  ;;  %v14179_v32 = vcombine.low %v9216_v10, %v9220_v14  ;;  %v14188_v53 = vcombine.high %v9224_v24, %v9228_v1 }
 0xac5   :  { %v12655_v31 = vadd.f32 %v15719_v50, %v12157_v57  ;;  %v14171_v50 = vcombine.low %v9208_v51, %v9212_v27  ;;  %v14316_v38 = vcombine.high %v9352_v60, %v9356_v56  ;;  %v9236_v39 = vld [vmem:[#allocation19 + $0xaf0] sm:$0xff]  ;;  %v14315_v0 = vcombine.low %v9352_v60, %v9356_v56 }
 0xac6   :  { %v12656_v13 = vadd.f32 %v15721_v42, %v12159_v25  ;;  %12422 = vmatpush1.bf16.msra.mxu1 %v14155_v26  ;;  %v14180_v42 = vcombine.high %v9216_v10, %v9220_v14  ;;  %v9360_v33 = vld [vmem:[#allocation19 + $0xed0] sm:$0xff]  ;;  %v14196_v30 = vcombine.high %v9232_v28, %v9236_v39  ;;  %v14195_v63 = vcombine.low %v9232_v28, %v9236_v39 }
 0xac7   :  { %12663 = vst [vmem:[#allocation20] sm:$0xff] %v12655_v31  ;;  %12463 = vmatpush1.bf16.msra.mxu0 %v14283_v15  ;;  %12423 = vmatprep.subr.bf16.mxu1 %v14164_v17  ;;  %v9364_v5 = vld [vmem:[#allocation19 + $0xef0] sm:$0xff] }
 0xac8   :  { %12664 = vst [vmem:[#allocation20 + $0x8] sm:$0xff] %v12656_v13  ;;  %12464 = vmatprep.subr.bf16.mxu0 %v14292_v7  ;;  %v14324_v48 = vcombine.high %v9360_v33, %v9364_v5  ;;  %v9240_v54 = vld [vmem:[#allocation19 + $0xb10] sm:$0xff]  ;;  %v14323_v15 = vcombine.low %v9360_v33, %v9364_v5 }
 0xac9   :  { %v9244_v26 = vld [vmem:[#allocation19 + $0xb30] sm:$0xff] }
 0xaca   :  { %12424 = vmatpush1.bf16.msra.mxu1 %v14163_v29  ;;  %v9368_v57 = vld [vmem:[#allocation19 + $0xf10] sm:$0xff]  ;;  %v14204_v17 = vcombine.high %v9240_v54, %v9244_v26  ;;  %v14203_v31 = vcombine.low %v9240_v54, %v9244_v26  ;;  %v9029_v54 = vld [vmem:[#allocation19 + $0x478] sm:$0xff] }
 0xacb   :  { %12465 = vmatpush1.bf16.msra.mxu0 %v14291_v9  ;;  %12425 = vmatprep.subr.bf16.mxu1 %v14172_v47  ;;  %v9372_v62 = vld [vmem:[#allocation19 + $0xf30] sm:$0xff] }
 0xacc   :  { %12466 = vmatprep.subr.bf16.mxu0 %v14300_v52  ;;  %v14332_v25 = vcombine.high %v9368_v57, %v9372_v62  ;;  %v9248_v20 = vld [vmem:[#allocation19 + $0xb50] sm:$0xff]  ;;  %v14331_v11 = vcombine.low %v9368_v57, %v9372_v62  ;;  %v8905_v62 = vld [vmem:[#allocation19 + $0x98] sm:$0xff] }
 0xacd   :  { %v9252_v7 = vld [vmem:[#allocation19 + $0xb70] sm:$0xff] }
 0xace   :  { %12426 = vmatpush1.bf16.msra.mxu1 %v14171_v50  ;;  %v9376_v51 = vld [vmem:[#allocation19 + $0xf50] sm:$0xff]  ;;  %v14212_v40 = vcombine.high %v9248_v20, %v9252_v7  ;;  %v14211_v10 = vcombine.low %v9248_v20, %v9252_v7 }
 0xacf   :  { %12467 = vmatpush1.bf16.msra.mxu0 %v14299_v58  ;;  %12427 = vmatprep.subr.bf16.mxu1 %v14180_v42  ;;  %v9380_v27 = vld [vmem:[#allocation19 + $0xf70] sm:$0xff] }
 0xad0   :  { %12468 = vmatprep.subr.bf16.mxu0 %v14308_v23  ;;  %v14340_v13 = vcombine.high %v9376_v51, %v9380_v27  ;;  %v9256_v29 = vld [vmem:[#allocation19 + $0xb90] sm:$0xff]  ;;  %v14339_v14 = vcombine.low %v9376_v51, %v9380_v27 }
 0xad1   :  { %v9260_v9 = vld [vmem:[#allocation19 + $0xbb0] sm:$0xff] }
 0xad2   :  { %12428 = vmatpush1.bf16.msra.mxu1 %v14179_v32  ;;  %v9384_v47 = vld [vmem:[#allocation19 + $0xf90] sm:$0xff]  ;;  %v14220_v19 = vcombine.high %v9256_v29, %v9260_v9  ;;  %v14219_v24 = vcombine.low %v9256_v29, %v9260_v9  ;;  %v8889_v32 = vld [vmem:[#allocation19 + $0x18] sm:$0xff] }
 0xad3   :  { %12469 = vmatpush1.bf16.msra.mxu0 %v14307_v4  ;;  %12429 = vmatprep.subr.bf16.mxu1 %v14188_v53  ;;  %v9388_v52 = vld [vmem:[#allocation19 + $0xfb0] sm:$0xff]  ;;  %v8893_v4 = vld [vmem:[#allocation19 + $0x38] sm:$0xff] }
 0xad4   :  { %12470 = vmatprep.subr.bf16.mxu0 %v14316_v38  ;;  %v14348_v22 = vcombine.high %v9384_v47, %v9388_v52  ;;  %v9264_v50 = vld [vmem:[#allocation19 + $0xbd0] sm:$0xff]  ;;  %v14347_v1 = vcombine.low %v9384_v47, %v9388_v52  ;;  %v9017_v53 = vld [vmem:[#allocation19 + $0x418] sm:$0xff]  ;;  %v13854_v33 = vcombine.high %v8889_v32, %v8893_v4 }
 0xad5   :  { %v9268_v58 = vld [vmem:[#allocation19 + $0xbf0] sm:$0xff]  ;;  %v9021_v38 = vld [vmem:[#allocation19 + $0x438] sm:$0xff] }
 0xad6   :  { %12430 = vmatpush1.bf16.msra.mxu1 %v14187_v45  ;;  %v9392_v42 = vld [vmem:[#allocation19 + $0xfd0] sm:$0xff]  ;;  %v14228_v60 = vcombine.high %v9264_v50, %v9268_v58  ;;  %v14227_v28 = vcombine.low %v9264_v50, %v9268_v58  ;;  %v13982_v5 = vcombine.high %v9017_v53, %v9021_v38  ;;  %v8897_v45 = vld [vmem:[#allocation19 + $0x58] sm:$0xff]  ;;  %v13981_v26 = vcombine.low %v9017_v53, %v9021_v38 }
 0xad7   :  { %12471 = vmatpush1.bf16.msra.mxu0 %v14315_v0  ;;  %12431 = vmatprep.subr.bf16.mxu1 %v14196_v30  ;;  %v9396_v23 = vld [vmem:[#allocation19 + $0xff0] sm:$0xff]  ;;  %v8901_v0 = vld [vmem:[#allocation19 + $0x78] sm:$0xff]  ;;  %v13853_v30 = vcombine.low %v8889_v32, %v8893_v4 }
 0xad8   :  { %12472 = vmatprep.subr.bf16.mxu0 %v14324_v48  ;;  %v14356_v56 = vcombine.high %v9392_v42, %v9396_v23  ;;  %v14355_v39 = vcombine.low %v9392_v42, %v9396_v23  ;;  %v9025_v48 = vld [vmem:[#allocation19 + $0x458] sm:$0xff]  ;;  %v13862_v57 = vcombine.high %v8897_v45, %v8901_v0  ;;  %v13861_v20 = vcombine.low %v8897_v45, %v8901_v0 }
 0xad9   :  { %v13989_v7 = vcombine.low %v9025_v48, %v9029_v54  ;;  %v8921_v52 = vld [vmem:[#allocation19 + $0x118] sm:$0xff] }
 0xada   :  { %12432 = vmatpush1.bf16.msra.mxu1 %v14195_v63  ;;  %v8909_v63 = vld [vmem:[#allocation19 + $0xb8] sm:$0xff] }
 0xadb   :  { %12473 = vmatpush1.bf16.msra.mxu0 %v14323_v15  ;;  %12433 = vmatprep.subr.bf16.mxu1 %v14204_v17  ;;  %v13990_v15 = vcombine.high %v9025_v48, %v9029_v54  ;;  %v9033_v17 = vld [vmem:[#allocation19 + $0x498] sm:$0xff]  ;;  %v13870_v51 = vcombine.high %v8905_v62, %v8909_v63  ;;  %v13869_v29 = vcombine.low %v8905_v62, %v8909_v63 }
 0xadc   :  { %12474 = vmatprep.subr.bf16.mxu0 %v14332_v25  ;;  %v9037_v25 = vld [vmem:[#allocation19 + $0x4b8] sm:$0xff] }
 0xadd   :  { %v13998_v27 = vcombine.high %v9033_v17, %v9037_v25  ;;  %v13997_v9 = vcombine.low %v9033_v17, %v9037_v25  ;;  %v8929_v42 = vld [vmem:[#allocation19 + $0x158] sm:$0xff] }
 0xade   :  { %12434 = vmatpush1.bf16.msra.mxu1 %v14203_v31  ;;  %v8913_v31 = vld [vmem:[#allocation19 + $0xd8] sm:$0xff] }
 0xadf   :  { %12475 = vmatpush1.bf16.msra.mxu0 %v14331_v11  ;;  %12435 = vmatprep.subr.bf16.mxu1 %v14212_v40  ;;  %v8917_v11 = vld [vmem:[#allocation19 + $0xf8] sm:$0xff] }
 0xae0   :  { %12476 = vmatprep.subr.bf16.mxu0 %v14340_v13  ;;  %v9041_v40 = vld [vmem:[#allocation19 + $0x4d8] sm:$0xff]  ;;  %v13878_v47 = vcombine.high %v8913_v31, %v8917_v11 }
 0xae1   :  { %v9045_v13 = vld [vmem:[#allocation19 + $0x4f8] sm:$0xff] }
 0xae2   :  { %12436 = vmatpush1.bf16.msra.mxu1 %v14211_v10  ;;  %v8925_v10 = vld [vmem:[#allocation19 + $0x138] sm:$0xff] }
 0xae3   :  { %12477 = vmatpush1.bf16.msra.mxu0 %v14339_v14  ;;  %12437 = vmatprep.subr.bf16.mxu1 %v14220_v19  ;;  %v9049_v14 = vld [vmem:[#allocation19 + $0x518] sm:$0xff]  ;;  %v13886_v50 = vcombine.high %v8921_v52, %v8925_v10 }
 0xae4   :  { %12478 = vmatprep.subr.bf16.mxu0 %v14348_v22  ;;  %v9053_v19 = vld [vmem:[#allocation19 + $0x538] sm:$0xff]  ;;  %v14005_v22 = vcombine.low %v9041_v40, %v9045_v13 }
 0xae5   :  { %v14014_v58 = vcombine.high %v9049_v14, %v9053_v19  ;;  %v8933_v23 = vld [vmem:[#allocation19 + $0x178] sm:$0xff] }
 0xae6   :  { %12438 = vmatpush1.bf16.msra.mxu1 %v14219_v24  ;;  %v9057_v24 = vld [vmem:[#allocation19 + $0x558] sm:$0xff]  ;;  %v13894_v32 = vcombine.high %v8929_v42, %v8933_v23  ;;  %v13893_v0 = vcombine.low %v8929_v42, %v8933_v23 }
 0xae7   :  { %12479 = vmatpush1.bf16.msra.mxu0 %v14347_v1  ;;  %12439 = vmatprep.subr.bf16.mxu1 %v14228_v60  ;;  %v9061_v1 = vld [vmem:[#allocation19 + $0x578] sm:$0xff]  ;;  %v13885_v60 = vcombine.low %v8921_v52, %v8925_v10 }
 0xae8   :  { %12480 = vmatprep.subr.bf16.mxu0 %v14356_v56  ;;  %v14013_v56 = vcombine.low %v9049_v14, %v9053_v19  ;;  %v14022_v4 = vcombine.high %v9057_v24, %v9061_v1  ;;  %v8937_v53 = vld [vmem:[#allocation19 + $0x198] sm:$0xff] }
 0xae9   :  { %v8941_v38 = vld [vmem:[#allocation19 + $0x1b8] sm:$0xff] }
 0xaea   :  { %12440 = vmatpush1.bf16.msra.mxu1 %v14227_v28  ;;  %v15920_v28 = vld [vmem:[#allocation5 + $0x22] sm:$0xff]  ;;  %v13902_v48 = vcombine.high %v8937_v53, %v8941_v38  ;;  %v8949_v62 = vld [vmem:[#allocation19 + $0x1f8] sm:$0xff] }
 0xaeb   :  { %12481 = vmatpush1.bf16.msra.mxu0 %v14355_v39  ;;  %12491 = vmatprep.subr.bf16.mxu1 %v13854_v33  ;;  %v9410_v39 = vrot.slane %v15920_v28, %v15629_v16  ;;  %v9065_v33 = vld [vmem:[#allocation19 + $0x598] sm:$0xff]  ;;  %v9414_v45 = vrot.slane %v15920_v28, %v15609_v61  ;;  %v13901_v61 = vcombine.low %v8937_v53, %v8941_v38 }
 0xaec   :  { %12532 = vmatprep.subr.bf16.mxu0 %v13982_v5  ;;  %v9069_v5 = vld [vmem:[#allocation19 + $0x5b8] sm:$0xff] }
 0xaed   :  { %12442 = vmatmul.mubr.bf16.vlgmr.msra.gmra.mrb[56].mxu1 %v15876_v35  ;;  %v9073_v16 = vld [vmem:[#allocation19 + $0x5d8] sm:$0xff] }
 0xaee   :  { %12483 = vmatmul.mubr.bf16.vlgmr.msra.gmra.mrb[60].mxu0 %v15880_v37  ;;  %12492 = vmatpush1.bf16.msra.mxu1 %v13853_v30  ;;  %v14021_v30 = vcombine.low %v9057_v24, %v9061_v1  ;;  %v9077_v25 = vld [vmem:[#allocation19 + $0x5f8] sm:$0xff] }
 0xaef   :  { %12523 = vmatprep.mubr.bf16.mxu1 %v15830_v49  ;;  %12533 = vmatpush1.bf16.msra.mxu0 %v13981_v26  ;;  %v14006_v49 = vcombine.high %v9041_v40, %v9045_v13  ;;  %v14030_v26 = vcombine.high %v9065_v33, %v9069_v5  ;;  %v14029_v40 = vcombine.low %v9065_v33, %v9069_v5  ;;  %v8957_v52 = vld [vmem:[#allocation19 + $0x238] sm:$0xff] }
 0xaf0   :  { %12564 = vmatprep.mubr.bf16.mxu0 %v15833_v6  ;;  %12493 = vmatprep.subr.bf16.mxu1 %v13862_v57  ;;  %v13877_v6 = vcombine.low %v8913_v31, %v8917_v11  ;;  %v8945_v57 = vld [vmem:[#allocation19 + $0x1d8] sm:$0xff] }
 0xaf1   :  { %12534 = vmatprep.subr.bf16.mxu0 %v13990_v15  ;;  %v13910_v13 = vcombine.high %v8945_v57, %v8949_v62  ;;  %v9081_v10 = vld [vmem:[#allocation19 + $0x618] sm:$0xff]  ;;  %v13909_v19 = vcombine.low %v8945_v57, %v8949_v62 }
 0xaf2   :  { %12494 = vmatpush1.bf16.msra.mxu1 %v13861_v20  ;;  %v9085_v14 = vld [vmem:[#allocation19 + $0x638] sm:$0xff] }
 0xaf3   :  { %12535 = vmatpush1.bf16.msra.mxu0 %v13989_v7  ;;  %12495 = vmatprep.subr.bf16.mxu1 %v13870_v51  ;;  %v8965_v42 = vld [vmem:[#allocation19 + $0x278] sm:$0xff] }
 0xaf4   :  { %12536 = vmatprep.subr.bf16.mxu0 %v13998_v27  ;;  %v9089_v23 = vld [vmem:[#allocation19 + $0x658] sm:$0xff] }
 0xaf5   :  { %v9093_v24 = vld [vmem:[#allocation19 + $0x678] sm:$0xff] }
 0xaf6   :  { %12496 = vmatpush1.bf16.msra.mxu1 %v13869_v29  ;;  %v8973_v53 = vld [vmem:[#allocation19 + $0x2b8] sm:$0xff]  ;;  %v14053_v5 = vcombine.low %v9089_v23, %v9093_v24 }
 0xaf7   :  { %12537 = vmatpush1.bf16.msra.mxu0 %v13997_v9  ;;  %12497 = vmatprep.subr.bf16.mxu1 %v13878_v47  ;;  %v14038_v47 = vcombine.high %v9073_v16, %v9077_v25  ;;  %v9097_v38 = vld [vmem:[#allocation19 + $0x698] sm:$0xff] }
 0xaf8   :  { %12538 = vmatprep.subr.bf16.mxu0 %v14006_v49  ;;  %v8953_v49 = vld [vmem:[#allocation19 + $0x218] sm:$0xff] }
 0xaf9   :  { %v13917_v1 = vcombine.low %v8953_v49, %v8957_v52 }
 0xafa   :  { %12498 = vmatpush1.bf16.msra.mxu1 %v13877_v6  ;;  %v14037_v6 = vcombine.low %v9073_v16, %v9077_v25  ;;  %v8989_v16 = vld [vmem:[#allocation19 + $0x338] sm:$0xff] }
 0xafb   :  { %12539 = vmatpush1.bf16.msra.mxu0 %v14005_v22  ;;  %12499 = vmatprep.subr.bf16.mxu1 %v13886_v50  ;;  %v13918_v22 = vcombine.high %v8953_v49, %v8957_v52  ;;  %v14046_v50 = vcombine.high %v9081_v10, %v9085_v14  ;;  %v9113_v25 = vld [vmem:[#allocation19 + $0x718] sm:$0xff] }
 0xafc   :  { %12540 = vmatprep.subr.bf16.mxu0 %v14014_v58  ;;  %v8961_v58 = vld [vmem:[#allocation19 + $0x258] sm:$0xff] }
 0xafd   :  { %v13925_v33 = vcombine.low %v8961_v58, %v8965_v42 }
 0xafe   :  { %12500 = vmatpush1.bf16.msra.mxu1 %v13885_v60  ;;  %v14045_v60 = vcombine.low %v9081_v10, %v9085_v14  ;;  %v9001_v14 = vld [vmem:[#allocation19 + $0x398] sm:$0xff] }
 0xaff   :  { %12541 = vmatpush1.bf16.msra.mxu0 %v14013_v56  ;;  %12501 = vmatprep.subr.bf16.mxu1 %v13894_v32  ;;  %v13926_v56 = vcombine.high %v8961_v58, %v8965_v42  ;;  %v14054_v32 = vcombine.high %v9089_v23, %v9093_v24  ;;  %v9009_v24 = vld [vmem:[#allocation19 + $0x3d8] sm:$0xff] }
 0xb00   :  { %v12197_v54 = vpop.f32.mrb[44].mxu1  ;;  %12542 = vmatprep.subr.bf16.mxu0 %v14022_v4  ;;  %v8969_v4 = vld [vmem:[#allocation19 + $0x298] sm:$0xff] }
 0xb01   :  { %v12198_v63 = vadd.f32 %v12197_v54, %v9410_v39  ;;  %v12238_v15 = vpop.f32.mrb[48].mxu0  ;;  %v12199_v17 = vpop.f32.mrb[45].mxu1  ;;  %v9101_v39 = vld [vmem:[#allocation19 + $0x6b8] sm:$0xff]  ;;  %v13933_v57 = vcombine.low %v8969_v4, %v8973_v53 }
 0xb02   :  { %v12200_v20 = vadd.f32 %v12199_v17, %v9414_v45  ;;  %v12240_v7 = vpop.f32.mrb[49].mxu0  ;;  %v12201_v51 = vpop.f32.mrb[46].mxu1  ;;  %12502 = vmatpush1.bf16.msra.mxu1 %v13893_v0  ;;  %v13934_v45 = vcombine.high %v8969_v4, %v8973_v53  ;;  %v14062_v0 = vcombine.high %v9097_v38, %v9101_v39  ;;  %v9105_v54 = vld [vmem:[#allocation19 + $0x6d8] sm:$0xff]  ;;  %v14061_v62 = vcombine.low %v9097_v38, %v9101_v39 }
 0xb03   :  { %v15926_v27 = vadd.f32 %v12238_v15, %v12198_v63  ;;  %v12242_v31 = vpop.f32.mrb[50].mxu0  ;;  %12543 = vmatpush1.bf16.msra.mxu0 %v14021_v30  ;;  %v12202_v11 = vpop.f32.mrb[47].mxu1  ;;  %12503 = vmatprep.subr.bf16.mxu1 %v13902_v48  ;;  %v8977_v30 = vld [vmem:[#allocation19 + $0x2d8] sm:$0xff] }
 0xb04   :  { %v15928_v29 = vadd.f32 %v12240_v7, %v12200_v20  ;;  %v12243_v9 = vpop.f32.mrb[51].mxu0  ;;  %12544 = vmatprep.subr.bf16.mxu0 %v14030_v26  ;;  %v8981_v48 = vld [vmem:[#allocation19 + $0x2f8] sm:$0xff] }
 0xb05   :  { %v9109_v26 = vld [vmem:[#allocation19 + $0x6f8] sm:$0xff]  ;;  %v13942_v63 = vcombine.high %v8977_v30, %v8981_v48  ;;  %v13941_v7 = vcombine.low %v8977_v30, %v8981_v48 }
 0xb06   :  { %12504 = vmatpush1.bf16.msra.mxu1 %v13901_v61  ;;  %v14070_v15 = vcombine.high %v9105_v54, %v9109_v26  ;;  %v8985_v17 = vld [vmem:[#allocation19 + $0x318] sm:$0xff]  ;;  %v14069_v51 = vcombine.low %v9105_v54, %v9109_v26 }
 0xb07   :  { %12545 = vmatpush1.bf16.msra.mxu0 %v14029_v40  ;;  %12505 = vmatprep.subr.bf16.mxu1 %v13910_v13  ;;  %v9117_v20 = vld [vmem:[#allocation19 + $0x738] sm:$0xff]  ;;  %v13950_v61 = vcombine.high %v8985_v17, %v8989_v16 }
 0xb08   :  { %12546 = vmatprep.subr.bf16.mxu0 %v14038_v47  ;;  %v14078_v31 = vcombine.high %v9113_v25, %v9117_v20  ;;  %v8993_v11 = vld [vmem:[#allocation19 + $0x358] sm:$0xff]  ;;  %v13949_v47 = vcombine.low %v8985_v17, %v8989_v16  ;;  %v14077_v49 = vcombine.low %v9113_v25, %v9117_v20 }
 0xb09   :  { %v8997_v40 = vld [vmem:[#allocation19 + $0x378] sm:$0xff] }
 0xb0a   :  { %12506 = vmatpush1.bf16.msra.mxu1 %v13909_v19  ;;  %v9121_v13 = vld [vmem:[#allocation19 + $0x758] sm:$0xff]  ;;  %v13958_v52 = vcombine.high %v8993_v11, %v8997_v40 }
 0xb0b   :  { %12547 = vmatpush1.bf16.msra.mxu0 %v14037_v6  ;;  %12507 = vmatprep.subr.bf16.mxu1 %v13918_v22  ;;  %v9125_v9 = vld [vmem:[#allocation19 + $0x778] sm:$0xff] }
 0xb0c   :  { %12548 = vmatprep.subr.bf16.mxu0 %v14046_v50  ;;  %v14086_v10 = vcombine.high %v9121_v13, %v9125_v9  ;;  %v9005_v19 = vld [vmem:[#allocation19 + $0x3b8] sm:$0xff]  ;;  %v13957_v50 = vcombine.low %v8993_v11, %v8997_v40  ;;  %v14085_v58 = vcombine.low %v9121_v13, %v9125_v9 }
 0xb0d   :  { %v9129_v6 = vld [vmem:[#allocation19 + $0x798] sm:$0xff]  ;;  %v13966_v42 = vcombine.high %v9001_v14, %v9005_v19 }
 0xb0e   :  { %12508 = vmatpush1.bf16.msra.mxu1 %v13917_v1  ;;  %v9133_v22 = vld [vmem:[#allocation19 + $0x7b8] sm:$0xff] }
 0xb0f   :  { %12549 = vmatpush1.bf16.msra.mxu0 %v14045_v60  ;;  %12509 = vmatprep.subr.bf16.mxu1 %v13926_v56  ;;  %v14094_v23 = vcombine.high %v9129_v6, %v9133_v22  ;;  %v9013_v1 = vld [vmem:[#allocation19 + $0x3f8] sm:$0xff]  ;;  %v14093_v4 = vcombine.low %v9129_v6, %v9133_v22 }
 0xb10   :  { %12550 = vmatprep.subr.bf16.mxu0 %v14054_v32  ;;  %v9137_v60 = vld [vmem:[#allocation19 + $0x7d8] sm:$0xff]  ;;  %v13965_v32 = vcombine.low %v9001_v14, %v9005_v19  ;;  %v13974_v53 = vcombine.high %v9009_v24, %v9013_v1 }
 0xb11   :  { %v9141_v56 = vld [vmem:[#allocation19 + $0x7f8] sm:$0xff] }
 0xb12   :  { %12510 = vmatpush1.bf16.msra.mxu1 %v13925_v33  ;;  %v14102_v38 = vcombine.high %v9137_v60, %v9141_v56  ;;  %v9145_v39 = vld [vmem:[#allocation19 + $0x818] sm:$0xff]  ;;  %v14101_v30 = vcombine.low %v9137_v60, %v9141_v56 }
 0xb13   :  { %12551 = vmatpush1.bf16.msra.mxu0 %v14053_v5  ;;  %12511 = vmatprep.subr.bf16.mxu1 %v13934_v45  ;;  %v9149_v33 = vld [vmem:[#allocation19 + $0x838] sm:$0xff] }
 0xb14   :  { %12552 = vmatprep.subr.bf16.mxu0 %v14062_v0  ;;  %v9273_v5 = vld [vmem:[#allocation19 + $0xc18] sm:$0xff]  ;;  %v13973_v0 = vcombine.low %v9009_v24, %v9013_v1  ;;  %v14110_v48 = vcombine.high %v9145_v39, %v9149_v33 }
 0xb15   :  { %v9277_v45 = vld [vmem:[#allocation19 + $0xc38] sm:$0xff] }
 0xb16   :  { %12512 = vmatpush1.bf16.msra.mxu1 %v13933_v57  ;;  %v14238_v54 = vcombine.high %v9273_v5, %v9277_v45  ;;  %v9153_v26 = vld [vmem:[#allocation19 + $0x858] sm:$0xff]  ;;  %v14237_v17 = vcombine.low %v9273_v5, %v9277_v45 }
 0xb17   :  { %12553 = vmatpush1.bf16.msra.mxu0 %v14061_v62  ;;  %12513 = vmatprep.subr.bf16.mxu1 %v13942_v63  ;;  %v9157_v57 = vld [vmem:[#allocation19 + $0x878] sm:$0xff]  ;;  %v14109_v62 = vcombine.low %v9145_v39, %v9149_v33 }
 0xb18   :  { %12554 = vmatprep.subr.bf16.mxu0 %v14070_v15  ;;  %v9281_v63 = vld [vmem:[#allocation19 + $0xc58] sm:$0xff]  ;;  %v14118_v16 = vcombine.high %v9153_v26, %v9157_v57 }
 0xb19   :  { %v9285_v15 = vld [vmem:[#allocation19 + $0xc78] sm:$0xff] }
 0xb1a   :  { %12514 = vmatpush1.bf16.msra.mxu1 %v13941_v7  ;;  %v9161_v25 = vld [vmem:[#allocation19 + $0x898] sm:$0xff]  ;;  %v14246_v7 = vcombine.high %v9281_v63, %v9285_v15  ;;  %v14245_v11 = vcombine.low %v9281_v63, %v9285_v15 }
 0xb1b   :  { %12555 = vmatpush1.bf16.msra.mxu0 %v14069_v51  ;;  %12515 = vmatprep.subr.bf16.mxu1 %v13950_v61  ;;  %v9165_v20 = vld [vmem:[#allocation19 + $0x8b8] sm:$0xff] }
 0xb1c   :  { %12556 = vmatprep.subr.bf16.mxu0 %v14078_v31  ;;  %v9289_v51 = vld [vmem:[#allocation19 + $0xc98] sm:$0xff]  ;;  %v14117_v31 = vcombine.low %v9153_v26, %v9157_v57  ;;  %v14126_v40 = vcombine.high %v9161_v25, %v9165_v20 }
 0xb1d   :  { %v9293_v61 = vld [vmem:[#allocation19 + $0xcb8] sm:$0xff] }
 0xb1e   :  { %12516 = vmatpush1.bf16.msra.mxu1 %v13949_v47  ;;  %v14254_v13 = vcombine.high %v9289_v51, %v9293_v61  ;;  %v9169_v9 = vld [vmem:[#allocation19 + $0x8d8] sm:$0xff] }
 0xb1f   :  { %12557 = vmatpush1.bf16.msra.mxu0 %v14077_v49  ;;  %12517 = vmatprep.subr.bf16.mxu1 %v13958_v52  ;;  %v9173_v47 = vld [vmem:[#allocation19 + $0x8f8] sm:$0xff]  ;;  %v14125_v52 = vcombine.low %v9161_v25, %v9165_v20 }
 0xb20   :  { %12558 = vmatprep.subr.bf16.mxu0 %v14086_v10  ;;  %v9301_v49 = vld [vmem:[#allocation19 + $0xcf8] sm:$0xff]  ;;  %v14134_v10 = vcombine.high %v9169_v9, %v9173_v47 }
 0xb21   :  { %v9177_v14 = vld [vmem:[#allocation19 + $0x918] sm:$0xff] }
 0xb22   :  { %12518 = vmatpush1.bf16.msra.mxu1 %v13957_v50  ;;  %v9181_v19 = vld [vmem:[#allocation19 + $0x938] sm:$0xff] }
 0xb23   :  { %12559 = vmatpush1.bf16.msra.mxu0 %v14085_v58  ;;  %12519 = vmatprep.subr.bf16.mxu1 %v13966_v42  ;;  %v9305_v6 = vld [vmem:[#allocation19 + $0xd18] sm:$0xff]  ;;  %v14142_v58 = vcombine.high %v9177_v14, %v9181_v19  ;;  %v14141_v56 = vcombine.low %v9177_v14, %v9181_v19 }
 0xb24   :  { %12560 = vmatprep.subr.bf16.mxu0 %v14094_v23  ;;  %v9309_v22 = vld [vmem:[#allocation19 + $0xd38] sm:$0xff] }
 0xb25   :  { %v14270_v42 = vcombine.high %v9305_v6, %v9309_v22  ;;  %v9185_v23 = vld [vmem:[#allocation19 + $0x958] sm:$0xff] }
 0xb26   :  { %12520 = vmatpush1.bf16.msra.mxu1 %v13965_v32  ;;  %v9189_v24 = vld [vmem:[#allocation19 + $0x978] sm:$0xff]  ;;  %v14269_v32 = vcombine.low %v9305_v6, %v9309_v22 }
 0xb27   :  { %12561 = vmatpush1.bf16.msra.mxu0 %v14093_v4  ;;  %12521 = vmatprep.subr.bf16.mxu1 %v13974_v53  ;;  %v9313_v1 = vld [vmem:[#allocation19 + $0xd58] sm:$0xff]  ;;  %v14150_v4 = vcombine.high %v9185_v23, %v9189_v24  ;;  %v14149_v45 = vcombine.low %v9185_v23, %v9189_v24 }
 0xb28   :  { %12562 = vmatprep.subr.bf16.mxu0 %v14102_v38  ;;  %v9317_v60 = vld [vmem:[#allocation19 + $0xd78] sm:$0xff] }
 0xb29   :  { %v14278_v53 = vcombine.high %v9313_v1, %v9317_v60  ;;  %v9193_v38 = vld [vmem:[#allocation19 + $0x998] sm:$0xff] }
 0xb2a   :  { %12522 = vmatpush1.bf16.msra.mxu1 %v13973_v0  ;;  %v9197_v39 = vld [vmem:[#allocation19 + $0x9b8] sm:$0xff]  ;;  %v14277_v0 = vcombine.low %v9313_v1, %v9317_v60 }
 0xb2b   :  { %12563 = vmatpush1.bf16.msra.mxu0 %v14101_v30  ;;  %12573 = vmatprep.subr.bf16.mxu1 %v14110_v48  ;;  %v9321_v33 = vld [vmem:[#allocation19 + $0xd98] sm:$0xff]  ;;  %v14158_v30 = vcombine.high %v9193_v38, %v9197_v39 }
 0xb2c   :  { %12614 = vmatprep.subr.bf16.mxu0 %v14238_v54  ;;  %v9325_v5 = vld [vmem:[#allocation19 + $0xdb8] sm:$0xff] }
 0xb2d   :  { %12524 = vmatmul.mubr.bf16.vlgmr.msra.gmra.mrb[60].mxu1 %v15844_v12  ;;  %v9297_v12 = vld [vmem:[#allocation19 + $0xcd8] sm:$0xff]  ;;  %v14286_v54 = vcombine.high %v9321_v33, %v9325_v5 }
 0xb2e   :  { %12565 = vmatmul.mubr.bf16.vlgmr.msra.gmra.mrb[64].mxu0 %v15846_v8  ;;  %12574 = vmatpush1.bf16.msra.mxu1 %v14109_v62  ;;  %v14253_v8 = vcombine.low %v9289_v51, %v9293_v61  ;;  %v14261_v50 = vcombine.low %v9297_v12, %v9301_v49  ;;  %v9201_v26 = vld [vmem:[#allocation19 + $0x9d8] sm:$0xff]  ;;  %v14157_v51 = vcombine.low %v9193_v38, %v9197_v39 }
 0xb2f   :  { %12605 = vmatprep.mubr.bf16.mxu1 %v15874_v46  ;;  %12615 = vmatpush1.bf16.msra.mxu0 %v14237_v17  ;;  %v14262_v46 = vcombine.high %v9297_v12, %v9301_v49  ;;  %v9205_v57 = vld [vmem:[#allocation19 + $0x9f8] sm:$0xff] }
 0xb30   :  { %12646 = vmatprep.mubr.bf16.mxu0 %v15878_v36  ;;  %12575 = vmatprep.subr.bf16.mxu1 %v14118_v16  ;;  %v14133_v36 = vcombine.low %v9169_v9, %v9173_v47  ;;  %v9329_v17 = vld [vmem:[#allocation19 + $0xdd8] sm:$0xff] }
 0xb31   :  { %12616 = vmatprep.subr.bf16.mxu0 %v14246_v7  ;;  %v9333_v16 = vld [vmem:[#allocation19 + $0xdf8] sm:$0xff] }
 0xb32   :  { %12576 = vmatpush1.bf16.msra.mxu1 %v14117_v31  ;;  %v9209_v12 = vld [vmem:[#allocation19 + $0xa18] sm:$0xff]  ;;  %v14293_v14 = vcombine.low %v9329_v17, %v9333_v16 }
 0xb33   :  { %12617 = vmatpush1.bf16.msra.mxu0 %v14245_v11  ;;  %12577 = vmatprep.subr.bf16.mxu1 %v14126_v40  ;;  %v14285_v40 = vcombine.low %v9321_v33, %v9325_v5  ;;  %v9213_v49 = vld [vmem:[#allocation19 + $0xa38] sm:$0xff] }
 0xb34   :  { %12618 = vmatprep.subr.bf16.mxu0 %v14254_v13  ;;  %v14166_v13 = vcombine.high %v9201_v26, %v9205_v57  ;;  %v14174_v19 = vcombine.high %v9209_v12, %v9213_v49  ;;  %v9217_v22 = vld [vmem:[#allocation19 + $0xa58] sm:$0xff] }
 0xb35   :  { %v9225_v24 = vld [vmem:[#allocation19 + $0xa98] sm:$0xff] }
 0xb36   :  { %12578 = vmatpush1.bf16.msra.mxu1 %v14125_v52  ;;  %v9229_v1 = vld [vmem:[#allocation19 + $0xab8] sm:$0xff] }
 0xb37   :  { %12619 = vmatpush1.bf16.msra.mxu0 %v14253_v8  ;;  %12579 = vmatprep.subr.bf16.mxu1 %v14134_v10  ;;  %v9341_v8 = vld [vmem:[#allocation19 + $0xe38] sm:$0xff] }
 0xb38   :  { %12620 = vmatprep.subr.bf16.mxu0 %v14262_v46  ;;  %v14165_v46 = vcombine.low %v9201_v26, %v9205_v57  ;;  %v9353_v60 = vld [vmem:[#allocation19 + $0xe98] sm:$0xff] }
 0xb39   :  { %v9233_v39 = vld [vmem:[#allocation19 + $0xad8] sm:$0xff] }
 0xb3a   :  { %12580 = vmatpush1.bf16.msra.mxu1 %v14133_v36  ;;  %v9221_v36 = vld [vmem:[#allocation19 + $0xa78] sm:$0xff] }
 0xb3b   :  { %12621 = vmatpush1.bf16.msra.mxu0 %v14261_v50  ;;  %12581 = vmatprep.subr.bf16.mxu1 %v14142_v58  ;;  %v9345_v50 = vld [vmem:[#allocation19 + $0xe58] sm:$0xff] }
 0xb3c   :  { %12622 = vmatprep.subr.bf16.mxu0 %v14270_v42  ;;  %v9349_v58 = vld [vmem:[#allocation19 + $0xe78] sm:$0xff] }
 0xb3d   :  { %v14310_v23 = vcombine.high %v9345_v50, %v9349_v58  ;;  %v9237_v33 = vld [vmem:[#allocation19 + $0xaf8] sm:$0xff] }
 0xb3e   :  { %12582 = vmatpush1.bf16.msra.mxu1 %v14141_v56  ;;  %v9357_v56 = vld [vmem:[#allocation19 + $0xeb8] sm:$0xff] }
 0xb3f   :  { %12623 = vmatpush1.bf16.msra.mxu0 %v14269_v32  ;;  %12583 = vmatprep.subr.bf16.mxu1 %v14150_v4  ;;  %v14181_v32 = vcombine.low %v9217_v22, %v9221_v36  ;;  %v14309_v4 = vcombine.low %v9345_v50, %v9349_v58  ;;  %v14318_v38 = vcombine.high %v9353_v60, %v9357_v56  ;;  %v9361_v5 = vld [vmem:[#allocation19 + $0xed8] sm:$0xff] }
 0xb40   :  { %v12279_v48 = vpop.f32.mrb[48].mxu1  ;;  %12624 = vmatprep.subr.bf16.mxu0 %v14278_v53  ;;  %v14190_v53 = vcombine.high %v9225_v24, %v9229_v1  ;;  %v9241_v26 = vld [vmem:[#allocation19 + $0xb18] sm:$0xff] }
 0xb41   :  { %v12280_v62 = vadd.f32 %v12279_v48, %v15926_v27  ;;  %v12320_v63 = vpop.f32.mrb[52].mxu0  ;;  %v12281_v15 = vpop.f32.mrb[49].mxu1  ;;  %v14294_v27 = vcombine.high %v9329_v17, %v9333_v16  ;;  %v14198_v48 = vcombine.high %v9233_v39, %v9237_v33  ;;  %v9245_v57 = vld [vmem:[#allocation19 + $0xb38] sm:$0xff] }
 0xb42   :  { %v12282_v25 = vadd.f32 %v12281_v15, %v15928_v29  ;;  %v12322_v20 = vpop.f32.mrb[53].mxu0  ;;  %v12283_v7 = vpop.f32.mrb[50].mxu1  ;;  %12584 = vmatpush1.bf16.msra.mxu1 %v14149_v45  ;;  %v9337_v29 = vld [vmem:[#allocation19 + $0xe18] sm:$0xff]  ;;  %v14197_v15 = vcombine.low %v9233_v39, %v9237_v33  ;;  %v14206_v16 = vcombine.high %v9241_v26, %v9245_v57 }
 0xb43   :  { %v12321_v61 = vadd.f32 %v12320_v63, %v12280_v62  ;;  %v12324_v31 = vpop.f32.mrb[54].mxu0  ;;  %12625 = vmatpush1.bf16.msra.mxu0 %v14277_v0  ;;  %v12284_v11 = vpop.f32.mrb[51].mxu1  ;;  %12585 = vmatprep.subr.bf16.mxu1 %v14158_v30  ;;  %v14302_v6 = vcombine.high %v9337_v29, %v9341_v8  ;;  %v14301_v42 = vcombine.low %v9337_v29, %v9341_v8  ;;  %v9365_v45 = vld [vmem:[#allocation19 + $0xef8] sm:$0xff] }
 0xb44   :  { %v12323_v9 = vadd.f32 %v12322_v20, %v12282_v25  ;;  %v12325_v47 = vpop.f32.mrb[55].mxu0  ;;  %12626 = vmatprep.subr.bf16.mxu0 %v14286_v54  ;;  %v14189_v0 = vcombine.low %v9225_v24, %v9229_v1  ;;  %v14317_v30 = vcombine.low %v9353_v60, %v9357_v56  ;;  %v14326_v54 = vcombine.high %v9361_v5, %v9365_v45  ;;  %v9369_v62 = vld [vmem:[#allocation19 + $0xf18] sm:$0xff] }
 0xb45   :  { %v12657_v52 = vadd.f32 %v15743_v2, %v12321_v61  ;;  %v14173_v2 = vcombine.low %v9209_v12, %v9213_v49  ;;  %v9373_v63 = vld [vmem:[#allocation19 + $0xf38] sm:$0xff]  ;;  %v14325_v17 = vcombine.low %v9361_v5, %v9365_v45  ;;  %v14205_v31 = vcombine.low %v9241_v26, %v9245_v57 }
 0xb46   :  { %v12658_v10 = vadd.f32 %v15723_v44, %v12323_v9  ;;  %12586 = vmatpush1.bf16.msra.mxu1 %v14157_v51  ;;  %v14182_v44 = vcombine.high %v9217_v22, %v9221_v36  ;;  %v14334_v25 = vcombine.high %v9369_v62, %v9373_v63  ;;  %v9249_v20 = vld [vmem:[#allocation19 + $0xb58] sm:$0xff]  ;;  %v14333_v11 = vcombine.low %v9369_v62, %v9373_v63 }
 0xb47   :  { %12665 = vst [vmem:[#allocation20 + $0x10] sm:$0xff] %v12657_v52  ;;  %12627 = vmatpush1.bf16.msra.mxu0 %v14285_v40  ;;  %12587 = vmatprep.subr.bf16.mxu1 %v14166_v13  ;;  %v9253_v7 = vld [vmem:[#allocation19 + $0xb78] sm:$0xff] }
 0xb48   :  { %12666 = vst [vmem:[#allocation20 + $0x18] sm:$0xff] %v12658_v10  ;;  %12628 = vmatprep.subr.bf16.mxu0 %v14294_v27  ;;  %v9377_v51 = vld [vmem:[#allocation19 + $0xf58] sm:$0xff]  ;;  %v14214_v40 = vcombine.high %v9249_v20, %v9253_v7  ;;  %v14213_v49 = vcombine.low %v9249_v20, %v9253_v7 }
 0xb49   :  { %v9381_v61 = vld [vmem:[#allocation19 + $0xf78] sm:$0xff] }
 0xb4a   :  { %12588 = vmatpush1.bf16.msra.mxu1 %v14165_v46  ;;  %v14342_v13 = vcombine.high %v9377_v51, %v9381_v61  ;;  %v9257_v9 = vld [vmem:[#allocation19 + $0xb98] sm:$0xff]  ;;  %v14341_v52 = vcombine.low %v9377_v51, %v9381_v61 }
 0xb4b   :  { %12629 = vmatpush1.bf16.msra.mxu0 %v14293_v14  ;;  %12589 = vmatprep.subr.bf16.mxu1 %v14174_v19  ;;  %v9261_v47 = vld [vmem:[#allocation19 + $0xbb8] sm:$0xff] }
 0xb4c   :  { %12630 = vmatprep.subr.bf16.mxu0 %v14302_v6  ;;  %v9385_v27 = vld [vmem:[#allocation19 + $0xf98] sm:$0xff]  ;;  %v14222_v29 = vcombine.high %v9257_v9, %v9261_v47  ;;  %v14221_v6 = vcombine.low %v9257_v9, %v9261_v47 }
 0xb4d   :  { %v9389_v12 = vld [vmem:[#allocation19 + $0xfb8] sm:$0xff] }
 0xb4e   :  { %12590 = vmatpush1.bf16.msra.mxu1 %v14173_v2  ;;  %v14350_v8 = vcombine.high %v9385_v27, %v9389_v12  ;;  %v9265_v10 = vld [vmem:[#allocation19 + $0xbd8] sm:$0xff]  ;;  %v14349_v22 = vcombine.low %v9385_v27, %v9389_v12 }
 0xb4f   :  { %12631 = vmatpush1.bf16.msra.mxu0 %v14301_v42  ;;  %12591 = vmatprep.subr.bf16.mxu1 %v14182_v44  ;;  %v9269_v46 = vld [vmem:[#allocation19 + $0xbf8] sm:$0xff]  ;;  %v9418_v42 = vrot.slane %v15920_v28, %v15751_v21  ;;  %v9422_v44 = vrot.slane %v15920_v28, %v15754_v34 }
 0xb50   :  { %12632 = vmatprep.subr.bf16.mxu0 %v14310_v23  ;;  %v9393_v14 = vld [vmem:[#allocation19 + $0xfd8] sm:$0xff]  ;;  %v14230_v36 = vcombine.high %v9265_v10, %v9269_v46  ;;  %v14229_v58 = vcombine.low %v9265_v10, %v9269_v46 }
 0xb51   :  { %v9397_v19 = vld [vmem:[#allocation19 + $0xff8] sm:$0xff] }
 0xb52   :  { %12592 = vmatpush1.bf16.msra.mxu1 %v14181_v32  ;;  %v14358_v50 = vcombine.high %v9393_v14, %v9397_v19  ;;  %v14357_v2 = vcombine.low %v9393_v14, %v9397_v19 }
 0xb53   :  { %12633 = vmatpush1.bf16.msra.mxu0 %v14309_v4  ;;  %12593 = vmatprep.subr.bf16.mxu1 %v14190_v53 }
 0xb54   :  { %12634 = vmatprep.subr.bf16.mxu0 %v14318_v38 }
 0xb56   :  { %12594 = vmatpush1.bf16.msra.mxu1 %v14189_v0 }
 0xb57   :  { %12635 = vmatpush1.bf16.msra.mxu0 %v14317_v30  ;;  %12595 = vmatprep.subr.bf16.mxu1 %v14198_v48 }
 0xb58   :  { %12636 = vmatprep.subr.bf16.mxu0 %v14326_v54 }
 0xb5a   :  { %12596 = vmatpush1.bf16.msra.mxu1 %v14197_v15 }
 0xb5b   :  { %12637 = vmatpush1.bf16.msra.mxu0 %v14325_v17  ;;  %12597 = vmatprep.subr.bf16.mxu1 %v14206_v16  ;;  %v9426_v17 = vrot.slane %v15920_v28, %v15789_v43  ;;  %v9430_v16 = vrot.slane %v15920_v28, %v15757_v41 }
 0xb5c   :  { %12638 = vmatprep.subr.bf16.mxu0 %v14334_v25 }
 0xb5e   :  { %12598 = vmatpush1.bf16.msra.mxu1 %v14205_v31 }
 0xb5f   :  { %12639 = vmatpush1.bf16.msra.mxu0 %v14333_v11  ;;  %12599 = vmatprep.subr.bf16.mxu1 %v14214_v40 }
 0xb60   :  { %12640 = vmatprep.subr.bf16.mxu0 %v14342_v13 }
 0xb62   :  { %12600 = vmatpush1.bf16.msra.mxu1 %v14213_v49 }
 0xb63   :  { %12641 = vmatpush1.bf16.msra.mxu0 %v14341_v52  ;;  %12601 = vmatprep.subr.bf16.mxu1 %v14222_v29 }
 0xb64   :  { %12642 = vmatprep.subr.bf16.mxu0 %v14350_v8 }
 0xb66   :  { %12602 = vmatpush1.bf16.msra.mxu1 %v14221_v6 }
 0xb67   :  { %12643 = vmatpush1.bf16.msra.mxu0 %v14349_v22  ;;  %12603 = vmatprep.subr.bf16.mxu1 %v14230_v36 }
 0xb68   :  { %12644 = vmatprep.subr.bf16.mxu0 %v14358_v50 }
 0xb6a   :  { %12604 = vmatpush1.bf16.msra.mxu1 %v14229_v58 }
 0xb6b   :  { %12645 = vmatpush1.bf16.msra.mxu0 %v14357_v2 }
 0xb6d   :  { %12606 = vmatmul.mubr.bf16.vlgmr.msra.gmra.mrb[64].mxu1 %v15876_v35 }
 0xb6e   :  { %12647 = vmatmul.mubr.bf16.vlgmr.msra.gmra.mrb[68].mxu0 %v15880_v37 }
 0xb80   :  { %v12361_v23 = vpop.f32.mrb[52].mxu1 }
 0xb81   :  { %v12362_v24 = vadd.f32 %v12361_v23, %v9418_v42  ;;  %v12402_v1 = vpop.f32.mrb[56].mxu0  ;;  %v12363_v60 = vpop.f32.mrb[53].mxu1 }
 0xb82   :  { %v12364_v56 = vadd.f32 %v12363_v60, %v9422_v44  ;;  %v12404_v32 = vpop.f32.mrb[57].mxu0  ;;  %v12365_v4 = vpop.f32.mrb[54].mxu1 }
 0xb83   :  { %v12403_v53 = vadd.f32 %v12402_v1, %v12362_v24  ;;  %v12406_v38 = vpop.f32.mrb[58].mxu0  ;;  %v12366_v39 = vpop.f32.mrb[55].mxu1 }
 0xb84   :  { %v12405_v33 = vadd.f32 %v12404_v32, %v12364_v56  ;;  %v12407_v35 = vpop.f32.mrb[59].mxu0 }
 0xbc0   :  { %v12443_v5 = vpop.f32.mrb[56].mxu1 }
 0xbc1   :  { %v12444_v37 = vadd.f32 %v12443_v5, %v12403_v53  ;;  %v12484_v45 = vpop.f32.mrb[60].mxu0  ;;  %v12445_v0 = vpop.f32.mrb[57].mxu1 }
 0xbc2   :  { %v12446_v21 = vadd.f32 %v12445_v0, %v12405_v33  ;;  %v12486_v30 = vpop.f32.mrb[61].mxu0  ;;  %v12447_v48 = vpop.f32.mrb[58].mxu1 }
 0xbc3   :  { %v12485_v34 = vadd.f32 %v12484_v45, %v12444_v37  ;;  %v12488_v54 = vpop.f32.mrb[62].mxu0  ;;  %v12448_v26 = vpop.f32.mrb[59].mxu1 }
 0xbc4   :  { %v12487_v57 = vadd.f32 %v12486_v30, %v12446_v21  ;;  %v12489_v62 = vpop.f32.mrb[63].mxu0 }
 0xbc5   :  { %v12659_v63 = vadd.f32 %v15765_v55, %v12485_v34 }
 0xbc6   :  { %v12660_v15 = vadd.f32 %v15769_v59, %v12487_v57 }
 0xbc7   :  { %12667 = vst [vmem:[#allocation20 + $0x20] sm:$0xff] %v12659_v63 }
 0xbc8   :  { %12668 = vst [vmem:[#allocation20 + $0x28] sm:$0xff] %v12660_v15 }
 0xc00   :  { %v12525_v25 = vpop.f32.mrb[60].mxu1 }
 0xc01   :  { %v12526_v20 = vadd.f32 %v12525_v25, %v9426_v17  ;;  %v12566_v7 = vpop.f32.mrb[64].mxu0  ;;  %v12527_v51 = vpop.f32.mrb[61].mxu1 }
 0xc02   :  { %v12528_v61 = vadd.f32 %v12527_v51, %v9430_v16  ;;  %v12568_v31 = vpop.f32.mrb[65].mxu0  ;;  %v12529_v11 = vpop.f32.mrb[62].mxu1 }
 0xc03   :  { %v12567_v40 = vadd.f32 %v12566_v7, %v12526_v20  ;;  %v12570_v13 = vpop.f32.mrb[66].mxu0  ;;  %v12530_v55 = vpop.f32.mrb[63].mxu1 }
 0xc04   :  { %v12569_v9 = vadd.f32 %v12568_v31, %v12528_v61  ;;  %v12571_v59 = vpop.f32.mrb[67].mxu0 }
 0xc40   :  { %v12607_v47 = vpop.f32.mrb[64].mxu1 }
 0xc41   :  { %v12608_v27 = vadd.f32 %v12607_v47, %v12567_v40  ;;  %v12648_v12 = vpop.f32.mrb[68].mxu0  ;;  %v12609_v49 = vpop.f32.mrb[65].mxu1 }
 0xc42   :  { %v12610_v43 = vadd.f32 %v12609_v49, %v12569_v9  ;;  %v12650_v52 = vpop.f32.mrb[69].mxu0  ;;  %v12611_v29 = vpop.f32.mrb[66].mxu1 }
 0xc43   :  { %v12649_v41 = vadd.f32 %v12648_v12, %v12608_v27  ;;  %v12652_v28 = vpop.f32.mrb[70].mxu0  ;;  %v12612_v8 = vpop.f32.mrb[67].mxu1 }
 0xc44   :  { %v12651_v10 = vadd.f32 %v12650_v52, %v12610_v43  ;;  %v12653_v46 = vpop.f32.mrb[71].mxu0 }
 0xc45   :  { %v12661_v14 = vadd.f32 %v15793_v18, %v12649_v41 }
 0xc46   :  { %v12662_v19 = vadd.f32 %v15772_v3, %v12651_v10 }
 0xc47   :  { %12669 = vst [vmem:[#allocation20 + $0x30] sm:$0xff] %v12661_v14 }
 0xc48   :  { %12670 = vst [vmem:[#allocation20 + $0x38] sm:$0xff] %v12662_v19 }
 0xc49   :  { %15303 = shalt.err (!%p15300_p8)
}
 0xc4a   :  { %s15304_s4 = scalar_lea.hbm %s15975_s11, 1024 }
 0xc4b   :  { %p15305_p9 = scmp.ne.s32.totalorder %s15975_s11, %s15304_s4  ;;  %p15308_p10 = scmp.lt.u32.totalorder %s15304_s4, %s15975_s11 }
 0xc4d   :  { %p15310_p11 = pnand %p15308_p10, %p15305_p9 }
 0xc4f   :  { %15313 = shalt.err (!%p15310_p11)
}
 0xc50   :  { %12680 = dma.vmem_to_hbm [thread:$0]  %s12678_s19, 1024, %s15975_s11, [#allocation4]  }
 0xc51   :  { %15326 = dma.done.wait [#allocation4], 1024  }
 0xc52   :  { %15327 = vsyncadd [#allocation4], 4294966272 }
 0xc53   :  { %12684 = vsyncpa [#allocation3], 1 }
 0xc54   :  { %12685 = vsyncpa [#allocation6], 1 }
 0xc55   :  { %12686 = vsyncpa [#allocation9], 1 }
 0xc56   :  { %12687 = vsyncpa [#allocation12], 1 }
 0xc57   :  { %12688 = vsyncpa [#allocation15], 1 }
 0xc58   :  { %12689 = vsyncpa [#allocation18], 1 }
 0xc59   :  { %12690 = vsyncpa [#allocation4], 1 }

</bundles_post_ra>
